<compile_context>
chip_gen: v5e
topology: v5e:2x2
jax: 0.10.0
libtpu: 0.0.40
codegen_flags: <defaults>
</compile_context>

<pallas_src>
import functools

import jax
import jax.numpy as jnp
from jax.experimental import pallas as pl
from jax.experimental.pallas import tpu as pltpu

EPS = 1e-5


# ---------------------------------------------------------------------------
# Fused Bottleneck kernel (one batch element per grid step)
# ---------------------------------------------------------------------------
def _fused_bottleneck_kernel(x_ref, w1_ref, b1_ref, w2_ref, b2_ref,
                             w3_ref, b3_ref, o_ref, p1_ref, *, W, pad):
    """All intermediates stay in VMEM; weights carry the folded BN scale.

    p1_ref layout: (2*pad + HW, 3*planes) bf16.  Channel group g in {0,1,2}
    holds y1 shifted by dx = g-1 columns (column wrap masked to zero at store
    time), so p1_ref[pad + dy*W : pad + dy*W + HW, :] is the dx-stacked
    im2col slab for row offset dy and the 3x3 conv is three K=3*planes dots.
    """
    HW = x_ref.shape[1]
    planes = w1_ref.shape[1]

    x = x_ref[0]                                                   # (HW, Cin) bf16

    # ---- stage 1: 1x1 conv (BN scale pre-folded into w1) + bias + ReLU -----
    y1 = jnp.dot(x, w1_ref[...], preferred_element_type=jnp.float32)
    y1 = jnp.maximum(y1 + b1_ref[...], 0.0)                        # (HW, planes) f32
    y1_bf = y1.astype(jnp.bfloat16)

    # Column-wrap masks, computed once per step (hoisted out of any tap loop).
    col = jax.lax.broadcasted_iota(jnp.int32, (HW, 1), 0) % W
    not_last = (col != W - 1).astype(jnp.bfloat16)    # kills y1's last image column
    not_first = (col != 0).astype(jnp.bfloat16)       # kills y1's first image column

    # Zero the vertical halos (and the two rows the shifted groups never write).
    # Done every grid step so it stays correct under megacore sharding.
    halo = jnp.zeros((pad + 8, 3 * planes), jnp.bfloat16)
    p1_ref[pl.ds(0, pad + 8), :] = halo
    p1_ref[pl.ds(pad + HW - 8, pad + 8), :] = halo

    # dx-stacked copies of y1 (one bf16 store per dx; wrap masked at store time).
    p1_ref[pl.ds(pad + 1, HW), pl.ds(0, planes)] = y1_bf * not_last            # dx=-1
    p1_ref[pl.ds(pad, HW), pl.ds(planes, planes)] = y1_bf                      # dx= 0
    p1_ref[pl.ds(pad - 1, HW), pl.ds(2 * planes, planes)] = y1_bf * not_first  # dx=+1

    # ---- stage 2: 3x3 conv = three K=3*planes MXU matmuls (one per dy) ------
    acc = jnp.dot(p1_ref[pl.ds(pad - W, HW), :], w2_ref[0],
                  preferred_element_type=jnp.float32)
    acc = acc + jnp.dot(p1_ref[pl.ds(pad, HW), :], w2_ref[1],
                        preferred_element_type=jnp.float32)
    acc = acc + jnp.dot(p1_ref[pl.ds(pad + W, HW), :], w2_ref[2],
                        preferred_element_type=jnp.float32)
    y2 = jnp.maximum(acc + b2_ref[...], 0.0)                       # (HW, planes) f32

    # ---- stage 3: 1x1 conv + bias + residual + ReLU (lane-dense bf16 store) -
    y3 = jnp.dot(y2.astype(jnp.bfloat16), w3_ref[...],
                 preferred_element_type=jnp.float32)
    out = jnp.maximum(y3 + b3_ref[...] + x.astype(jnp.float32), 0.0)
    o_ref[0] = out.astype(jnp.bfloat16)


# ---------------------------------------------------------------------------
# pallas_call builder + wrapper
# ---------------------------------------------------------------------------
def _build_call(N, H, W, Cin, planes, Cout, pad, single_buffer_weights):
    HW = H * W
    kernel = functools.partial(_fused_bottleneck_kernel, W=W, pad=pad)

    def wspec(shape):
        idx = lambda n: (0,) * len(shape)
        if single_buffer_weights:
            # Constant-index blocks are DMA'd once; one VMEM buffer suffices
            # (frees double-buffer headroom on v7x's 64 MiB VMEM).
            return pl.BlockSpec(shape, idx, pipeline_mode=pl.Buffered(1))
        return pl.BlockSpec(shape, idx)

    return pl.pallas_call(
        kernel,
        out_shape=jax.ShapeDtypeStruct((N, HW, Cout), jnp.bfloat16),
        grid=(N,),
        in_specs=[
            pl.BlockSpec((1, HW, Cin), lambda n: (n, 0, 0)),   # activations (bf16)
            wspec((Cin, planes)),                              # w1 (bf16)
            wspec((1, planes)),                                # b1 (f32)
            wspec((3, 3 * planes, planes)),                    # w2 dy-stacked (bf16)
            wspec((1, planes)),                                # b2 (f32)
            wspec((planes, Cout)),                             # w3 (bf16)
            wspec((1, Cout)),                                  # b3 (f32)
        ],
        out_specs=pl.BlockSpec((1, HW, Cout), lambda n: (n, 0, 0)),
        scratch_shapes=[pltpu.VMEM((2 * pad + HW, 3 * planes), jnp.bfloat16)],
        compiler_params=pltpu.CompilerParams(
            dimension_semantics=("parallel",),
            # ~1.5 MiB used per step here; raise toward ~100 MiB on v6e once
            # the row-tiled real-shape version (see TODO above) lands.
            vmem_limit_bytes=32 * 1024 * 1024,
        ),
    )


def bottleneck_forward_nhwc(x_nhwc, params):
    """Fused ResNet Bottleneck (stride=1, identity shortcut). NHWC in / out."""
    N, H, W, Cin = x_nhwc.shape
    planes = params["w1"].shape[1]
    Cout = params["w3"].shape[1]
    assert Cin == Cout, "identity shortcut requires inplanes == 4 * planes"
    HW = H * W
    assert HW >= 8
    pad = max(8, ((W + 7) // 8) * 8)          # vertical halo: >= W rows, 8-aligned

    x_flat = x_nhwc.astype(jnp.bfloat16).reshape(N, HW, Cin)      # free reshape
    args = (x_flat, params["w1"], params["b1"], params["w2"], params["b2"],
            params["w3"], params["b3"])
    try:
        out = _build_call(N, H, W, Cin, planes, Cout, pad, True)(*args)
    except Exception:
        # pipeline_mode=pl.Buffered(1) unsupported in this JAX build: fall back
        # to default (double-buffered) weight specs; everything else unchanged.
        out = _build_call(N, H, W, Cin, planes, Cout, pad, False)(*args)
    return out.reshape(N, H, W, Cout)


# ---------------------------------------------------------------------------
# Parameter preparation: fold eval-mode BN into weights, cast weights to bf16
# ---------------------------------------------------------------------------
def _fold_bn(gamma, beta, mean, var):
    scale = gamma / jnp.sqrt(var + EPS)
    return scale, beta - mean * scale


def prepare_bottleneck_params(w1_oihw, bn1, w2_oihw, bn2, w3_oihw, bn3):
    s1, b1 = _fold_bn(*bn1)
    s2, b2 = _fold_bn(*bn2)
    s3, b3 = _fold_bn(*bn3)
    planes = w2_oihw.shape[0]
    w1 = jnp.transpose(w1_oihw[:, :, 0, 0], (1, 0)) * s1[None, :]        # (Cin, planes)
    # (O, I, kh, kw) -> (kh, kw, I, O) -> (kh, kw*I, O): per-dy K-stacked, kw-major,
    # matching the dx channel-group order of the kernel's scratch.
    w2 = (jnp.transpose(w2_oihw, (2, 3, 1, 0)).reshape(3, 3 * planes, planes)
          * s2[None, None, :])
    w3 = jnp.transpose(w3_oihw[:, :, 0, 0], (1, 0)) * s3[None, :]        # (planes, 4p)
    as_bias = lambda b: b.reshape(1, -1).astype(jnp.float32)
    return {
        "w1": w1.astype(jnp.bfloat16), "b1": as_bias(b1),
        "w2": w2.astype(jnp.bfloat16), "b2": as_bias(b2),
        "w3": w3.astype(jnp.bfloat16), "b3": as_bias(b3),
    }


# ---------------------------------------------------------------------------
# Pure-JAX f32 reference (NCHW, eval-mode BN, unfolded) for correctness check
# ---------------------------------------------------------------------------
def _ref_bottleneck_nchw(x, w1_oihw, bn1, w2_oihw, bn2, w3_oihw, bn3):
    def conv(x, w, pad):
        return jax.lax.conv_general_dilated(
            x, w, (1, 1), [(pad, pad), (pad, pad)],
            dimension_numbers=("NCHW", "OIHW", "NCHW"),
            precision=jax.lax.Precision.HIGHEST)

    def bn(x, p):
        g, b, m, v = p
        r = lambda a: a[None, :, None, None]
        return (x - r(m)) / jnp.sqrt(r(v) + EPS) * r(g) + r(b)

    out = jnp.maximum(bn(conv(x, w1_oihw, 0), bn1), 0.0)
    out = jnp.maximum(bn(conv(out, w2_oihw, 1), bn2), 0.0)
    out = bn(conv(out, w3_oihw, 0), bn3) + x
    return jnp.maximum(out, 0.0)


# ---------------------------------------------------------------------------
if __name__ == "__main__":
    # A layer1-style Bottleneck of the Encoder backbone:
    # inplanes = 256, planes = 64, stride = 1, identity shortcut.
    inplanes, planes = 256, 64
    N, H, W = 2, 16, 16

    key = jax.random.PRNGKey(0)
    ks = jax.random.split(key, 8)

    wstd = 0.05
    w1_oihw = wstd * jax.random.normal(ks[0], (planes, inplanes, 1, 1), jnp.float32)
    w2_oihw = wstd * jax.random.normal(ks[1], (planes, planes, 3, 3), jnp.float32)
    w3_oihw = wstd * jax.random.normal(ks[2], (4 * planes, planes, 1, 1), jnp.float32)

    def bn_params(k, c):
        k1, k2, k3, k4 = jax.random.split(k, 4)
        gamma = 1.0 + 0.1 * jax.random.normal(k1, (c,), jnp.float32)
        beta = 0.3 * jax.random.normal(k2, (c,), jnp.float32)
        mean = 0.3 * jax.random.normal(k3, (c,), jnp.float32)
        var = 0.5 + 0.5 * jnp.abs(jax.random.normal(k4, (c,), jnp.float32))
        return (gamma, beta, mean, var)

    bn1 = bn_params(ks[3], planes)
    bn2 = bn_params(ks[4], planes)
    bn3 = bn_params(ks[5], 4 * planes)

    params = prepare_bottleneck_params(w1_oihw, bn1, w2_oihw, bn2, w3_oihw, bn3)

    x_nchw = jax.random.normal(ks[6], (N, inplanes, H, W), jnp.float32)
    # The Pallas path is channels-last (and bf16) end to end; transpose only at
    # the boundary so we can compare against the NCHW (PyTorch-layout) reference.
    x_nhwc = jnp.transpose(x_nchw, (0, 2, 3, 1))

    out_nhwc = jax.block_until_ready(bottleneck_forward_nhwc(x_nhwc, params))
    out_nchw = jnp.transpose(out_nhwc.astype(jnp.float32), (0, 3, 1, 2))

    ref = jax.block_until_ready(
        _ref_bottleneck_nchw(x_nchw, w1_oihw, bn1, w2_oihw, bn2, w3_oihw, bn3))

    assert out_nchw.shape == (N, 4 * planes, H, W), out_nchw.shape
    max_err = float(jnp.max(jnp.abs(out_nchw - ref)))
    # bf16 activations (in/out/scratch) and bf16 matmuls with f32 accumulation
    # versus an f32 reference.
    assert jnp.allclose(out_nchw, ref, rtol=5e-2, atol=5e-2), max_err
    print("KERNEL_OK")
</pallas_src>

<mosaic_0001>
module attributes {stable_mosaic.version = 11 : i64} {
  func.func @_fused_bottleneck_kernel(%arg0: i32, %arg1: memref<1x256x256xbf16, #tpu.memory_space<vmem>>, %arg2: memref<256x64xbf16, #tpu.memory_space<vmem>>, %arg3: memref<1x64xf32, #tpu.memory_space<vmem>>, %arg4: memref<3x192x64xbf16, #tpu.memory_space<vmem>>, %arg5: memref<1x64xf32, #tpu.memory_space<vmem>>, %arg6: memref<64x256xbf16, #tpu.memory_space<vmem>>, %arg7: memref<1x256xf32, #tpu.memory_space<vmem>>, %arg8: memref<1x256x256xbf16, #tpu.memory_space<vmem>>, %arg9: memref<288x192xbf16, #tpu.memory_space<vmem>>) attributes {dimension_semantics = [#tpu.dimension_semantics<parallel>], iteration_bounds = array<i64: 2>, scalar_prefetch = 0 : i64, scratch_operands = 1 : i64, tpu.core_type = #tpu.core_type<tc>, window_params = [{transform_indices = @transform_0, window_bounds = array<i64: 1, 256, 256>}, {pipeline_mode = #tpu.pipeline_mode<synchronous>, transform_indices = @transform_1, window_bounds = array<i64: 256, 64>}, {pipeline_mode = #tpu.pipeline_mode<synchronous>, transform_indices = @transform_2, window_bounds = array<i64: 1, 64>}, {pipeline_mode = #tpu.pipeline_mode<synchronous>, transform_indices = @transform_3, window_bounds = array<i64: 3, 192, 64>}, {pipeline_mode = #tpu.pipeline_mode<synchronous>, transform_indices = @transform_4, window_bounds = array<i64: 1, 64>}, {pipeline_mode = #tpu.pipeline_mode<synchronous>, transform_indices = @transform_5, window_bounds = array<i64: 64, 256>}, {pipeline_mode = #tpu.pipeline_mode<synchronous>, transform_indices = @transform_6, window_bounds = array<i64: 1, 256>}, {transform_indices = @transform_7, window_bounds = array<i64: 1, 256, 256>}]} {
    %c0 = arith.constant 0 : index
    %c0_0 = arith.constant 0 : index
    %c0_1 = arith.constant 0 : index
    %0 = vector.load %arg1[%c0, %c0_0, %c0_1] : memref<1x256x256xbf16, #tpu.memory_space<vmem>>, vector<1x256x256xbf16>
    %1 = vector.shape_cast %0 : vector<1x256x256xbf16> to vector<256x256xbf16>
    %c0_2 = arith.constant 0 : index
    %c0_3 = arith.constant 0 : index
    %2 = vector.load %arg2[%c0_2, %c0_3] : memref<256x64xbf16, #tpu.memory_space<vmem>>, vector<256x64xbf16>
    %cst = arith.constant dense<0.000000e+00> : vector<256x64xf32>
    %3 = tpu.matmul %1, %2, %cst {dimension_numbers = #tpu.dot_dimension_numbers<[1], [0], [0], [1], [0, 0, 1, 1], [], []>} : vector<256x256xbf16>, vector<256x64xbf16>, vector<256x64xf32> -> vector<256x64xf32>
    %c0_4 = arith.constant 0 : index
    %c0_5 = arith.constant 0 : index
    %4 = vector.load %arg3[%c0_4, %c0_5] : memref<1x64xf32, #tpu.memory_space<vmem>>, vector<1x64xf32>
    %5 = vector.broadcast %4 : vector<1x64xf32> to vector<256x64xf32>
    %6 = arith.addf %3, %5 : vector<256x64xf32>
    %cst_6 = arith.constant 0.000000e+00 : f32
    %7 = vector.broadcast %cst_6 : f32 to vector<256x64xf32>
    %8 = arith.maximumf %6, %7 : vector<256x64xf32>
    %9 = arith.truncf %8 : vector<256x64xf32> to vector<256x64xbf16>
    %10 = tpu.iota {dimensions = array<i32: 0>} : vector<256x1xi32>
    %c16_i32 = arith.constant 16 : i32
    %c0_i32 = arith.constant 0 : i32
    %11 = arith.cmpi eq, %c16_i32, %c0_i32 : i32
    %c1_i32 = arith.constant 1 : i32
    %12 = arith.select %11, %c1_i32, %c16_i32 : i32
    %13 = vector.broadcast %12 : i32 to vector<256x1xi32>
    %14 = arith.remsi %10, %13 : vector<256x1xi32>
    %c0_i32_7 = arith.constant 0 : i32
    %15 = vector.broadcast %c0_i32_7 : i32 to vector<256x1xi32>
    %16 = arith.cmpi ne, %14, %15 : vector<256x1xi32>
    %c0_i32_8 = arith.constant 0 : i32
    %17 = vector.broadcast %c0_i32_8 : i32 to vector<256x1xi32>
    %18 = arith.cmpi slt, %14, %17 : vector<256x1xi32>
    %c0_i32_9 = arith.constant 0 : i32
    %19 = arith.cmpi slt, %12, %c0_i32_9 : i32
    %20 = vector.broadcast %19 : i1 to vector<256x1xi1>
    %21 = vector.broadcast %20 : vector<256x1xi1> to vector<256x1xi1>
    %22 = arith.xori %18, %21 : vector<256x1xi1>
    %23 = arith.andi %22, %16 : vector<256x1xi1>
    %24 = vector.broadcast %12 : i32 to vector<256x1xi32>
    %25 = arith.addi %14, %24 : vector<256x1xi32>
    %26 = arith.select %23, %25, %14 : vector<256x1xi1>, vector<256x1xi32>
    %c15_i32 = arith.constant 15 : i32
    %27 = vector.broadcast %c15_i32 : i32 to vector<256x1xi32>
    %28 = arith.cmpi ne, %26, %27 : vector<256x1xi32>
    %29 = arith.extui %28 : vector<256x1xi1> to vector<256x1xi32>
    %30 = arith.sitofp %29 : vector<256x1xi32> to vector<256x1xf32>
    %31 = arith.truncf %30 : vector<256x1xf32> to vector<256x1xbf16>
    %c0_i32_10 = arith.constant 0 : i32
    %32 = vector.broadcast %c0_i32_10 : i32 to vector<256x1xi32>
    %33 = arith.cmpi ne, %26, %32 : vector<256x1xi32>
    %34 = arith.extui %33 : vector<256x1xi1> to vector<256x1xi32>
    %35 = arith.sitofp %34 : vector<256x1xi32> to vector<256x1xf32>
    %36 = arith.truncf %35 : vector<256x1xf32> to vector<256x1xbf16>
    %cst_11 = arith.constant 0.000000e+00 : bf16
    %37 = vector.broadcast %cst_11 : bf16 to vector<24x192xbf16>
    %c0_12 = arith.constant 0 : index
    %c0_13 = arith.constant 0 : index
    %38 = vector.load %arg9[%c0_12, %c0_13] : memref<288x192xbf16, #tpu.memory_space<vmem>>, vector<24x192xbf16>
    tpu.vector_store %arg9[%c0_12, %c0_13], %37 {strides = array<i32>} : memref<288x192xbf16, #tpu.memory_space<vmem>>, vector<24x192xbf16>,
    %c264 = arith.constant 264 : index
    %c0_14 = arith.constant 0 : index
    %39 = vector.load %arg9[%c264, %c0_14] : memref<288x192xbf16, #tpu.memory_space<vmem>>, vector<24x192xbf16>
    tpu.vector_store %arg9[%c264, %c0_14], %37 {strides = array<i32>} : memref<288x192xbf16, #tpu.memory_space<vmem>>, vector<24x192xbf16>,
    %40 = vector.broadcast %31 : vector<256x1xbf16> to vector<256x64xbf16>
    %41 = arith.mulf %9, %40 : vector<256x64xbf16>
    %c17 = arith.constant 17 : index
    %c0_15 = arith.constant 0 : index
    %42 = vector.load %arg9[%c17, %c0_15] : memref<288x192xbf16, #tpu.memory_space<vmem>>, vector<256x64xbf16>
    tpu.vector_store %arg9[%c17, %c0_15], %41 {strides = array<i32>} : memref<288x192xbf16, #tpu.memory_space<vmem>>, vector<256x64xbf16>,
    %c16 = arith.constant 16 : index
    %c64 = arith.constant 64 : index
    %43 = vector.load %arg9[%c16, %c64] : memref<288x192xbf16, #tpu.memory_space<vmem>>, vector<256x64xbf16>
    tpu.vector_store %arg9[%c16, %c64], %9 {strides = array<i32>} : memref<288x192xbf16, #tpu.memory_space<vmem>>, vector<256x64xbf16>,
    %44 = vector.broadcast %36 : vector<256x1xbf16> to vector<256x64xbf16>
    %45 = arith.mulf %9, %44 : vector<256x64xbf16>
    %c15 = arith.constant 15 : index
    %c128 = arith.constant 128 : index
    %46 = vector.load %arg9[%c15, %c128] : memref<288x192xbf16, #tpu.memory_space<vmem>>, vector<256x64xbf16>
    tpu.vector_store %arg9[%c15, %c128], %45 {strides = array<i32>} : memref<288x192xbf16, #tpu.memory_space<vmem>>, vector<256x64xbf16>,
    %c0_16 = arith.constant 0 : index
    %c0_17 = arith.constant 0 : index
    %47 = vector.load %arg9[%c0_16, %c0_17] : memref<288x192xbf16, #tpu.memory_space<vmem>>, vector<256x192xbf16>
    %c0_18 = arith.constant 0 : index
    %c0_19 = arith.constant 0 : index
    %c0_20 = arith.constant 0 : index
    %48 = vector.load %arg4[%c0_18, %c0_19, %c0_20] : memref<3x192x64xbf16, #tpu.memory_space<vmem>>, vector<1x192x64xbf16>
    %49 = vector.shape_cast %48 : vector<1x192x64xbf16> to vector<192x64xbf16>
    %cst_21 = arith.constant dense<0.000000e+00> : vector<256x64xf32>
    %50 = tpu.matmul %47, %49, %cst_21 {dimension_numbers = #tpu.dot_dimension_numbers<[1], [0], [0], [1], [0, 0, 1, 1], [], []>} : vector<256x192xbf16>, vector<192x64xbf16>, vector<256x64xf32> -> vector<256x64xf32>
    %c16_22 = arith.constant 16 : index
    %c0_23 = arith.constant 0 : index
    %51 = vector.load %arg9[%c16_22, %c0_23] : memref<288x192xbf16, #tpu.memory_space<vmem>>, vector<256x192xbf16>
    %c1 = arith.constant 1 : index
    %c0_24 = arith.constant 0 : index
    %c0_25 = arith.constant 0 : index
    %52 = vector.load %arg4[%c1, %c0_24, %c0_25] : memref<3x192x64xbf16, #tpu.memory_space<vmem>>, vector<1x192x64xbf16>
    %53 = vector.shape_cast %52 : vector<1x192x64xbf16> to vector<192x64xbf16>
    %cst_26 = arith.constant dense<0.000000e+00> : vector<256x64xf32>
    %54 = tpu.matmul %51, %53, %cst_26 {dimension_numbers = #tpu.dot_dimension_numbers<[1], [0], [0], [1], [0, 0, 1, 1], [], []>} : vector<256x192xbf16>, vector<192x64xbf16>, vector<256x64xf32> -> vector<256x64xf32>
    %55 = arith.addf %50, %54 : vector<256x64xf32>
    %c32 = arith.constant 32 : index
    %c0_27 = arith.constant 0 : index
    %56 = vector.load %arg9[%c32, %c0_27] : memref<288x192xbf16, #tpu.memory_space<vmem>>, vector<256x192xbf16>
    %c2 = arith.constant 2 : index
    %c0_28 = arith.constant 0 : index
    %c0_29 = arith.constant 0 : index
    %57 = vector.load %arg4[%c2, %c0_28, %c0_29] : memref<3x192x64xbf16, #tpu.memory_space<vmem>>, vector<1x192x64xbf16>
    %58 = vector.shape_cast %57 : vector<1x192x64xbf16> to vector<192x64xbf16>
    %cst_30 = arith.constant dense<0.000000e+00> : vector<256x64xf32>
    %59 = tpu.matmul %56, %58, %cst_30 {dimension_numbers = #tpu.dot_dimension_numbers<[1], [0], [0], [1], [0, 0, 1, 1], [], []>} : vector<256x192xbf16>, vector<192x64xbf16>, vector<256x64xf32> -> vector<256x64xf32>
    %60 = arith.addf %55, %59 : vector<256x64xf32>
    %c0_31 = arith.constant 0 : index
    %c0_32 = arith.constant 0 : index
    %61 = vector.load %arg5[%c0_31, %c0_32] : memref<1x64xf32, #tpu.memory_space<vmem>>, vector<1x64xf32>
    %62 = vector.broadcast %61 : vector<1x64xf32> to vector<256x64xf32>
    %63 = arith.addf %60, %62 : vector<256x64xf32>
    %cst_33 = arith.constant 0.000000e+00 : f32
    %64 = vector.broadcast %cst_33 : f32 to vector<256x64xf32>
    %65 = arith.maximumf %63, %64 : vector<256x64xf32>
    %66 = arith.truncf %65 : vector<256x64xf32> to vector<256x64xbf16>
    %c0_34 = arith.constant 0 : index
    %c0_35 = arith.constant 0 : index
    %67 = vector.load %arg6[%c0_34, %c0_35] : memref<64x256xbf16, #tpu.memory_space<vmem>>, vector<64x256xbf16>
    %cst_36 = arith.constant dense<0.000000e+00> : vector<256x256xf32>
    %68 = tpu.matmul %66, %67, %cst_36 {dimension_numbers = #tpu.dot_dimension_numbers<[1], [0], [0], [1], [0, 0, 1, 1], [], []>} : vector<256x64xbf16>, vector<64x256xbf16>, vector<256x256xf32> -> vector<256x256xf32>
    %c0_37 = arith.constant 0 : index
    %c0_38 = arith.constant 0 : index
    %69 = vector.load %arg7[%c0_37, %c0_38] : memref<1x256xf32, #tpu.memory_space<vmem>>, vector<1x256xf32>
    %70 = vector.broadcast %69 : vector<1x256xf32> to vector<256x256xf32>
    %71 = arith.addf %68, %70 : vector<256x256xf32>
    %72 = arith.extf %1 : vector<256x256xbf16> to vector<256x256xf32>
    %73 = arith.addf %71, %72 : vector<256x256xf32>
    %cst_39 = arith.constant 0.000000e+00 : f32
    %74 = vector.broadcast %cst_39 : f32 to vector<256x256xf32>
    %75 = arith.maximumf %73, %74 : vector<256x256xf32>
    %76 = arith.truncf %75 : vector<256x256xf32> to vector<256x256xbf16>
    %c0_40 = arith.constant 0 : index
    %c0_41 = arith.constant 0 : index
    %c0_42 = arith.constant 0 : index
    %77 = vector.load %arg8[%c0_40, %c0_41, %c0_42] : memref<1x256x256xbf16, #tpu.memory_space<vmem>>, vector<1x256x256xbf16>
    %78 = vector.shape_cast %77 : vector<1x256x256xbf16> to vector<256x256xbf16>
    %79 = vector.shape_cast %76 : vector<256x256xbf16> to vector<1x256x256xbf16>
    tpu.vector_store %arg8[%c0_40, %c0_41, %c0_42], %79 {strides = array<i32>} : memref<1x256x256xbf16, #tpu.memory_space<vmem>>, vector<1x256x256xbf16>,
    return
  }
  func.func @transform_0(%arg0: i32) -> (i32, i32, i32) {
    %c0_i32 = arith.constant 0 : i32
    %c0_i32_0 = arith.constant 0 : i32
    %c0_i32_1 = arith.constant 0 : i32
    return %arg0, %c0_i32, %c0_i32_0 : i32, i32, i32
  }
  func.func @transform_1(%arg0: i32) -> (i32, i32) {
    %c0_i32 = arith.constant 0 : i32
    %c0_i32_0 = arith.constant 0 : i32
    %c0_i32_1 = arith.constant 0 : i32
    return %c0_i32, %c0_i32_0 : i32, i32
  }
  func.func @transform_2(%arg0: i32) -> (i32, i32) {
    %c0_i32 = arith.constant 0 : i32
    %c0_i32_0 = arith.constant 0 : i32
    %c0_i32_1 = arith.constant 0 : i32
    return %c0_i32, %c0_i32_0 : i32, i32
  }
  func.func @transform_3(%arg0: i32) -> (i32, i32, i32) {
    %c0_i32 = arith.constant 0 : i32
    %c0_i32_0 = arith.constant 0 : i32
    %c0_i32_1 = arith.constant 0 : i32
    %c0_i32_2 = arith.constant 0 : i32
    return %c0_i32, %c0_i32_0, %c0_i32_1 : i32, i32, i32
  }
  func.func @transform_4(%arg0: i32) -> (i32, i32) {
    %c0_i32 = arith.constant 0 : i32
    %c0_i32_0 = arith.constant 0 : i32
    %c0_i32_1 = arith.constant 0 : i32
    return %c0_i32, %c0_i32_0 : i32, i32
  }
  func.func @transform_5(%arg0: i32) -> (i32, i32) {
    %c0_i32 = arith.constant 0 : i32
    %c0_i32_0 = arith.constant 0 : i32
    %c0_i32_1 = arith.constant 0 : i32
    return %c0_i32, %c0_i32_0 : i32, i32
  }
  func.func @transform_6(%arg0: i32) -> (i32, i32) {
    %c0_i32 = arith.constant 0 : i32
    %c0_i32_0 = arith.constant 0 : i32
    %c0_i32_1 = arith.constant 0 : i32
    return %c0_i32, %c0_i32_0 : i32, i32
  }
  func.func @transform_7(%arg0: i32) -> (i32, i32, i32) {
    %c0_i32 = arith.constant 0 : i32
    %c0_i32_0 = arith.constant 0 : i32
    %c0_i32_1 = arith.constant 0 : i32
    return %arg0, %c0_i32, %c0_i32_0 : i32, i32, i32
  }
}

module attributes {stable_mosaic.version = 11 : i64} {
  func.func @_fused_bottleneck_kernel(%arg0: i32, %arg1: memref<1x256x256xbf16, #tpu.memory_space<vmem>>, %arg2: memref<256x64xbf16, #tpu.memory_space<vmem>>, %arg3: memref<1x64xf32, #tpu.memory_space<vmem>>, %arg4: memref<3x192x64xbf16, #tpu.memory_space<vmem>>, %arg5: memref<1x64xf32, #tpu.memory_space<vmem>>, %arg6: memref<64x256xbf16, #tpu.memory_space<vmem>>, %arg7: memref<1x256xf32, #tpu.memory_space<vmem>>, %arg8: memref<1x256x256xbf16, #tpu.memory_space<vmem>>, %arg9: memref<288x192xbf16, #tpu.memory_space<vmem>>) attributes {dimension_semantics = [#tpu.dimension_semantics<parallel>], iteration_bounds = array<i64: 2>, scalar_prefetch = 0 : i64, scratch_operands = 1 : i64, tpu.core_type = #tpu.core_type<tc>, window_params = [{transform_indices = @transform_0, window_bounds = array<i64: 1, 256, 256>}, {pipeline_mode = #tpu.pipeline_mode<synchronous>, transform_indices = @transform_1, window_bounds = array<i64: 256, 64>}, {pipeline_mode = #tpu.pipeline_mode<synchronous>, transform_indices = @transform_2, window_bounds = array<i64: 1, 64>}, {pipeline_mode = #tpu.pipeline_mode<synchronous>, transform_indices = @transform_3, window_bounds = array<i64: 3, 192, 64>}, {pipeline_mode = #tpu.pipeline_mode<synchronous>, transform_indices = @transform_4, window_bounds = array<i64: 1, 64>}, {pipeline_mode = #tpu.pipeline_mode<synchronous>, transform_indices = @transform_5, window_bounds = array<i64: 64, 256>}, {pipeline_mode = #tpu.pipeline_mode<synchronous>, transform_indices = @transform_6, window_bounds = array<i64: 1, 256>}, {transform_indices = @transform_7, window_bounds = array<i64: 1, 256, 256>}]} {
    %c0 = arith.constant 0 : index
    %c0_0 = arith.constant 0 : index
    %c0_1 = arith.constant 0 : index
    %0 = vector.load %arg1[%c0, %c0_0, %c0_1] : memref<1x256x256xbf16, #tpu.memory_space<vmem>>, vector<1x256x256xbf16>
    %1 = vector.shape_cast %0 : vector<1x256x256xbf16> to vector<256x256xbf16>
    %c0_2 = arith.constant 0 : index
    %c0_3 = arith.constant 0 : index
    %2 = vector.load %arg2[%c0_2, %c0_3] : memref<256x64xbf16, #tpu.memory_space<vmem>>, vector<256x64xbf16>
    %cst = arith.constant dense<0.000000e+00> : vector<256x64xf32>
    %3 = tpu.matmul %1, %2, %cst {dimension_numbers = #tpu.dot_dimension_numbers<[1], [0], [0], [1], [0, 0, 1, 1], [], []>} : vector<256x256xbf16>, vector<256x64xbf16>, vector<256x64xf32> -> vector<256x64xf32>
    %c0_4 = arith.constant 0 : index
    %c0_5 = arith.constant 0 : index
    %4 = vector.load %arg3[%c0_4, %c0_5] : memref<1x64xf32, #tpu.memory_space<vmem>>, vector<1x64xf32>
    %5 = vector.broadcast %4 : vector<1x64xf32> to vector<256x64xf32>
    %6 = arith.addf %3, %5 : vector<256x64xf32>
    %cst_6 = arith.constant 0.000000e+00 : f32
    %7 = vector.broadcast %cst_6 : f32 to vector<256x64xf32>
    %8 = arith.maximumf %6, %7 : vector<256x64xf32>
    %9 = arith.truncf %8 : vector<256x64xf32> to vector<256x64xbf16>
    %10 = tpu.iota {dimensions = array<i32: 0>} : vector<256x1xi32>
    %c16_i32 = arith.constant 16 : i32
    %c0_i32 = arith.constant 0 : i32
    %11 = arith.cmpi eq, %c16_i32, %c0_i32 : i32
    %c1_i32 = arith.constant 1 : i32
    %12 = arith.select %11, %c1_i32, %c16_i32 : i32
    %13 = vector.broadcast %12 : i32 to vector<256x1xi32>
    %14 = arith.remsi %10, %13 : vector<256x1xi32>
    %c0_i32_7 = arith.constant 0 : i32
    %15 = vector.broadcast %c0_i32_7 : i32 to vector<256x1xi32>
    %16 = arith.cmpi ne, %14, %15 : vector<256x1xi32>
    %c0_i32_8 = arith.constant 0 : i32
    %17 = vector.broadcast %c0_i32_8 : i32 to vector<256x1xi32>
    %18 = arith.cmpi slt, %14, %17 : vector<256x1xi32>
    %c0_i32_9 = arith.constant 0 : i32
    %19 = arith.cmpi slt, %12, %c0_i32_9 : i32
    %20 = vector.broadcast %19 : i1 to vector<256x1xi1>
    %21 = vector.broadcast %20 : vector<256x1xi1> to vector<256x1xi1>
    %22 = arith.xori %18, %21 : vector<256x1xi1>
    %23 = arith.andi %22, %16 : vector<256x1xi1>
    %24 = vector.broadcast %12 : i32 to vector<256x1xi32>
    %25 = arith.addi %14, %24 : vector<256x1xi32>
    %26 = arith.select %23, %25, %14 : vector<256x1xi1>, vector<256x1xi32>
    %c15_i32 = arith.constant 15 : i32
    %27 = vector.broadcast %c15_i32 : i32 to vector<256x1xi32>
    %28 = arith.cmpi ne, %26, %27 : vector<256x1xi32>
    %29 = arith.extui %28 : vector<256x1xi1> to vector<256x1xi32>
    %30 = arith.sitofp %29 : vector<256x1xi32> to vector<256x1xf32>
    %31 = arith.truncf %30 : vector<256x1xf32> to vector<256x1xbf16>
    %c0_i32_10 = arith.constant 0 : i32
    %32 = vector.broadcast %c0_i32_10 : i32 to vector<256x1xi32>
    %33 = arith.cmpi ne, %26, %32 : vector<256x1xi32>
    %34 = arith.extui %33 : vector<256x1xi1> to vector<256x1xi32>
    %35 = arith.sitofp %34 : vector<256x1xi32> to vector<256x1xf32>
    %36 = arith.truncf %35 : vector<256x1xf32> to vector<256x1xbf16>
    %cst_11 = arith.constant 0.000000e+00 : bf16
    %37 = vector.broadcast %cst_11 : bf16 to vector<24x192xbf16>
    %c0_12 = arith.constant 0 : index
    %c0_13 = arith.constant 0 : index
    %38 = vector.load %arg9[%c0_12, %c0_13] : memref<288x192xbf16, #tpu.memory_space<vmem>>, vector<24x192xbf16>
    tpu.vector_store %arg9[%c0_12, %c0_13], %37 {strides = array<i32>} : memref<288x192xbf16, #tpu.memory_space<vmem>>, vector<24x192xbf16>,
    %c264 = arith.constant 264 : index
    %c0_14 = arith.constant 0 : index
    %39 = vector.load %arg9[%c264, %c0_14] : memref<288x192xbf16, #tpu.memory_space<vmem>>, vector<24x192xbf16>
    tpu.vector_store %arg9[%c264, %c0_14], %37 {strides = array<i32>} : memref<288x192xbf16, #tpu.memory_space<vmem>>, vector<24x192xbf16>,
    %40 = vector.broadcast %31 : vector<256x1xbf16> to vector<256x64xbf16>
    %41 = arith.mulf %9, %40 : vector<256x64xbf16>
    %c17 = arith.constant 17 : index
    %c0_15 = arith.constant 0 : index
    %42 = vector.load %arg9[%c17, %c0_15] : memref<288x192xbf16, #tpu.memory_space<vmem>>, vector<256x64xbf16>
    tpu.vector_store %arg9[%c17, %c0_15], %41 {strides = array<i32>} : memref<288x192xbf16, #tpu.memory_space<vmem>>, vector<256x64xbf16>,
    %c16 = arith.constant 16 : index
    %c64 = arith.constant 64 : index
    %43 = vector.load %arg9[%c16, %c64] : memref<288x192xbf16, #tpu.memory_space<vmem>>, vector<256x64xbf16>
    tpu.vector_store %arg9[%c16, %c64], %9 {strides = array<i32>} : memref<288x192xbf16, #tpu.memory_space<vmem>>, vector<256x64xbf16>,
    %44 = vector.broadcast %36 : vector<256x1xbf16> to vector<256x64xbf16>
    %45 = arith.mulf %9, %44 : vector<256x64xbf16>
    %c15 = arith.constant 15 : index
    %c128 = arith.constant 128 : index
    %46 = vector.load %arg9[%c15, %c128] : memref<288x192xbf16, #tpu.memory_space<vmem>>, vector<256x64xbf16>
    tpu.vector_store %arg9[%c15, %c128], %45 {strides = array<i32>} : memref<288x192xbf16, #tpu.memory_space<vmem>>, vector<256x64xbf16>,
    %c0_16 = arith.constant 0 : index
    %c0_17 = arith.constant 0 : index
    %47 = vector.load %arg9[%c0_16, %c0_17] : memref<288x192xbf16, #tpu.memory_space<vmem>>, vector<256x192xbf16>
    %c0_18 = arith.constant 0 : index
    %c0_19 = arith.constant 0 : index
    %c0_20 = arith.constant 0 : index
    %48 = vector.load %arg4[%c0_18, %c0_19, %c0_20] : memref<3x192x64xbf16, #tpu.memory_space<vmem>>, vector<1x192x64xbf16>
    %49 = vector.shape_cast %48 : vector<1x192x64xbf16> to vector<192x64xbf16>
    %cst_21 = arith.constant dense<0.000000e+00> : vector<256x64xf32>
    %50 = tpu.matmul %47, %49, %cst_21 {dimension_numbers = #tpu.dot_dimension_numbers<[1], [0], [0], [1], [0, 0, 1, 1], [], []>} : vector<256x192xbf16>, vector<192x64xbf16>, vector<256x64xf32> -> vector<256x64xf32>
    %c16_22 = arith.constant 16 : index
    %c0_23 = arith.constant 0 : index
    %51 = vector.load %arg9[%c16_22, %c0_23] : memref<288x192xbf16, #tpu.memory_space<vmem>>, vector<256x192xbf16>
    %c1 = arith.constant 1 : index
    %c0_24 = arith.constant 0 : index
    %c0_25 = arith.constant 0 : index
    %52 = vector.load %arg4[%c1, %c0_24, %c0_25] : memref<3x192x64xbf16, #tpu.memory_space<vmem>>, vector<1x192x64xbf16>
    %53 = vector.shape_cast %52 : vector<1x192x64xbf16> to vector<192x64xbf16>
    %cst_26 = arith.constant dense<0.000000e+00> : vector<256x64xf32>
    %54 = tpu.matmul %51, %53, %cst_26 {dimension_numbers = #tpu.dot_dimension_numbers<[1], [0], [0], [1], [0, 0, 1, 1], [], []>} : vector<256x192xbf16>, vector<192x64xbf16>, vector<256x64xf32> -> vector<256x64xf32>
    %55 = arith.addf %50, %54 : vector<256x64xf32>
    %c32 = arith.constant 32 : index
    %c0_27 = arith.constant 0 : index
    %56 = vector.load %arg9[%c32, %c0_27] : memref<288x192xbf16, #tpu.memory_space<vmem>>, vector<256x192xbf16>
    %c2 = arith.constant 2 : index
    %c0_28 = arith.constant 0 : index
    %c0_29 = arith.constant 0 : index
    %57 = vector.load %arg4[%c2, %c0_28, %c0_29] : memref<3x192x64xbf16, #tpu.memory_space<vmem>>, vector<1x192x64xbf16>
    %58 = vector.shape_cast %57 : vector<1x192x64xbf16> to vector<192x64xbf16>
    %cst_30 = arith.constant dense<0.000000e+00> : vector<256x64xf32>
    %59 = tpu.matmul %56, %58, %cst_30 {dimension_numbers = #tpu.dot_dimension_numbers<[1], [0], [0], [1], [0, 0, 1, 1], [], []>} : vector<256x192xbf16>, vector<192x64xbf16>, vector<256x64xf32> -> vector<256x64xf32>
    %60 = arith.addf %55, %59 : vector<256x64xf32>
    %c0_31 = arith.constant 0 : index
    %c0_32 = arith.constant 0 : index
    %61 = vector.load %arg5[%c0_31, %c0_32] : memref<1x64xf32, #tpu.memory_space<vmem>>, vector<1x64xf32>
    %62 = vector.broadcast %61 : vector<1x64xf32> to vector<256x64xf32>
    %63 = arith.addf %60, %62 : vector<256x64xf32>
    %cst_33 = arith.constant 0.000000e+00 : f32
    %64 = vector.broadcast %cst_33 : f32 to vector<256x64xf32>
    %65 = arith.maximumf %63, %64 : vector<256x64xf32>
    %66 = arith.truncf %65 : vector<256x64xf32> to vector<256x64xbf16>
    %c0_34 = arith.constant 0 : index
    %c0_35 = arith.constant 0 : index
    %67 = vector.load %arg6[%c0_34, %c0_35] : memref<64x256xbf16, #tpu.memory_space<vmem>>, vector<64x256xbf16>
    %cst_36 = arith.constant dense<0.000000e+00> : vector<256x256xf32>
    %68 = tpu.matmul %66, %67, %cst_36 {dimension_numbers = #tpu.dot_dimension_numbers<[1], [0], [0], [1], [0, 0, 1, 1], [], []>} : vector<256x64xbf16>, vector<64x256xbf16>, vector<256x256xf32> -> vector<256x256xf32>
    %c0_37 = arith.constant 0 : index
    %c0_38 = arith.constant 0 : index
    %69 = vector.load %arg7[%c0_37, %c0_38] : memref<1x256xf32, #tpu.memory_space<vmem>>, vector<1x256xf32>
    %70 = vector.broadcast %69 : vector<1x256xf32> to vector<256x256xf32>
    %71 = arith.addf %68, %70 : vector<256x256xf32>
    %72 = arith.extf %1 : vector<256x256xbf16> to vector<256x256xf32>
    %73 = arith.addf %71, %72 : vector<256x256xf32>
    %cst_39 = arith.constant 0.000000e+00 : f32
    %74 = vector.broadcast %cst_39 : f32 to vector<256x256xf32>
    %75 = arith.maximumf %73, %74 : vector<256x256xf32>
    %76 = arith.truncf %75 : vector<256x256xf32> to vector<256x256xbf16>
    %c0_40 = arith.constant 0 : index
    %c0_41 = arith.constant 0 : index
    %c0_42 = arith.constant 0 : index
    %77 = vector.load %arg8[%c0_40, %c0_41, %c0_42] : memref<1x256x256xbf16, #tpu.memory_space<vmem>>, vector<1x256x256xbf16>
    %78 = vector.shape_cast %77 : vector<1x256x256xbf16> to vector<256x256xbf16>
    %79 = vector.shape_cast %76 : vector<256x256xbf16> to vector<1x256x256xbf16>
    tpu.vector_store %arg8[%c0_40, %c0_41, %c0_42], %79 {strides = array<i32>} : memref<1x256x256xbf16, #tpu.memory_space<vmem>>, vector<1x256x256xbf16>,
    return
  }
  func.func @transform_0(%arg0: i32) -> (i32, i32, i32) {
    %c0_i32 = arith.constant 0 : i32
    %c0_i32_0 = arith.constant 0 : i32
    %c0_i32_1 = arith.constant 0 : i32
    return %arg0, %c0_i32, %c0_i32_0 : i32, i32, i32
  }
  func.func @transform_1(%arg0: i32) -> (i32, i32) {
    %c0_i32 = arith.constant 0 : i32
    %c0_i32_0 = arith.constant 0 : i32
    %c0_i32_1 = arith.constant 0 : i32
    return %c0_i32, %c0_i32_0 : i32, i32
  }
  func.func @transform_2(%arg0: i32) -> (i32, i32) {
    %c0_i32 = arith.constant 0 : i32
    %c0_i32_0 = arith.constant 0 : i32
    %c0_i32_1 = arith.constant 0 : i32
    return %c0_i32, %c0_i32_0 : i32, i32
  }
  func.func @transform_3(%arg0: i32) -> (i32, i32, i32) {
    %c0_i32 = arith.constant 0 : i32
    %c0_i32_0 = arith.constant 0 : i32
    %c0_i32_1 = arith.constant 0 : i32
    %c0_i32_2 = arith.constant 0 : i32
    return %c0_i32, %c0_i32_0, %c0_i32_1 : i32, i32, i32
  }
  func.func @transform_4(%arg0: i32) -> (i32, i32) {
    %c0_i32 = arith.constant 0 : i32
    %c0_i32_0 = arith.constant 0 : i32
    %c0_i32_1 = arith.constant 0 : i32
    return %c0_i32, %c0_i32_0 : i32, i32
  }
  func.func @transform_5(%arg0: i32) -> (i32, i32) {
    %c0_i32 = arith.constant 0 : i32
    %c0_i32_0 = arith.constant 0 : i32
    %c0_i32_1 = arith.constant 0 : i32
    return %c0_i32, %c0_i32_0 : i32, i32
  }
  func.func @transform_6(%arg0: i32) -> (i32, i32) {
    %c0_i32 = arith.constant 0 : i32
    %c0_i32_0 = arith.constant 0 : i32
    %c0_i32_1 = arith.constant 0 : i32
    return %c0_i32, %c0_i32_0 : i32, i32
  }
  func.func @transform_7(%arg0: i32) -> (i32, i32, i32) {
    %c0_i32 = arith.constant 0 : i32
    %c0_i32_0 = arith.constant 0 : i32
    %c0_i32_1 = arith.constant 0 : i32
    return %arg0, %c0_i32, %c0_i32_0 : i32, i32, i32
  }
}

</mosaic_0001>

<bundles_post_ra>
// kernel: tpu_custom_call.1
= control target key start
LH: loop header
LB: loop body
LE: loop exit
PB: predicated region body
PF: predicated region fallthrough
CT: control target
= control target key end

     0   :  { %12 = vsyncpa [#allocation4], 0  ;;  %s7769_s0 = inlined_call_operand.hbm [shape: bf16[2,256,256], index: 0, kind: input, shape index: {}]   ;;  %s7770_s1 = inlined_call_operand.vmem [shape: bf16[256,64], index: 1, kind: input, shape index: {}]   ;;  %s7771_s2 = inlined_call_operand.vmem [shape: f32[1,64], index: 2, kind: input, shape index: {}]   ;;  %s7772_s3 = inlined_call_operand.vmem [shape: bf16[3,192,64], index: 3, kind: input, shape index: {}]   ;;  %s7773_s4 = inlined_call_operand.vmem [shape: f32[1,64], index: 4, kind: input, shape index: {}]   ;;  %s7774_s5 = inlined_call_operand.vmem [shape: bf16[64,256], index: 5, kind: input, shape index: {}]   ;;  %s7775_s6 = inlined_call_operand.vmem [shape: f32[1,256], index: 6, kind: input, shape index: {}]   ;;  %s7776_s7 = inlined_call_operand.hbm [shape: bf16[2,256,256], index: 7, kind: output, shape index: {}]  }
   0x1   :  { %14 = vsyncpa [#allocation4 + $0x1], 0 }
   0x2   :  { %15 = vsyncpa [#allocation5], 0 }
   0x3   :  { %17 = vsyncpa [#allocation5 + $0x1], 0  ;;  %s5906_s24 = smov 0   ;;  %s5908_s25 = smov 0  }
   0x4   :  { %s5910_s26 = smov 0   ;;  %s5912_s27 = smov 0  }
   0x5 LB: > { %s5927_s28 = sadd.s32 4294967295, %s5856_s27   ;;  %s4723_s29 = sadd.s32 4294967294, %s5856_s27   ;;  %s5856_s27 = sphi %s5912_s27, %s7930_s27   ;;  %s5852_s26 = sphi %s5910_s26, %s7929_s26   ;;  %s5848_s25 = sphi %s5908_s25, %s7928_s25   ;;  %s5844_s24 = sphi %s5906_s24, %s7927_s24  }
   0x6   : > { %s5931_s30 = sadd.s32 1, %s5856_s27   ;;  %s30_s8 = sadd.s32 1, %s5852_s26 }
   0x7   : > { %s27_s9 = ssub.s32 %s5856_s27, %s5931_s30  ;;  %p37_p0 = scmp.ne.s32.totalorder %s5852_s26, %s5848_s25 }
   0x8   : > { %p28_p1 = scmp.eq.s32.totalorder %s27_s9, 0  ;;  %p38_p2 = scmp.eq.s32.totalorder %s5856_s27, 0 }
   0x9   : > { %p43_p3 = scmp.ne.s32.totalorder %s5848_s25, %s5844_s24  ;;  %p44_p4 = scmp.eq.s32.totalorder %s5927_s28, 0 }
   0xa   : > { %s5943_s10 = scalar_select %p28_p1, %s5852_s26, %s30_s8  }
   0xb   : > { %p5945_p5 = por %p38_p2, %p37_p0  ;;  %p5949_p6 = por %p44_p4, %p43_p3 }
   0xc   : > { %7777 = sst [smem:[#allocation9_spill]] %s5943_s10  ;;  %p193_p7 = scmp.eq.s32.totalorder %s5927_s28, 1 }
   0xd   : > { %p199_p8 = scmp.eq.s32.totalorder %s4723_s29, 1  ;;  %p5713_p10 = scmp.lt.s32.totalorder %s5856_s27, 2 }
   0xe   : > { %p5956_p11 = por %p193_p7, %p37_p0  ;;  %s237_s15 = sand.u32 1, %s5852_s26  }
   0xf   : > { %p5960_p12 = por %p199_p8, %p43_p3  ;;  %s5529_s16 = sshll.u32 %s5856_s27, 8 }
  0x10   : > { %s4726_s17 = sshll.u32 %s237_s15, 8  ;;  %s246_s20 = scalar_lea.hbm %s7769_s0, %s5529_s16 }
  0x11   : > { %s247_s21 = sshll.u32 %s246_s20, 4  ;;  %s241_s22 = scalar_lea.vmem [#allocation3], %s4726_s17  ;;  %s248_s21 = int_to_ptr.hbm [resolvable:$true] %s247_s21 }
  0x12   : > { %s249_s23 = sshll.u32 %s241_s22, 4  ;;  %p5971_p13 = pnand %p5713_p10, %p5945_p5  ;;  %s250_s23 = int_to_ptr.vmem [resolvable:$true] %s249_s23 }
  0x13   : > { %p4729_p0 = scmp.ge.s32.totalorder %s5856_s27, 1  ;;  %p257_p1 = scmp.lt.s32.totalorder %s5856_s27, 3 }
  0x14   : > { %s238_s8 = scalar_lea.sflag [#allocation4], %s237_s15  ;;  %s5760_s9 = sshra.s32 %s248_s21, 4  ;;  %s5761_s9 = int_to_ptr.hbm [resolvable:$true] %s5760_s9 }
  0x15   : > { %s5762_s10 = scalar_lea.hbm %s5761_s9, 256  ;;  %p5764_p3 = pneg %p5971_p13 }
  0x16   : > { %p5763_p2 = scmp.ne.s32.totalorder %s5761_s9, %s5762_s10  ;;  %s5767_s11 = scalar_lea.hbm %s7769_s0, 512 }
  0x17   : > { %p5768_p5 = scmp.lt.s32.totalorder %s5761_s9, %s7769_s0  ;;  %p5769_p8 = scmp.lt.s32.totalorder %s5767_s11, %s5762_s10 }
  0x18   : > { %p5765_p4 = pnand %p5764_p3, %p5763_p2 }
  0x19   : > { %p5770_p10 = por %p5769_p8, %p5768_p5 }
  0x1a   : > { %p5766_p7 = pneg %p5765_p4 }
  0x1c   : > { %p5771_p9 = pnand %p5770_p10, %p5766_p7 }
  0x1e   : > { %5774 = shalt.err (!%p5771_p9)
}
  0x1f   : > { %s5858_s15 = smov 128   ;;  %s5859_s20 = smov 8  }
  0x20   : > { %5708 = dma.hbm_to_vmem [thread:$0]  (!%p5971_p13), %s248_s21, 4096, %s250_s23, %s238_s8, %s5858_s15, %s5858_s15, %s5859_s20  }
  0x21   : > { %p258_p2 = pnand %p4729_p0, %p257_p1 }
  0x23   : > { %261 = sbr.rel (%p258_p2) target bundleno = 1381 (0x565), region = 48 }
  0x28   : > { %s5992_s22 = sand.u32 1, %s5848_s25  }
  0x29   : > { %s4730_s10 = sshll.u32 %s5992_s22, 8  ;;  %s264_s9 = scalar_lea.sflag [#allocation4], %s5992_s22 }
  0x2a   : > { %s5998_s16 = scalar_lea.vmem [#allocation3], %s4730_s10 }
  0x2b   : > { %5835 = dma.done.wait (%p5949_p6), %s264_s9, 4096  }
  0x2c   : > { %5837 = vsyncadd (%p5949_p6), %s264_s9, 4294963200  ;;  %v5569_v0 = vld [vmem:[%s7770_s1 + $0x38] sm:$0xff]  ;;  %v5568_v1 = vld [vmem:[%s7770_s1 + $0x30] sm:$0xff]  ;;  %vm1539_vm0 = vcmask 1043456   ;;  %vm1540_vm1 = vcmask 523268   ;;  %s5863_s12 = smov 64  }
  0x2d   : > { %5689 = vmatpush.bf16.msra.mxu1 %v5569_v0  ;;  %624 = vmatpush.bf16.msra.mxu0 %v5569_v0  ;;  %v5567_v2 = vld [vmem:[%s7770_s1 + $0x28] sm:$0xff]  ;;  %v5566_v3 = vld [vmem:[%s7770_s1 + $0x20] sm:$0xff]  ;;  %v5565_v4 = vld [vmem:[%s7770_s1 + $0x18] sm:$0xff]  ;;  %vm2654_vm4 = vcmask 519171   ;;  %vm2655_vm5 = vsmask.f32 7950 }
  0x2e   : > { %v5564_v5 = vld [vmem:[%s7770_s1 + $0x10] sm:$0xff]  ;;  %v5563_v6 = vld [vmem:[%s7770_s1 + $0x8] sm:$0xff]  ;;  %v5562_v7 = vld [vmem:[%s7770_s1] sm:$0xff]  ;;  %vm1999_vm7 = vcmask 519168   ;;  %vm2000_vm8 = vsmask.f32 7938 }
  0x2f   : > { %v4798_v8 = vld [vmem:[%s5998_s16 + $0x80] sm:$0xf]  ;;  %v5547_v9 = vld [vmem:[%s5998_s16 + $0x84] sm:$0xf0]  ;;  %v5577_v10 = vld [vmem:[%s7770_s1 + $0x78] sm:$0xff]  ;;  %s5688_s15 = sshll.u32 %s5927_s28, 8 }
  0x30   : > { %v4799_v11 = vor.u32 %v5547_v9, %v4798_v8  ;;  %v5576_v12 = vld [vmem:[%s7770_s1 + $0x70] sm:$0xff]  ;;  %v5575_v13 = vld [vmem:[%s7770_s1 + $0x68] sm:$0xff]  ;;  %v5549_v15 = vld [vmem:[%s5998_s16 + $0x94] sm:$0xf0]  ;;  %vm2299_vm11 = vsmask.f32 3328  ;;  %s4646_s21 = scalar_lea.hbm %s7776_s7, %s5688_s15 }
  0x31   : > { %5690 = vmatpush.bf16.msra.mxu1 %v5568_v1  ;;  %625 = vmatpush.bf16.msra.mxu0 %v5568_v1  ;;  %v4806_v14 = vld [vmem:[%s5998_s16 + $0x90] sm:$0xf]  ;;  %v5574_v17 = vld [vmem:[%s7770_s1 + $0x60] sm:$0xff]  ;;  %v5551_v19 = vld [vmem:[%s5998_s16 + $0xa4] sm:$0xf0]  ;;  %s4649_s23 = sshll.u32 %s4646_s21, 4  ;;  %s4650_s23 = int_to_ptr.hbm [resolvable:$true] %s4649_s23 }
  0x32   : > { %v4807_v16 = vor.u32 %v5549_v15, %v4806_v14  ;;  %v4814_v18 = vld [vmem:[%s5998_s16 + $0xa0] sm:$0xf]  ;;  %v5573_v21 = vld [vmem:[%s7770_s1 + $0x58] sm:$0xff]  ;;  %v4822_v22 = vld [vmem:[%s5998_s16 + $0xb0] sm:$0xf]  ;;  %s4635_s28 = scalar_lea.sflag [#allocation5], %s5992_s22 }
  0x33   : > { %v4815_v20 = vor.u32 %v5551_v19, %v4814_v18  ;;  %v5553_v23 = vld [vmem:[%s5998_s16 + $0xb4] sm:$0xf0]  ;;  %v5572_v25 = vld [vmem:[%s7770_s1 + $0x50] sm:$0xff]  ;;  %v4830_v26 = vld [vmem:[%s5998_s16 + $0xc0] sm:$0xf]  ;;  %s5804_s29 = sshra.s32 %s4650_s23, 4  ;;  %s5805_s29 = int_to_ptr.hbm [resolvable:$true] %s5804_s29 }
  0x34   : > { %v4823_v24 = vor.u32 %v5553_v23, %v4822_v22  ;;  %v5555_v27 = vld [vmem:[%s5998_s16 + $0xc4] sm:$0xf0]  ;;  %v4838_v30 = vld [vmem:[%s5998_s16 + $0xd0] sm:$0xf]  ;;  %v5557_v31 = vld [vmem:[%s5998_s16 + $0xd4] sm:$0xf0]  ;;  %p5811_p0 = scmp.lt.s32.totalorder %s5805_s29, %s7776_s7 }
  0x35   : > { %5691 = vmatpush.bf16.msra.mxu1 %v5567_v2  ;;  %626 = vmatpush.bf16.msra.mxu0 %v5567_v2  ;;  %v4831_v28 = vor.u32 %v5555_v27, %v4830_v26  ;;  %v5571_v29 = vld [vmem:[%s7770_s1 + $0x48] sm:$0xff]  ;;  %v4839_v32 = vor.u32 %v5557_v31, %v4838_v30  ;;  %v5570_v33 = vld [vmem:[%s7770_s1 + $0x40] sm:$0xff]  ;;  %v4742_v40 = vld [vmem:[%s5998_s16 + $0x10] sm:$0xf]  ;;  %vm2300_vm12 = vsmask.f32 7440 }
  0x36   : > { %v4734_v34 = vld [vmem:[%s5998_s16] sm:$0xf]  ;;  %v5531_v35 = vld [vmem:[%s5998_s16 + $0x4] sm:$0xf0]  ;;  %v5533_v41 = vld [vmem:[%s5998_s16 + $0x14] sm:$0xf0] }
  0x37   : > { %v4735_v36 = vor.u32 %v5531_v35, %v4734_v34  ;;  %v4846_v37 = vld [vmem:[%s5998_s16 + $0xe0] sm:$0xf]  ;;  %v5559_v38 = vld [vmem:[%s5998_s16 + $0xe4] sm:$0xf0]  ;;  %v4743_v42 = vor.u32 %v5533_v41, %v4742_v40  ;;  %v4854_v43 = vld [vmem:[%s5998_s16 + $0xf0] sm:$0xf] }
  0x38   : > { %v4847_v39 = vor.u32 %v5559_v38, %v4846_v37  ;;  %v5561_v44 = vld [vmem:[%s5998_s16 + $0xf4] sm:$0xf0]  ;;  %v4750_v46 = vld [vmem:[%s5998_s16 + $0x20] sm:$0xf]  ;;  %v5535_v47 = vld [vmem:[%s5998_s16 + $0x24] sm:$0xf0] }
  0x39   : > { %5692 = vmatpush.bf16.msra.mxu1 %v5566_v3  ;;  %627 = vmatpush.bf16.msra.mxu0 %v5566_v3  ;;  %v4855_v45 = vor.u32 %v5561_v44, %v4854_v43  ;;  %v4751_v48 = vor.u32 %v5535_v47, %v4750_v46  ;;  %v5530_v49 = vld [vmem:[%s5998_s16 + $0x4] sm:$0xf]  ;;  %v4736_v50 = vld [vmem:[%s5998_s16 + $0x8] sm:$0xf0]  ;;  %v4758_v53 = vld [vmem:[%s5998_s16 + $0x30] sm:$0xf]  ;;  %v866_v46 = vlaneseq }
  0x3a   : > { %v4739_v51 = vor.u32 %v5530_v49, %v4736_v50  ;;  %v5537_v54 = vld [vmem:[%s5998_s16 + $0x34] sm:$0xf0]  ;;  %v5532_v57 = vld [vmem:[%s5998_s16 + $0x14] sm:$0xf]  ;;  %v4744_v58 = vld [vmem:[%s5998_s16 + $0x18] sm:$0xf0] }
  0x3b   : > { %v4759_v55 = vor.u32 %v5537_v54, %v4758_v53  ;;  %v4747_v59 = vor.u32 %v5532_v57, %v4744_v58  ;;  %v4766_v61 = vld [vmem:[%s5998_s16 + $0x40] sm:$0xf]  ;;  %v5539_v62 = vld [vmem:[%s5998_s16 + $0x44] sm:$0xf0]  ;;  %v5534_v1 = vld [vmem:[%s5998_s16 + $0x24] sm:$0xf] }
  0x3c   : > { %v4767_v63 = vor.u32 %v5539_v62, %v4766_v61  ;;  %v4752_v2 = vld [vmem:[%s5998_s16 + $0x28] sm:$0xf0]  ;;  %v5536_v9 = vld [vmem:[%s5998_s16 + $0x34] sm:$0xf]  ;;  %v5543_v14 = vld [vmem:[%s5998_s16 + $0x64] sm:$0xf0] }
  0x3d   : > { %5693 = vmatpush.bf16.msra.mxu1 %v5565_v4  ;;  %628 = vmatpush.bf16.msra.mxu0 %v5565_v4  ;;  %v4755_v3 = vor.u32 %v5534_v1, %v4752_v2  ;;  %v4768_v18 = vld [vmem:[%s5998_s16 + $0x48] sm:$0xf0]  ;;  %v5545_v22 = vld [vmem:[%s5998_s16 + $0x74] sm:$0xf0]  ;;  %v4776_v26 = vld [vmem:[%s5998_s16 + $0x58] sm:$0xf0] }
  0x3e   : > { %v5542_v30 = vld [vmem:[%s5998_s16 + $0x64] sm:$0xf]  ;;  %v4784_v31 = vld [vmem:[%s5998_s16 + $0x68] sm:$0xf0]  ;;  %vm1541_vm2 = vmor %vm1540_vm1, %vm1539_vm0  ;;  %vm1676_vm14 = vsmask.f32 256 }
  0x3f   : > { %v5544_v38 = vld [vmem:[%s5998_s16 + $0x74] sm:$0xf]  ;;  %v5621_v40 = vld [vmem:[%s7772_s3 + $0x58] sm:$0xff]  ;;  %v6149_v50 = vld [vmem:[%s7771_s2] ss:$0 sm:$0xff]  ;;  %s5806_s8 = scalar_lea.hbm %s5805_s29, 256 }
  0x40   : > { %v5620_v44 = vld [vmem:[%s7772_s3 + $0x50] sm:$0xff]  ;;  %v5546_v53 = vld [vmem:[%s5998_s16 + $0x84] sm:$0xf]  ;;  %v4800_v54 = vld [vmem:[%s5998_s16 + $0x88] sm:$0xf0]  ;;  %p5807_p6 = scmp.ne.s32.totalorder %s5805_s29, %s5806_s8  ;;  %s5810_s18 = scalar_lea.hbm %s7776_s7, 512 }
  0x41   : > { %5694 = vmatpush.bf16.msra.mxu1 %v5564_v5  ;;  %629 = vmatpush.bf16.msra.mxu0 %v5564_v5  ;;  %v4774_v5 = vld [vmem:[%s5998_s16 + $0x50] sm:$0xf]  ;;  %v4803_v57 = vor.u32 %v5546_v53, %v4800_v54  ;;  %vm6171_vm9 = vmand %vm2654_vm4, %vm2655_vm5  ;;  %vm1677_vm15 = vsmask.f32 4368  ;;  %p5812_p1 = scmp.lt.s32.totalorder %s5810_s18, %s5806_s8 }
  0x42   : > { %vm6183_vm10 = vmand %vm1999_vm7, %vm2000_vm8  ;;  %p5808_p9 = pnand %p5807_p6, %p5956_p11 }
  0x43   : > { %vm6196_vm0 = vmor %vm2299_vm11, %vm2300_vm12  ;;  %p5813_p3 = por %p5812_p1, %p5811_p0 }
  0x44   : > { %p5809_p13 = pneg %p5808_p9 }
  0x45   : > { %5695 = vmatpush.bf16.msra.mxu1 %v5563_v6  ;;  %630 = vmatpush.bf16.msra.mxu0 %v5563_v6  ;;  %v5541_v6 = vld [vmem:[%s5998_s16 + $0x54] sm:$0xf0] }
  0x46   : > { %p5814_p4 = pnand %p5813_p3, %p5809_p13 }
  0x49   : > { %5696 = vmatpush.bf16.msra.mxu1 %v5562_v7  ;;  %631 = vmatpush.bf16.msra.mxu0 %v5562_v7  ;;  %v4775_v7 = vor.u32 %v5541_v6, %v4774_v5  ;;  %v5862_v6 = vmov 0.0  }
  0x4c   : > { %672 = vmatmul.bf16.vlgmr.msra.gmra.mxu1 %v4799_v11  ;;  %632 = vmatmul.bf16.vlgmr.msra.gmra.mxu0 %v4735_v36  ;;  %v5860_v36 = vmov 0  }
  0x4d   : > { %713 = vmatpush.bf16.msrb.mxu1 %v5577_v10  ;;  %v4760_v10 = vld [vmem:[%s5998_s16 + $0x38] sm:$0xf0]  ;;  %1542 = vst.msk [vmem:[#allocation2] sm:$0xff] %vm1541_vm2, %v5860_v36  ;;  %3398 = vmatpush.bf16.msrb.mxu0 %v5621_v40 }
  0x4e   : > { %v4763_v11 = vor.u32 %v5536_v9, %v4760_v10  ;;  %1543 = vst.msk [vmem:[#allocation2 + $0x8] sm:$0xff] %vm1541_vm2, %v5860_v36 }
  0x4f   : > { %1544 = vst.msk [vmem:[#allocation2 + $0x10] sm:$0xff] %vm1541_vm2, %v5860_v36 }
  0x50   : > { %1545 = vst.msk [vmem:[#allocation2 + $0x108] sm:$0xff] %vm1541_vm2, %v5860_v36 }
  0x51   : > { %714 = vmatpush.bf16.msrb.mxu1 %v5576_v12  ;;  %1546 = vst.msk [vmem:[#allocation2 + $0x110] sm:$0xff] %vm1541_vm2, %v5860_v36  ;;  %3399 = vmatpush.bf16.msrb.mxu0 %v5620_v44 }
  0x52   : > { %1547 = vst.msk [vmem:[#allocation2 + $0x118] sm:$0xff] %vm1541_vm2, %v5860_v36  ;;  %vm2994_vm2 = vcmask 523264  }
  0x55   : > { %715 = vmatpush.bf16.msrb.mxu1 %v5575_v13  ;;  %v4782_v13 = vld [vmem:[%s5998_s16 + $0x60] sm:$0xf] }
  0x56   : > { %v4783_v15 = vor.u32 %v5543_v14, %v4782_v13  ;;  %v2002_v54 = vld [vmem:[#allocation2 + $0x10] sm:$0xf] }
  0x59   : > { %716 = vmatpush.bf16.msrb.mxu1 %v5574_v17  ;;  %v5538_v17 = vld [vmem:[%s5998_s16 + $0x44] sm:$0xf] }
  0x5a   : > { %v4771_v19 = vor.u32 %v5538_v17, %v4768_v18 }
  0x5c   : > { %677 = vmatmul.bf16.gmra.mxu1 %v4807_v16  ;;  %637 = vmatmul.bf16.gmra.mxu0 %v4743_v42 }
  0x5d   : > { %717 = vmatpush.bf16.msrb.mxu1 %v5573_v21  ;;  %v4790_v21 = vld [vmem:[%s5998_s16 + $0x70] sm:$0xf] }
  0x5e   : > { %v4791_v23 = vor.u32 %v5545_v22, %v4790_v21  ;;  %v5548_v22 = vld [vmem:[%s5998_s16 + $0x94] sm:$0xf] }
  0x61   : > { %718 = vmatpush.bf16.msrb.mxu1 %v5572_v25  ;;  %v5540_v25 = vld [vmem:[%s5998_s16 + $0x54] sm:$0xf] }
  0x62   : > { %v4779_v27 = vor.u32 %v5540_v25, %v4776_v26 }
  0x65   : > { %719 = vmatpush.bf16.msrb.mxu1 %v5571_v29 }
  0x69   : > { %720 = vmatpush.bf16.msrb.mxu1 %v5570_v33  ;;  %v4787_v33 = vor.u32 %v5542_v30, %v4784_v31 }
  0x6c   : > { %682 = vmatmul.bf16.gmra.mxu1 %v4815_v20  ;;  %642 = vmatmul.bf16.gmra.mxu0 %v4751_v48  ;;  %v5618_v48 = vld [vmem:[%s7772_s3 + $0x40] sm:$0xff] }
  0x7c   : > { %687 = vmatmul.bf16.gmra.mxu1 %v4823_v24  ;;  %647 = vmatmul.bf16.gmra.mxu0 %v4759_v55 }
  0x8c   : > { %692 = vmatmul.bf16.gmra.mxu1 %v4831_v28  ;;  %652 = vmatmul.bf16.gmra.mxu0 %v4767_v63 }
  0x9c   : > { %697 = vmatmul.bf16.gmra.mxu1 %v4839_v32  ;;  %657 = vmatmul.bf16.gmra.mxu0 %v4775_v7 }
  0xac   : > { %702 = vmatmul.bf16.gmra.mxu1 %v4847_v39  ;;  %662 = vmatmul.bf16.gmra.mxu0 %v4783_v15  ;;  %v4792_v39 = vld [vmem:[%s5998_s16 + $0x78] sm:$0xf0] }
  0xad   : > { %v4795_v41 = vor.u32 %v5544_v38, %v4792_v39 }
  0xbc   : > { %707 = vmatmul.bf16.gmra.mxu1 %v4855_v45  ;;  %667 = vmatmul.bf16.gmra.mxu0 %v4791_v23  ;;  %v5619_v45 = vld [vmem:[%s7772_s3 + $0x48] sm:$0xff]  ;;  %v4808_v23 = vld [vmem:[%s5998_s16 + $0x98] sm:$0xf0] }
  0xbd   : > { %3400 = vmatpush.bf16.msrb.mxu0 %v5619_v45  ;;  %v4811_v38 = vor.u32 %v5548_v22, %v4808_v23 }
  0xc1   : > { %3401 = vmatpush.bf16.msrb.mxu0 %v5618_v48 }
  0xc9   : > { %v6076_v52 = vpop.f32.mrf.mxu1  ;;  %v633_v32 = vpop.f32.mrf.mxu0 }
  0xca   : > { %v634_v55 = vadd.f32 %v6149_v50, %v633_v32 }
  0xcc   : > { %721 = vmatmul.bf16.vlgmr.msrb.gmra.mxu1 %v4739_v51  ;;  %v6151_v51 = vshrl.u32 %v866_v46, 7 }
  0xce   : > { %v903_v58 = vand.u32 15, %v6151_v51  ;;  %v868_v63 = vadd.s32 8, %v6151_v51  ;;  %v869_v25 = vadd.s32 16, %v6151_v51 }
  0xd0   : > { %vm1411_vm3 = vcmp.ne.s32.totalorder %v903_v58, 0  ;;  %v917_v48 = vand.u32 15, %v869_v25  ;;  %v870_v58 = vadd.s32 24, %v6151_v51 }
  0xd1   : > { %v6080_v56 = vpop.f32.mrf.mxu1  ;;  %v635_v35 = vpop.f32.mrf.mxu0  ;;  %v4940_v7 = vsel %vm1411_vm3, 1.0, %v5862_v6  ;;  %vm6214_vm3 = vmor %vm1676_vm14, %vm1677_vm15 }
  0xd2   : > { %v636_v9 = vadd.f32 %v6149_v50, %v635_v35  ;;  %vm1413_vm13 = vcmp.ne.s32.totalorder %v917_v48, 0 }
  0xd9   : > { %v6084_v60 = vpop.f32.mrf.mxu1  ;;  %v638_v43 = vpop.f32.mrf.mxu0 }
  0xda   : > { %v639_v31 = vadd.f32 %v6149_v50, %v638_v43 }
  0xdc   : > { %726 = vmatmul.bf16.gmra.mxu1 %v4747_v59 }
  0xe1   : > { %v6088_v0 = vpop.f32.mrf.mxu1  ;;  %v6144_v49 = vpop.f32.mrf.mxu0 }
  0xe9   : > { %v6092_v4 = vpop.f32.mrf.mxu1  ;;  %v6158_v1 = vpop.f32.mrf.mxu0 }
  0xec   : > { %731 = vmatmul.bf16.gmra.mxu1 %v4755_v3  ;;  %v5861_v3 = vmov 1.0|1.0  }
  0xed   : > { %v6160_v5 = vunpack.c.l.bf16 %v5861_v3 }
  0xf1   : > { %v6096_v8 = vpop.f32.mrf.mxu1  ;;  %v6176_v39 = vpop.f32.mrf.mxu0 }
  0xf9   : > { %v6100_v12 = vpop.f32.mrf.mxu1 }
  0xfc   : > { %736 = vmatmul.bf16.gmra.mxu1 %v4763_v11  ;;  %v910_v11 = vand.u32 15, %v868_v63 }
  0xfe   : > { %vm1284_vm6 = vcmp.ne.s32.totalorder %v910_v11, 15 }
  0xff   : > { %v4924_v36 = vsel %vm1284_vm6, 1.0, %v5862_v6 }
 0x101   : > { %v6104_v16 = vpop.f32.mrf.mxu1 }
 0x109   : > { %v6108_v20 = vpop.f32.mrf.mxu1 }
 0x10c   : > { %741 = vmatmul.bf16.gmra.mxu1 %v4771_v19 }
 0x111   : > { %v6112_v24 = vpop.f32.mrf.mxu1 }
 0x119   : > { %v6116_v28 = vpop.f32.mrf.mxu1 }
 0x11c   : > { %746 = vmatmul.bf16.gmra.mxu1 %v4779_v27 }
 0x121   : > { %v6118_v29 = vpop.f32.mrf.mxu1 }
 0x129   : > { %v6122_v34 = vpop.f32.mrf.mxu1 }
 0x12c   : > { %751 = vmatmul.bf16.gmra.mxu1 %v4787_v33  ;;  %v2657_v33 = vld [vmem:[#allocation2 + $0xc] sm:$0x8] }
 0x131   : > { %v6124_v37 = vpop.f32.mrf.mxu1 }
 0x139   : > { %v6131_v42 = vpop.f32.mrf.mxu1 }
 0x13c   : > { %756 = vmatmul.bf16.gmra.mxu1 %v4795_v41 }
 0x141   : > { %v6139_v47 = vpop.f32.mrf.mxu1 }
 0x149   : > { %v722_v59 = vpop.f32.mrf.mxu1 }
 0x14a   : > { %v723_v61 = vadd.f32 %v722_v59, %v634_v55 }
 0x14c   : > { %v802_v62 = vmax.f32 %v723_v61, 0.0  ;;  %761 = vmatmul.bf16.gmra.mxu1 %v4803_v57 }
 0x14e   : > { %v834_v2 = vpack.c.bf16 %v802_v62, %v802_v62 }
 0x150   : > { %2074 = vrot.lane.b32.xlu0 %v834_v2, %s5863_s12  ;;  %v1548_v10 = vunpack.c.l.bf16 %v834_v2 }
 0x151   : > { %v724_v13 = vpop.f32.mrf.mxu1 }
 0x152   : > { %v1612_v14 = vmul.f32 %v6160_v5, %v1548_v10  ;;  %v2235_v15 = vmul.f32 %v4940_v7, %v1548_v10  ;;  %v725_v17 = vadd.f32 %v724_v13, %v636_v9  ;;  %v924_v10 = vand.u32 15, %v870_v58 }
 0x154   : > { %v1644_v18 = vpack.c.bf16 %v1612_v14, %v1612_v14  ;;  %v2267_v19 = vpack.c.bf16 %v2235_v15, %v2235_v15  ;;  %v803_v21 = vmax.f32 %v725_v17, 0.0  ;;  %vm6208_vm1 = vcmp.ne.s32.totalorder %v924_v10, 15 }
 0x156   : > { %v1680_v26 = vshrl.u32 %v1644_v18, 16  ;;  %v2303_v27 = vshll.u32 %v2267_v19, 16  ;;  %v2306_v30 = vshrl.u32 %v2267_v19, 16  ;;  %v835_v35 = vpack.c.bf16 %v803_v21, %v803_v21 }
 0x157   : > { %v1683_v41 = vshll.u32 %v1644_v18, 16  ;;  %v641_v18 = vadd.f32 %v6149_v50, %v6144_v49  ;;  %v4941_v21 = vsel %vm1413_vm13, 1.0, %v5862_v6 }
 0x158   : > { %v6178_v40 = vrot.slane %v1680_v26, 7  ;;  %v2305_v44 = vrot.slane %v2303_v27, 5  ;;  %v2308_v45 = vrot.slane %v2306_v30, 4  ;;  %v1549_v46 = vunpack.c.l.bf16 %v835_v35  ;;  %2076 = vrot.lane.b32.xlu0 %v835_v35, %s5863_s12  ;;  %v5578_v30 = vld [vmem:[#allocation2 + $0x4] sm:$0xf] }
 0x159   : > { %v727_v43 = vpop.f32.mrf.mxu1  ;;  %v872_v35 = vadd.s32 40, %v6151_v51 }
 0x15a   : > { %v1685_v55 = vor.u32 %v1683_v41, %v6178_v40  ;;  %v2658_v57 = vsel %vm6171_vm9, %v2305_v44, %v2657_v33  ;;  %v1613_v59 = vmul.f32 %v4924_v36, %v1549_v46  ;;  %v2236_v61 = vmul.f32 %v6160_v5, %v1549_v46 }
 0x15b   : > { %2659 = vst [vmem:[#allocation2 + $0xc] sm:$0x8] %v2658_v57  ;;  %v728_v62 = vadd.f32 %v727_v43, %v639_v31  ;;  %v2309_v63 = vor.u32 %v2308_v45, %v2305_v44  ;;  %v6205_v31 = vpop.f32.mrf.mxu0  ;;  %v871_v45 = vadd.s32 32, %v6151_v51  ;;  %v5550_v57 = vld [vmem:[%s5998_s16 + $0xa4] sm:$0xf] }
 0x15c   : > { %766 = vmatmul.bf16.gmra.mxu1 %v4811_v38  ;;  %v2003_v2 = vsel %vm6183_vm10, %v1685_v55, %v2002_v54  ;;  %v1645_v3 = vpack.c.bf16 %v1613_v59, %v1613_v59  ;;  %v2268_v7 = vpack.c.bf16 %v2236_v61, %v2236_v61  ;;  %v1686_v38 = vrot.slane %v6178_v40, 4  ;;  %v4816_v40 = vld [vmem:[%s5998_s16 + $0xa8] sm:$0xf0] }
 0x15d   : > { %v804_v9 = vmax.f32 %v728_v62, 0.0  ;;  %2004 = vst [vmem:[#allocation2 + $0x10] sm:$0xf] %v2003_v2  ;;  %v2310_v15 = vrot.slane %v2309_v63, 4  ;;  %v644_v55 = vadd.f32 %v6149_v50, %v6158_v1  ;;  %v4925_v63 = vsel %vm6208_vm1, 1.0, %v5862_v6 }
 0x15e   : > { %v1688_v11 = vshrl.u32 %v1645_v3, 16  ;;  %v2312_v13 = vshll.u32 %v2268_v7, 16  ;;  %v2316_v14 = vshrl.u32 %v2268_v7, 16  ;;  %v1691_v23 = vshll.u32 %v1645_v3, 16 }
 0x15f   : > { %v836_v19 = vpack.c.bf16 %v804_v9, %v804_v9  ;;  %v931_v2 = vand.u32 15, %v871_v45  ;;  %v4819_v9 = vor.u32 %v5550_v57, %v4816_v40  ;;  %v646_v45 = vadd.f32 %v6149_v50, %v6176_v39 }
 0x160   : > { %v6203_v22 = vrot.slane %v1688_v11, 7  ;;  %v2314_v25 = vrot.slane %v2312_v13, 5  ;;  %v2318_v26 = vrot.slane %v2316_v14, 4  ;;  %v938_v57 = vand.u32 15, %v872_v35 }
 0x161   : > { %v729_v27 = vpop.f32.mrf.mxu1  ;;  %2078 = vrot.lane.b32.xlu1 %v836_v19, %s5863_s12  ;;  %v1550_v32 = vunpack.c.l.bf16 %v836_v19  ;;  %vm6238_vm4 = vcmp.ne.s32.totalorder %v931_v2, 0 }
 0x162   : > { %v730_v33 = vadd.f32 %v729_v27, %v641_v18  ;;  %v5176_v49 = vld [vmem:[#allocation2 + $0x8] sm:$0xf0]  ;;  %v1693_v41 = vor.u32 %v1691_v23, %v6203_v22  ;;  %v2315_v44 = vsel %vm6196_vm0, %v2310_v15, %v2314_v25  ;;  %v2319_v54 = vor.u32 %v2318_v26, %v2314_v25 }
 0x163   : > { %2660 = vst.msk [vmem:[#allocation2 + $0x14] sm:$0xf] %vm1999_vm7, %v2315_v44  ;;  %v1614_v46 = vmul.f32 %v6160_v5, %v1550_v32  ;;  %v2237_v43 = vmul.f32 %v4941_v21, %v1550_v32  ;;  %v5179_v53 = vor.u32 %v5578_v30, %v5176_v49  ;;  %v6242_v27 = vpop.f32.mrf.mxu0  ;;  %v1695_v44 = vrot.slane %v6203_v22, 4 }
 0x164   : > { %v805_v48 = vmax.f32 %v730_v33, 0.0  ;;  %v1694_v58 = vsel %vm6214_vm3, %v1686_v38, %v1693_v41  ;;  %v2320_v10 = vrot.slane %v2319_v54, 4  ;;  %vm1288_vm5 = vcmp.ne.s32.totalorder %v938_v57, 15 }
 0x165   : > { %v1646_v59 = vpack.c.bf16 %v1614_v46, %v1614_v46  ;;  %v2269_v61 = vpack.c.bf16 %v2237_v43, %v2237_v43  ;;  %5228 = vmatmul.msk.bf16.vlgmr.msrb.gmra.mxu0 %vm2994_vm2, %v5179_v53  ;;  %2006 = vst.msk [vmem:[#allocation2 + $0x18] sm:$0xf] %vm1999_vm7, %v1694_v58  ;;  %v4942_v53 = vsel %vm6238_vm4, 1.0, %v5862_v6  ;;  %v649_v26 = vadd.f32 %v6149_v50, %v6205_v31 }
 0x166   : > { %v837_v62 = vpack.c.bf16 %v805_v48, %v805_v48  ;;  %v4926_v35 = vsel %vm1288_vm5, 1.0, %v5862_v6  ;;  %vm2170_vm5 = vcmask 1043968  }
 0x167   : > { %v1697_v3 = vshrl.u32 %v1646_v59, 16  ;;  %v2322_v7 = vshll.u32 %v2269_v61, 16  ;;  %v2326_v1 = vshrl.u32 %v2269_v61, 16  ;;  %v1700_v11 = vshll.u32 %v1646_v59, 16 }
 0x168   : > { %v1551_v13 = vunpack.c.l.bf16 %v837_v62 }
 0x169   : > { %v732_v14 = vpop.f32.mrf.mxu1  ;;  %v1699_v15 = vrot.slane %v1697_v3, 7  ;;  %v2324_v18 = vrot.slane %v2322_v7, 5  ;;  %v2328_v19 = vrot.slane %v2326_v1, 4  ;;  %2080 = vrot.lane.b32.xlu1 %v837_v62, %s5863_s12 }
 0x16a   : > { %v733_v21 = vadd.f32 %v732_v14, %v644_v55  ;;  %v1615_v23 = vmul.f32 %v4925_v63, %v1551_v13  ;;  %v2238_v25 = vmul.f32 %v6160_v5, %v1551_v13  ;;  %v5580_v1 = vld [vmem:[#allocation2 + $0x14] sm:$0xf] }
 0x16b   : > { %v1702_v30 = vor.u32 %v1700_v11, %v1699_v15  ;;  %v2325_v32 = vsel %vm6196_vm0, %v2320_v10, %v2324_v18  ;;  %v2329_v33 = vor.u32 %v2328_v19, %v2324_v18  ;;  %v1704_v2 = vrot.slane %v1699_v15, 4  ;;  %v5552_v15 = vld [vmem:[%s5998_s16 + $0xb4] sm:$0xf] }
 0x16c   : > { %771 = vmatmul.bf16.gmra.mxu1 %v4819_v9  ;;  %2661 = vst.msk [vmem:[#allocation2 + $0x1c] sm:$0xf] %vm1999_vm7, %v2325_v32  ;;  %v1647_v49 = vpack.c.bf16 %v1615_v23, %v1615_v23  ;;  %v2270_v38 = vpack.c.bf16 %v2238_v25, %v2238_v25  ;;  %v806_v41 = vmax.f32 %v733_v21, 0.0  ;;  %v873_v9 = vadd.s32 48, %v6151_v51  ;;  %v4824_v21 = vld [vmem:[%s5998_s16 + $0xb8] sm:$0xf0]  ;;  %v6270_v23 = vpop.f32.mrf.mxu0 }
 0x16d   : > { %v2330_v54 = vrot.slane %v2329_v33, 4  ;;  %v1703_v40 = vsel %vm6214_vm3, %v1695_v44, %v1702_v30 }
 0x16e   : > { %v1706_v46 = vshrl.u32 %v1647_v49, 16  ;;  %v2332_v43 = vshll.u32 %v2270_v38, 16  ;;  %v2336_v48 = vshrl.u32 %v2270_v38, 16  ;;  %v838_v55 = vpack.c.bf16 %v806_v41, %v806_v41  ;;  %2007 = vst.msk [vmem:[#allocation2 + $0x20] sm:$0xf] %vm1999_vm7, %v1703_v40 }
 0x16f   : > { %v1709_v59 = vshll.u32 %v1647_v49, 16  ;;  %v945_v49 = vand.u32 15, %v873_v9 }
 0x170   : > { %v6256_v58 = vrot.slane %v1706_v46, 7  ;;  %v2334_v22 = vrot.slane %v2332_v43, 5  ;;  %v2338_v61 = vrot.slane %v2336_v48, 4  ;;  %2082 = vrot.lane.b32.xlu2 %v838_v55, %s5863_s12  ;;  %v1552_v39 = vunpack.c.l.bf16 %v838_v55 }
 0x171   : > { %v734_v62 = vpop.f32.mrf.mxu1  ;;  %vm1417_vm6 = vcmp.ne.s32.totalorder %v945_v49, 0 }
 0x172   : > { %v735_v63 = vadd.f32 %v734_v62, %v646_v45  ;;  %v1711_v3 = vor.u32 %v1709_v59, %v6256_v58  ;;  %v2335_v7 = vsel %vm6196_vm0, %v2330_v54, %v2334_v22  ;;  %v1616_v10 = vmul.f32 %v6160_v5, %v1552_v39 }
 0x173   : > { %2662 = vst.msk [vmem:[#allocation2 + $0x24] sm:$0xf] %vm1999_vm7, %v2335_v7  ;;  %v2239_v11 = vmul.f32 %v4942_v53, %v1552_v39  ;;  %v4984_v14 = vld [vmem:[#allocation2 + $0x18] sm:$0xf0]  ;;  %v2339_v18 = vor.u32 %v2338_v61, %v2334_v22  ;;  %v4827_v45 = vor.u32 %v5552_v15, %v4824_v21  ;;  %v874_v39 = vadd.s32 56, %v6151_v51 }
 0x174   : > { %v807_v13 = vmax.f32 %v735_v63, 0.0  ;;  %v6266_v19 = vor.u32 %v5580_v1, %v4984_v14  ;;  %v1712_v25 = vsel %vm6214_vm3, %v1704_v2, %v1711_v3  ;;  %v1648_v30 = vpack.c.bf16 %v1616_v10, %v1616_v10  ;;  %v6290_v14 = vpop.f32.mrf.mxu0 }
 0x175   : > { %v2271_v32 = vpack.c.bf16 %v2239_v11, %v2239_v11  ;;  %2008 = vst.msk [vmem:[#allocation2 + $0x28] sm:$0xf] %vm1999_vm7, %v1712_v25  ;;  %v2340_v46 = vrot.slane %v2339_v18, 4  ;;  %v1713_v7 = vrot.slane %v6256_v58, 4  ;;  %v651_v1 = vadd.f32 %v6149_v50, %v6242_v27 }
 0x176   : > { %v839_v33 = vpack.c.bf16 %v807_v13, %v807_v13  ;;  %5229 = vmatmul.msk.bf16.gmra.mxu0 %vm2994_vm2, %v6266_v19  ;;  %v1715_v38 = vshrl.u32 %v1648_v30, 16  ;;  %v1718_v43 = vshll.u32 %v1648_v30, 16  ;;  %v4943_v13 = vsel %vm1417_vm6, 1.0, %v5862_v6 }
 0x177   : > { %v2342_v41 = vshll.u32 %v2271_v32, 16  ;;  %v2346_v44 = vshrl.u32 %v2271_v32, 16  ;;  %v952_v21 = vand.u32 15, %v874_v39 }
 0x178   : > { %v1553_v48 = vunpack.c.l.bf16 %v839_v33  ;;  %v1717_v31 = vrot.slane %v1715_v38, 7  ;;  %2084 = vrot.lane.b32.xlu2 %v839_v33, %s5863_s12 }
 0x179   : > { %v737_v53 = vpop.f32.mrf.mxu1  ;;  %v2344_v54 = vrot.slane %v2342_v41, 5  ;;  %v2348_v55 = vrot.slane %v2346_v44, 4  ;;  %vm1290_vm8 = vcmp.ne.s32.totalorder %v952_v21, 15 }
 0x17a   : > { %v738_v57 = vadd.f32 %v737_v53, %v649_v26  ;;  %v1617_v40 = vmul.f32 %v4926_v35, %v1553_v48  ;;  %v2240_v59 = vmul.f32 %v6160_v5, %v1553_v48  ;;  %v1720_v22 = vor.u32 %v1718_v43, %v1717_v31  ;;  %v5582_v44 = vld [vmem:[#allocation2 + $0x24] sm:$0xf] }
 0x17b   : > { %v2345_v61 = vsel %vm6196_vm0, %v2340_v46, %v2344_v54  ;;  %v2349_v62 = vor.u32 %v2348_v55, %v2344_v54  ;;  %v1722_v49 = vrot.slane %v1717_v31, 4  ;;  %v5554_v31 = vld [vmem:[%s5998_s16 + $0xc4] sm:$0xf]  ;;  %v4927_v39 = vsel %vm1290_vm8, 1.0, %v5862_v6 }
 0x17c   : > { %776 = vmatmul.bf16.gmra.mxu1 %v4827_v45  ;;  %2663 = vst.msk [vmem:[#allocation2 + $0x2c] sm:$0xf] %vm1999_vm7, %v2345_v61  ;;  %v1649_v63 = vpack.c.bf16 %v1617_v40, %v1617_v40  ;;  %v2272_v2 = vpack.c.bf16 %v2240_v59, %v2240_v59  ;;  %v808_v3 = vmax.f32 %v738_v57, 0.0  ;;  %v1721_v25 = vsel %vm6214_vm3, %v1713_v7, %v1720_v22  ;;  %v4832_v57 = vld [vmem:[%s5998_s16 + $0xc8] sm:$0xf0] }
 0x17d   : > { %v2350_v18 = vrot.slane %v2349_v62, 4  ;;  %2009 = vst.msk [vmem:[#allocation2 + $0x30] sm:$0xf] %vm1999_vm7, %v1721_v25  ;;  %v875_v45 = vadd.s32 64, %v6151_v51  ;;  %v654_v61 = vadd.f32 %v6149_v50, %v6270_v23  ;;  %v658_v23 = vpop.f32.mrf.mxu0 }
 0x17e   : > { %v1724_v9 = vshrl.u32 %v1649_v63, 16  ;;  %v2352_v10 = vshll.u32 %v2272_v2, 16  ;;  %v2356_v11 = vshrl.u32 %v2272_v2, 16  ;;  %v840_v15 = vpack.c.bf16 %v808_v3, %v808_v3 }
 0x17f   : > { %v1727_v30 = vshll.u32 %v1649_v63, 16  ;;  %v959_v63 = vand.u32 15, %v875_v45  ;;  %v656_v45 = vadd.f32 %v6149_v50, %v6290_v14 }
 0x180   : > { %v6294_v26 = vrot.slane %v1724_v9, 7  ;;  %v2354_v58 = vrot.slane %v2352_v10, 5  ;;  %v2358_v32 = vrot.slane %v2356_v11, 4  ;;  %v1554_v27 = vunpack.c.l.bf16 %v840_v15  ;;  %2086 = vrot.lane.b32.xlu0 %v840_v15, %s5863_s12 }
 0x181   : > { %v739_v33 = vpop.f32.mrf.mxu1  ;;  %vm1419_vm9 = vcmp.ne.s32.totalorder %v959_v63, 0 }
 0x182   : > { %v740_v35 = vadd.f32 %v739_v33, %v651_v1  ;;  %v1729_v38 = vor.u32 %v1727_v30, %v6294_v26  ;;  %v2355_v41 = vsel %vm6196_vm0, %v2350_v18, %v2354_v58  ;;  %v1618_v46 = vmul.f32 %v6160_v5, %v1554_v27 }
 0x183   : > { %2664 = vst.msk [vmem:[#allocation2 + $0x34] sm:$0xf] %vm1999_vm7, %v2355_v41  ;;  %v2241_v43 = vmul.f32 %v4943_v13, %v1554_v27  ;;  %v4992_v53 = vld [vmem:[#allocation2 + $0x28] sm:$0xf0]  ;;  %v2359_v54 = vor.u32 %v2358_v32, %v2354_v58  ;;  %v4835_v1 = vor.u32 %v5554_v31, %v4832_v57 }
 0x184   : > { %v809_v48 = vmax.f32 %v740_v35, 0.0  ;;  %v6304_v55 = vor.u32 %v5582_v44, %v4992_v53  ;;  %v1730_v40 = vsel %vm6214_vm3, %v1722_v49, %v1729_v38  ;;  %v1650_v59 = vpack.c.bf16 %v1618_v46, %v1618_v46 }
 0x185   : > { %v2273_v22 = vpack.c.bf16 %v2241_v43, %v2241_v43  ;;  %2010 = vst.msk [vmem:[#allocation2 + $0x38] sm:$0xf] %vm1999_vm7, %v1730_v40  ;;  %v2360_v9 = vrot.slane %v2359_v54, 4  ;;  %v876_v35 = vadd.s32 72, %v6151_v51  ;;  %v1731_v44 = vrot.slane %v6294_v26, 4 }
 0x186   : > { %v841_v62 = vpack.c.bf16 %v809_v48, %v809_v48  ;;  %5230 = vmatmul.msk.bf16.gmra.mxu0 %vm2994_vm2, %v6304_v55  ;;  %v1733_v2 = vshrl.u32 %v1650_v59, 16  ;;  %v1736_v10 = vshll.u32 %v1650_v59, 16  ;;  %v4944_v53 = vsel %vm1419_vm9, 1.0, %v5862_v6 }
 0x187   : > { %v2362_v3 = vshll.u32 %v2273_v22, 16  ;;  %v2366_v7 = vshrl.u32 %v2273_v22, 16  ;;  %v966_v57 = vand.u32 15, %v876_v35 }
 0x188   : > { %2088 = vrot.lane.b32.xlu1 %v841_v62, %s5863_s12  ;;  %v1555_v11 = vunpack.c.l.bf16 %v841_v62  ;;  %v1735_v18 = vrot.slane %v1733_v2, 7 }
 0x189   : > { %v742_v13 = vpop.f32.mrf.mxu1  ;;  %v2364_v15 = vrot.slane %v2362_v3, 5  ;;  %v2368_v21 = vrot.slane %v2366_v7, 4  ;;  %vm1292_vm10 = vcmp.ne.s32.totalorder %v966_v57, 15 }
 0x18a   : > { %v743_v25 = vadd.f32 %v742_v13, %v654_v61  ;;  %v1619_v30 = vmul.f32 %v4927_v39, %v1555_v11  ;;  %v2242_v58 = vmul.f32 %v6160_v5, %v1555_v11  ;;  %v1738_v32 = vor.u32 %v1736_v10, %v1735_v18  ;;  %v5584_v7 = vld [vmem:[#allocation2 + $0x34] sm:$0xf] }
 0x18b   : > { %v2365_v33 = vsel %vm6196_vm0, %v2360_v9, %v2364_v15  ;;  %v2369_v27 = vor.u32 %v2368_v21, %v2364_v15  ;;  %v1740_v63 = vrot.slane %v1735_v18, 4  ;;  %v877_v9 = vadd.s32 80, %v6151_v51  ;;  %v5556_v18 = vld [vmem:[%s5998_s16 + $0xd4] sm:$0xf] }
 0x18c   : > { %781 = vmatmul.bf16.gmra.mxu1 %v4835_v1  ;;  %2665 = vst.msk [vmem:[#allocation2 + $0x3c] sm:$0xf] %vm1999_vm7, %v2365_v33  ;;  %v1651_v49 = vpack.c.bf16 %v1619_v30, %v1619_v30  ;;  %v2274_v38 = vpack.c.bf16 %v2242_v58, %v2242_v58  ;;  %v810_v41 = vmax.f32 %v743_v25, 0.0  ;;  %v1739_v40 = vsel %vm6214_vm3, %v1731_v44, %v1738_v32  ;;  %v660_v1 = vpop.f32.mrf.mxu0  ;;  %v4840_v30 = vld [vmem:[%s5998_s16 + $0xd8] sm:$0xf0] }
 0x18d   : > { %v2370_v54 = vrot.slane %v2369_v27, 4  ;;  %2011 = vst.msk [vmem:[#allocation2 + $0x40] sm:$0xf] %vm1999_vm7, %v1739_v40  ;;  %v659_v27 = vadd.f32 %v6149_v50, %v658_v23 }
 0x18e   : > { %v1742_v46 = vshrl.u32 %v1651_v49, 16  ;;  %v2372_v43 = vshll.u32 %v2274_v38, 16  ;;  %v2376_v48 = vshrl.u32 %v2274_v38, 16  ;;  %v842_v31 = vpack.c.bf16 %v810_v41, %v810_v41 }
 0x18f   : > { %v1745_v22 = vshll.u32 %v1651_v49, 16  ;;  %v5631_v49 = vld [vmem:[%s7772_s3 + $0x98] sm:$0xff]  ;;  %v4928_v38 = vsel %vm1292_vm10, 1.0, %v5862_v6  ;;  %v973_v41 = vand.u32 15, %v877_v9 }
 0x190   : > { %v6328_v59 = vrot.slane %v1742_v46, 7  ;;  %v2374_v61 = vrot.slane %v2372_v43, 5  ;;  %v2378_v62 = vrot.slane %v2376_v48, 4  ;;  %v1556_v14 = vunpack.c.l.bf16 %v842_v31  ;;  %2090 = vrot.lane.b32.xlu2 %v842_v31, %s5863_s12  ;;  %3043 = vmatpush.bf16.msra.mxu2 %v5631_v49 }
 0x191   : > { %v744_v26 = vpop.f32.mrf.mxu1  ;;  %v4843_v43 = vor.u32 %v5556_v18, %v4840_v30  ;;  %vm6357_vm12 = vcmp.ne.s32.totalorder %v973_v41, 0 }
 0x192   : > { %v745_v39 = vadd.f32 %v744_v26, %v656_v45  ;;  %v1747_v2 = vor.u32 %v1745_v22, %v6328_v59  ;;  %v2375_v3 = vsel %vm6196_vm0, %v2370_v54, %v2374_v61  ;;  %v1620_v10 = vmul.f32 %v6160_v5, %v1556_v14 }
 0x193   : > { %2666 = vst.msk [vmem:[#allocation2 + $0x44] sm:$0xf] %vm1999_vm7, %v2375_v3  ;;  %v2243_v11 = vmul.f32 %v4944_v53, %v1556_v14  ;;  %v5000_v15 = vld [vmem:[#allocation2 + $0x38] sm:$0xf0]  ;;  %v2379_v21 = vor.u32 %v2378_v62, %v2374_v61  ;;  %v5630_v61 = vld [vmem:[%s7772_s3 + $0x90] sm:$0xff]  ;;  %v878_v3 = vadd.s32 88, %v6151_v51 }
 0x194   : > { %v811_v13 = vmax.f32 %v745_v39, 0.0  ;;  %v6338_v25 = vor.u32 %v5584_v7, %v5000_v15  ;;  %v1748_v58 = vsel %vm6214_vm3, %v1740_v63, %v1747_v2  ;;  %v1652_v32 = vpack.c.bf16 %v1620_v10, %v1620_v10  ;;  %3044 = vmatpush.bf16.msra.mxu2 %v5630_v61 }
 0x195   : > { %v2275_v33 = vpack.c.bf16 %v2243_v11, %v2243_v11  ;;  %2012 = vst.msk [vmem:[#allocation2 + $0x48] sm:$0xf] %vm1999_vm7, %v1748_v58  ;;  %v2380_v23 = vrot.slane %v2379_v21, 4  ;;  %v663_v11 = vpop.f32.mrf.mxu0  ;;  %v661_v15 = vadd.f32 %v6149_v50, %v660_v1  ;;  %v5629_v21 = vld [vmem:[%s7772_s3 + $0x88] sm:$0xff]  ;;  %v879_v14 = vadd.s32 96, %v6151_v51 }
 0x196   : > { %v843_v35 = vpack.c.bf16 %v811_v13, %v811_v13  ;;  %5231 = vmatmul.msk.bf16.gmra.mxu0 %vm2994_vm2, %v6338_v25  ;;  %v1751_v44 = vshrl.u32 %v1652_v32, 16  ;;  %v1754_v48 = vshll.u32 %v1652_v32, 16  ;;  %v1749_v13 = vrot.slane %v6328_v59, 4 }
 0x197   : > { %v2382_v45 = vshll.u32 %v2275_v33, 16  ;;  %v2386_v46 = vshrl.u32 %v2275_v33, 16  ;;  %v4945_v32 = vsel %vm6357_vm12, 1.0, %v5862_v6 }
 0x198   : > { %2092 = vrot.lane.b32.xlu0 %v843_v35, %s5863_s12  ;;  %v1557_v53 = vunpack.c.l.bf16 %v843_v35  ;;  %v1753_v31 = vrot.slane %v1751_v44, 7  ;;  %v980_v35 = vand.u32 15, %v878_v3  ;;  %3045 = vmatpush.bf16.msra.mxu2 %v5629_v21 }
 0x199   : > { %v747_v54 = vpop.f32.mrf.mxu1  ;;  %v2384_v57 = vrot.slane %v2382_v45, 5  ;;  %v2388_v40 = vrot.slane %v2386_v46, 4 }
 0x19a   : > { %v748_v22 = vadd.f32 %v747_v54, %v659_v27  ;;  %v1621_v62 = vmul.f32 %v4928_v38, %v1557_v53  ;;  %v2244_v26 = vmul.f32 %v6160_v5, %v1557_v53  ;;  %v1756_v39 = vor.u32 %v1754_v48, %v1753_v31  ;;  %v5586_v54 = vld [vmem:[#allocation2 + $0x44] sm:$0xf] }
 0x19b   : > { %v2385_v63 = vsel %vm6196_vm0, %v2380_v23, %v2384_v57  ;;  %v2389_v2 = vor.u32 %v2388_v40, %v2384_v57  ;;  %v1758_v23 = vrot.slane %v1753_v31, 4  ;;  %vm6387_vm13 = vcmp.ne.s32.totalorder %v980_v35, 15 }
 0x19c   : > { %786 = vmatmul.bf16.gmra.mxu1 %v4843_v43  ;;  %2667 = vst.msk [vmem:[#allocation2 + $0x4c] sm:$0xf] %vm1999_vm7, %v2385_v63  ;;  %v1653_v7 = vpack.c.bf16 %v1621_v62, %v1621_v62  ;;  %v2276_v9 = vpack.c.bf16 %v2244_v26, %v2244_v26  ;;  %v812_v10 = vmax.f32 %v748_v22, 0.0  ;;  %v1757_v59 = vsel %vm6214_vm3, %v1749_v13, %v1756_v39  ;;  %v5628_v43 = vld [vmem:[%s7772_s3 + $0x80] sm:$0xff]  ;;  %v4848_v63 = vld [vmem:[%s5998_s16 + $0xe8] sm:$0xf0] }
 0x19d   : > { %v2390_v33 = vrot.slane %v2389_v2, 4  ;;  %2013 = vst.msk [vmem:[#allocation2 + $0x50] sm:$0xf] %vm1999_vm7, %v1757_v59  ;;  %3046 = vmatpush.bf16.msra.mxu2 %v5628_v43  ;;  %v5558_v39 = vld [vmem:[%s5998_s16 + $0xe4] sm:$0xf]  ;;  %v5627_v13 = vld [vmem:[%s7772_s3 + $0x78] sm:$0xff] }
 0x19e   : > { %v1760_v18 = vshrl.u32 %v1653_v7, 16  ;;  %v2392_v30 = vshll.u32 %v2276_v9, 16  ;;  %v2396_v58 = vshrl.u32 %v2276_v9, 16  ;;  %v844_v27 = vpack.c.bf16 %v812_v10, %v812_v10  ;;  %v5674_v43 = vld [vmem:[%s7772_s3 + $0xf0] sm:$0xff] }
 0x19f   : > { %v1763_v1 = vshll.u32 %v1653_v7, 16  ;;  %v664_v9 = vadd.f32 %v6149_v50, %v663_v11  ;;  %v4929_v21 = vsel %vm6387_vm13, 1.0, %v5862_v6 }
 0x1a0   : > { %v6375_v49 = vrot.slane %v1760_v18, 7  ;;  %v2394_v38 = vrot.slane %v2392_v30, 5  ;;  %v2398_v41 = vrot.slane %v2396_v58, 4  ;;  %v1558_v45 = vunpack.c.l.bf16 %v844_v27  ;;  %2094 = vrot.lane.b32.xlu1 %v844_v27, %s5863_s12  ;;  %v665_v18 = vpop.f32.mrf.mxu0 }
 0x1a1   : > { %v749_v44 = vpop.f32.mrf.mxu1  ;;  %3047 = vmatpush.bf16.msra.mxu2 %v5627_v13  ;;  %v5625_v13 = vld [vmem:[%s7772_s3 + $0x68] sm:$0xff] }
 0x1a2   : > { %v750_v46 = vadd.f32 %v749_v44, %v661_v15  ;;  %v1765_v48 = vor.u32 %v1763_v1, %v6375_v49  ;;  %v2395_v53 = vsel %vm6196_vm0, %v2390_v33, %v2394_v38  ;;  %v1622_v57 = vmul.f32 %v6160_v5, %v1558_v45  ;;  %v5675_v15 = vld [vmem:[%s7772_s3 + $0xf8] sm:$0xff] }
 0x1a3   : > { %2668 = vst.msk [vmem:[#allocation2 + $0x54] sm:$0xf] %vm1999_vm7, %v2395_v53  ;;  %v2245_v40 = vmul.f32 %v4945_v32, %v1558_v45  ;;  %v5008_v62 = vld [vmem:[#allocation2 + $0x48] sm:$0xf0]  ;;  %v2399_v26 = vor.u32 %v2398_v41, %v2394_v38  ;;  %v4851_v32 = vor.u32 %v5558_v39, %v4848_v63  ;;  %v987_v1 = vand.u32 15, %v879_v14  ;;  %3804 = vmatpush.bf16.msra.mxu1 %v5675_v15 }
 0x1a4   : > { %v813_v22 = vmax.f32 %v750_v46, 0.0  ;;  %v6391_v31 = vor.u32 %v5586_v54, %v5008_v62  ;;  %v1766_v2 = vsel %vm6214_vm3, %v1758_v23, %v1765_v48  ;;  %v1654_v3 = vpack.c.bf16 %v1622_v57, %v1622_v57  ;;  %v5626_v46 = vld [vmem:[%s7772_s3 + $0x70] sm:$0xff]  ;;  %v5673_v15 = vld [vmem:[%s7772_s3 + $0xe8] sm:$0xff] }
 0x1a5   : > { %v2277_v7 = vpack.c.bf16 %v2245_v40, %v2245_v40  ;;  %2014 = vst.msk [vmem:[#allocation2 + $0x58] sm:$0xf] %vm1999_vm7, %v1766_v2  ;;  %v2400_v33 = vrot.slane %v2399_v26, 4  ;;  %v880_v53 = vadd.s32 104, %v6151_v51  ;;  %v1767_v54 = vrot.slane %v6375_v49, 4  ;;  %3048 = vmatpush.bf16.msra.mxu2 %v5626_v46 }
 0x1a6   : > { %v845_v10 = vpack.c.bf16 %v813_v22, %v813_v22  ;;  %5232 = vmatmul.msk.bf16.gmra.mxu0 %vm2994_vm2, %v6391_v31  ;;  %v1769_v11 = vshrl.u32 %v1654_v3, 16  ;;  %v1772_v27 = vshll.u32 %v1654_v3, 16  ;;  %vm1423_vm15 = vcmp.ne.s32.totalorder %v987_v1, 0 }
 0x1a7   : > { %v2402_v30 = vshll.u32 %v2277_v7, 16  ;;  %v2406_v58 = vshrl.u32 %v2277_v7, 16  ;;  %3805 = vmatpush.bf16.msra.mxu1 %v5674_v43  ;;  %v666_v2 = vadd.f32 %v6149_v50, %v665_v18 }
 0x1a8   : > { %2096 = vrot.lane.b32.xlu2 %v845_v10, %s5863_s12  ;;  %v1559_v35 = vunpack.c.l.bf16 %v845_v10  ;;  %v6412_v38 = vrot.slane %v1769_v11, 7  ;;  %v994_v10 = vand.u32 15, %v880_v53 }
 0x1a9   : > { %v752_v59 = vpop.f32.mrf.mxu1  ;;  %v2404_v41 = vrot.slane %v2402_v30, 5  ;;  %v2408_v44 = vrot.slane %v2406_v58, 4  ;;  %v668_v58 = vpop.f32.mrf.mxu0  ;;  %3049 = vmatpush.bf16.msra.mxu2 %v5625_v13 }
 0x1aa   : > { %v753_v45 = vadd.f32 %v752_v59, %v664_v9  ;;  %v1623_v23 = vmul.f32 %v4929_v21, %v1559_v35  ;;  %v2246_v48 = vmul.f32 %v6160_v5, %v1559_v35  ;;  %v1774_v57 = vor.u32 %v1772_v27, %v6412_v38 }
 0x1ab   : > { %v2405_v40 = vsel %vm6196_vm0, %v2400_v33, %v2404_v41  ;;  %v2409_v22 = vor.u32 %v2408_v44, %v2404_v41  ;;  %v4946_v9 = vsel %vm1423_vm15, 1.0, %v5862_v6  ;;  %v1776_v35 = vrot.slane %v6412_v38, 4  ;;  %v5588_v41 = vld [vmem:[#allocation2 + $0x54] sm:$0xf]  ;;  %3806 = vmatpush.bf16.msra.mxu1 %v5673_v15 }
 0x1ac   : > { %791 = vmatmul.bf16.gmra.mxu1 %v4851_v32  ;;  %2669 = vst.msk [vmem:[#allocation2 + $0x5c] sm:$0xf] %vm1999_vm7, %v2405_v40  ;;  %v1655_v61 = vpack.c.bf16 %v1623_v23, %v1623_v23  ;;  %v2278_v62 = vpack.c.bf16 %v2246_v48, %v2246_v48  ;;  %v814_v26 = vmax.f32 %v753_v45, 0.0  ;;  %v1775_v14 = vsel %vm6214_vm3, %v1767_v54, %v1774_v57  ;;  %v5560_v45 = vld [vmem:[%s5998_s16 + $0xf4] sm:$0xf]  ;;  %v5624_v57 = vld [vmem:[%s7772_s3 + $0x60] sm:$0xff] }
 0x1ad   : > { %2015 = vst.msk [vmem:[#allocation2 + $0x60] sm:$0xf] %vm1999_vm7, %v1775_v14  ;;  %v2410_v3 = vrot.slane %v2409_v22, 4  ;;  %v881_v44 = vadd.s32 112, %v6151_v51  ;;  %vm1296_vm1 = vcmp.ne.s32.totalorder %v994_v10, 15  ;;  %v5672_v40 = vld [vmem:[%s7772_s3 + $0xe0] sm:$0xff]  ;;  %3050 = vmatpush.bf16.msra.mxu2 %v5624_v57 }
 0x1ae   : > { %v1778_v39 = vshrl.u32 %v1655_v61, 16  ;;  %v2412_v49 = vshll.u32 %v2278_v62, 16  ;;  %v2416_v63 = vshrl.u32 %v2278_v62, 16  ;;  %v846_v7 = vpack.c.bf16 %v814_v26, %v814_v26  ;;  %v4856_v54 = vld [vmem:[%s5998_s16 + $0xf8] sm:$0xf0] }
 0x1af   : > { %v1781_v11 = vshll.u32 %v1655_v61, 16  ;;  %v669_v26 = vadd.f32 %v6149_v50, %v668_v58  ;;  %3807 = vmatpush.bf16.msra.mxu1 %v5672_v40  ;;  %v5635_v50 = vld [vmem:[%s7772_s3 + $0xb8] sm:$0xff] }
 0x1b0   : > { %v6438_v21 = vrot.slane %v1778_v39, 7  ;;  %v2414_v18 = vrot.slane %v2412_v49, 5  ;;  %v2418_v30 = vrot.slane %v2416_v63, 4  ;;  %v1560_v33 = vunpack.c.l.bf16 %v846_v7  ;;  %2098 = vrot.lane.b32.xlu0 %v846_v7, %s5863_s12  ;;  %5697 = vmatpush.bf16.msra.mxu3 %v5635_v50 }
 0x1b1   : > { %v754_v32 = vpop.f32.mrf.mxu1  ;;  %v4930_v39 = vsel %vm1296_vm1, 1.0, %v5862_v6  ;;  %v1001_v49 = vand.u32 15, %v881_v44  ;;  %v4859_v7 = vor.u32 %v5560_v45, %v4856_v54  ;;  %3136 = vmatpush.bf16.msrb.mxu2 %v5635_v50  ;;  %v6494_v54 = vld [vmem:[%s7771_s2] ss:$0 sm:$0xff] }
 0x1b2   : > { %v755_v27 = vadd.f32 %v754_v32, %v666_v2  ;;  %v1783_v59 = vor.u32 %v1781_v11, %v6438_v21  ;;  %v2415_v1 = vsel %vm6196_vm0, %v2410_v3, %v2414_v18  ;;  %v1624_v46 = vmul.f32 %v6160_v5, %v1560_v33  ;;  %v5671_v11 = vld [vmem:[%s7772_s3 + $0xd8] sm:$0xff] }
 0x1b3   : > { %2670 = vst.msk [vmem:[#allocation2 + $0x64] sm:$0xf] %vm1999_vm7, %v2415_v1  ;;  %v2247_v43 = vmul.f32 %v4946_v9, %v1560_v33  ;;  %v5016_v48 = vld [vmem:[#allocation2 + $0x58] sm:$0xf0]  ;;  %v2419_v53 = vor.u32 %v2418_v30, %v2414_v18  ;;  %vm6475_vm4 = vcmp.ne.s32.totalorder %v1001_v49, 0  ;;  %v882_v1 = vadd.s32 120, %v6151_v51  ;;  %3808 = vmatpush.bf16.msra.mxu1 %v5671_v11 }
 0x1b4   : > { %v815_v23 = vmax.f32 %v755_v27, 0.0  ;;  %v6449_v38 = vor.u32 %v5588_v41, %v5016_v48  ;;  %v1784_v22 = vsel %vm6214_vm3, %v1776_v35, %v1783_v59  ;;  %v1656_v61 = vpack.c.bf16 %v1624_v46, %v1624_v46  ;;  %v670_v35 = vpop.f32.mrf.mxu0 }
 0x1b5   : > { %v2279_v62 = vpack.c.bf16 %v2247_v43, %v2247_v43  ;;  %2016 = vst.msk [vmem:[#allocation2 + $0x68] sm:$0xf] %vm1999_vm7, %v1784_v22  ;;  %v2420_v9 = vrot.slane %v2419_v53, 4  ;;  %v1785_v41 = vrot.slane %v6438_v21, 4  ;;  %v5634_v43 = vld [vmem:[%s7772_s3 + $0xb0] sm:$0xff]  ;;  %v671_v57 = vadd.f32 %v6494_v54, %v670_v35 }
 0x1b6   : > { %v847_v14 = vpack.c.bf16 %v815_v23, %v815_v23  ;;  %5233 = vmatmul.msk.bf16.gmra.mxu0 %vm2994_vm2, %v6449_v38  ;;  %v1787_v63 = vshrl.u32 %v1656_v61, 16  ;;  %v1790_v10 = vshll.u32 %v1656_v61, 16  ;;  %v5670_v21 = vld [vmem:[%s7772_s3 + $0xd0] sm:$0xff]  ;;  %5698 = vmatpush.bf16.msra.mxu3 %v5634_v43  ;;  %v1008_v49 = vand.u32 15, %v882_v1 }
 0x1b7   : > { %v2422_v2 = vshll.u32 %v2279_v62, 16  ;;  %v2426_v3 = vshrl.u32 %v2279_v62, 16  ;;  %3137 = vmatpush.bf16.msrb.mxu2 %v5634_v43  ;;  %3809 = vmatpush.bf16.msra.mxu1 %v5670_v21  ;;  %v5668_v43 = vld [vmem:[%s7772_s3 + $0xc0] sm:$0xff] }
 0x1b8   : > { %2100 = vrot.lane.b32.xlu1 %v847_v14, %s5863_s12  ;;  %v1561_v13 = vunpack.c.l.bf16 %v847_v14  ;;  %v6472_v18 = vrot.slane %v1787_v63, 7  ;;  %v5633_v63 = vld [vmem:[%s7772_s3 + $0xa8] sm:$0xff]  ;;  %vm6519_vm6 = vcmp.ne.s32.totalorder %v1008_v49, 15 }
 0x1b9   : > { %v757_v15 = vpop.f32.mrf.mxu1  ;;  %v2424_v30 = vrot.slane %v2422_v2, 5  ;;  %v2428_v58 = vrot.slane %v2426_v3, 4 }
 0x1ba   : > { %v758_v32 = vadd.f32 %v757_v15, %v669_v26  ;;  %v1625_v33 = vmul.f32 %v4930_v39, %v1561_v13  ;;  %v2248_v27 = vmul.f32 %v6160_v5, %v1561_v13  ;;  %v1792_v44 = vor.u32 %v1790_v10, %v6472_v18  ;;  %v5669_v10 = vld [vmem:[%s7772_s3 + $0xc8] sm:$0xff]  ;;  %5699 = vmatpush.bf16.msra.mxu3 %v5633_v63 }
 0x1bb   : > { %v2425_v45 = vsel %vm6196_vm0, %v2420_v9, %v2424_v30  ;;  %v2429_v46 = vor.u32 %v2428_v58, %v2424_v30  ;;  %v4947_v26 = vsel %vm6475_vm4, 1.0, %v5862_v6  ;;  %v1794_v30 = vrot.slane %v6472_v18, 4  ;;  %3138 = vmatpush.bf16.msrb.mxu2 %v5633_v63  ;;  %3810 = vmatpush.bf16.msra.mxu1 %v5669_v10 }
 0x1bc   : > { %796 = vmatmul.bf16.gmra.mxu1 %v4859_v7  ;;  %2671 = vst.msk [vmem:[#allocation2 + $0x6c] sm:$0xf] %vm1999_vm7, %v2425_v45  ;;  %v1657_v23 = vpack.c.bf16 %v1625_v33, %v1625_v33  ;;  %v2280_v48 = vpack.c.bf16 %v2248_v27, %v2248_v27  ;;  %v816_v53 = vmax.f32 %v758_v32, 0.0  ;;  %v1793_v40 = vsel %vm6214_vm3, %v1785_v41, %v1792_v44  ;;  %v5590_v33 = vld [vmem:[#allocation2 + $0x64] sm:$0xf] }
 0x1bd   : > { %2017 = vst.msk [vmem:[#allocation2 + $0x70] sm:$0xf] %vm1999_vm7, %v1793_v40  ;;  %v2430_v14 = vrot.slane %v2429_v46, 4  ;;  %v883_v45 = vadd.s32 128, %v6151_v51  ;;  %v5632_v46 = vld [vmem:[%s7772_s3 + $0xa0] sm:$0xff] }
 0x1be   : > { %v1796_v22 = vshrl.u32 %v1657_v23, 16  ;;  %v2432_v61 = vshll.u32 %v2280_v48, 16  ;;  %v2436_v62 = vshrl.u32 %v2280_v48, 16  ;;  %v848_v39 = vpack.c.bf16 %v816_v53, %v816_v53  ;;  %5700 = vmatpush.bf16.msra.mxu3 %v5632_v46 }
 0x1bf   : > { %v1799_v3 = vshll.u32 %v1657_v23, 16  ;;  %3139 = vmatpush.bf16.msrb.mxu2 %v5632_v46  ;;  %v1015_v63 = vand.u32 15, %v883_v45  ;;  %3811 = vmatpush.bf16.msra.mxu1 %v5668_v43  ;;  %v676_v46 = vadd.f32 %v6494_v54, %v6080_v56 }
 0x1c0   : > { %v6506_v2 = vrot.slane %v1796_v22, 7  ;;  %v2434_v7 = vrot.slane %v2432_v61, 5  ;;  %v2438_v50 = vrot.slane %v2436_v62, 4  ;;  %v1562_v13 = vunpack.c.l.bf16 %v848_v39  ;;  %2102 = vrot.lane.b32.xlu2 %v848_v39, %s5863_s12 }
 0x1c1   : > { %v759_v9 = vpop.f32.mrf.mxu1  ;;  %v4931_v62 = vsel %vm6519_vm6, 1.0, %v5862_v6  ;;  %vm1427_vm8 = vcmp.ne.s32.totalorder %v1015_v63, 0 }
 0x1c2   : > { %v760_v15 = vadd.f32 %v759_v9, %v671_v57  ;;  %v2075_v11 = vpop.permute.xlu0 %2074  ;;  %v1801_v58 = vor.u32 %v1799_v3, %v6506_v2  ;;  %v2435_v32 = vsel %vm6196_vm0, %v2430_v14, %v2434_v7  ;;  %v1626_v27 = vmul.f32 %v6160_v5, %v1562_v13 }
 0x1c3   : > { %2171 = vst.msk [vmem:[#allocation2 + $0x10] sm:$0xf] %vm2170_vm5, %v2075_v11  ;;  %v2249_v35 = vmul.f32 %v4947_v26, %v1562_v13  ;;  %v5024_v18 = vld [vmem:[#allocation2 + $0x68] sm:$0xf0]  ;;  %v2439_v41 = vor.u32 %v2438_v50, %v2434_v7  ;;  %v674_v57 = vadd.f32 %v6494_v54, %v6076_v52  ;;  %v1803_v11 = vrot.slane %v6506_v2, 4 }
 0x1c4   : > { %2672 = vst.msk [vmem:[#allocation2 + $0x74] sm:$0xf] %vm1999_vm7, %v2435_v32  ;;  %v817_v59 = vmax.f32 %v760_v15, 0.0  ;;  %v6523_v44 = vor.u32 %v5590_v33, %v5024_v18  ;;  %v1802_v23 = vsel %vm6214_vm3, %v1794_v30, %v1801_v58  ;;  %v1658_v48 = vpack.c.bf16 %v1626_v27, %v1626_v27 }
 0x1c5   : > { %v2281_v53 = vpack.c.bf16 %v2249_v35, %v2249_v35  ;;  %2018 = vst.msk [vmem:[#allocation2 + $0x78] sm:$0xf] %vm1999_vm7, %v1802_v23  ;;  %v2440_v26 = vrot.slane %v2439_v41, 4  ;;  %v884_v15 = vadd.s32 136, %v6151_v51 }
 0x1c6   : > { %v849_v21 = vpack.c.bf16 %v817_v59, %v817_v59  ;;  %5234 = vmatmul.msk.bf16.gmra.mxu0 %vm2994_vm2, %v6523_v44  ;;  %v1805_v40 = vshrl.u32 %v1658_v48, 16  ;;  %v1808_v14 = vshll.u32 %v1658_v48, 16  ;;  %v4948_v48 = vsel %vm1427_vm8, 1.0, %v5862_v6 }
 0x1c7   : > { %v2442_v22 = vshll.u32 %v2281_v53, 16  ;;  %v2446_v61 = vshrl.u32 %v2281_v53, 16  ;;  %v1022_v45 = vand.u32 15, %v884_v15 }
 0x1c8   : > { %2104 = vrot.lane.b32.xlu0 %v849_v21, %s5863_s12  ;;  %v1563_v39 = vunpack.c.l.bf16 %v849_v21  ;;  %v1807_v52 = vrot.slane %v1805_v40, 7 }
 0x1c9   : > { %v762_v49 = vpop.f32.mrf.mxu1  ;;  %v2444_v3 = vrot.slane %v2442_v22, 5  ;;  %v2448_v7 = vrot.slane %v2446_v61, 4  ;;  %vm6563_vm9 = vcmp.ne.s32.totalorder %v1022_v45, 15 }
 0x1ca   : > { %v763_v50 = vadd.f32 %v762_v49, %v674_v57  ;;  %v1627_v9 = vmul.f32 %v4931_v62, %v1563_v39  ;;  %v2250_v10 = vmul.f32 %v6160_v5, %v1563_v39  ;;  %v2077_v13 = vpop.permute.xlu0 %2076  ;;  %v1810_v30 = vor.u32 %v1808_v14, %v1807_v52  ;;  %v2083_v33 = vpop.permute.xlu2 %2082 }
 0x1cb   : > { %v2445_v58 = vsel %vm6196_vm0, %v2440_v26, %v2444_v3  ;;  %v2449_v32 = vor.u32 %v2448_v7, %v2444_v3  ;;  %2172 = vst.msk [vmem:[#allocation2 + $0x18] sm:$0xf] %vm2170_vm5, %v2077_v13  ;;  %v4982_v26 = vld [vmem:[#allocation2 + $0x10] sm:$0xf]  ;;  %v1812_v14 = vrot.slane %v1807_v52, 4 }
 0x1cc   : > { %2673 = vst.msk [vmem:[#allocation2 + $0x7c] sm:$0xf] %vm1999_vm7, %v2445_v58  ;;  %v1659_v27 = vpack.c.bf16 %v1627_v9, %v1627_v9  ;;  %v2282_v35 = vpack.c.bf16 %v2250_v10, %v2250_v10  ;;  %v818_v59 = vmax.f32 %v763_v50, 0.0  ;;  %v1811_v1 = vsel %vm6214_vm3, %v1803_v11, %v1810_v30  ;;  %v5592_v3 = vld [vmem:[#allocation2 + $0x74] sm:$0xf] }
 0x1cd   : > { %2175 = vst.msk [vmem:[#allocation2 + $0x30] sm:$0xf] %vm2170_vm5, %v2083_v33  ;;  %v2450_v43 = vrot.slane %v2449_v32, 4  ;;  %v885_v58 = vadd.s32 144, %v6151_v51 }
 0x1ce   : > { %v1814_v2 = vshrl.u32 %v1659_v27, 16  ;;  %v2452_v18 = vshll.u32 %v2282_v35, 16  ;;  %v2456_v41 = vshrl.u32 %v2282_v35, 16  ;;  %2019 = vst.msk [vmem:[#allocation2 + $0x80] sm:$0xf] %vm1999_vm7, %v1811_v1  ;;  %v850_v23 = vpack.c.bf16 %v818_v59, %v818_v59 }
 0x1cf   : > { %v1817_v21 = vshll.u32 %v1659_v27, 16  ;;  %v679_v59 = vadd.f32 %v6494_v54, %v6084_v60 }
 0x1d0   : > { %v6557_v53 = vrot.slane %v1814_v2, 7  ;;  %v2454_v57 = vrot.slane %v2452_v18, 5  ;;  %v2458_v40 = vrot.slane %v2456_v41, 4  ;;  %v1564_v61 = vunpack.c.l.bf16 %v850_v23  ;;  %2106 = vrot.lane.b32.xlu1 %v850_v23, %s5863_s12 }
 0x1d1   : > { %v764_v22 = vpop.f32.mrf.mxu1  ;;  %v4932_v41 = vsel %vm6563_vm9, 1.0, %v5862_v6 }
 0x1d2   : > { %v765_v62 = vadd.f32 %v764_v22, %v676_v46  ;;  %v1819_v39 = vor.u32 %v1817_v21, %v6557_v53  ;;  %v2455_v56 = vsel %vm6196_vm0, %v2450_v43, %v2454_v57  ;;  %v5581_v63 = vld [vmem:[#allocation2 + $0x14] sm:$0xf0]  ;;  %v1628_v7 = vmul.f32 %v6160_v5, %v1564_v61  ;;  %v2085_v10 = vpop.permute.xlu2 %2084 }
 0x1d3   : > { %2674 = vst.msk [vmem:[#allocation2 + $0x84] sm:$0xf] %vm1999_vm7, %v2455_v56  ;;  %v2251_v50 = vmul.f32 %v4948_v48, %v1564_v61  ;;  %v2079_v13 = vpop.permute.xlu1 %2078  ;;  %v6569_v52 = vor.u32 %v5581_v63, %v4982_v26  ;;  %v5032_v15 = vld [vmem:[#allocation2 + $0x78] sm:$0xf0]  ;;  %v2459_v11 = vor.u32 %v2458_v40, %v2454_v57  ;;  %v1029_v48 = vand.u32 15, %v885_v58 }
 0x1d4   : > { %v819_v9 = vmax.f32 %v765_v62, 0.0  ;;  %2176 = vst.msk [vmem:[#allocation2 + $0x38] sm:$0xf] %vm2170_vm5, %v2085_v10  ;;  %v6572_v30 = vor.u32 %v5592_v3, %v5032_v15  ;;  %v1820_v32 = vsel %vm6214_vm3, %v1812_v14, %v1819_v39  ;;  %v1660_v33 = vpack.c.bf16 %v1628_v7, %v1628_v7 }
 0x1d5   : > { %v2283_v27 = vpack.c.bf16 %v2251_v50, %v2251_v50  ;;  %2173 = vst.msk [vmem:[#allocation2 + $0x20] sm:$0xf] %vm2170_vm5, %v2079_v13  ;;  %3051 = vmatmul.bf16.vlgmr.msra.gmra.mxu2 %v6569_v52  ;;  %v2460_v45 = vrot.slane %v2459_v11, 4  ;;  %v886_v62 = vadd.s32 152, %v6151_v51  ;;  %vm1429_vm10 = vcmp.ne.s32.totalorder %v1029_v48, 0 }
 0x1d6   : > { %v851_v35 = vpack.c.bf16 %v819_v9, %v819_v9  ;;  %5235 = vmatmul.msk.bf16.gmra.mxu0 %vm2994_vm2, %v6572_v30  ;;  %2020 = vst.msk [vmem:[#allocation2 + $0x88] sm:$0xf] %vm1999_vm7, %v1820_v32  ;;  %v1823_v1 = vshrl.u32 %v1660_v33, 16  ;;  %v1826_v46 = vshll.u32 %v1660_v33, 16  ;;  %v681_v7 = vadd.f32 %v6494_v54, %v6088_v0 }
 0x1d7   : > { %v2462_v2 = vshll.u32 %v2283_v27, 16  ;;  %v2466_v18 = vshrl.u32 %v2283_v27, 16  ;;  %v1821_v50 = vrot.slane %v6557_v53, 4  ;;  %v1036_v15 = vand.u32 15, %v886_v62 }
 0x1d8   : > { %2108 = vrot.lane.b32.xlu2 %v851_v35, %s5863_s12  ;;  %v1565_v43 = vunpack.c.l.bf16 %v851_v35  ;;  %v1825_v60 = vrot.slane %v1823_v1, 7  ;;  %v4949_v32 = vsel %vm1429_vm10, 1.0, %v5862_v6 }
 0x1d9   : > { %v767_v23 = vpop.f32.mrf.mxu1  ;;  %v2464_v21 = vrot.slane %v2462_v2, 5  ;;  %v2468_v57 = vrot.slane %v2466_v18, 4  ;;  %vm6607_vm12 = vcmp.ne.s32.totalorder %v1036_v15, 15 }
 0x1da   : > { %v768_v40 = vadd.f32 %v767_v23, %v679_v59  ;;  %v1629_v22 = vmul.f32 %v4932_v41, %v1565_v43  ;;  %v2252_v61 = vmul.f32 %v6160_v5, %v1565_v43  ;;  %v1828_v26 = vor.u32 %v1826_v46, %v1825_v60  ;;  %v5594_v43 = vld [vmem:[#allocation2 + $0x84] sm:$0xf] }
 0x1db   : > { %v2465_v14 = vsel %vm6196_vm0, %v2460_v45, %v2464_v21  ;;  %v2469_v39 = vor.u32 %v2468_v57, %v2464_v21  ;;  %v2081_v56 = vpop.permute.xlu1 %2080  ;;  %v1830_v18 = vrot.slane %v1825_v60, 4  ;;  %v4933_v15 = vsel %vm6607_vm12, 1.0, %v5862_v6 }
 0x1dc   : > { %2675 = vst.msk [vmem:[#allocation2 + $0x8c] sm:$0xf] %vm1999_vm7, %v2465_v14  ;;  %v1661_v49 = vpack.c.bf16 %v1629_v22, %v1629_v22  ;;  %v2284_v63 = vpack.c.bf16 %v2252_v61, %v2252_v61  ;;  %v820_v3 = vmax.f32 %v768_v40, 0.0  ;;  %v1829_v33 = vsel %vm6214_vm3, %v1821_v50, %v1828_v26  ;;  %v4990_v22 = vld [vmem:[#allocation2 + $0x20] sm:$0xf] }
 0x1dd   : > { %2174 = vst.msk [vmem:[#allocation2 + $0x28] sm:$0xf] %vm2170_vm5, %v2081_v56  ;;  %v2470_v11 = vrot.slane %v2469_v39, 4  ;;  %v887_v40 = vadd.s32 160, %v6151_v51 }
 0x1de   : > { %v1832_v9 = vshrl.u32 %v1661_v49, 16  ;;  %v2472_v10 = vshll.u32 %v2284_v63, 16  ;;  %v2476_v13 = vshrl.u32 %v2284_v63, 16  ;;  %v852_v58 = vpack.c.bf16 %v820_v3, %v820_v3  ;;  %2021 = vst.msk [vmem:[#allocation2 + $0x90] sm:$0xf] %vm1999_vm7, %v1829_v33 }
 0x1df   : > { %v1835_v35 = vshll.u32 %v1661_v49, 16  ;;  %v5270_v3 = vld [vmem:[#allocation2 + $0x20] sm:$0xf]  ;;  %v1043_v33 = vand.u32 15, %v887_v40 }
 0x1e0   : > { %v6600_v27 = vrot.slane %v1832_v9, 7  ;;  %v2474_v59 = vrot.slane %v2472_v10, 5  ;;  %v2478_v0 = vrot.slane %v2476_v13, 4  ;;  %v1566_v53 = vunpack.c.l.bf16 %v852_v58  ;;  %2110 = vrot.lane.b32.xlu0 %v852_v58, %s5863_s12 }
 0x1e1   : > { %v769_v1 = vpop.f32.mrf.mxu1  ;;  %vm1431_vm13 = vcmp.ne.s32.totalorder %v1043_v33, 0 }
 0x1e2   : > { %v770_v2 = vadd.f32 %v769_v1, %v681_v7  ;;  %v1837_v41 = vor.u32 %v1835_v35, %v6600_v27  ;;  %v2475_v45 = vsel %vm6196_vm0, %v2470_v11, %v2474_v59  ;;  %v1630_v23 = vmul.f32 %v6160_v5, %v1566_v53 }
 0x1e3   : > { %2676 = vst.msk [vmem:[#allocation2 + $0x94] sm:$0xf] %vm1999_vm7, %v2475_v45  ;;  %v2253_v48 = vmul.f32 %v4949_v32, %v1566_v53  ;;  %v5040_v57 = vld [vmem:[#allocation2 + $0x88] sm:$0xf0]  ;;  %v2479_v60 = vor.u32 %v2478_v0, %v2474_v59  ;;  %v684_v7 = vadd.f32 %v6494_v54, %v6092_v4 }
 0x1e4   : > { %v821_v21 = vmax.f32 %v770_v2, 0.0  ;;  %v5583_v61 = vld [vmem:[#allocation2 + $0x24] sm:$0xf0]  ;;  %v5043_v62 = vor.u32 %v5594_v43, %v5040_v57  ;;  %v1838_v14 = vsel %vm6214_vm3, %v1830_v18, %v1837_v41  ;;  %v1662_v39 = vpack.c.bf16 %v1630_v23, %v1630_v23 }
 0x1e5   : > { %v5637_v26 = vld [vmem:[#allocation2 + $0x24] sm:$0xf0]  ;;  %v2285_v56 = vpack.c.bf16 %v2253_v48, %v2253_v48  ;;  %v6616_v63 = vor.u32 %v5583_v61, %v4990_v22  ;;  %2022 = vst.msk [vmem:[#allocation2 + $0x98] sm:$0xf] %vm1999_vm7, %v1838_v14  ;;  %v2480_v11 = vrot.slane %v2479_v60, 4  ;;  %v888_v18 = vadd.s32 168, %v6151_v51 }
 0x1e6   : > { %v853_v49 = vpack.c.bf16 %v821_v21, %v821_v21  ;;  %5163 = vmatmul.msk.bf16.vlgmr.msra.gmra.mxu3 %vm2994_vm2, %v5043_v62  ;;  %5236 = vmatmul.msk.bf16.gmra.mxu0 %vm2994_vm2, %v5043_v62  ;;  %v5271_v50 = vor.u32 %v5637_v26, %v5270_v3  ;;  %v1841_v9 = vshrl.u32 %v1662_v39, 16  ;;  %v1844_v58 = vshll.u32 %v1662_v39, 16 }
 0x1e7   : > { %v2482_v10 = vshll.u32 %v2285_v56, 16  ;;  %v2486_v13 = vshrl.u32 %v2285_v56, 16  ;;  %3056 = vmatmul.bf16.gmra.mxu2 %v6616_v63  ;;  %v1839_v41 = vrot.slane %v6600_v27, 4  ;;  %v686_v27 = vadd.f32 %v6494_v54, %v6096_v8 }
 0x1e8   : > { %2112 = vrot.lane.b32.xlu1 %v853_v49, %s5863_s12  ;;  %v1567_v32 = vunpack.c.l.bf16 %v853_v49  ;;  %3812 = vmatmul.bf16.vlgmr.msra.gmra.mxu1 %v5271_v50  ;;  %v1843_v35 = vrot.slane %v1841_v9, 7  ;;  %v4950_v14 = vsel %vm1431_vm13, 1.0, %v5862_v6  ;;  %v1050_v39 = vand.u32 15, %v888_v18  ;;  %v4998_v18 = vld [vmem:[#allocation2 + $0x30] sm:$0xf] }
 0x1e9   : > { %v772_v4 = vpop.f32.mrf.mxu1  ;;  %v2484_v59 = vrot.slane %v2482_v10, 5  ;;  %v2488_v0 = vrot.slane %v2486_v13, 4  ;;  %v5585_v10 = vld [vmem:[#allocation2 + $0x34] sm:$0xf0] }
 0x1ea   : > { %v773_v1 = vadd.f32 %v772_v4, %v684_v7  ;;  %v1631_v53 = vmul.f32 %v4933_v15, %v1567_v32  ;;  %v2254_v2 = vmul.f32 %v6160_v5, %v1567_v32  ;;  %v1846_v45 = vor.u32 %v1844_v58, %v1843_v35  ;;  %v2091_v23 = vpop.permute.xlu2 %2090  ;;  %v5596_v58 = vld [vmem:[#allocation2 + $0x94] sm:$0xf]  ;;  %v5639_v32 = vld [vmem:[#allocation2 + $0x34] sm:$0xf0] }
 0x1eb   : > { %v2485_v46 = vsel %vm6196_vm0, %v2480_v11, %v2484_v59  ;;  %v2489_v43 = vor.u32 %v2488_v0, %v2484_v59  ;;  %2179 = vst.msk [vmem:[#allocation2 + $0x50] sm:$0xf] %vm2170_vm5, %v2091_v23  ;;  %v1848_v13 = vrot.slane %v1843_v35, 4  ;;  %v889_v4 = vadd.s32 176, %v6151_v51 }
 0x1ec   : > { %2677 = vst.msk [vmem:[#allocation2 + $0x9c] sm:$0xf] %vm1999_vm7, %v2485_v46  ;;  %v1663_v48 = vpack.c.bf16 %v1631_v53, %v1631_v53  ;;  %v2286_v21 = vpack.c.bf16 %v2254_v2, %v2254_v2  ;;  %v822_v57 = vmax.f32 %v773_v1, 0.0  ;;  %v1847_v40 = vsel %vm6214_vm3, %v1839_v41, %v1846_v45 }
 0x1ed   : > { %2023 = vst.msk [vmem:[#allocation2 + $0xa0] sm:$0xf] %vm1999_vm7, %v1847_v40  ;;  %v2490_v62 = vrot.slane %v2489_v43, 4  ;;  %vm6650_vm15 = vcmp.ne.s32.totalorder %v1050_v39, 15 }
 0x1ee   : > { %v1850_v60 = vshrl.u32 %v1663_v48, 16  ;;  %v2492_v22 = vshll.u32 %v2286_v21, 16  ;;  %v2496_v61 = vshrl.u32 %v2286_v21, 16  ;;  %v854_v26 = vpack.c.bf16 %v822_v57, %v822_v57  ;;  %v5278_v21 = vld [vmem:[#allocation2 + $0x30] sm:$0xf] }
 0x1ef   : > { %v1853_v49 = vshll.u32 %v1663_v48, 16  ;;  %v6657_v48 = vor.u32 %v5585_v10, %v4998_v18  ;;  %v689_v57 = vadd.f32 %v6494_v54, %v6100_v12  ;;  %v5279_v40 = vor.u32 %v5639_v32, %v5278_v21 }
 0x1f0   : > { %v6641_v56 = vrot.slane %v1850_v60, 7  ;;  %v2494_v3 = vrot.slane %v2492_v22, 5  ;;  %v2498_v7 = vrot.slane %v2496_v61, 4  ;;  %v1568_v9 = vunpack.c.l.bf16 %v854_v26  ;;  %2114 = vrot.lane.b32.xlu2 %v854_v26, %s5863_s12 }
 0x1f1   : > { %v774_v50 = vpop.f32.mrf.mxu1  ;;  %v890_v60 = vadd.s32 184, %v6151_v51  ;;  %v4934_v26 = vsel %vm6650_vm15, 1.0, %v5862_v6 }
 0x1f2   : > { %v775_v8 = vadd.f32 %v774_v50, %v686_v27  ;;  %v1855_v15 = vor.u32 %v1853_v49, %v6641_v56  ;;  %v2495_v11 = vsel %vm6196_vm0, %v2490_v62, %v2494_v3  ;;  %v1632_v33 = vmul.f32 %v6160_v5, %v1568_v9  ;;  %v2087_v1 = vpop.permute.xlu0 %2086 }
 0x1f3   : > { %2678 = vst.msk [vmem:[#allocation2 + $0xa4] sm:$0xf] %vm1999_vm7, %v2495_v11  ;;  %v2255_v59 = vmul.f32 %v4950_v14, %v1568_v9  ;;  %v5048_v53 = vld [vmem:[#allocation2 + $0x98] sm:$0xf0]  ;;  %v2499_v2 = vor.u32 %v2498_v7, %v2494_v3  ;;  %v1057_v27 = vand.u32 15, %v889_v4  ;;  %v1064_v11 = vand.u32 15, %v890_v60 }
 0x1f4   : > { %v823_v0 = vmax.f32 %v775_v8, 0.0  ;;  %2177 = vst.msk [vmem:[#allocation2 + $0x40] sm:$0xf] %vm2170_vm5, %v2087_v1  ;;  %v5051_v41 = vor.u32 %v5596_v58, %v5048_v53  ;;  %v1856_v45 = vsel %vm6214_vm3, %v1848_v13, %v1855_v15  ;;  %v1664_v46 = vpack.c.bf16 %v1632_v33, %v1632_v33 }
 0x1f5   : > { %v2287_v43 = vpack.c.bf16 %v2255_v59, %v2255_v59  ;;  %2024 = vst.msk [vmem:[#allocation2 + $0xa8] sm:$0xf] %vm1999_vm7, %v1856_v45  ;;  %v2500_v12 = vrot.slane %v2499_v2, 4  ;;  %vm6673_vm1 = vcmp.ne.s32.totalorder %v1057_v27, 0  ;;  %v1857_v58 = vrot.slane %v6641_v56, 4 }
 0x1f6   : > { %v855_v23 = vpack.c.bf16 %v823_v0, %v823_v0  ;;  %5164 = vmatmul.msk.bf16.gmra.mxu3 %vm2994_vm2, %v5051_v41  ;;  %5237 = vmatmul.msk.bf16.gmra.mxu0 %vm2994_vm2, %v5051_v41  ;;  %v1859_v22 = vshrl.u32 %v1664_v46, 16  ;;  %v1862_v14 = vshll.u32 %v1664_v46, 16  ;;  %v691_v53 = vadd.f32 %v6494_v54, %v6104_v16 }
 0x1f7   : > { %v2502_v61 = vshll.u32 %v2287_v43, 16  ;;  %v2506_v62 = vshrl.u32 %v2287_v43, 16  ;;  %3061 = vmatmul.bf16.gmra.mxu2 %v6657_v48  ;;  %v4951_v41 = vsel %vm6673_vm1, 1.0, %v5862_v6  ;;  %vm6691_vm4 = vcmp.ne.s32.totalorder %v1064_v11, 15 }
 0x1f8   : > { %2116 = vrot.lane.b32.xlu0 %v855_v23, %s5863_s12  ;;  %v1569_v39 = vunpack.c.l.bf16 %v855_v23  ;;  %3817 = vmatmul.bf16.gmra.mxu1 %v5279_v40  ;;  %v6670_v3 = vrot.slane %v1859_v22, 7  ;;  %v6696_v16 = vadd.s32 192, %v6151_v51 }
 0x1f9   : > { %v777_v49 = vpop.f32.mrf.mxu1  ;;  %v2504_v7 = vrot.slane %v2502_v61, 5  ;;  %v2508_v50 = vrot.slane %v2506_v62, 4 }
 0x1fa   : > { %v778_v9 = vadd.f32 %v777_v49, %v689_v57  ;;  %v2089_v8 = vpop.permute.xlu1 %2088  ;;  %v1633_v10 = vmul.f32 %v4934_v26, %v1569_v39  ;;  %v2256_v13 = vmul.f32 %v6160_v5, %v1569_v39  ;;  %v1864_v32 = vor.u32 %v1862_v14, %v6670_v3  ;;  %v5598_v26 = vld [vmem:[#allocation2 + $0xa4] sm:$0xf] }
 0x1fb   : > { %2178 = vst.msk [vmem:[#allocation2 + $0x48] sm:$0xf] %vm2170_vm5, %v2089_v8  ;;  %v2505_v4 = vsel %vm6196_vm0, %v2500_v12, %v2504_v7  ;;  %v2509_v33 = vor.u32 %v2508_v50, %v2504_v7  ;;  %v5006_v49 = vld [vmem:[#allocation2 + $0x40] sm:$0xf]  ;;  %v1866_v15 = vrot.slane %v6670_v3, 4  ;;  %v4935_v3 = vsel %vm6691_vm4, 1.0, %v5862_v6 }
 0x1fc   : > { %2679 = vst.msk [vmem:[#allocation2 + $0xac] sm:$0xf] %vm1999_vm7, %v2505_v4  ;;  %v1665_v59 = vpack.c.bf16 %v1633_v10, %v1633_v10  ;;  %v2288_v0 = vpack.c.bf16 %v2256_v13, %v2256_v13  ;;  %v824_v1 = vmax.f32 %v778_v9, 0.0  ;;  %v1865_v2 = vsel %vm6214_vm3, %v1857_v58, %v1864_v32  ;;  %v5286_v7 = vld [vmem:[#allocation2 + $0x40] sm:$0xf] }
 0x1fd   : > { %2025 = vst.msk [vmem:[#allocation2 + $0xb0] sm:$0xf] %vm1999_vm7, %v1865_v2  ;;  %v2510_v45 = vrot.slane %v2509_v33, 4  ;;  %vm2037_vm4 = vcmask 516096  }
 0x1fe   : > { %v1868_v35 = vshrl.u32 %v1665_v59, 16  ;;  %v2512_v18 = vshll.u32 %v2288_v0, 16  ;;  %v2516_v56 = vshrl.u32 %v2288_v0, 16  ;;  %v856_v46 = vpack.c.bf16 %v824_v1, %v824_v1 }
 0x1ff   : > { %v1871_v21 = vshll.u32 %v1665_v59, 16  ;;  %v694_v0 = vadd.f32 %v6494_v54, %v6108_v20 }
 0x200   : > { %v6698_v23 = vrot.slane %v1868_v35, 7  ;;  %v2514_v57 = vrot.slane %v2512_v18, 5  ;;  %v2518_v40 = vrot.slane %v2516_v56, 4  ;;  %v1570_v60 = vunpack.c.l.bf16 %v856_v46  ;;  %2118 = vrot.lane.b32.xlu1 %v856_v46, %s5863_s12 }
 0x201   : > { %v779_v27 = vpop.f32.mrf.mxu1 }
 0x202   : > { %v780_v22 = vadd.f32 %v779_v27, %v691_v53  ;;  %v2097_v61 = vpop.permute.xlu2 %2096  ;;  %v5587_v62 = vld [vmem:[#allocation2 + $0x44] sm:$0xf0]  ;;  %v1873_v14 = vor.u32 %v1871_v21, %v6698_v23  ;;  %v2515_v39 = vsel %vm6196_vm0, %v2510_v45, %v2514_v57  ;;  %v1634_v50 = vmul.f32 %v6160_v5, %v1570_v60 }
 0x203   : > { %v5641_v12 = vld [vmem:[#allocation2 + $0x44] sm:$0xf0]  ;;  %2182 = vst.msk [vmem:[#allocation2 + $0x68] sm:$0xf] %vm2170_vm5, %v2097_v61  ;;  %v2257_v9 = vmul.f32 %v4951_v41, %v1570_v60  ;;  %v6707_v10 = vor.u32 %v5587_v62, %v5006_v49  ;;  %v5056_v13 = vld [vmem:[#allocation2 + $0xa8] sm:$0xf0]  ;;  %v2519_v11 = vor.u32 %v2518_v40, %v2514_v57 }
 0x204   : > { %2680 = vst.msk [vmem:[#allocation2 + $0xb4] sm:$0xf] %vm1999_vm7, %v2515_v39  ;;  %v825_v8 = vmax.f32 %v780_v22, 0.0  ;;  %v5059_v58 = vor.u32 %v5598_v26, %v5056_v13  ;;  %v5287_v32 = vor.u32 %v5641_v12, %v5286_v7  ;;  %v1666_v4 = vpack.c.bf16 %v1634_v50, %v1634_v50 }
 0x205   : > { %v2289_v33 = vpack.c.bf16 %v2257_v9, %v2257_v9  ;;  %v1874_v1 = vsel %vm6214_vm3, %v1866_v15, %v1873_v14  ;;  %v2520_v20 = vrot.slane %v2519_v11, 4  ;;  %v1071_v45 = vand.u32 15, %v6696_v16 }
 0x206   : > { %v857_v59 = vpack.c.bf16 %v825_v8, %v825_v8  ;;  %5165 = vmatmul.msk.bf16.gmra.mxu3 %vm2994_vm2, %v5059_v58  ;;  %5238 = vmatmul.msk.bf16.gmra.mxu0 %vm2994_vm2, %v5059_v58  ;;  %v1877_v53 = vshrl.u32 %v1666_v4, 16  ;;  %2026 = vst.msk [vmem:[#allocation2 + $0xb8] sm:$0xf] %vm1999_vm7, %v1874_v1  ;;  %v1880_v18 = vshll.u32 %v1666_v4, 16  ;;  %v892_v22 = vadd.s32 200, %v6151_v51  ;;  %v6739_v58 = vpop.f32.mrf.mxu0 }
 0x207   : > { %v2522_v2 = vshll.u32 %v2289_v33, 16  ;;  %v2526_v35 = vshrl.u32 %v2289_v33, 16  ;;  %3066 = vmatmul.bf16.gmra.mxu2 %v6707_v10  ;;  %v1875_v61 = vrot.slane %v6698_v23, 4  ;;  %vm1435_vm6 = vcmp.ne.s32.totalorder %v1071_v45, 0 }
 0x208   : > { %2120 = vrot.lane.b32.xlu2 %v857_v59, %s5863_s12  ;;  %v1571_v56 = vunpack.c.l.bf16 %v857_v59  ;;  %3822 = vmatmul.bf16.gmra.mxu1 %v5287_v32  ;;  %v6723_v46 = vrot.slane %v1877_v53, 7  ;;  %v1078_v8 = vand.u32 15, %v892_v22  ;;  %v696_v23 = vadd.f32 %v6494_v54, %v6112_v24 }
 0x209   : > { %v782_v41 = vpop.f32.mrf.mxu1  ;;  %v2524_v21 = vrot.slane %v2522_v2, 5  ;;  %v2528_v57 = vrot.slane %v2526_v35, 4  ;;  %v4952_v11 = vsel %vm1435_vm6, 1.0, %v5862_v6  ;;  %v5014_v2 = vld [vmem:[#allocation2 + $0x50] sm:$0xf]  ;;  %v893_v45 = vadd.s32 208, %v6151_v51  ;;  %vm6946_vm6 = vmand %vm2037_vm4, %vm1676_vm14 }
 0x20a   : > { %v783_v40 = vadd.f32 %v782_v41, %v694_v0  ;;  %v2093_v43 = vpop.permute.xlu0 %2092  ;;  %v1635_v27 = vmul.f32 %v4935_v3, %v1571_v56  ;;  %v2258_v60 = vmul.f32 %v6160_v5, %v1571_v56  ;;  %v1882_v62 = vor.u32 %v1880_v18, %v6723_v46  ;;  %v5294_v41 = vld [vmem:[#allocation2 + $0x50] sm:$0xf]  ;;  %vm6958_vm14 = vmand %vm1999_vm7, %vm2299_vm11 }
 0x20b   : > { %2180 = vst.msk [vmem:[#allocation2 + $0x58] sm:$0xf] %vm2170_vm5, %v2093_v43  ;;  %v2525_v16 = vsel %vm6196_vm0, %v2520_v20, %v2524_v21  ;;  %v2529_v26 = vor.u32 %v2528_v57, %v2524_v21  ;;  %vm6747_vm8 = vcmp.ne.s32.totalorder %v1078_v8, 15  ;;  %v5600_v56 = vld [vmem:[#allocation2 + $0xb4] sm:$0xf]  ;;  %v1884_v22 = vrot.slane %v6723_v46, 4 }
 0x20c   : > { %2681 = vst.msk [vmem:[#allocation2 + $0xbc] sm:$0xf] %vm1999_vm7, %v2525_v16  ;;  %v1667_v12 = vpack.c.bf16 %v1635_v27, %v1635_v27  ;;  %v2290_v14 = vpack.c.bf16 %v2258_v60, %v2258_v60  ;;  %v826_v39 = vmax.f32 %v783_v40, 0.0  ;;  %v1883_v49 = vsel %vm6214_vm3, %v1875_v61, %v1882_v62 }
 0x20d   : > { %2027 = vst.msk [vmem:[#allocation2 + $0xc0] sm:$0xf] %vm1999_vm7, %v1883_v49  ;;  %v2530_v13 = vrot.slane %v2529_v26, 4 }
 0x20e   : > { %v1886_v7 = vshrl.u32 %v1667_v12, 16  ;;  %v2532_v50 = vshll.u32 %v2290_v14, 16  ;;  %v2536_v9 = vshrl.u32 %v2290_v14, 16  ;;  %v858_v15 = vpack.c.bf16 %v826_v39, %v826_v39 }
 0x20f   : > { %v1889_v4 = vshll.u32 %v1667_v12, 16  ;;  %v699_v39 = vadd.f32 %v6494_v54, %v6116_v28 }
 0x210   : > { %v6741_v32 = vrot.slane %v1886_v7, 7  ;;  %v2534_v33 = vrot.slane %v2532_v50, 5  ;;  %v2538_v59 = vrot.slane %v2536_v9, 4  ;;  %v1572_v1 = vunpack.c.l.bf16 %v858_v15  ;;  %2122 = vrot.lane.b32.xlu0 %v858_v15, %s5863_s12 }
 0x211   : > { %v784_v0 = vpop.f32.mrf.mxu1  ;;  %v4936_v9 = vsel %vm6747_vm8, 1.0, %v5862_v6  ;;  %v1085_v15 = vand.u32 15, %v893_v45 }
 0x212   : > { %v785_v53 = vadd.f32 %v784_v0, %v696_v23  ;;  %v5589_v35 = vld [vmem:[#allocation2 + $0x54] sm:$0xf0]  ;;  %v1891_v24 = vor.u32 %v1889_v4, %v6741_v32  ;;  %v2535_v20 = vsel %vm6196_vm0, %v2530_v13, %v2534_v33  ;;  %v1636_v21 = vmul.f32 %v6160_v5, %v1572_v1  ;;  %v2095_v43 = vpop.permute.xlu1 %2094  ;;  %v6770_v0 = vpop.f32.mrf.mxu0 }
 0x213   : > { %v5643_v3 = vld [vmem:[#allocation2 + $0x54] sm:$0xf0]  ;;  %2682 = vst.msk [vmem:[#allocation2 + $0xc4] sm:$0xf] %vm1999_vm7, %v2535_v20  ;;  %v2259_v57 = vmul.f32 %v4952_v11, %v1572_v1  ;;  %v6754_v27 = vor.u32 %v5589_v35, %v5014_v2  ;;  %v5064_v60 = vld [vmem:[#allocation2 + $0xb8] sm:$0xf0]  ;;  %v2539_v61 = vor.u32 %v2538_v59, %v2534_v33 }
 0x214   : > { %v827_v40 = vmax.f32 %v785_v53, 0.0  ;;  %2181 = vst.msk [vmem:[#allocation2 + $0x60] sm:$0xf] %vm2170_vm5, %v2095_v43  ;;  %v5067_v62 = vor.u32 %v5600_v56, %v5064_v60  ;;  %v5295_v16 = vor.u32 %v5643_v3, %v5294_v41  ;;  %v1668_v26 = vpack.c.bf16 %v1636_v21, %v1636_v21 }
 0x215   : > { %v2291_v12 = vpack.c.bf16 %v2259_v57, %v2259_v57  ;;  %v1892_v49 = vsel %vm6214_vm3, %v1884_v22, %v1891_v24  ;;  %v2540_v28 = vrot.slane %v2539_v61, 4  ;;  %v894_v2 = vadd.s32 216, %v6151_v51 }
 0x216   : > { %v859_v14 = vpack.c.bf16 %v827_v40, %v827_v40  ;;  %5166 = vmatmul.msk.bf16.gmra.mxu3 %vm2994_vm2, %v5067_v62  ;;  %5239 = vmatmul.msk.bf16.gmra.mxu0 %vm2994_vm2, %v5067_v62  ;;  %v1895_v7 = vshrl.u32 %v1668_v26, 16  ;;  %2028 = vst.msk [vmem:[#allocation2 + $0xc8] sm:$0xf] %vm1999_vm7, %v1892_v49  ;;  %v1898_v8 = vshll.u32 %v1668_v26, 16  ;;  %v1893_v35 = vrot.slane %v6741_v32, 4 }
 0x217   : > { %v2542_v46 = vshll.u32 %v2291_v12, 16  ;;  %v2546_v50 = vshrl.u32 %v2291_v12, 16  ;;  %3071 = vmatmul.bf16.gmra.mxu2 %v6754_v27  ;;  %vm1437_vm9 = vcmp.ne.s32.totalorder %v1085_v15, 0  ;;  %v1092_v43 = vand.u32 15, %v894_v2  ;;  %v5591_v2 = vld [vmem:[#allocation2 + $0x64] sm:$0xf0] }
 0x218   : > { %2124 = vrot.lane.b32.xlu1 %v859_v14, %s5863_s12  ;;  %v1573_v23 = vunpack.c.l.bf16 %v859_v14  ;;  %3827 = vmatmul.bf16.gmra.mxu1 %v5295_v16  ;;  %v1897_v11 = vrot.slane %v1895_v7, 7  ;;  %v701_v60 = vadd.f32 %v6494_v54, %v6118_v29  ;;  %v4953_v62 = vsel %vm1437_vm9, 1.0, %v5862_v6 }
 0x219   : > { %v787_v13 = vpop.f32.mrf.mxu1  ;;  %v2544_v4 = vrot.slane %v2542_v46, 5  ;;  %v2548_v33 = vrot.slane %v2546_v50, 4  ;;  %vm6791_vm10 = vcmp.ne.s32.totalorder %v1092_v43, 15 }
 0x21a   : > { %v788_v59 = vadd.f32 %v787_v13, %v699_v39  ;;  %v1637_v1 = vmul.f32 %v4936_v9, %v1573_v23  ;;  %v2260_v53 = vmul.f32 %v6160_v5, %v1573_v23  ;;  %v1900_v3 = vor.u32 %v1898_v8, %v1897_v11  ;;  %v2103_v18 = vpop.permute.xlu2 %2102  ;;  %v5602_v46 = vld [vmem:[#allocation2 + $0xc4] sm:$0xf] }
 0x21b   : > { %v2545_v24 = vsel %vm6196_vm0, %v2540_v28, %v2544_v4  ;;  %v2549_v20 = vor.u32 %v2548_v33, %v2544_v4  ;;  %2185 = vst.msk [vmem:[#allocation2 + $0x80] sm:$0xf] %vm2170_vm5, %v2103_v18  ;;  %v1902_v50 = vrot.slane %v1897_v11, 4  ;;  %v5022_v8 = vld [vmem:[#allocation2 + $0x60] sm:$0xf]  ;;  %v895_v11 = vadd.s32 224, %v6151_v51 }
 0x21c   : > { %2683 = vst.msk [vmem:[#allocation2 + $0xcc] sm:$0xf] %vm1999_vm7, %v2545_v24  ;;  %v1669_v56 = vpack.c.bf16 %v1637_v1, %v1637_v1  ;;  %v2292_v41 = vpack.c.bf16 %v2260_v53, %v2260_v53  ;;  %v828_v45 = vmax.f32 %v788_v59, 0.0  ;;  %v1901_v21 = vsel %vm6214_vm3, %v1893_v35, %v1900_v3  ;;  %v5302_v23 = vld [vmem:[#allocation2 + $0x60] sm:$0xf]  ;;  %v6798_v1 = vpop.f32.mrf.mxu0 }
 0x21d   : > { %2029 = vst.msk [vmem:[#allocation2 + $0xd0] sm:$0xf] %vm1999_vm7, %v1901_v21  ;;  %v2550_v22 = vrot.slane %v2549_v20, 4  ;;  %v4937_v21 = vsel %vm6791_vm10, 1.0, %v5862_v6 }
 0x21e   : > { %v1904_v57 = vshrl.u32 %v1669_v56, 16  ;;  %v2552_v40 = vshll.u32 %v2292_v41, 16  ;;  %v2556_v32 = vshrl.u32 %v2292_v41, 16  ;;  %v860_v61 = vpack.c.bf16 %v828_v45, %v828_v45  ;;  %v5645_v41 = vld [vmem:[#allocation2 + $0x64] sm:$0xf0] }
 0x21f   : > { %v1907_v26 = vshll.u32 %v1669_v56, 16  ;;  %v6803_v56 = vor.u32 %v5591_v2, %v5022_v8  ;;  %v704_v45 = vadd.f32 %v6494_v54, %v6122_v34 }
 0x220   : > { %v6785_v16 = vrot.slane %v1904_v57, 7  ;;  %v2554_v12 = vrot.slane %v2552_v40, 5  ;;  %v2558_v14 = vrot.slane %v2556_v32, 4  ;;  %v1574_v49 = vunpack.c.l.bf16 %v860_v61  ;;  %2126 = vrot.lane.b32.xlu2 %v860_v61, %s5863_s12 }
 0x221   : > { %v789_v39 = vpop.f32.mrf.mxu1  ;;  %v5303_v57 = vor.u32 %v5645_v41, %v5302_v23 }
 0x222   : > { %v790_v7 = vadd.f32 %v789_v39, %v701_v60  ;;  %v1909_v9 = vor.u32 %v1907_v26, %v6785_v16  ;;  %v2555_v29 = vsel %vm6196_vm0, %v2550_v22, %v2554_v12  ;;  %v1638_v13 = vmul.f32 %v6160_v5, %v1574_v49  ;;  %v2099_v33 = vpop.permute.xlu0 %2098 }
 0x223   : > { %2684 = vst.msk [vmem:[#allocation2 + $0xd4] sm:$0xf] %vm1999_vm7, %v2555_v29  ;;  %v2261_v15 = vmul.f32 %v4953_v62, %v1574_v49  ;;  %v5072_v59 = vld [vmem:[#allocation2 + $0xc8] sm:$0xf0]  ;;  %v2559_v53 = vor.u32 %v2558_v14, %v2554_v12  ;;  %v1099_v60 = vand.u32 15, %v895_v11  ;;  %v896_v62 = vadd.s32 232, %v6151_v51 }
 0x224   : > { %v829_v4 = vmax.f32 %v790_v7, 0.0  ;;  %2183 = vst.msk [vmem:[#allocation2 + $0x70] sm:$0xf] %vm2170_vm5, %v2099_v33  ;;  %v5075_v35 = vor.u32 %v5602_v46, %v5072_v59  ;;  %v1910_v3 = vsel %vm6214_vm3, %v1902_v50, %v1909_v9  ;;  %v1670_v24 = vpack.c.bf16 %v1638_v13, %v1638_v13  ;;  %v6827_v33 = vpop.f32.mrf.mxu0 }
 0x225   : > { %v2293_v20 = vpack.c.bf16 %v2261_v15, %v2261_v15  ;;  %2030 = vst.msk [vmem:[#allocation2 + $0xd8] sm:$0xf] %vm1999_vm7, %v1910_v3  ;;  %v2560_v22 = vrot.slane %v2559_v53, 4  ;;  %v1911_v50 = vrot.slane %v6785_v16, 4  ;;  %vm1439_vm12 = vcmp.ne.s32.totalorder %v1099_v60, 0 }
 0x226   : > { %v861_v18 = vpack.c.bf16 %v829_v4, %v829_v4  ;;  %5167 = vmatmul.msk.bf16.gmra.mxu3 %vm2994_vm2, %v5075_v35  ;;  %5240 = vmatmul.msk.bf16.gmra.mxu0 %vm2994_vm2, %v5075_v35  ;;  %v1913_v40 = vshrl.u32 %v1670_v24, 16  ;;  %v1916_v61 = vshll.u32 %v1670_v24, 16  ;;  %v1106_v15 = vand.u32 15, %v896_v62  ;;  %v6833_v53 = vld [vmem:[%s7771_s2] ss:$0 sm:$0xff] }
 0x227   : > { %v2562_v32 = vshll.u32 %v2293_v20, 16  ;;  %v2566_v43 = vshrl.u32 %v2293_v20, 16  ;;  %3076 = vmatmul.bf16.gmra.mxu2 %v6803_v56  ;;  %v706_v2 = vadd.f32 %v6833_v53, %v6124_v37  ;;  %v4954_v24 = vsel %vm1439_vm12, 1.0, %v5862_v6 }
 0x228   : > { %2128 = vrot.lane.b32.xlu0 %v861_v18, %s5863_s12  ;;  %v1575_v34 = vunpack.c.l.bf16 %v861_v18  ;;  %3832 = vmatmul.bf16.gmra.mxu1 %v5303_v57  ;;  %v6816_v26 = vrot.slane %v1913_v40, 7  ;;  %vm6842_vm13 = vcmp.ne.s32.totalorder %v1106_v15, 15  ;;  %v709_v15 = vadd.f32 %v6833_v53, %v6131_v42  ;;  %v5617_v42 = vld [vmem:[%s7772_s3 + $0x38] sm:$0xff] }
 0x229   : > { %v792_v54 = vpop.f32.mrf.mxu1  ;;  %v2564_v12 = vrot.slane %v2562_v32, 5  ;;  %v2568_v14 = vrot.slane %v2566_v43, 4  ;;  %3305 = vmatpush.bf16.msrb.mxu3 %v5617_v42  ;;  %v5616_v43 = vld [vmem:[%s7772_s3 + $0x30] sm:$0xff] }
 0x22a   : > { %v793_v39 = vadd.f32 %v792_v54, %v704_v45  ;;  %v2101_v49 = vpop.permute.xlu1 %2100  ;;  %v1639_v7 = vmul.f32 %v4937_v21, %v1575_v34  ;;  %v2262_v46 = vmul.f32 %v6160_v5, %v1575_v34  ;;  %v1918_v9 = vor.u32 %v1916_v61, %v6816_v26 }
 0x22b   : > { %2184 = vst.msk [vmem:[#allocation2 + $0x78] sm:$0xf] %vm2170_vm5, %v2101_v49  ;;  %v2565_v29 = vsel %vm6196_vm0, %v2560_v22, %v2564_v12  ;;  %v2569_v28 = vor.u32 %v2568_v14, %v2564_v12  ;;  %v1920_v57 = vrot.slane %v6816_v26, 4  ;;  %v5604_v22 = vld [vmem:[#allocation2 + $0xd4] sm:$0xf] }
 0x22c   : > { %2685 = vst.msk [vmem:[#allocation2 + $0xdc] sm:$0xf] %vm1999_vm7, %v2565_v29  ;;  %v1671_v8 = vpack.c.bf16 %v1639_v7, %v1639_v7  ;;  %v2294_v23 = vpack.c.bf16 %v2262_v46, %v2262_v46  ;;  %v830_v13 = vmax.f32 %v793_v39, 0.0  ;;  %v1919_v4 = vsel %vm6214_vm3, %v1911_v50, %v1918_v9  ;;  %v5030_v62 = vld [vmem:[#allocation2 + $0x70] sm:$0xf] }
 0x22d   : > { %2031 = vst.msk [vmem:[#allocation2 + $0xe0] sm:$0xf] %vm1999_vm7, %v1919_v4  ;;  %v2570_v35 = vrot.slane %v2569_v28, 4  ;;  %v5310_v26 = vld [vmem:[#allocation2 + $0x70] sm:$0xf]  ;;  %v897_v29 = vadd.s32 240, %v6151_v51  ;;  %3306 = vmatpush.bf16.msrb.mxu3 %v5616_v43 }
 0x22e   : > { %v1922_v59 = vshrl.u32 %v1671_v8, 16  ;;  %v2572_v16 = vshll.u32 %v2294_v23, 16  ;;  %v2576_v11 = vshrl.u32 %v2294_v23, 16  ;;  %v862_v3 = vpack.c.bf16 %v830_v13, %v830_v13 }
 0x22f   : > { %v1925_v18 = vshll.u32 %v1671_v8, 16 }
 0x230   : > { %v6838_v20 = vrot.slane %v1922_v59, 7  ;;  %v2574_v41 = vrot.slane %v2572_v16, 5  ;;  %v2578_v45 = vrot.slane %v2576_v11, 4  ;;  %v1576_v40 = vunpack.c.l.bf16 %v862_v3  ;;  %2130 = vrot.lane.b32.xlu1 %v862_v3, %s5863_s12 }
 0x231   : > { %v794_v21 = vpop.f32.mrf.mxu1  ;;  %v4938_v11 = vsel %vm6842_vm13, 1.0, %v5862_v6 }
 0x232   : > { %v795_v32 = vadd.f32 %v794_v21, %v706_v2  ;;  %v2109_v37 = vpop.permute.xlu2 %2108  ;;  %v5593_v60 = vld [vmem:[#allocation2 + $0x74] sm:$0xf0]  ;;  %v1927_v34 = vor.u32 %v1925_v18, %v6838_v20  ;;  %v2575_v54 = vsel %vm6196_vm0, %v2570_v35, %v2574_v41  ;;  %v1640_v12 = vmul.f32 %v6160_v5, %v1576_v40  ;;  %v6870_v2 = vpop.f32.mrf.mxu0 }
 0x233   : > { %v5647_v61 = vld [vmem:[#allocation2 + $0x74] sm:$0xf0]  ;;  %2188 = vst.msk [vmem:[#allocation2 + $0x98] sm:$0xf] %vm2170_vm5, %v2109_v37  ;;  %v2263_v14 = vmul.f32 %v4954_v24, %v1576_v40  ;;  %v6852_v49 = vor.u32 %v5593_v60, %v5030_v62  ;;  %v5080_v7 = vld [vmem:[#allocation2 + $0xd8] sm:$0xf0]  ;;  %v2579_v46 = vor.u32 %v2578_v45, %v2574_v41 }
 0x234   : > { %2686 = vst.msk [vmem:[#allocation2 + $0xe4] sm:$0xf] %vm1999_vm7, %v2575_v54  ;;  %v831_v39 = vmax.f32 %v795_v32, 0.0  ;;  %v5083_v50 = vor.u32 %v5604_v22, %v5080_v7  ;;  %v5311_v9 = vor.u32 %v5647_v61, %v5310_v26  ;;  %v1672_v28 = vpack.c.bf16 %v1640_v12, %v1640_v12 }
 0x235   : > { %v2295_v8 = vpack.c.bf16 %v2263_v14, %v2263_v14  ;;  %v1928_v13 = vsel %vm6214_vm3, %v1920_v57, %v1927_v34  ;;  %v2580_v35 = vrot.slane %v2579_v46, 4  ;;  %v1113_v41 = vand.u32 15, %v897_v29 }
 0x236   : > { %v863_v23 = vpack.c.bf16 %v831_v39, %v831_v39  ;;  %5168 = vmatmul.msk.bf16.gmra.mxu3 %vm2994_vm2, %v5083_v50  ;;  %5241 = vmatmul.msk.bf16.gmra.mxu0 %vm2994_vm2, %v5083_v50  ;;  %2032 = vst.msk [vmem:[#allocation2 + $0xe8] sm:$0xf] %vm1999_vm7, %v1928_v13  ;;  %v1931_v4 = vshrl.u32 %v1672_v28, 16  ;;  %v1934_v3 = vshll.u32 %v1672_v28, 16  ;;  %v898_v22 = vadd.s32 248, %v6151_v51  ;;  %v5615_v39 = vld [vmem:[%s7772_s3 + $0x28] sm:$0xff] }
 0x237   : > { %v2582_v59 = vshll.u32 %v2295_v8, 16  ;;  %v2586_v16 = vshrl.u32 %v2295_v8, 16  ;;  %3081 = vmatmul.bf16.gmra.mxu2 %v6852_v49  ;;  %v1929_v61 = vrot.slane %v6838_v20, 4  ;;  %vm1441_vm15 = vcmp.ne.s32.totalorder %v1113_v41, 0  ;;  %3307 = vmatpush.bf16.msrb.mxu3 %v5615_v39 }
 0x238   : > { %2132 = vrot.lane.b32.xlu2 %v863_v23, %s5863_s12  ;;  %v1577_v24 = vunpack.c.l.bf16 %v863_v23  ;;  %3837 = vmatmul.bf16.gmra.mxu1 %v5311_v9  ;;  %v6872_v45 = vrot.slane %v1931_v4, 7  ;;  %v1120_v50 = vand.u32 15, %v898_v22  ;;  %v711_v9 = vadd.f32 %v6833_v53, %v6139_v47  ;;  %v5614_v47 = vld [vmem:[%s7772_s3 + $0x20] sm:$0xff] }
 0x239   : > { %v797_v18 = vpop.f32.mrf.mxu1  ;;  %v2584_v21 = vrot.slane %v2582_v59, 5  ;;  %v2588_v57 = vrot.slane %v2586_v16, 4  ;;  %v4955_v8 = vsel %vm1441_vm15, 1.0, %v5862_v6  ;;  %v5038_v16 = vld [vmem:[#allocation2 + $0x80] sm:$0xf] }
 0x23a   : > { %v798_v40 = vadd.f32 %v797_v18, %v709_v15  ;;  %v2105_v32 = vpop.permute.xlu0 %2104  ;;  %v1641_v37 = vmul.f32 %v4938_v11, %v1577_v24  ;;  %v2264_v60 = vmul.f32 %v6160_v5, %v1577_v24  ;;  %v1936_v34 = vor.u32 %v1934_v3, %v6872_v45  ;;  %v6900_v53 = vpop.f32.mrf.mxu0 }
 0x23b   : > { %2186 = vst.msk [vmem:[#allocation2 + $0x88] sm:$0xf] %vm2170_vm5, %v2105_v32  ;;  %v2585_v54 = vsel %vm6196_vm0, %v2580_v35, %v2584_v21  ;;  %v2589_v62 = vor.u32 %v2588_v57, %v2584_v21  ;;  %v1938_v24 = vrot.slane %v6872_v45, 4  ;;  %vm6906_vm1 = vcmp.ne.s32.totalorder %v1120_v50, 15  ;;  %v5606_v57 = vld [vmem:[#allocation2 + $0xe4] sm:$0xf]  ;;  %3308 = vmatpush.bf16.msrb.mxu3 %v5614_v47 }
 0x23c   : > { %2687 = vst.msk [vmem:[#allocation2 + $0xec] sm:$0xf] %vm1999_vm7, %v2585_v54  ;;  %v1673_v26 = vpack.c.bf16 %v1641_v37, %v1641_v37  ;;  %v2296_v12 = vpack.c.bf16 %v2264_v60, %v2264_v60  ;;  %v832_v14 = vmax.f32 %v798_v40, 0.0  ;;  %v1937_v51 = vsel %vm6214_vm3, %v1929_v61, %v1936_v34  ;;  %v5318_v40 = vld [vmem:[#allocation2 + $0x80] sm:$0xf] }
 0x23d   : > { %2033 = vst.msk [vmem:[#allocation2 + $0xf0] sm:$0xf] %vm1999_vm7, %v1937_v51  ;;  %v2590_v29 = vrot.slane %v2589_v62, 4 }
 0x23e   : > { %v1940_v20 = vshrl.u32 %v1673_v26, 16  ;;  %v2592_v7 = vshll.u32 %v2296_v12, 16  ;;  %v2596_v46 = vshrl.u32 %v2296_v12, 16  ;;  %v864_v28 = vpack.c.bf16 %v832_v14, %v832_v14 }
 0x23f   : > { %v1943_v13 = vshll.u32 %v1673_v26, 16 }
 0x240   : > { %v6894_v23 = vrot.slane %v1940_v20, 7  ;;  %v2594_v15 = vrot.slane %v2592_v7, 5  ;;  %v2598_v4 = vrot.slane %v2596_v46, 4  ;;  %v1578_v11 = vunpack.c.l.bf16 %v864_v28  ;;  %2134 = vrot.lane.b32.xlu0 %v864_v28, %s5863_s12  ;;  %v5613_v46 = vld [vmem:[%s7772_s3 + $0x18] sm:$0xff] }
 0x241   : > { %v799_v59 = vpop.f32.mrf.mxu1  ;;  %v4939_v7 = vsel %vm6906_vm1, 1.0, %v5862_v6  ;;  %3309 = vmatpush.bf16.msrb.mxu3 %v5613_v46  ;;  %v5612_v6 = vld [vmem:[%s7772_s3 + $0x10] sm:$0xff] }
 0x242   : > { %v800_v42 = vadd.f32 %v799_v59, %v711_v9  ;;  %v5595_v35 = vld [vmem:[#allocation2 + $0x84] sm:$0xf0]  ;;  %v1945_v18 = vor.u32 %v1943_v13, %v6894_v23  ;;  %v2595_v41 = vsel %vm6196_vm0, %v2590_v29, %v2594_v15  ;;  %v1642_v32 = vmul.f32 %v6160_v5, %v1578_v11  ;;  %v2107_v60 = vpop.permute.xlu1 %2106 }
 0x243   : > { %v5649_v3 = vld [vmem:[#allocation2 + $0x84] sm:$0xf0]  ;;  %2688 = vst.msk [vmem:[#allocation2 + $0xf4] sm:$0xf] %vm1999_vm7, %v2595_v41  ;;  %v2265_v43 = vmul.f32 %v4955_v8, %v1578_v11  ;;  %v6912_v22 = vor.u32 %v5595_v35, %v5038_v16  ;;  %v5088_v45 = vld [vmem:[#allocation2 + $0xe8] sm:$0xf0]  ;;  %v2599_v61 = vor.u32 %v2598_v4, %v2594_v15 }
 0x244   : > { %v833_v37 = vmax.f32 %v800_v42, 0.0  ;;  %2187 = vst.msk [vmem:[#allocation2 + $0x90] sm:$0xf] %vm2170_vm5, %v2107_v60  ;;  %v5091_v34 = vor.u32 %v5606_v57, %v5088_v45  ;;  %v5319_v54 = vor.u32 %v5649_v3, %v5318_v40  ;;  %v1946_v62 = vsel %vm6214_vm3, %v1938_v24, %v1945_v18  ;;  %v6935_v3 = vpop.f32.mrf.mxu0 }
 0x245   : > { %v1674_v26 = vpack.c.bf16 %v1642_v32, %v1642_v32  ;;  %v2297_v12 = vpack.c.bf16 %v2265_v43, %v2265_v43  ;;  %2034 = vst.msk [vmem:[#allocation2 + $0xf8] sm:$0xf] %vm1999_vm7, %v1946_v62  ;;  %v2600_v50 = vrot.slane %v2599_v61, 4  ;;  %v1947_v59 = vrot.slane %v6894_v23, 4  ;;  %3310 = vmatpush.bf16.msrb.mxu3 %v5612_v6  ;;  %v2039_v61 = vld [vmem:[#allocation2 + $0x110] sm:$0x1] }
 0x246   : > { %v865_v14 = vpack.c.bf16 %v833_v37, %v833_v37  ;;  %5169 = vmatmul.msk.bf16.gmra.mxu3 %vm2994_vm2, %v5091_v34  ;;  %5242 = vmatmul.msk.bf16.gmra.mxu0 %vm2994_vm2, %v5091_v34  ;;  %v2692_v34 = vld [vmem:[#allocation2 + $0x10c] sm:$0xf] }
 0x247   : > { %v1949_v39 = vshrl.u32 %v1674_v26, 16  ;;  %v2602_v51 = vshll.u32 %v2297_v12, 16  ;;  %v2606_v20 = vshrl.u32 %v2297_v12, 16  ;;  %3086 = vmatmul.bf16.gmra.mxu2 %v6912_v22  ;;  %v1952_v28 = vshll.u32 %v1674_v26, 16 }
 0x248   : > { %2136 = vrot.lane.b32.xlu1 %v865_v14, %s5863_s12  ;;  %v1579_v9 = vunpack.c.l.bf16 %v865_v14  ;;  %3842 = vmatmul.bf16.gmra.mxu1 %v5319_v54  ;;  %s7546_s12 = scalar_lea.vmem [#allocation6], %s4730_s10 }
 0x249   : > { %v1951_v29 = vrot.slane %v1949_v39, 7  ;;  %v2604_v8 = vrot.slane %v2602_v51, 5  ;;  %v2608_v13 = vrot.slane %v2606_v20, 4  ;;  %v5610_v51 = vld [vmem:[%s7772_s3] sm:$0xff] }
 0x24a   : > { %v1643_v15 = vmul.f32 %v4939_v7, %v1579_v9  ;;  %v2266_v4 = vmul.f32 %v6160_v5, %v1579_v9  ;;  %v2115_v35 = vpop.permute.xlu2 %2114  ;;  %v5611_v5 = vld [vmem:[%s7772_s3 + $0x8] sm:$0xff]  ;;  %v5608_v39 = vld [vmem:[#allocation2 + $0xf4] sm:$0xf] }
 0x24b   : > { %v1954_v16 = vor.u32 %v1952_v28, %v1951_v29  ;;  %v2605_v11 = vsel %vm6196_vm0, %v2600_v50, %v2604_v8  ;;  %v2609_v42 = vor.u32 %v2608_v13, %v2604_v8  ;;  %2191 = vst.msk [vmem:[#allocation2 + $0xb0] sm:$0xf] %vm2170_vm5, %v2115_v35  ;;  %v1956_v60 = vrot.slane %v1951_v29, 4  ;;  %3311 = vmatpush.bf16.msrb.mxu3 %v5611_v5  ;;  %v5046_v14 = vld [vmem:[#allocation2 + $0x90] sm:$0xf] }
 0x24c   : > { %2689 = vst.msk [vmem:[#allocation2 + $0xfc] sm:$0xf] %vm1999_vm7, %v2605_v11  ;;  %v1675_v47 = vpack.c.bf16 %v1643_v15, %v1643_v15  ;;  %v2298_v24 = vpack.c.bf16 %v2266_v4, %v2266_v4  ;;  %v5326_v50 = vld [vmem:[#allocation2 + $0x90] sm:$0xf]  ;;  %v5597_v29 = vld [vmem:[#allocation2 + $0x94] sm:$0xf0]  ;;  %v6969_v4 = vpop.f32.mrf.mxu0 }
 0x24d   : > { %v1955_v23 = vsel %vm6214_vm3, %v1947_v59, %v1954_v16  ;;  %v2610_v57 = vrot.slane %v2609_v42, 4  ;;  %v6967_v13 = vor.u32 %v5597_v29, %v5046_v14  ;;  %v5651_v15 = vld [vmem:[#allocation2 + $0x94] sm:$0xf0] }
 0x24e   : > { %v1958_v18 = vshrl.u32 %v1675_v47, 16  ;;  %v2612_v41 = vshll.u32 %v2298_v24, 16  ;;  %v2616_v21 = vshrl.u32 %v2298_v24, 16  ;;  %2035 = vst.msk [vmem:[#allocation2 + $0x100] sm:$0xf] %vm1999_vm7, %v1955_v23  ;;  %v1961_v32 = vshll.u32 %v1675_v47, 16 }
 0x24f   : > { %3312 = vmatpush.bf16.msrb.mxu3 %v5610_v51  ;;  %v5327_v59 = vor.u32 %v5651_v15, %v5326_v50 }
 0x250   : > { %v1960_v40 = vrot.slane %v1958_v18, 7  ;;  %v2614_v43 = vrot.slane %v2612_v41, 5  ;;  %v2618_v37 = vrot.slane %v2616_v21, 4 }
 0x252   : > { %v1963_v54 = vor.u32 %v1961_v32, %v1960_v40  ;;  %v1965_v62 = vrot.slane %v1960_v40, 4  ;;  %v2615_v26 = vsel %vm6196_vm0, %v2610_v57, %v2614_v43  ;;  %v2619_v12 = vor.u32 %v2618_v37, %v2614_v43  ;;  %v2111_v7 = vpop.permute.xlu0 %2110  ;;  %v5174_v37 = vld [vmem:[#allocation2] sm:$0xf] }
 0x253   : > { %2690 = vst.msk [vmem:[#allocation2 + $0x104] sm:$0xf] %vm1999_vm7, %v2615_v26  ;;  %v5096_v46 = vld [vmem:[#allocation2 + $0xf8] sm:$0xf0] }
 0x254   : > { %v2040_v17 = vsel %vm6946_vm6, %v1965_v62, %v2039_v61  ;;  %v2620_v9 = vrot.slane %v2619_v12, 4  ;;  %2189 = vst.msk [vmem:[#allocation2 + $0xa0] sm:$0xf] %vm2170_vm5, %v2111_v7  ;;  %v5099_v28 = vor.u32 %v5608_v39, %v5096_v46  ;;  %v1964_v8 = vsel %vm6214_vm3, %v1956_v60, %v1963_v54  ;;  %v5579_v60 = vld [vmem:[#allocation2 + $0x4] sm:$0xf0] }
 0x255   : > { %2041 = vst [vmem:[#allocation2 + $0x110] sm:$0x1] %v2040_v17  ;;  %v5062_v62 = vld [vmem:[#allocation2 + $0xb0] sm:$0xf]  ;;  %v5175_v26 = vor.u32 %v5579_v60, %v5174_v37 }
 0x256   : > { %v2693_v6 = vsel %vm6958_vm14, %v2620_v9, %v2692_v34  ;;  %5170 = vmatmul.msk.bf16.gmra.mxu3 %vm2994_vm2, %v5099_v28  ;;  %5243 = vmatmul.msk.bf16.gmra.mxu0 %vm2994_vm2, %v5099_v28  ;;  %2036 = vst.msk [vmem:[#allocation2 + $0x108] sm:$0xf] %vm1999_vm7, %v1964_v8  ;;  %v5342_v39 = vld [vmem:[#allocation2 + $0xb0] sm:$0xf] }
 0x257   : > { %2694 = vst [vmem:[#allocation2 + $0x10c] sm:$0xf] %v2693_v6  ;;  %3091 = vmatmul.bf16.gmra.mxu2 %v6967_v13 }
 0x258   : > { %3847 = vmatmul.bf16.gmra.mxu1 %v5327_v59  ;;  %v6977_v36 = vpop.f32.mrf.mxu2 }
 0x25a   : > { %v2113_v16 = vpop.permute.xlu1 %2112  ;;  %v5622_v18 = vld [vmem:[#allocation2 + $0x104] sm:$0xf] }
 0x25b   : > { %2190 = vst.msk [vmem:[#allocation2 + $0xa8] sm:$0xf] %vm2170_vm5, %v2113_v16  ;;  %v5054_v5 = vld [vmem:[#allocation2 + $0xa0] sm:$0xf] }
 0x25c   : > { %v5334_v41 = vld [vmem:[#allocation2 + $0xa0] sm:$0xf] }
 0x25e   : > { %v5104_v47 = vld [vmem:[#allocation2 + $0x108] sm:$0xf0] }
 0x25f   : > { %v5107_v21 = vor.u32 %v5622_v18, %v5104_v47 }
 0x260   : > { %v6980_v11 = vpop.f32.mrf.mxu2 }
 0x262   : > { %v2121_v42 = vpop.permute.xlu2 %2120  ;;  %v5599_v35 = vld [vmem:[#allocation2 + $0xa4] sm:$0xf0] }
 0x263   : > { %v5653_v24 = vld [vmem:[#allocation2 + $0xa4] sm:$0xf0]  ;;  %2194 = vst.msk [vmem:[#allocation2 + $0xc8] sm:$0xf] %vm2170_vm5, %v2121_v42  ;;  %v6983_v23 = vor.u32 %v5599_v35, %v5054_v5 }
 0x264   : > { %v5335_v57 = vor.u32 %v5653_v24, %v5334_v41 }
 0x265   : > { %v7021_v41 = vpop.f32.mrf.mxu1 }
 0x266   : > { %5171 = vmatmul.msk.bf16.gmra.mxu3 %vm2994_vm2, %v5107_v21 }
 0x267   : > { %3096 = vmatmul.bf16.gmra.mxu2 %v6983_v23 }
 0x268   : > { %3852 = vmatmul.bf16.gmra.mxu1 %v5335_v57 }
 0x269   : > { %v6987_v40 = vpop.f32.mrf.mxu3 }
 0x26a   : > { %v2117_v32 = vpop.permute.xlu0 %2116  ;;  %v6989_v43 = vpop.f32.mrf.mxu2  ;;  %v5603_v8 = vld [vmem:[#allocation2 + $0xc4] sm:$0xf0] }
 0x26b   : > { %2192 = vst.msk [vmem:[#allocation2 + $0xb8] sm:$0xf] %vm2170_vm5, %v2117_v32  ;;  %v5657_v6 = vld [vmem:[#allocation2 + $0xc4] sm:$0xf0] }
 0x271   : > { %v6992_v45 = vpop.f32.mrf.mxu3 }
 0x272   : > { %7825 = vst [vmem:[#allocation10_spill] sm:$0xff] %v6992_v45  ;;  %v5601_v61 = vld [vmem:[#allocation2 + $0xb4] sm:$0xf0]  ;;  %v6994_v54 = vpop.f32.mrf.mxu2  ;;  %v2119_v12 = vpop.permute.xlu1 %2118 }
 0x273   : > { %v5655_v34 = vld [vmem:[#allocation2 + $0xb4] sm:$0xf0]  ;;  %v6996_v14 = vor.u32 %v5601_v61, %v5062_v62  ;;  %2193 = vst.msk [vmem:[#allocation2 + $0xc0] sm:$0xf] %vm2170_vm5, %v2119_v12  ;;  %v7035_v62 = vpop.f32.mrf.mxu1 }
 0x274   : > { %v5343_v51 = vor.u32 %v5655_v34, %v5342_v39 }
 0x276   : > { %3313 = vmatmul.bf16.vlgmr.msrb.gmra.mxu3 %v5175_v26 }
 0x277   : > { %3101 = vmatmul.bf16.gmra.mxu2 %v6996_v14 }
 0x278   : > { %3857 = vmatmul.bf16.gmra.mxu1 %v5343_v51 }
 0x279   : > { %v7000_v20 = vpop.f32.mrf.mxu3 }
 0x27a   : > { %v7002_v7 = vpop.f32.mrf.mxu2  ;;  %v2127_v46 = vpop.permute.xlu2 %2126  ;;  %v5070_v9 = vld [vmem:[#allocation2 + $0xc0] sm:$0xf] }
 0x27b   : > { %2197 = vst.msk [vmem:[#allocation2 + $0xe0] sm:$0xf] %vm2170_vm5, %v2127_v46  ;;  %v5350_v28 = vld [vmem:[#allocation2 + $0xc0] sm:$0xf]  ;;  %v7010_v15 = vor.u32 %v5603_v8, %v5070_v9  ;;  %v7044_v8 = vpop.f32.mrf.mxu1 }
 0x27c   : > { %v5351_v59 = vor.u32 %v5657_v6, %v5350_v28 }
 0x281   : > { %v7005_v50 = vpop.f32.mrf.mxu3 }
 0x282   : > { %7826 = vst [vmem:[#allocation11_spill] sm:$0xff] %v7005_v50  ;;  %v7007_v17 = vpop.f32.mrf.mxu2  ;;  %v2123_v29 = vpop.permute.xlu0 %2122  ;;  %v5086_v46 = vld [vmem:[#allocation2 + $0xe0] sm:$0xf] }
 0x283   : > { %2195 = vst.msk [vmem:[#allocation2 + $0xd0] sm:$0xf] %vm2170_vm5, %v2123_v29  ;;  %v5366_v29 = vld [vmem:[#allocation2 + $0xe0] sm:$0xf] }
 0x286   : > { %3318 = vmatmul.bf16.gmra.mxu3 %v6569_v52 }
 0x287   : > { %3106 = vmatmul.bf16.gmra.mxu2 %v7010_v15 }
 0x288   : > { %3862 = vmatmul.bf16.gmra.mxu1 %v5351_v59 }
 0x289   : > { %v7014_v16 = vpop.f32.mrf.mxu3 }
 0x28a   : > { %v2125_v42 = vpop.permute.xlu1 %2124  ;;  %v7016_v35 = vpop.f32.mrf.mxu2  ;;  %v5078_v52 = vld [vmem:[#allocation2 + $0xd0] sm:$0xf] }
 0x28b   : > { %2196 = vst.msk [vmem:[#allocation2 + $0xd8] sm:$0xf] %vm2170_vm5, %v2125_v42  ;;  %v5358_v32 = vld [vmem:[#allocation2 + $0xd0] sm:$0xf]  ;;  %v7052_v42 = vpop.f32.mrf.mxu1 }
 0x291   : > { %v7019_v47 = vpop.f32.mrf.mxu3 }
 0x292   : > { %7827 = vst [vmem:[#allocation12_spill] sm:$0xff] %v7019_v47  ;;  %v2133_v24 = vpop.permute.xlu2 %2132  ;;  %v5605_v5 = vld [vmem:[#allocation2 + $0xd4] sm:$0xf0]  ;;  %v7023_v21 = vpop.f32.mrf.mxu2  ;;  %v5488_v47 = vld [vmem:[%s7774_s5 + $0x38] sm:$0xf0] }
 0x293   : > { %v5659_v18 = vld [vmem:[#allocation2 + $0xd4] sm:$0xf0]  ;;  %2200 = vst.msk [vmem:[#allocation2 + $0xf8] sm:$0xf] %vm2170_vm5, %v2133_v24  ;;  %v7026_v57 = vor.u32 %v5605_v5, %v5078_v52 }
 0x294   : > { %v5359_v37 = vor.u32 %v5659_v18, %v5358_v32 }
 0x296   : > { %3323 = vmatmul.bf16.gmra.mxu3 %v6616_v63 }
 0x297   : > { %3111 = vmatmul.bf16.gmra.mxu2 %v7026_v57 }
 0x298   : > { %3867 = vmatmul.bf16.gmra.mxu1 %v5359_v37 }
 0x299   : > { %v7030_v60 = vpop.f32.mrf.mxu3 }
 0x29a   : > { %v2129_v61 = vpop.permute.xlu0 %2128  ;;  %v7032_v34 = vpop.f32.mrf.mxu2  ;;  %v5609_v37 = vld [vmem:[#allocation2 + $0xf4] sm:$0xf0] }
 0x29b   : > { %7828 = vst [vmem:[#allocation13_spill] sm:$0xff] %v7032_v34  ;;  %v5296_v34 = vld [vmem:[#allocation2 + $0x58] sm:$0xf0] }
 0x29c   : > { %2198 = vst.msk [vmem:[#allocation2 + $0xe8] sm:$0xf] %vm2170_vm5, %v2129_v61  ;;  %v5663_v61 = vld [vmem:[#allocation2 + $0xf4] sm:$0xf0] }
 0x2a1   : > { %v7037_v26 = vpop.f32.mrf.mxu3 }
 0x2a2   : > { %7829 = vst [vmem:[#allocation14_spill] sm:$0xff] %v7037_v26  ;;  %v7039_v51 = vpop.f32.mrf.mxu2  ;;  %v2131_v63 = vpop.permute.xlu1 %2130 }
 0x2a3   : > { %v5607_v12 = vld [vmem:[#allocation2 + $0xe4] sm:$0xf0]  ;;  %7830 = vst [vmem:[#allocation15_spill] sm:$0xff] %v7039_v51  ;;  %v5472_v51 = vld [vmem:[%s7774_s5 + $0x18] sm:$0xf0] }
 0x2a4   : > { %v5661_v39 = vld [vmem:[#allocation2 + $0xe4] sm:$0xf0]  ;;  %v7041_v9 = vor.u32 %v5607_v12, %v5086_v46  ;;  %2199 = vst.msk [vmem:[#allocation2 + $0xf0] sm:$0xf] %vm2170_vm5, %v2131_v63 }
 0x2a5   : > { %v5367_v28 = vor.u32 %v5661_v39, %v5366_v29  ;;  %v5679_v39 = vld [vmem:[%s7772_s3 + $0x118] sm:$0xff]  ;;  %v7068_v29 = vpop.f32.mrf.mxu1 }
 0x2a6   : > { %3328 = vmatmul.bf16.gmra.mxu3 %v6657_v48  ;;  %3897 = vmatpush.bf16.msra.mxu2 %v5679_v39  ;;  %v5686_v39 = vld [vmem:[%s7774_s5 + $0x34] sm:$0xf] }
 0x2a7   : > { %3116 = vmatmul.bf16.gmra.mxu2 %v7041_v9 }
 0x2a8   : > { %3872 = vmatmul.bf16.gmra.mxu1 %v5367_v28 }
 0x2a9   : > { %v7048_v6 = vpop.f32.mrf.mxu3 }
 0x2aa   : > { %v7050_v59 = vpop.f32.mrf.mxu2 }
 0x2ab   : > { %7831 = vst [vmem:[#allocation16_spill] sm:$0xff] %v7050_v59  ;;  %v5094_v18 = vld [vmem:[#allocation2 + $0xf0] sm:$0xf]  ;;  %v5682_v59 = vld [vmem:[%s7774_s5 + $0x14] sm:$0xf] }
 0x2ac   : > { %v5374_v32 = vld [vmem:[#allocation2 + $0xf0] sm:$0xf]  ;;  %v7059_v48 = vor.u32 %v5609_v37, %v5094_v18  ;;  %v5687_v18 = vld [vmem:[%s7774_s5 + $0x34] sm:$0xf0] }
 0x2ad   : > { %v5375_v12 = vor.u32 %v5663_v61, %v5374_v32  ;;  %v7089_v50 = vpop.f32.mrf.mxu1 }
 0x2b1   : > { %v7054_v24 = vpop.f32.mrf.mxu3 }
 0x2b2   : > { %7832 = vst [vmem:[#allocation17_spill] sm:$0xff] %v7054_v24  ;;  %v7056_v5 = vpop.f32.mrf.mxu2  ;;  %v2135_v52 = vpop.permute.xlu0 %2134 }
 0x2b3   : > { %7833 = vst [vmem:[#allocation18_spill] sm:$0xff] %v7056_v5 }
 0x2b4   : > { %2201 = vst.msk [vmem:[#allocation2 + $0x100] sm:$0xf] %vm2170_vm5, %v2135_v52 }
 0x2b6   : > { %3333 = vmatmul.bf16.gmra.mxu3 %v6707_v10  ;;  %v5486_v10 = vld [vmem:[%s7774_s5 + $0x30] sm:$0xf] }
 0x2b7   : > { %3121 = vmatmul.bf16.gmra.mxu2 %v7059_v48  ;;  %v5487_v52 = vor.u32 %v5687_v18, %v5486_v10  ;;  %v5491_v18 = vor.u32 %v5686_v39, %v5488_v47  ;;  %v5678_v47 = vld [vmem:[%s7772_s3 + $0x110] sm:$0xff] }
 0x2b8   : > { %3877 = vmatmul.bf16.gmra.mxu1 %v5375_v12  ;;  %3898 = vmatpush.bf16.msra.mxu2 %v5678_v47  ;;  %v5478_v47 = vld [vmem:[%s7774_s5 + $0x20] sm:$0xf] }
 0x2b9   : > { %v7066_v46 = vpop.f32.mrf.mxu3  ;;  %4204 = vmatpush.bf16.msra.mxu3 %v5487_v52  ;;  %4293 = vmatpush.bf16.msra.mxu0 %v5491_v18 }
 0x2ba   : > { %v2137_v63 = vpop.permute.xlu1 %2136  ;;  %v7070_v28 = vpop.f32.mrf.mxu2 }
 0x2bb   : > { %7834 = vst [vmem:[#allocation19_spill] sm:$0xff] %v7070_v28  ;;  %v5102_v24 = vld [vmem:[#allocation2 + $0x100] sm:$0xf]  ;;  %v5667_v28 = vld [vmem:[#allocation2 + $0x114] sm:$0xf0] }
 0x2bc   : > { %2202 = vst.msk [vmem:[#allocation2 + $0x108] sm:$0xf] %vm2170_vm5, %v2137_v63  ;;  %v5382_v63 = vld [vmem:[#allocation2 + $0x100] sm:$0xf] }
 0x2c1   : > { %v7079_v32 = vpop.f32.mrf.mxu3 }
 0x2c2   : > { %7835 = vst [vmem:[#allocation20_spill] sm:$0xff] %v7079_v32  ;;  %v7081_v12 = vpop.f32.mrf.mxu2 }
 0x2c3   : > { %v5623_v37 = vld [vmem:[#allocation2 + $0x104] sm:$0xf0]  ;;  %7836 = vst [vmem:[#allocation21_spill] sm:$0xff] %v7081_v12  ;;  %v5390_v12 = vld [vmem:[#allocation2 + $0x110] sm:$0xf] }
 0x2c4   : > { %v5665_v61 = vld [vmem:[#allocation2 + $0x104] sm:$0xf0]  ;;  %v5103_v26 = vor.u32 %v5623_v37, %v5102_v24  ;;  %v7096_v37 = vpop.f32.mrf.mxu1 }
 0x2c5   : > { %v5383_v10 = vor.u32 %v5665_v61, %v5382_v63 }
 0x2c6   : > { %3338 = vmatmul.bf16.gmra.mxu3 %v6754_v27  ;;  %v5391_v27 = vor.u32 %v5667_v28, %v5390_v12 }
 0x2c7   : > { %3126 = vmatmul.bf16.gmra.mxu2 %v5103_v26 }
 0x2c8   : > { %3882 = vmatmul.bf16.gmra.mxu1 %v5383_v10 }
 0x2c9   : > { %v7092_v52 = vpop.f32.mrf.mxu3 }
 0x2ca   : > { %v7094_v24 = vpop.f32.mrf.mxu2 }
 0x2cc   : > { %v7108_v26 = vpop.f32.mrf.mxu1 }
 0x2cd   : > { %7839 = vst [vmem:[#allocation24_spill] sm:$0xff] %v7108_v26 }
 0x2d1   : > { %v7098_v32 = vpop.f32.mrf.mxu3 }
 0x2d2   : > { %7837 = vst [vmem:[#allocation22_spill] sm:$0xff] %v7098_v32  ;;  %v7100_v45 = vpop.f32.mrf.mxu2 }
 0x2d3   : > { %7838 = vst [vmem:[#allocation23_spill] sm:$0xff] %v7100_v45  ;;  %v5272_v45 = vld [vmem:[#allocation2 + $0x28] sm:$0xf0] }
 0x2d6   : > { %3343 = vmatmul.bf16.gmra.mxu3 %v6803_v56 }
 0x2d7   : > { %5156 = vmatmul.msk.bf16.vlgmr.msrb.gmra.mxu2 %vm2994_vm2, %v6266_v19  ;;  %v5677_v19 = vld [vmem:[%s7772_s3 + $0x108] sm:$0xff] }
 0x2d8   : > { %3887 = vmatmul.bf16.gmra.mxu1 %v5391_v27  ;;  %3899 = vmatpush.bf16.msra.mxu2 %v5677_v19  ;;  %v5685_v27 = vld [vmem:[%s7774_s5 + $0x24] sm:$0xf0] }
 0x2d9   : > { %v7110_v61 = vpop.f32.mrf.mxu3  ;;  %v5479_v19 = vor.u32 %v5685_v27, %v5478_v47 }
 0x2da   : > { %v7112_v63 = vpop.f32.mrf.mxu2 }
 0x2db   : > { %4205 = vmatpush.bf16.msra.mxu3 %v5479_v19  ;;  %v5676_v19 = vld [vmem:[%s7772_s3 + $0x100] sm:$0xff] }
 0x2dc   : > { %3900 = vmatpush.bf16.msra.mxu2 %v5676_v19 }
 0x2e1   : > { %v7114_v39 = vpop.f32.mrf.mxu3 }
 0x2e2   : > { %7840 = vst [vmem:[#allocation25_spill] sm:$0xff] %v7114_v39  ;;  %v7116_v10 = vpop.f32.mrf.mxu2  ;;  %v5480_v39 = vld [vmem:[%s7774_s5 + $0x28] sm:$0xf0] }
 0x2e3   : > { %7841 = vst [vmem:[#allocation26_spill] sm:$0xff] %v7116_v10 }
 0x2e6   : > { %3348 = vmatmul.bf16.gmra.mxu3 %v6852_v49 }
 0x2e7   : > { %5157 = vmatmul.msk.bf16.gmra.mxu2 %vm2994_vm2, %v6304_v55 }
 0x2e9   : > { %v7121_v56 = vpop.f32.mrf.mxu3 }
 0x2ea   : > { %v7123_v28 = vpop.f32.mrf.mxu2 }
 0x2f1   : > { %v7128_v12 = vpop.f32.mrf.mxu3 }
 0x2f2   : > { %7842 = vst [vmem:[#allocation27_spill] sm:$0xff] %v7128_v12  ;;  %v7130_v18 = vpop.f32.mrf.mxu2 }
 0x2f3   : > { %7843 = vst [vmem:[#allocation28_spill] sm:$0xff] %v7130_v18 }
 0x2f6   : > { %3353 = vmatmul.bf16.gmra.mxu3 %v6912_v22 }
 0x2f7   : > { %5158 = vmatmul.msk.bf16.gmra.mxu2 %vm2994_vm2, %v6338_v25  ;;  %v5684_v25 = vld [vmem:[%s7774_s5 + $0x24] sm:$0xf] }
 0x2f8   : > { %v5483_v32 = vor.u32 %v5684_v25, %v5480_v39 }
 0x2f9   : > { %v7135_v49 = vpop.f32.mrf.mxu3 }
 0x2fa   : > { %v7137_v55 = vpop.f32.mrf.mxu2  ;;  %4294 = vmatpush.bf16.msra.mxu0 %v5483_v32 }
 0x301   : > { %v7145_v12 = vpop.f32.mrf.mxu3 }
 0x302   : > { %v7147_v22 = vpop.f32.mrf.mxu2 }
 0x303   : > { %7844 = vst [vmem:[#allocation29_spill] sm:$0xff] %v7147_v22 }
 0x306   : > { %3358 = vmatmul.bf16.gmra.mxu3 %v6967_v13 }
 0x307   : > { %5159 = vmatmul.msk.bf16.gmra.mxu2 %vm2994_vm2, %v6391_v31 }
 0x309   : > { %v7158_v47 = vpop.f32.mrf.mxu3 }
 0x30a   : > { %v7160_v27 = vpop.f32.mrf.mxu2 }
 0x311   : > { %v7165_v22 = vpop.f32.mrf.mxu3 }
 0x312   : > { %v7167_v18 = vpop.f32.mrf.mxu2 }
 0x313   : > { %7845 = vst [vmem:[#allocation30_spill] sm:$0xff] %v7167_v18 }
 0x316   : > { %3363 = vmatmul.bf16.gmra.mxu3 %v6983_v23 }
 0x317   : > { %5160 = vmatmul.msk.bf16.gmra.mxu2 %vm2994_vm2, %v6449_v38 }
 0x319   : > { %v7172_v13 = vpop.f32.mrf.mxu3 }
 0x31a   : > { %v7174_v31 = vpop.f32.mrf.mxu2 }
 0x321   : > { %v7176_v32 = vpop.f32.mrf.mxu3 }
 0x322   : > { %v7178_v39 = vpop.f32.mrf.mxu2 }
 0x323   : > { %7846 = vst [vmem:[#allocation31_spill] sm:$0xff] %v7178_v39 }
 0x326   : > { %3368 = vmatmul.bf16.gmra.mxu3 %v6996_v14  ;;  %v5683_v14 = vld [vmem:[%s7774_s5 + $0x14] sm:$0xf0] }
 0x327   : > { %5161 = vmatmul.msk.bf16.gmra.mxu2 %vm2994_vm2, %v6523_v44  ;;  %v5470_v44 = vld [vmem:[%s7774_s5 + $0x10] sm:$0xf] }
 0x328   : > { %v5471_v10 = vor.u32 %v5683_v14, %v5470_v44 }
 0x329   : > { %v7183_v25 = vpop.f32.mrf.mxu3 }
 0x32a   : > { %v7185_v19 = vpop.f32.mrf.mxu2  ;;  %4206 = vmatpush.bf16.msra.mxu3 %v5471_v10 }
 0x331   : > { %v7187_v23 = vpop.f32.mrf.mxu3 }
 0x332   : > { %v7189_v38 = vpop.f32.mrf.mxu2 }
 0x333   : > { %7847 = vst [vmem:[#allocation32_spill] sm:$0xff] %v7189_v38 }
 0x336   : > { %3373 = vmatmul.bf16.gmra.mxu3 %v7010_v15 }
 0x337   : > { %5162 = vmatmul.msk.bf16.gmra.mxu2 %vm2994_vm2, %v6572_v30  ;;  %v5636_v30 = vld [vmem:[#allocation2 + $0x24] sm:$0xf] }
 0x338   : > { %v5275_v5 = vor.u32 %v5636_v30, %v5272_v45  ;;  %v5280_v30 = vld [vmem:[#allocation2 + $0x38] sm:$0xf0] }
 0x339   : > { %v7194_v18 = vpop.f32.mrf.mxu3 }
 0x33a   : > { %7848 = vst [vmem:[#allocation33_spill] sm:$0xff] %v7194_v18  ;;  %v7196_v39 = vpop.f32.mrf.mxu2  ;;  %v5475_v18 = vor.u32 %v5682_v59, %v5472_v51 }
 0x33c   : > { %4295 = vmatpush.bf16.msra.mxu0 %v5475_v18  ;;  %v5288_v18 = vld [vmem:[#allocation2 + $0x48] sm:$0xf0] }
 0x341   : > { %v7204_v38 = vpop.f32.mrf.mxu3 }
 0x342   : > { %7849 = vst [vmem:[#allocation34_spill] sm:$0xff] %v7204_v38  ;;  %v7206_v15 = vpop.f32.mrf.mxu2 }
 0x343   : > { %7850 = vst [vmem:[#allocation35_spill] sm:$0xff] %v7206_v15  ;;  %v5638_v15 = vld [vmem:[#allocation2 + $0x34] sm:$0xf] }
 0x344   : > { %v5283_v38 = vor.u32 %v5638_v15, %v5280_v30 }
 0x346   : > { %3378 = vmatmul.bf16.gmra.mxu3 %v7026_v57 }
 0x347   : > { %5444 = vmatmul.msk.bf16.vlgmr.msra.gmra.mxu2 %vm2994_vm2, %v5275_v5 }
 0x349   : > { %v7216_v10 = vpop.f32.mrf.mxu3 }
 0x34a   : > { %7851 = vst [vmem:[#allocation36_spill] sm:$0xff] %v7216_v10  ;;  %v7218_v44 = vpop.f32.mrf.mxu2  ;;  %v5640_v10 = vld [vmem:[#allocation2 + $0x44] sm:$0xf] }
 0x351   : > { %v7220_v14 = vpop.f32.mrf.mxu3 }
 0x352   : > { %7852 = vst [vmem:[#allocation37_spill] sm:$0xff] %v7220_v14  ;;  %v7222_v45 = vpop.f32.mrf.mxu2  ;;  %v5291_v14 = vor.u32 %v5640_v10, %v5288_v18  ;;  %v5642_v10 = vld [vmem:[#allocation2 + $0x54] sm:$0xf] }
 0x353   : > { %7853 = vst [vmem:[#allocation38_spill] sm:$0xff] %v7222_v45  ;;  %v7242_v45 = vpop.f32.mrf.mxu0  ;;  %v5299_v18 = vor.u32 %v5642_v10, %v5296_v34  ;;  %v5681_v34 = vld [vmem:[%s7774_s5 + $0x4] sm:$0xf0] }
 0x354   : > { %7857 = vst [vmem:[#allocation42_spill] sm:$0xff] %v7242_v45  ;;  %v5312_v45 = vld [vmem:[#allocation2 + $0x78] sm:$0xf0] }
 0x356   : > { %3383 = vmatmul.bf16.gmra.mxu3 %v7041_v9  ;;  %v3177_v9 = vadd.f32 %v6987_v40, %v7094_v24  ;;  %v3182_v40 = vadd.f32 %v7000_v20, %v7112_v63  ;;  %v5304_v63 = vld [vmem:[#allocation2 + $0x68] sm:$0xf0] }
 0x357   : > { %5445 = vmatmul.msk.bf16.gmra.mxu2 %vm2994_vm2, %v5283_v38 }
 0x359   : > { %v7226_v57 = vpop.f32.mrf.mxu3 }
 0x35a   : > { %7854 = vst [vmem:[#allocation39_spill] sm:$0xff] %v7226_v57  ;;  %v7228_v51 = vpop.f32.mrf.mxu2 }
 0x361   : > { %v7230_v59 = vpop.f32.mrf.mxu3 }
 0x362   : > { %7855 = vst [vmem:[#allocation40_spill] sm:$0xff] %v7230_v59  ;;  %v7232_v5 = vpop.f32.mrf.mxu2 }
 0x366   : > { %3388 = vmatmul.bf16.gmra.mxu3 %v7059_v48  ;;  %v7248_v48 = vpop.f32.mrf.mxu0 }
 0x367   : > { %5446 = vmatmul.msk.bf16.gmra.mxu2 %vm2994_vm2, %v5291_v14  ;;  %7859 = vst [vmem:[#allocation44_spill] sm:$0xff] %v7248_v48 }
 0x369   : > { %v3349_v15 = vpop.f32.mrf.mxu3 }
 0x36a   : > { %v7238_v38 = vpop.f32.mrf.mxu2  ;;  %v7240_v30 = vadd.f32 %v3349_v15, %v3177_v9  ;;  %v5462_v15 = vld [vmem:[%s7774_s5] sm:$0xf] }
 0x36b   : > { %v5463_v10 = vor.u32 %v5681_v34, %v5462_v15  ;;  %v3187_v15 = vadd.f32 %v7014_v16, %v7123_v28  ;;  %v3192_v16 = vadd.f32 %v7030_v60, %v7137_v55  ;;  %v3197_v60 = vadd.f32 %v7048_v6, %v7160_v27 }
 0x36c   : > { %7856 = vst [vmem:[#allocation41_spill] sm:$0xff] %v7240_v30  ;;  %v5644_v30 = vld [vmem:[#allocation2 + $0x64] sm:$0xf] }
 0x36d   : > { %4207 = vmatpush.bf16.msra.mxu3 %v5463_v10 }
 0x371   : > { %v7244_v59 = vpop.f32.mrf.mxu3 }
 0x372   : > { %7858 = vst [vmem:[#allocation43_spill] sm:$0xff] %v7244_v59  ;;  %v7246_v57 = vpop.f32.mrf.mxu2  ;;  %v7263_v59 = vpop.f32.mrf.mxu0 }
 0x373   : > { %7861 = vst [vmem:[#allocation46_spill] sm:$0xff] %v7263_v59 }
 0x377   : > { %5447 = vmatmul.msk.bf16.gmra.mxu2 %vm2994_vm2, %v5299_v18 }
 0x379   : > { %v3354_v24 = vpop.f32.mrf.mxu3 }
 0x37a   : > { %v7253_v14 = vpop.f32.mrf.mxu2  ;;  %v7255_v9 = vadd.f32 %v3354_v24, %v3182_v40  ;;  %v5307_v40 = vor.u32 %v5644_v30, %v5304_v63  ;;  %v5680_v24 = vld [vmem:[%s7774_s5 + $0x4] sm:$0xf]  ;;  %v7278_v10 = vpop.f32.mrf.mxu0 }
 0x37b   : > { %7863 = vst [vmem:[#allocation48_spill] sm:$0xff] %v7278_v10 }
 0x37c   : > { %7860 = vst [vmem:[#allocation45_spill] sm:$0xff] %v7255_v9  ;;  %v5464_v9 = vld [vmem:[%s7774_s5 + $0x8] sm:$0xf0] }
 0x37d   : > { %v5467_v48 = vor.u32 %v5680_v24, %v5464_v9  ;;  %v5646_v9 = vld [vmem:[#allocation2 + $0x74] sm:$0xf] }
 0x37f   : > { %4296 = vmatpush.bf16.msra.mxu0 %v5467_v48 }
 0x381   : > { %v7265_v18 = vpop.f32.mrf.mxu3 }
 0x382   : > { %7862 = vst [vmem:[#allocation47_spill] sm:$0xff] %v7265_v18  ;;  %v7267_v20 = vpop.f32.mrf.mxu2  ;;  %v7288_v26 = vpop.f32.mrf.mxu0 }
 0x383   : > { %7866 = vst [vmem:[#allocation51_spill] sm:$0xff] %v7288_v26  ;;  %v5648_v26 = vld [vmem:[#allocation2 + $0x84] sm:$0xf] }
 0x387   : > { %5448 = vmatmul.msk.bf16.gmra.mxu2 %vm2994_vm2, %v5307_v40  ;;  %v5315_v40 = vor.u32 %v5646_v9, %v5312_v45 }
 0x389   : > { %v3359_v34 = vpop.f32.mrf.mxu3 }
 0x38a   : > { %v7280_v18 = vpop.f32.mrf.mxu2  ;;  %v7282_v30 = vadd.f32 %v3359_v34, %v3187_v15  ;;  %v7297_v15 = vpop.f32.mrf.mxu0 }
 0x38b   : > { %7868 = vst [vmem:[#allocation53_spill] sm:$0xff] %v7297_v15 }
 0x38c   : > { %7864 = vst [vmem:[#allocation49_spill] sm:$0xff] %v7282_v30  ;;  %v5320_v30 = vld [vmem:[#allocation2 + $0x88] sm:$0xf0] }
 0x38d   : > { %v5323_v10 = vor.u32 %v5648_v26, %v5320_v30  ;;  %v5650_v26 = vld [vmem:[#allocation2 + $0x94] sm:$0xf] }
 0x391   : > { %v7284_v63 = vpop.f32.mrf.mxu3 }
 0x392   : > { %7865 = vst [vmem:[#allocation50_spill] sm:$0xff] %v7284_v63  ;;  %v7286_v59 = vpop.f32.mrf.mxu2  ;;  %v7304_v45 = vpop.f32.mrf.mxu0 }
 0x393   : > { %7870 = vst [vmem:[#allocation55_spill] sm:$0xff] %v7304_v45 }
 0x397   : > { %5449 = vmatmul.msk.bf16.gmra.mxu2 %vm2994_vm2, %v5315_v40 }
 0x399   : > { %v3364_v28 = vpop.f32.mrf.mxu3 }
 0x39a   : > { %v7293_v48 = vpop.f32.mrf.mxu2  ;;  %v7295_v24 = vadd.f32 %v3364_v28, %v3192_v16  ;;  %v7314_v28 = vpop.f32.mrf.mxu0 }
 0x39b   : > { %7873 = vst [vmem:[#allocation58_spill] sm:$0xff] %v7314_v28  ;;  %v5652_v28 = vld [vmem:[#allocation2 + $0xa4] sm:$0xf] }
 0x39c   : > { %7867 = vst [vmem:[#allocation52_spill] sm:$0xff] %v7295_v24  ;;  %v5328_v24 = vld [vmem:[#allocation2 + $0x98] sm:$0xf0] }
 0x39d   : > { %v5331_v30 = vor.u32 %v5650_v26, %v5328_v24  ;;  %v3142_v26 = vadd.f32 %v7228_v51, %v6977_v36 }
 0x3a1   : > { %v7299_v34 = vpop.f32.mrf.mxu3 }
 0x3a2   : > { %7869 = vst [vmem:[#allocation54_spill] sm:$0xff] %v7299_v34  ;;  %v7301_v63 = vpop.f32.mrf.mxu2 }
 0x3a7   : > { %5450 = vmatmul.msk.bf16.gmra.mxu2 %vm2994_vm2, %v5323_v10  ;;  %v3202_v10 = vadd.f32 %v7066_v46, %v7174_v31  ;;  %v3207_v46 = vadd.f32 %v7092_v52, %v7185_v19  ;;  %v7351_v52 = vld [vmem:[%s7773_s4] ss:$0 sm:$0xff] }
 0x3a9   : > { %v3369_v55 = vpop.f32.mrf.mxu3 }
 0x3aa   : > { %v7308_v9 = vpop.f32.mrf.mxu2  ;;  %v7310_v40 = vadd.f32 %v3369_v55, %v3197_v60  ;;  %v7325_v60 = vpop.f32.mrf.mxu0 }
 0x3ac   : > { %7871 = vst [vmem:[#allocation56_spill] sm:$0xff] %v7310_v40  ;;  %v5336_v40 = vld [vmem:[#allocation2 + $0xa8] sm:$0xf0] }
 0x3ad   : > { %v5339_v15 = vor.u32 %v5652_v28, %v5336_v40 }
 0x3b1   : > { %v7312_v16 = vpop.f32.mrf.mxu3 }
 0x3b2   : > { %7872 = vst [vmem:[#allocation57_spill] sm:$0xff] %v7312_v16  ;;  %v7316_v34 = vpop.f32.mrf.mxu2  ;;  %v7331_v24 = vpop.f32.mrf.mxu0 }
 0x3b7   : > { %5451 = vmatmul.msk.bf16.gmra.mxu2 %vm2994_vm2, %v5331_v30 }
 0x3b9   : > { %v3374_v6 = vpop.f32.mrf.mxu3 }
 0x3ba   : > { %v7321_v27 = vpop.f32.mrf.mxu2  ;;  %v7323_v45 = vadd.f32 %v3374_v6, %v3202_v10  ;;  %v3315_v6 = vadd.f32 %v7135_v49, %v3142_v26  ;;  %v7346_v51 = vpop.f32.mrf.mxu0  ;;  %v5344_v26 = vld [vmem:[#allocation2 + $0xb8] sm:$0xf0] }
 0x3bc   : > { %v3404_v36 = vadd.f32 %v6739_v58, %v3315_v6 }
 0x3c1   : > { %v7327_v55 = vpop.f32.mrf.mxu3 }
 0x3c2   : > { %7874 = vst [vmem:[#allocation59_spill] sm:$0xff] %v7327_v55  ;;  %v7329_v16 = vpop.f32.mrf.mxu2  ;;  %v3144_v55 = vadd.f32 %v7232_v5, %v6980_v11  ;;  %v5654_v5 = vld [vmem:[#allocation2 + $0xb4] sm:$0xf] }
 0x3c4   : > { %v3317_v28 = vadd.f32 %v7145_v12, %v3144_v55  ;;  %v5347_v55 = vor.u32 %v5654_v5, %v5344_v26 }
 0x3c6   : > { %v3406_v11 = vadd.f32 %v6770_v0, %v3317_v28  ;;  %v7364_v28 = vpop.f32.mrf.mxu0 }
 0x3c7   : > { %5452 = vmatmul.msk.bf16.gmra.mxu2 %vm2994_vm2, %v5339_v15 }
 0x3c9   : > { %v3379_v31 = vpop.f32.mrf.mxu3 }
 0x3ca   : > { %v7338_v30 = vadd.f32 %v3379_v31, %v3207_v46  ;;  %v3902_v10 = vpop.f32.mrf.mxu2  ;;  %v3147_v46 = vadd.f32 %v7238_v38, %v6989_v43  ;;  %v3149_v43 = vadd.f32 %v7246_v57, %v6994_v54 }
 0x3cb   : > { %v3903_v40 = vadd.f32 %v3902_v10, %v7021_v41  ;;  %v3212_v10 = vadd.f32 %v7110_v61, %v7196_v39 }
 0x3cc   : > { %v3322_v61 = vadd.f32 %v7165_v22, %v3149_v43 }
 0x3cd   : > { %v3982_v15 = vadd.f32 %v3903_v40, %v3404_v36 }
 0x3ce   : > { %v7382_v57 = vpop.f32.mrf.mxu0 }
 0x3cf   : > { %v4018_v12 = vadd.f32 %v7351_v52, %v3982_v15  ;;  %v7368_v15 = vpop.f32.mrf.mxu1 }
 0x3d1   : > { %v7353_v19 = vpop.f32.mrf.mxu3  ;;  %v4050_v6 = vmax.f32 %v4018_v12, 0.0  ;;  %v5352_v12 = vld [vmem:[#allocation2 + $0xc8] sm:$0xf0] }
 0x3d2   : > { %v3904_v49 = vpop.f32.mrf.mxu2 }
 0x3d3   : > { %v3905_v41 = vadd.f32 %v3904_v49, %v7035_v62  ;;  %v3320_v49 = vadd.f32 %v7158_v47, %v3147_v46  ;;  %v3411_v47 = vadd.f32 %v6827_v33, %v3322_v61  ;;  %v3217_v33 = vadd.f32 %v7121_v56, %v7218_v44  ;;  %v5360_v61 = vld [vmem:[#allocation2 + $0xd8] sm:$0xf0] }
 0x3d5   : > { %v3983_v58 = vadd.f32 %v3905_v41, %v3406_v11  ;;  %v3409_v39 = vadd.f32 %v6798_v1, %v3320_v49  ;;  %v3152_v1 = vadd.f32 %v7253_v14, %v7002_v7  ;;  %v3154_v49 = vadd.f32 %v7267_v20, %v7007_v17 }
 0x3d6   : > { %v7401_v14 = vpop.f32.mrf.mxu0 }
 0x3d7   : > { %v4019_v31 = vadd.f32 %v7351_v52, %v3983_v58  ;;  %5453 = vmatmul.msk.bf16.gmra.mxu2 %vm2994_vm2, %v5347_v55  ;;  %v7384_v58 = vpop.f32.mrf.mxu1  ;;  %v3327_v44 = vadd.f32 %v7176_v32, %v3154_v49  ;;  %v7876_v49 = vld [vmem:[#allocation13_spill] sm:$0xff] }
 0x3d9   : > { %v4051_v40 = vmax.f32 %v4019_v31, 0.0  ;;  %v3384_v0 = vpop.f32.mrf.mxu3  ;;  %v3416_v17 = vadd.f32 %v6900_v53, %v3327_v44 }
 0x3da   : > { %v7366_v62 = vadd.f32 %v3384_v0, %v3212_v10  ;;  %v3907_v36 = vpop.f32.mrf.mxu2 }
 0x3db   : > { %v4082_v38 = vpack.c.bf16 %v4051_v40, %v4050_v6  ;;  %v3908_v26 = vadd.f32 %v3907_v36, %v7044_v8  ;;  %v5656_v8 = vld [vmem:[#allocation2 + $0xc4] sm:$0xf]  ;;  %v3325_v36 = vadd.f32 %v7172_v13, %v3152_v1 }
 0x3dc   : > { %v5355_v22 = vor.u32 %v5656_v8, %v5352_v12  ;;  %v3157_v12 = vadd.f32 %v7280_v18, %v7016_v35 }
 0x3dd   : > { %5492 = vmatmul.msk.bf16.vlgmr.msra.gmra.mxu3 %vm2994_vm2, %v4082_v38  ;;  %5508 = vmatmul.msk.bf16.vlgmr.msra.gmra.mxu0 %vm2994_vm2, %v4082_v38  ;;  %v3984_v11 = vadd.f32 %v3908_v26, %v3409_v39  ;;  %v3414_v38 = vadd.f32 %v6870_v2, %v3325_v36 }
 0x3de   : > { %v7414_v2 = vpop.f32.mrf.mxu0 }
 0x3df   : > { %v4020_v55 = vadd.f32 %v7351_v52, %v3984_v11  ;;  %v7403_v56 = vpop.f32.mrf.mxu1 }
 0x3e1   : > { %v7378_v41 = vpop.f32.mrf.mxu3 }
 0x3e2   : > { %v3909_v5 = vpop.f32.mrf.mxu2 }
 0x3e3   : > { %v3910_v54 = vadd.f32 %v3909_v5, %v7052_v42  ;;  %v4052_v42 = vmax.f32 %v4020_v55, 0.0  ;;  %v3159_v55 = vadd.f32 %v7286_v59, %v7023_v21  ;;  %v7875_v59 = vld [vmem:[#allocation24_spill] sm:$0xff] }
 0x3e5   : > { %v3985_v46 = vadd.f32 %v3910_v54, %v3411_v47  ;;  %v3332_v35 = vadd.f32 %v7187_v23, %v3159_v55  ;;  %v3162_v23 = vadd.f32 %v7293_v48, %v7876_v49  ;;  %v7879_v48 = vld [vmem:[#allocation34_spill] sm:$0xff] }
 0x3e7   : > { %v4021_v31 = vadd.f32 %v7351_v52, %v3985_v46  ;;  %5454 = vmatmul.msk.bf16.gmra.mxu2 %vm2994_vm2, %v5355_v22  ;;  %v7416_v32 = vpop.f32.mrf.mxu1  ;;  %v3421_v21 = vadd.f32 %v6969_v4, %v3332_v35  ;;  %v7878_v4 = vld [vmem:[#allocation15_spill] sm:$0xff] }
 0x3e9   : > { %v4053_v10 = vmax.f32 %v4021_v31, 0.0  ;;  %v3389_v6 = vpop.f32.mrf.mxu3  ;;  %v7426_v31 = vpop.f32.mrf.mxu0 }
 0x3ea   : > { %v7393_v40 = vadd.f32 %v3389_v6, %v3217_v33  ;;  %v3912_v0 = vpop.f32.mrf.mxu2 }
 0x3eb   : > { %v4083_v43 = vpack.c.bf16 %v4053_v10, %v4052_v42  ;;  %v3913_v7 = vadd.f32 %v3912_v0, %v7068_v29  ;;  %v5658_v29 = vld [vmem:[#allocation2 + $0xd4] sm:$0xf]  ;;  %v5368_v42 = vld [vmem:[#allocation2 + $0xe8] sm:$0xf0] }
 0x3ec   : > { %v5363_v5 = vor.u32 %v5658_v29, %v5360_v61 }
 0x3ed   : > { %5493 = vmatmul.msk.bf16.gmra.mxu3 %vm2994_vm2, %v4083_v43  ;;  %5509 = vmatmul.msk.bf16.gmra.mxu0 %vm2994_vm2, %v4083_v43  ;;  %v3986_v26 = vadd.f32 %v3913_v7, %v3414_v38  ;;  %v7877_v38 = vld [vmem:[#allocation33_spill] sm:$0xff] }
 0x3ef   : > { %v4022_v39 = vadd.f32 %v7351_v52, %v3986_v26  ;;  %v3335_v26 = vadd.f32 %v7877_v38, %v3162_v23  ;;  %v7886_v23 = vld [vmem:[#allocation46_spill] sm:$0xff] }
 0x3f1   : > { %v4054_v54 = vmax.f32 %v4022_v39, 0.0 }
 0x3f2   : > { %v3914_v13 = vpop.f32.mrf.mxu2 }
 0x3f3   : > { %v3915_v20 = vadd.f32 %v3914_v13, %v7089_v50  ;;  %v3330_v50 = vadd.f32 %v7183_v25, %v3157_v12  ;;  %v7428_v25 = vpop.f32.mrf.mxu1  ;;  %v3164_v13 = vadd.f32 %v7301_v63, %v7878_v4  ;;  %v7887_v4 = vld [vmem:[#allocation48_spill] sm:$0xff] }
 0x3f5   : > { %v3987_v11 = vadd.f32 %v3915_v20, %v3416_v17  ;;  %v3419_v18 = vadd.f32 %v6935_v3, %v3330_v50  ;;  %v7440_v17 = vpop.f32.mrf.mxu0  ;;  %v3337_v39 = vadd.f32 %v7879_v48, %v3164_v13  ;;  %v5662_v50 = vld [vmem:[#allocation2 + $0xf4] sm:$0xf] }
 0x3f7   : > { %v4023_v47 = vadd.f32 %v7351_v52, %v3987_v11  ;;  %5455 = vmatmul.msk.bf16.gmra.mxu2 %vm2994_vm2, %v5363_v5  ;;  %v7880_v11 = vld [vmem:[#allocation42_spill] sm:$0xff] }
 0x3f8   : > { %v3424_v5 = vadd.f32 %v7880_v11, %v3335_v26  ;;  %v5384_v26 = vld [vmem:[#allocation2 + $0x108] sm:$0xf0] }
 0x3f9   : > { %v4055_v53 = vmax.f32 %v4023_v47, 0.0 }
 0x3fa   : > { %v3917_v8 = vpop.f32.mrf.mxu2 }
 0x3fb   : > { %v4084_v46 = vpack.c.bf16 %v4055_v53, %v4054_v54  ;;  %v3918_v22 = vadd.f32 %v3917_v8, %v7096_v37  ;;  %v5660_v37 = vld [vmem:[#allocation2 + $0xe4] sm:$0xf]  ;;  %v7442_v20 = vpop.f32.mrf.mxu1  ;;  %v5376_v54 = vld [vmem:[#allocation2 + $0xf8] sm:$0xf0]  ;;  %v7881_v53 = vld [vmem:[#allocation44_spill] sm:$0xff] }
 0x3fc   : > { %v5371_v36 = vor.u32 %v5660_v37, %v5368_v42  ;;  %v3426_v63 = vadd.f32 %v7881_v53, %v3337_v39  ;;  %v7884_v37 = vld [vmem:[#allocation18_spill] sm:$0xff]  ;;  %v7888_v39 = vld [vmem:[#allocation19_spill] sm:$0xff] }
 0x3fd   : > { %5494 = vmatmul.msk.bf16.gmra.mxu3 %vm2994_vm2, %v4084_v46  ;;  %5510 = vmatmul.msk.bf16.gmra.mxu0 %vm2994_vm2, %v4084_v46  ;;  %v3988_v1 = vadd.f32 %v3918_v22, %v3419_v18  ;;  %v7452_v22 = vpop.f32.mrf.mxu0  ;;  %v7882_v18 = vld [vmem:[#allocation16_spill] sm:$0xff]  ;;  %v3172_v11 = vadd.f32 %v7321_v27, %v7888_v39  ;;  %v7898_v39 = vld [vmem:[#allocation43_spill] sm:$0xff] }
 0x3fe   : > { %v7891_v27 = vld [vmem:[#allocation40_spill] sm:$0xff] }
 0x3ff   : > { %v4024_v6 = vadd.f32 %v7351_v52, %v3988_v1  ;;  %v3167_v1 = vadd.f32 %v7308_v9, %v7882_v18  ;;  %v7885_v9 = vld [vmem:[#allocation37_spill] sm:$0xff] }
 0x401   : > { %v4056_v43 = vmax.f32 %v4024_v6, 0.0  ;;  %v3169_v6 = vadd.f32 %v7316_v34, %v7884_v37 }
 0x402   : > { %v3919_v33 = vpop.f32.mrf.mxu2 }
 0x403   : > { %v3920_v10 = vadd.f32 %v3919_v33, %v7875_v59  ;;  %v3848_v35 = vpop.f32.mrf.mxu1  ;;  %v3342_v49 = vadd.f32 %v7885_v9, %v3169_v6 }
 0x405   : > { %v3989_v0 = vadd.f32 %v3920_v10, %v3421_v21  ;;  %v7883_v10 = vld [vmem:[#allocation36_spill] sm:$0xff]  ;;  %v3431_v13 = vadd.f32 %v7887_v4, %v3342_v49  ;;  %v7895_v4 = vld [vmem:[#allocation10_spill] sm:$0xff] }
 0x407   : > { %v4025_v3 = vadd.f32 %v7351_v52, %v3989_v0  ;;  %5456 = vmatmul.msk.bf16.gmra.mxu2 %vm2994_vm2, %v5371_v36 }
 0x409   : > { %v4057_v7 = vmax.f32 %v4025_v3, 0.0 }
 0x40a   : > { %v3922_v44 = vpop.f32.mrf.mxu2 }
 0x40b   : > { %v4085_v61 = vpack.c.bf16 %v4057_v7, %v4056_v43  ;;  %v3923_v29 = vadd.f32 %v3922_v44, %v7368_v15  ;;  %v5379_v15 = vor.u32 %v5662_v50, %v5376_v54  ;;  %v7466_v43 = vpop.f32.mrf.mxu0  ;;  %v3850_v7 = vpop.f32.mrf.mxu1  ;;  %v7890_v50 = vld [vmem:[#allocation21_spill] sm:$0xff] }
 0x40d   : > { %5495 = vmatmul.msk.bf16.gmra.mxu3 %vm2994_vm2, %v4085_v61  ;;  %5511 = vmatmul.msk.bf16.gmra.mxu0 %vm2994_vm2, %v4085_v61  ;;  %v3990_v12 = vadd.f32 %v3923_v29, %v3424_v5  ;;  %v5664_v61 = vld [vmem:[#allocation2 + $0x104] sm:$0xf] }
 0x40e   : > { %v5387_v48 = vor.u32 %v5664_v61, %v5384_v26  ;;  %v7894_v26 = vld [vmem:[#allocation23_spill] sm:$0xff] }
 0x40f   : > { %v4026_v55 = vadd.f32 %v7351_v52, %v3990_v12 }
 0x411   : > { %v4058_v42 = vmax.f32 %v4026_v55, 0.0  ;;  %v3174_v55 = vadd.f32 %v7329_v16, %v7890_v50 }
 0x412   : > { %v3924_v47 = vpop.f32.mrf.mxu2 }
 0x413   : > { %v3925_v8 = vadd.f32 %v3924_v47, %v7384_v58  ;;  %v3340_v58 = vadd.f32 %v7883_v10, %v3167_v1  ;;  %v7475_v54 = vpop.f32.mrf.mxu0  ;;  %v3347_v18 = vadd.f32 %v7891_v27, %v3174_v55  ;;  %v7892_v1 = vld [vmem:[#allocation51_spill] sm:$0xff] }
 0x415   : > { %v3991_v46 = vadd.f32 %v3925_v8, %v3426_v63  ;;  %v3429_v3 = vadd.f32 %v7886_v23, %v3340_v58  ;;  %v3853_v63 = vpop.f32.mrf.mxu1  ;;  %v7889_v8 = vld [vmem:[#allocation39_spill] sm:$0xff]  ;;  %v7893_v58 = vld [vmem:[#allocation53_spill] sm:$0xff] }
 0x416   : > { %v3436_v37 = vadd.f32 %v7893_v58, %v3347_v18  ;;  %v7903_v58 = vld [vmem:[#allocation47_spill] sm:$0xff] }
 0x417   : > { %v4027_v33 = vadd.f32 %v7351_v52, %v3991_v46  ;;  %5457 = vmatmul.msk.bf16.gmra.mxu2 %vm2994_vm2, %v5379_v15 }
 0x419   : > { %v4059_v21 = vmax.f32 %v4027_v33, 0.0 }
 0x41a   : > { %v3927_v59 = vpop.f32.mrf.mxu2 }
 0x41b   : > { %v4086_v0 = vpack.c.bf16 %v4059_v21, %v4058_v42  ;;  %v3928_v36 = vadd.f32 %v3927_v59, %v7403_v56  ;;  %v5666_v42 = vld [vmem:[#allocation2 + $0x114] sm:$0xf]  ;;  %v5392_v21 = vld [vmem:[#allocation2 + $0x118] sm:$0xf0] }
 0x41c   : > { %v5395_v16 = vor.u32 %v5666_v42, %v5392_v21  ;;  %v7901_v42 = vld [vmem:[#allocation11_spill] sm:$0xff] }
 0x41d   : > { %5496 = vmatmul.msk.bf16.gmra.mxu3 %vm2994_vm2, %v4086_v0  ;;  %5512 = vmatmul.msk.bf16.gmra.mxu0 %vm2994_vm2, %v4086_v0  ;;  %v3992_v44 = vadd.f32 %v3928_v36, %v3429_v3  ;;  %v7487_v0 = vpop.f32.mrf.mxu0 }
 0x41f   : > { %v4028_v56 = vadd.f32 %v7351_v52, %v3992_v44 }
 0x421   : > { %v4060_v12 = vmax.f32 %v4028_v56, 0.0  ;;  %v7896_v56 = vld [vmem:[#allocation41_spill] sm:$0xff] }
 0x422   : > { %v3929_v38 = vpop.f32.mrf.mxu2 }
 0x423   : > { %v3930_v34 = vadd.f32 %v3929_v38, %v7416_v32  ;;  %v3345_v32 = vadd.f32 %v7889_v8, %v3172_v11 }
 0x425   : > { %v3993_v29 = vadd.f32 %v3930_v34, %v3431_v13  ;;  %v3434_v33 = vadd.f32 %v7892_v1, %v3345_v32  ;;  %v3179_v13 = vadd.f32 %v7895_v4, %v7894_v26 }
 0x427   : > { %v4029_v5 = vadd.f32 %v7351_v52, %v3993_v29  ;;  %5458 = vmatmul.msk.bf16.gmra.mxu2 %vm2994_vm2, %v5387_v48  ;;  %v7897_v29 = vld [vmem:[#allocation55_spill] sm:$0xff]  ;;  %v3352_v11 = vadd.f32 %v7898_v39, %v3179_v13  ;;  %v7905_v39 = vld [vmem:[#allocation12_spill] sm:$0xff] }
 0x428   : > { %v3439_v48 = vadd.f32 %v7897_v29, %v7896_v56  ;;  %v300_v56 = vld [vmem:[%s5998_s16] sm:$0xff] }
 0x429   : > { %v4061_v47 = vmax.f32 %v4029_v5, 0.0 }
 0x42a   : > { %v3932_v53 = vpop.f32.mrf.mxu2 }
 0x42b   : > { %v4087_v46 = vpack.c.bf16 %v4061_v47, %v4060_v12  ;;  %v3933_v15 = vadd.f32 %v3932_v53, %v7428_v25  ;;  %v3855_v25 = vpop.f32.mrf.mxu1  ;;  %v7899_v47 = vld [vmem:[#allocation58_spill] sm:$0xff] }
 0x42c   : > { %v3441_v53 = vadd.f32 %v7899_v47, %v3352_v11  ;;  %v4379_v47 = vunpack.c.h.bf16 %v300_v56 }
 0x42d   : > { %5497 = vmatmul.msk.bf16.gmra.mxu3 %vm2994_vm2, %v4087_v46  ;;  %5513 = vmatmul.msk.bf16.gmra.mxu0 %vm2994_vm2, %v4087_v46  ;;  %v3994_v59 = vadd.f32 %v3933_v15, %v3434_v33  ;;  %v7900_v33 = vld [vmem:[#allocation26_spill] sm:$0xff] }
 0x42e   : > { %v3184_v21 = vadd.f32 %v7901_v42, %v7900_v33  ;;  %v301_v33 = vld [vmem:[%s5998_s16 + $0x8] sm:$0xff] }
 0x42f   : > { %v4030_v36 = vadd.f32 %v7351_v52, %v3994_v59 }
 0x431   : > { %v4062_v23 = vmax.f32 %v4030_v36, 0.0 }
 0x432   : > { %v3934_v10 = vpop.f32.mrf.mxu2 }
 0x433   : > { %v3935_v6 = vadd.f32 %v3934_v10, %v7442_v20  ;;  %v7496_v20 = vpop.f32.mrf.mxu0  ;;  %v3858_v61 = vpop.f32.mrf.mxu1 }
 0x435   : > { %v3995_v9 = vadd.f32 %v3935_v6, %v3436_v37  ;;  %v3357_v37 = vadd.f32 %v7903_v58, %v3184_v21 }
 0x437   : > { %v4031_v49 = vadd.f32 %v7351_v52, %v3995_v9  ;;  %5459 = vmatmul.msk.bf16.gmra.mxu2 %vm2994_vm2, %v5395_v16 }
 0x439   : > { %v4063_v3 = vmax.f32 %v4031_v49, 0.0  ;;  %v3446_v49 = vadd.f32 %v7331_v24, %v3357_v37  ;;  %v4381_v37 = vunpack.c.h.bf16 %v301_v33 }
 0x43a   : > { %v3937_v44 = vpop.f32.mrf.mxu2 }
 0x43b   : > { %v4088_v38 = vpack.c.bf16 %v4063_v3, %v4062_v23  ;;  %v3938_v34 = vadd.f32 %v3937_v44, %v3848_v35  ;;  %v7504_v55 = vpop.f32.mrf.mxu0  ;;  %v3860_v46 = vpop.f32.mrf.mxu1  ;;  %v4106_v44 = vld [vmem:[%s7775_s6] sm:$0x3] }
 0x43c   : > { %v7523_v13 = vperm.slane %v4106_v44, 1 }
 0x43d   : > { %5498 = vmatmul.msk.bf16.gmra.mxu3 %vm2994_vm2, %v4088_v38  ;;  %5514 = vmatmul.msk.bf16.gmra.mxu0 %vm2994_vm2, %v4088_v38  ;;  %v3996_v5 = vadd.f32 %v3938_v34, %v3439_v48  ;;  %v7521_v38 = vpop.f32.mrf.mxu3  ;;  %v7904_v48 = vld [vmem:[#allocation28_spill] sm:$0xff] }
 0x43e   : > { %v3189_v11 = vadd.f32 %v7905_v39, %v7904_v48  ;;  %v7908_v48 = vld [vmem:[#allocation29_spill] sm:$0xff]  ;;  %v7909_v39 = vld [vmem:[#allocation14_spill] sm:$0xff] }
 0x43f   : > { %v4032_v32 = vadd.f32 %v7351_v52, %v3996_v5 }
 0x441   : > { %v4064_v15 = vmax.f32 %v4032_v32, 0.0 }
 0x442   : > { %v3939_v12 = vpop.f32.mrf.mxu2 }
 0x443   : > { %v3940_v8 = vadd.f32 %v3939_v12, %v3850_v7  ;;  %v7902_v7 = vld [vmem:[#allocation45_spill] sm:$0xff]  ;;  %v7513_v16 = vpop.f32.mrf.mxu0  ;;  %v3863_v9 = vpop.f32.mrf.mxu1 }
 0x444   : > { %v3444_v10 = vadd.f32 %v7325_v60, %v7902_v7 }
 0x445   : > { %v3997_v35 = vadd.f32 %v3940_v8, %v3441_v53  ;;  %v7533_v53 = vperm.slane %v4106_v44, 0  ;;  %v7906_v8 = vld [vmem:[#allocation49_spill] sm:$0xff]  ;;  %v4380_v44 = vunpack.c.l.bf16 %v301_v33 }
 0x446   : > { %v3449_v32 = vadd.f32 %v7346_v51, %v7906_v8 }
 0x447   : > { %v4033_v50 = vadd.f32 %v7351_v52, %v3997_v35  ;;  %v7907_v35 = vld [vmem:[#allocation50_spill] sm:$0xff] }
 0x449   : > { %v4065_v27 = vmax.f32 %v4033_v50, 0.0  ;;  %v3362_v50 = vadd.f32 %v7907_v35, %v3189_v11  ;;  %v3194_v11 = vadd.f32 %v7909_v39, %v7908_v48 }
 0x44a   : > { %v3942_v18 = vpop.f32.mrf.mxu2 }
 0x44b   : > { %v4089_v1 = vpack.c.bf16 %v4065_v27, %v4064_v15  ;;  %v3943_v59 = vadd.f32 %v3942_v18, %v3853_v63  ;;  %v7528_v5 = vpop.f32.mrf.mxu1 }
 0x44d   : > { %5499 = vmatmul.msk.bf16.gmra.mxu3 %vm2994_vm2, %v4089_v1  ;;  %5515 = vmatmul.msk.bf16.gmra.mxu0 %vm2994_vm2, %v4089_v1  ;;  %v3998_v6 = vadd.f32 %v3943_v59, %v3444_v10  ;;  %v3451_v59 = vadd.f32 %v7364_v28, %v3362_v50  ;;  %v7910_v50 = vld [vmem:[#allocation52_spill] sm:$0xff] }
 0x44f   : > { %v4034_v63 = vadd.f32 %v7351_v52, %v3998_v6 }
 0x451   : > { %v4066_v26 = vmax.f32 %v4034_v63, 0.0 }
 0x452   : > { %v3944_v36 = vpop.f32.mrf.mxu2 }
 0x453   : > { %v3945_v23 = vadd.f32 %v3944_v36, %v3855_v25 }
 0x455   : > { %v3999_v3 = vadd.f32 %v3945_v23, %v3446_v49  ;;  %v3868_v23 = vpop.f32.mrf.mxu1 }
 0x457   : > { %v4035_v60 = vadd.f32 %v7351_v52, %v3999_v3 }
 0x459   : > { %v4067_v4 = vmax.f32 %v4035_v60, 0.0 }
 0x45a   : > { %v3947_v34 = vpop.f32.mrf.mxu2  ;;  %v4298_v29 = vpop.f32.mrf.mxu0 }
 0x45b   : > { %v4090_v24 = vpack.c.bf16 %v4067_v4, %v4066_v26  ;;  %v3948_v25 = vadd.f32 %v3947_v34, %v3858_v61  ;;  %v4299_v12 = vadd.f32 %v4298_v29, %v7523_v13  ;;  %v4378_v61 = vunpack.c.l.bf16 %v300_v56  ;;  %v302_v56 = vld [vmem:[%s5998_s16 + $0x10] sm:$0xff] }
 0x45c   : > { %v4383_v35 = vunpack.c.h.bf16 %v302_v56 }
 0x45d   : > { %5500 = vmatmul.msk.bf16.gmra.mxu3 %vm2994_vm2, %v4090_v24  ;;  %5516 = vmatmul.msk.bf16.gmra.mxu0 %vm2994_vm2, %v4090_v24  ;;  %v4000_v15 = vadd.f32 %v3948_v25, %v3449_v32  ;;  %v4443_v18 = vadd.f32 %v4379_v47, %v4299_v12 }
 0x45f   : > { %v4036_v58 = vadd.f32 %v7351_v52, %v4000_v15  ;;  %v4507_v51 = vmax.f32 %v4443_v18, 0.0  ;;  %v7911_v15 = vld [vmem:[#allocation54_spill] sm:$0xff] }
 0x460   : > { %v4209_v27 = vpop.f32.mrf.mxu3 }
 0x461   : > { %v4210_v1 = vadd.f32 %v4209_v27, %v7533_v53  ;;  %v4068_v26 = vmax.f32 %v4036_v58, 0.0  ;;  %v3367_v27 = vadd.f32 %v7911_v15, %v3194_v11  ;;  %v7912_v11 = vld [vmem:[#allocation30_spill] sm:$0xff]  ;;  %v7914_v15 = vld [vmem:[#allocation56_spill] sm:$0xff] }
 0x462   : > { %v3949_v42 = vpop.f32.mrf.mxu2  ;;  %v4300_v21 = vpop.f32.mrf.mxu0 }
 0x463   : > { %v4442_v7 = vadd.f32 %v4378_v61, %v4210_v1  ;;  %v3950_v10 = vadd.f32 %v3949_v42, %v3860_v46  ;;  %v4301_v49 = vadd.f32 %v4300_v21, %v7523_v13  ;;  %v3454_v61 = vadd.f32 %v7382_v57, %v7910_v50 }
 0x464   : > { %v4382_v1 = vunpack.c.l.bf16 %v302_v56 }
 0x465   : > { %v4506_v6 = vmax.f32 %v4442_v7, 0.0  ;;  %v4001_v36 = vadd.f32 %v3950_v10, %v3451_v59  ;;  %v4445_v46 = vadd.f32 %v4381_v37, %v4301_v49  ;;  %v303_v7 = vld [vmem:[%s5998_s16 + $0x18] sm:$0xff]  ;;  %v3456_v37 = vadd.f32 %v7401_v14, %v3367_v27 }
 0x466   : > { %v3459_v27 = vadd.f32 %v7414_v2, %v7914_v15 }
 0x467   : > { %v4570_v63 = vpack.c.bf16 %v4507_v51, %v4506_v6  ;;  %v4037_v3 = vadd.f32 %v7351_v52, %v4001_v36  ;;  %v4509_v47 = vmax.f32 %v4445_v46, 0.0  ;;  %v4385_v36 = vunpack.c.h.bf16 %v303_v7 }
 0x468   : > { %v4211_v60 = vpop.f32.mrf.mxu3 }
 0x469   : > { %4602 = vst [vmem:[%s7546_s12] sm:$0xff] %v4570_v63  ;;  %v4069_v28 = vmax.f32 %v4037_v3, 0.0  ;;  %v4212_v4 = vadd.f32 %v4211_v60, %v7533_v53 }
 0x46a   : > { %v3952_v34 = vpop.f32.mrf.mxu2  ;;  %v4303_v29 = vpop.f32.mrf.mxu0 }
 0x46b   : > { %v4091_v24 = vpack.c.bf16 %v4069_v28, %v4068_v26  ;;  %v4444_v25 = vadd.f32 %v4380_v44, %v4212_v4  ;;  %v3953_v12 = vadd.f32 %v3952_v34, %v3863_v9  ;;  %v4304_v32 = vadd.f32 %v4303_v29, %v7523_v13  ;;  %v3870_v9 = vpop.f32.mrf.mxu1  ;;  %v304_v29 = vld [vmem:[%s5998_s16 + $0x20] sm:$0xff] }
 0x46c   : > { %v4384_v28 = vunpack.c.l.bf16 %v303_v7 }
 0x46d   : > { %v4508_v8 = vmax.f32 %v4444_v25, 0.0  ;;  %5501 = vmatmul.msk.bf16.gmra.mxu3 %vm2994_vm2, %v4091_v24  ;;  %5517 = vmatmul.msk.bf16.gmra.mxu0 %vm2994_vm2, %v4091_v24  ;;  %v4002_v33 = vadd.f32 %v3953_v12, %v3454_v61  ;;  %v4447_v21 = vadd.f32 %v4383_v35, %v4304_v32  ;;  %v7913_v12 = vld [vmem:[#allocation17_spill] sm:$0xff]  ;;  %v4387_v61 = vunpack.c.h.bf16 %v304_v29 }
 0x46f   : > { %v4571_v18 = vpack.c.bf16 %v4509_v47, %v4508_v8  ;;  %v4038_v6 = vadd.f32 %v7351_v52, %v4002_v33  ;;  %v4511_v49 = vmax.f32 %v4447_v21, 0.0  ;;  %v3199_v47 = vadd.f32 %v7913_v12, %v7912_v11  ;;  %v7917_v11 = vld [vmem:[#allocation20_spill] sm:$0xff] }
 0x470   : > { %v4214_v42 = vpop.f32.mrf.mxu3 }
 0x471   : > { %4603 = vst [vmem:[%s7546_s12 + $0x8] sm:$0xff] %v4571_v18  ;;  %v4215_v59 = vadd.f32 %v4214_v42, %v7533_v53  ;;  %v4070_v4 = vmax.f32 %v4038_v6, 0.0  ;;  %v7915_v18 = vld [vmem:[#allocation57_spill] sm:$0xff]  ;;  %v4386_v42 = vunpack.c.l.bf16 %v304_v29 }
 0x472   : > { %v3954_v10 = vpop.f32.mrf.mxu2  ;;  %v4305_v58 = vpop.f32.mrf.mxu0 }
 0x473   : > { %v4446_v51 = vadd.f32 %v4382_v1, %v4215_v59  ;;  %v3955_v57 = vadd.f32 %v3954_v10, %v7528_v5  ;;  %v4306_v44 = vadd.f32 %v4305_v58, %v7523_v13  ;;  %v3873_v25 = vpop.f32.mrf.mxu1  ;;  %v3372_v1 = vadd.f32 %v7915_v18, %v3199_v47  ;;  %v305_v10 = vld [vmem:[%s5998_s16 + $0x28] sm:$0xff] }
 0x475   : > { %v4510_v63 = vmax.f32 %v4446_v51, 0.0  ;;  %v4003_v3 = vadd.f32 %v3955_v57, %v3456_v37  ;;  %v4449_v34 = vadd.f32 %v4385_v36, %v4306_v44  ;;  %v3461_v51 = vadd.f32 %v7426_v31, %v3372_v1 }
 0x476   : > { %v4389_v36 = vunpack.c.h.bf16 %v305_v10 }
 0x477   : > { %v4572_v60 = vpack.c.bf16 %v4511_v49, %v4510_v63  ;;  %v4039_v26 = vadd.f32 %v7351_v52, %v4003_v3  ;;  %v4513_v32 = vmax.f32 %v4449_v34, 0.0 }
 0x478   : > { %v4216_v46 = vpop.f32.mrf.mxu3 }
 0x479   : > { %4604 = vst [vmem:[%s7546_s12 + $0x10] sm:$0xff] %v4572_v60  ;;  %v4071_v14 = vmax.f32 %v4039_v26, 0.0  ;;  %v4217_v5 = vadd.f32 %v4216_v46, %v7533_v53  ;;  %v4388_v46 = vunpack.c.l.bf16 %v305_v10 }
 0x47a   : > { %v3957_v56 = vpop.f32.mrf.mxu2  ;;  %v4308_v24 = vpop.f32.mrf.mxu0 }
 0x47b   : > { %v4092_v48 = vpack.c.bf16 %v4071_v14, %v4070_v4  ;;  %v4448_v39 = vadd.f32 %v4384_v28, %v4217_v5  ;;  %v3958_v8 = vadd.f32 %v3957_v56, %v3868_v23  ;;  %v4309_v50 = vadd.f32 %v4308_v24, %v7523_v13  ;;  %v3875_v49 = vpop.f32.mrf.mxu1  ;;  %v306_v56 = vld [vmem:[%s5998_s16 + $0x30] sm:$0xff] }
 0x47d   : > { %v4512_v35 = vmax.f32 %v4448_v39, 0.0  ;;  %5502 = vmatmul.msk.bf16.gmra.mxu3 %vm2994_vm2, %v4092_v48  ;;  %5518 = vmatmul.msk.bf16.gmra.mxu0 %vm2994_vm2, %v4092_v48  ;;  %v4004_v21 = vadd.f32 %v3958_v8, %v3459_v27  ;;  %v4451_v23 = vadd.f32 %v4387_v61, %v4309_v50  ;;  %v7916_v39 = vld [vmem:[#allocation31_spill] sm:$0xff]  ;;  %v4391_v50 = vunpack.c.h.bf16 %v306_v56 }
 0x47e   : > { %v3204_v12 = vadd.f32 %v7917_v11, %v7916_v39  ;;  %v3464_v61 = vadd.f32 %v7440_v17, %v7323_v45  ;;  %v7918_v27 = vld [vmem:[#allocation59_spill] sm:$0xff] }
 0x47f   : > { %v4573_v33 = vpack.c.bf16 %v4513_v32, %v4512_v35  ;;  %v4040_v2 = vadd.f32 %v7351_v52, %v4004_v21  ;;  %v4515_v63 = vmax.f32 %v4451_v23, 0.0  ;;  %v307_v23 = vld [vmem:[%s5998_s16 + $0x38] sm:$0xff] }
 0x480   : > { %v4219_v59 = vpop.f32.mrf.mxu3  ;;  %v3377_v18 = vadd.f32 %v7918_v27, %v3204_v12  ;;  %v4393_v17 = vunpack.c.h.bf16 %v307_v23 }
 0x481   : > { %4605 = vst [vmem:[%s7546_s12 + $0x18] sm:$0xff] %v4573_v33  ;;  %v4220_v7 = vadd.f32 %v4219_v59, %v7533_v53  ;;  %v4072_v14 = vmax.f32 %v4040_v2, 0.0  ;;  %v4390_v33 = vunpack.c.l.bf16 %v306_v56  ;;  %v7920_v56 = vld [vmem:[#allocation22_spill] sm:$0xff] }
 0x482   : > { %v3959_v58 = vpop.f32.mrf.mxu2  ;;  %v4310_v37 = vpop.f32.mrf.mxu0 }
 0x483   : > { %v4450_v57 = vadd.f32 %v4386_v42, %v4220_v7  ;;  %v3960_v6 = vadd.f32 %v3959_v58, %v3870_v9  ;;  %v4311_v60 = vadd.f32 %v4310_v37, %v7523_v13  ;;  %v3878_v15 = vpop.f32.mrf.mxu1  ;;  %v3466_v58 = vadd.f32 %v7452_v22, %v3377_v18  ;;  %v309_v18 = vld [vmem:[%s5998_s16 + $0x48] sm:$0xff] }
 0x485   : > { %v4514_v3 = vmax.f32 %v4450_v57, 0.0  ;;  %v4005_v44 = vadd.f32 %v3960_v6, %v3461_v51  ;;  %v4453_v34 = vadd.f32 %v4389_v36, %v4311_v60 }
 0x487   : > { %v4574_v26 = vpack.c.bf16 %v4515_v63, %v4514_v3  ;;  %v4041_v28 = vadd.f32 %v7351_v52, %v4005_v44  ;;  %v4517_v8 = vmax.f32 %v4453_v34, 0.0  ;;  %v4392_v44 = vunpack.c.l.bf16 %v307_v23 }
 0x488   : > { %v4221_v4 = vpop.f32.mrf.mxu3 }
 0x489   : > { %4606 = vst [vmem:[%s7546_s12 + $0x20] sm:$0xff] %v4574_v26  ;;  %v4073_v31 = vmax.f32 %v4041_v28, 0.0  ;;  %v4222_v9 = vadd.f32 %v4221_v4, %v7533_v53 }
 0x48a   : > { %v3962_v5 = vpop.f32.mrf.mxu2  ;;  %v4313_v29 = vpop.f32.mrf.mxu0 }
 0x48b   : > { %v4093_v24 = vpack.c.bf16 %v4073_v31, %v4072_v14  ;;  %v4452_v48 = vadd.f32 %v4388_v46, %v4222_v9  ;;  %v3963_v47 = vadd.f32 %v3962_v5, %v3873_v25  ;;  %v4314_v35 = vadd.f32 %v4313_v29, %v7523_v13  ;;  %v3880_v26 = vpop.f32.mrf.mxu1  ;;  %v308_v14 = vld [vmem:[%s5998_s16 + $0x40] sm:$0xff]  ;;  %v7919_v5 = vld [vmem:[#allocation32_spill] sm:$0xff] }
 0x48c   : > { %v3209_v29 = vadd.f32 %v7920_v56, %v7919_v5  ;;  %v4395_v12 = vunpack.c.h.bf16 %v308_v14 }
 0x48d   : > { %v4516_v32 = vmax.f32 %v4452_v48, 0.0  ;;  %5503 = vmatmul.msk.bf16.gmra.mxu3 %vm2994_vm2, %v4093_v24  ;;  %5519 = vmatmul.msk.bf16.gmra.mxu0 %vm2994_vm2, %v4093_v24  ;;  %v4006_v42 = vadd.f32 %v3963_v47, %v3464_v61  ;;  %v4455_v21 = vadd.f32 %v4391_v50, %v4314_v35  ;;  %v3469_v47 = vadd.f32 %v7466_v43, %v7338_v30 }
 0x48e   : > { %v4394_v35 = vunpack.c.l.bf16 %v308_v14 }
 0x48f   : > { %v4575_v1 = vpack.c.bf16 %v4517_v8, %v4516_v32  ;;  %v4042_v45 = vadd.f32 %v7351_v52, %v4006_v42  ;;  %v4519_v57 = vmax.f32 %v4455_v21, 0.0  ;;  %v3382_v8 = vadd.f32 %v7353_v19, %v3209_v29 }
 0x490   : > { %v4224_v25 = vpop.f32.mrf.mxu3  ;;  %v4397_v19 = vunpack.c.h.bf16 %v309_v18 }
 0x491   : > { %4607 = vst [vmem:[%s7546_s12 + $0x28] sm:$0xff] %v4575_v1  ;;  %v4225_v59 = vadd.f32 %v4224_v25, %v7533_v53  ;;  %v4074_v28 = vmax.f32 %v4042_v45, 0.0  ;;  %v3471_v25 = vadd.f32 %v7475_v54, %v3382_v8 }
 0x492   : > { %v3964_v7 = vpop.f32.mrf.mxu2  ;;  %v4315_v10 = vpop.f32.mrf.mxu0 }
 0x493   : > { %v4454_v37 = vadd.f32 %v4390_v33, %v4225_v59  ;;  %v3965_v51 = vadd.f32 %v3964_v7, %v3875_v49  ;;  %v4316_v36 = vadd.f32 %v4315_v10, %v7523_v13  ;;  %v3883_v42 = vpop.f32.mrf.mxu1 }
 0x495   : > { %v4518_v6 = vmax.f32 %v4454_v37, 0.0  ;;  %v4007_v2 = vadd.f32 %v3965_v51, %v3466_v58  ;;  %v4457_v46 = vadd.f32 %v4393_v17, %v4316_v36  ;;  %v4396_v51 = vunpack.c.l.bf16 %v309_v18  ;;  %v310_v36 = vld [vmem:[%s5998_s16 + $0x50] sm:$0xff] }
 0x496   : > { %v4398_v56 = vunpack.c.l.bf16 %v310_v36 }
 0x497   : > { %v4576_v63 = vpack.c.bf16 %v4519_v57, %v4518_v6  ;;  %v4043_v3 = vadd.f32 %v7351_v52, %v4007_v2  ;;  %v4521_v48 = vmax.f32 %v4457_v46, 0.0 }
 0x498   : > { %v4226_v60 = vpop.f32.mrf.mxu3 }
 0x499   : > { %4608 = vst [vmem:[%s7546_s12 + $0x30] sm:$0xff] %v4576_v63  ;;  %v4075_v22 = vmax.f32 %v4043_v3, 0.0  ;;  %v4227_v49 = vadd.f32 %v4226_v60, %v7533_v53  ;;  %v7921_v60 = vld [vmem:[#allocation35_spill] sm:$0xff] }
 0x49a   : > { %v3967_v4 = vpop.f32.mrf.mxu2  ;;  %v4318_v31 = vpop.f32.mrf.mxu0 }
 0x49b   : > { %v4094_v34 = vpack.c.bf16 %v4075_v22, %v4074_v28  ;;  %v4456_v9 = vadd.f32 %v4392_v44, %v4227_v49  ;;  %v3968_v24 = vadd.f32 %v3967_v4, %v3878_v15  ;;  %v4319_v11 = vadd.f32 %v4318_v31, %v7523_v13  ;;  %v3885_v46 = vpop.f32.mrf.mxu1 }
 0x49c   : > { %v4399_v31 = vunpack.c.h.bf16 %v310_v36 }
 0x49d   : > { %v4520_v39 = vmax.f32 %v4456_v9, 0.0  ;;  %5504 = vmatmul.msk.bf16.gmra.mxu3 %vm2994_vm2, %v4094_v34  ;;  %5520 = vmatmul.msk.bf16.gmra.mxu0 %vm2994_vm2, %v4094_v34  ;;  %v4008_v50 = vadd.f32 %v3968_v24, %v3469_v47  ;;  %v4459_v15 = vadd.f32 %v4395_v12, %v4319_v11  ;;  %v3474_v34 = vadd.f32 %v7487_v0, %v7366_v62  ;;  %v311_v11 = vld [vmem:[%s5998_s16 + $0x58] sm:$0xff] }
 0x49e   : > { %v4401_v0 = vunpack.c.h.bf16 %v311_v11 }
 0x49f   : > { %v4577_v32 = vpack.c.bf16 %v4521_v48, %v4520_v39  ;;  %v4044_v30 = vadd.f32 %v7351_v52, %v4008_v50  ;;  %v4523_v43 = vmax.f32 %v4459_v15, 0.0 }
 0x4a0   : > { %v4229_v61 = vpop.f32.mrf.mxu3 }
 0x4a1   : > { %4609 = vst [vmem:[%s7546_s12 + $0x38] sm:$0xff] %v4577_v32  ;;  %v4230_v27 = vadd.f32 %v4229_v61, %v7533_v53  ;;  %v4076_v17 = vmax.f32 %v4044_v30, 0.0 }
 0x4a2   : > { %v3969_v1 = vpop.f32.mrf.mxu2  ;;  %v4320_v33 = vpop.f32.mrf.mxu0 }
 0x4a3   : > { %v4458_v21 = vadd.f32 %v4394_v35, %v4230_v27  ;;  %v3970_v59 = vadd.f32 %v3969_v1, %v3880_v26  ;;  %v4321_v10 = vadd.f32 %v4320_v33, %v7523_v13  ;;  %v7922_v26 = vld [vmem:[#allocation25_spill] sm:$0xff]  ;;  %v3888_v27 = vpop.f32.mrf.mxu1  ;;  %v4400_v33 = vunpack.c.l.bf16 %v311_v11 }
 0x4a4   : > { %v3214_v28 = vadd.f32 %v7922_v26, %v7921_v60 }
 0x4a5   : > { %v4522_v23 = vmax.f32 %v4458_v21, 0.0  ;;  %v4009_v7 = vadd.f32 %v3970_v59, %v3471_v25  ;;  %v4461_v54 = vadd.f32 %v4397_v19, %v4321_v10  ;;  %v312_v19 = vld [vmem:[%s5998_s16 + $0x60] sm:$0xff] }
 0x4a6   : > { %v3387_v9 = vadd.f32 %v7378_v41, %v3214_v28  ;;  %v7923_v10 = vld [vmem:[#allocation38_spill] sm:$0xff]  ;;  %v4402_v36 = vunpack.c.l.bf16 %v312_v19  ;;  %v313_v28 = vld [vmem:[%s5998_s16 + $0x68] sm:$0xff] }
 0x4a7   : > { %v4578_v58 = vpack.c.bf16 %v4523_v43, %v4522_v23  ;;  %v4045_v37 = vadd.f32 %v7351_v52, %v4009_v7  ;;  %v4525_v49 = vmax.f32 %v4461_v54, 0.0  ;;  %v3479_v54 = vadd.f32 %v7504_v55, %v7393_v40  ;;  %v5759_v40 = vld [vmem:[%s7773_s4] ss:$0 sm:$0xff] }
 0x4a8   : > { %v4231_v45 = vpop.f32.mrf.mxu3  ;;  %v3476_v8 = vadd.f32 %v7496_v20, %v3387_v9 }
 0x4a9   : > { %4610 = vst [vmem:[%s7546_s12 + $0x40] sm:$0xff] %v4578_v58  ;;  %v4077_v57 = vmax.f32 %v4045_v37, 0.0  ;;  %v4232_v6 = vadd.f32 %v4231_v45, %v7533_v53  ;;  %v7924_v58 = vld [vmem:[#allocation27_spill] sm:$0xff] }
 0x4aa   : > { %v3972_v2 = vpop.f32.mrf.mxu2  ;;  %v4323_v63 = vpop.f32.mrf.mxu0  ;;  %v3219_v37 = vadd.f32 %v7924_v58, %v7923_v10  ;;  %v316_v58 = vld [vmem:[%s5998_s16 + $0x80] sm:$0xff] }
 0x4ab   : > { %v4095_v3 = vpack.c.bf16 %v4077_v57, %v4076_v17  ;;  %v4460_v44 = vadd.f32 %v4396_v51, %v4232_v6  ;;  %v3973_v22 = vadd.f32 %v3972_v2, %v3883_v42  ;;  %v4324_v14 = vadd.f32 %v4323_v63, %v7523_v13 }
 0x4ac   : > { %v4403_v57 = vunpack.c.h.bf16 %v312_v19  ;;  %v3392_v6 = vadd.f32 %v7521_v38, %v3219_v37  ;;  %v4405_v38 = vunpack.c.h.bf16 %v313_v28 }
 0x4ad   : > { %v4524_v4 = vmax.f32 %v4460_v44, 0.0  ;;  %5505 = vmatmul.msk.bf16.gmra.mxu3 %vm2994_vm2, %v4095_v3  ;;  %5521 = vmatmul.msk.bf16.gmra.mxu0 %vm2994_vm2, %v4095_v3  ;;  %v4010_v29 = vadd.f32 %v3973_v22, %v3474_v34  ;;  %v4463_v48 = vadd.f32 %v4399_v31, %v4324_v14  ;;  %v3890_v44 = vpop.f32.mrf.mxu1 }
 0x4af   : > { %v4579_v5 = vpack.c.bf16 %v4525_v49, %v4524_v4  ;;  %v4046_v62 = vadd.f32 %v7351_v52, %v4010_v29  ;;  %v4527_v41 = vmax.f32 %v4463_v48, 0.0  ;;  %v3481_v49 = vadd.f32 %v7513_v16, %v3392_v6 }
 0x4b0   : > { %v4234_v24 = vpop.f32.mrf.mxu3  ;;  %v4410_v6 = vunpack.c.l.bf16 %v316_v58 }
 0x4b1   : > { %4611 = vst [vmem:[%s7546_s12 + $0x48] sm:$0xff] %v4579_v5  ;;  %v4235_v39 = vadd.f32 %v4234_v24, %v7533_v53  ;;  %v4078_v25 = vmax.f32 %v4046_v62, 0.0  ;;  %v4404_v24 = vunpack.c.l.bf16 %v313_v28 }
 0x4b2   : > { %v3974_v12 = vpop.f32.mrf.mxu2  ;;  %v4325_v47 = vpop.f32.mrf.mxu0 }
 0x4b3   : > { %v4462_v32 = vadd.f32 %v4398_v56, %v4235_v39  ;;  %v3975_v35 = vadd.f32 %v3974_v12, %v3885_v46  ;;  %v4326_v15 = vadd.f32 %v4325_v47, %v7523_v13  ;;  %v314_v47 = vld [vmem:[%s5998_s16 + $0x70] sm:$0xff] }
 0x4b5   : > { %v4526_v50 = vmax.f32 %v4462_v32, 0.0  ;;  %v4011_v61 = vadd.f32 %v3975_v35, %v3476_v8  ;;  %v4465_v21 = vadd.f32 %v4401_v0, %v4326_v15  ;;  %v4406_v15 = vunpack.c.l.bf16 %v314_v47 }
 0x4b7   : > { %v4580_v18 = vpack.c.bf16 %v4527_v41, %v4526_v50  ;;  %v4047_v1 = vadd.f32 %v7351_v52, %v4011_v61  ;;  %v4529_v45 = vmax.f32 %v4465_v21, 0.0  ;;  %v4407_v50 = vunpack.c.h.bf16 %v314_v47 }
 0x4b8   : > { %v4236_v42 = vpop.f32.mrf.mxu3 }
 0x4b9   : > { %4612 = vst [vmem:[%s7546_s12 + $0x50] sm:$0xff] %v4580_v18  ;;  %v4079_v20 = vmax.f32 %v4047_v1, 0.0  ;;  %v4237_v59 = vadd.f32 %v4236_v42, %v7533_v53 }
 0x4ba   : > { %v3977_v30 = vpop.f32.mrf.mxu2  ;;  %v4328_v43 = vpop.f32.mrf.mxu0 }
 0x4bb   : > { %v4096_v23 = vpack.c.bf16 %v4079_v20, %v4078_v25  ;;  %v4464_v7 = vadd.f32 %v4400_v33, %v4237_v59  ;;  %v3978_v51 = vadd.f32 %v3977_v30, %v3888_v27  ;;  %v4329_v17 = vadd.f32 %v4328_v43, %v7523_v13  ;;  %v315_v33 = vld [vmem:[%s5998_s16 + $0x78] sm:$0xff] }
 0x4bc   : > { %v4409_v30 = vunpack.c.h.bf16 %v315_v33  ;;  %v4408_v43 = vunpack.c.l.bf16 %v315_v33 }
 0x4bd   : > { %v4528_v52 = vmax.f32 %v4464_v7, 0.0  ;;  %5506 = vmatmul.msk.bf16.gmra.mxu3 %vm2994_vm2, %v4096_v23  ;;  %5522 = vmatmul.msk.bf16.gmra.mxu0 %vm2994_vm2, %v4096_v23  ;;  %v4012_v63 = vadd.f32 %v3978_v51, %v3479_v54  ;;  %v4467_v60 = vadd.f32 %v4403_v57, %v4329_v17  ;;  %v4411_v57 = vunpack.c.h.bf16 %v316_v58 }
 0x4bf   : > { %v4581_v2 = vpack.c.bf16 %v4529_v45, %v4528_v52  ;;  %v4048_v55 = vadd.f32 %v5759_v40, %v4012_v63  ;;  %v4531_v31 = vmax.f32 %v4467_v60, 0.0 }
 0x4c0   : > { %v4239_v3 = vpop.f32.mrf.mxu3 }
 0x4c1   : > { %4613 = vst [vmem:[%s7546_s12 + $0x58] sm:$0xff] %v4581_v2  ;;  %v4240_v26 = vadd.f32 %v4239_v3, %v7533_v53  ;;  %v4080_v39 = vmax.f32 %v4048_v55, 0.0  ;;  %v317_v3 = vld [vmem:[%s5998_s16 + $0x88] sm:$0xff] }
 0x4c2   : > { %v3979_v22 = vpop.f32.mrf.mxu2  ;;  %v4330_v46 = vpop.f32.mrf.mxu0 }
 0x4c3   : > { %v4466_v4 = vadd.f32 %v4402_v36, %v4240_v26  ;;  %v3980_v14 = vadd.f32 %v3979_v22, %v3890_v44  ;;  %v4331_v5 = vadd.f32 %v4330_v46, %v7523_v13  ;;  %v4413_v46 = vunpack.c.h.bf16 %v317_v3 }
 0x4c5   : > { %v4530_v34 = vmax.f32 %v4466_v4, 0.0  ;;  %v4013_v9 = vadd.f32 %v3980_v14, %v3481_v49  ;;  %v4469_v11 = vadd.f32 %v4405_v38, %v4331_v5  ;;  %v4412_v4 = vunpack.c.l.bf16 %v317_v3  ;;  %v318_v38 = vld [vmem:[%s5998_s16 + $0x90] sm:$0xff] }
 0x4c7   : > { %v4582_v56 = vpack.c.bf16 %v4531_v31, %v4530_v34  ;;  %v4049_v29 = vadd.f32 %v5759_v40, %v4013_v9  ;;  %v4533_v62 = vmax.f32 %v4469_v11, 0.0 }
 0x4c8   : > { %v4241_v48 = vpop.f32.mrf.mxu3 }
 0x4c9   : > { %4614 = vst [vmem:[%s7546_s12 + $0x60] sm:$0xff] %v4582_v56  ;;  %v4081_v16 = vmax.f32 %v4049_v29, 0.0  ;;  %v4242_v12 = vadd.f32 %v4241_v48, %v7533_v53  ;;  %v4415_v29 = vunpack.c.h.bf16 %v318_v38  ;;  %v4414_v48 = vunpack.c.l.bf16 %v318_v38 }
 0x4ca   : > { %v4333_v8 = vpop.f32.mrf.mxu0 }
 0x4cb   : > { %v4097_v32 = vpack.c.bf16 %v4081_v16, %v4080_v39  ;;  %v4468_v35 = vadd.f32 %v4404_v24, %v4242_v12  ;;  %v4334_v41 = vadd.f32 %v4333_v8, %v7523_v13  ;;  %v319_v12 = vld [vmem:[%s5998_s16 + $0x98] sm:$0xff] }
 0x4cd   : > { %v4532_v0 = vmax.f32 %v4468_v35, 0.0  ;;  %5507 = vmatmul.msk.bf16.gmra.mxu3 %vm2994_vm2, %v4097_v32  ;;  %5523 = vmatmul.msk.bf16.gmra.mxu0 %vm2994_vm2, %v4097_v32  ;;  %v4471_v18 = vadd.f32 %v4407_v50, %v4334_v41  ;;  %v4416_v50 = vunpack.c.l.bf16 %v319_v12 }
 0x4cf   : > { %v4583_v61 = vpack.c.bf16 %v4533_v62, %v4532_v0  ;;  %v4535_v20 = vmax.f32 %v4471_v18, 0.0  ;;  %v4417_v0 = vunpack.c.h.bf16 %v319_v12  ;;  %v320_v18 = vld [vmem:[%s5998_s16 + $0xa0] sm:$0xff] }
 0x4d0   : > { %v4244_v27 = vpop.f32.mrf.mxu3 }
 0x4d1   : > { %4615 = vst [vmem:[%s7546_s12 + $0x68] sm:$0xff] %v4583_v61  ;;  %v4245_v1 = vadd.f32 %v4244_v27, %v7533_v53 }
 0x4d2   : > { %v4335_v42 = vpop.f32.mrf.mxu0 }
 0x4d3   : > { %v4470_v25 = vadd.f32 %v4406_v15, %v4245_v1  ;;  %v4336_v59 = vadd.f32 %v4335_v42, %v7523_v13 }
 0x4d5   : > { %v4534_v21 = vmax.f32 %v4470_v25, 0.0  ;;  %v4473_v7 = vadd.f32 %v4409_v30, %v4336_v59  ;;  %v4418_v30 = vunpack.c.l.bf16 %v320_v18 }
 0x4d7   : > { %v4584_v19 = vpack.c.bf16 %v4535_v20, %v4534_v21  ;;  %v4537_v45 = vmax.f32 %v4473_v7, 0.0  ;;  %v4419_v21 = vunpack.c.h.bf16 %v320_v18  ;;  %v321_v7 = vld [vmem:[%s5998_s16 + $0xa8] sm:$0xff] }
 0x4d8   : > { %v4246_v23 = vpop.f32.mrf.mxu3 }
 0x4d9   : > { %4616 = vst [vmem:[%s7546_s12 + $0x70] sm:$0xff] %v4584_v19  ;;  %v4247_v10 = vadd.f32 %v4246_v23, %v7533_v53 }
 0x4da   : > { %v4338_v37 = vpop.f32.mrf.mxu0 }
 0x4db   : > { %v4472_v51 = vadd.f32 %v4408_v43, %v4247_v10  ;;  %v4339_v17 = vadd.f32 %v4338_v37, %v7523_v13 }
 0x4dd   : > { %v4536_v52 = vmax.f32 %v4472_v51, 0.0  ;;  %v4475_v36 = vadd.f32 %v4411_v57, %v4339_v17  ;;  %v4420_v57 = vunpack.c.l.bf16 %v321_v7 }
 0x4df   : > { %v4585_v54 = vpack.c.bf16 %v4537_v45, %v4536_v52  ;;  %v4539_v26 = vmax.f32 %v4475_v36, 0.0  ;;  %v4421_v52 = vunpack.c.h.bf16 %v321_v7  ;;  %v322_v36 = vld [vmem:[%s5998_s16 + $0xb0] sm:$0xff] }
 0x4e0   : > { %v4249_v2 = vpop.f32.mrf.mxu3 }
 0x4e1   : > { %4617 = vst [vmem:[%s7546_s12 + $0x78] sm:$0xff] %v4585_v54  ;;  %v4250_v63 = vadd.f32 %v4249_v2, %v7533_v53 }
 0x4e2   : > { %v4340_v44 = vpop.f32.mrf.mxu0 }
 0x4e3   : > { %v4474_v60 = vadd.f32 %v4410_v6, %v4250_v63  ;;  %v4341_v22 = vadd.f32 %v4340_v44, %v7523_v13 }
 0x4e5   : > { %v4538_v28 = vmax.f32 %v4474_v60, 0.0  ;;  %v4477_v40 = vadd.f32 %v4413_v46, %v4341_v22  ;;  %v4422_v46 = vunpack.c.l.bf16 %v322_v36 }
 0x4e7   : > { %v4586_v49 = vpack.c.bf16 %v4539_v26, %v4538_v28  ;;  %v4541_v9 = vmax.f32 %v4477_v40, 0.0  ;;  %v4423_v28 = vunpack.c.h.bf16 %v322_v36  ;;  %v323_v40 = vld [vmem:[%s5998_s16 + $0xb8] sm:$0xff] }
 0x4e8   : > { %v4251_v14 = vpop.f32.mrf.mxu3 }
 0x4e9   : > { %4618 = vst [vmem:[%s7546_s12 + $0x80] sm:$0xff] %v4586_v49  ;;  %v4252_v55 = vadd.f32 %v4251_v14, %v7533_v53 }
 0x4ea   : > { %v4343_v31 = vpop.f32.mrf.mxu0 }
 0x4eb   : > { %v4476_v34 = vadd.f32 %v4412_v4, %v4252_v55  ;;  %v4344_v56 = vadd.f32 %v4343_v31, %v7523_v13 }
 0x4ed   : > { %v4540_v5 = vmax.f32 %v4476_v34, 0.0  ;;  %v4479_v16 = vadd.f32 %v4415_v29, %v4344_v56  ;;  %v4424_v29 = vunpack.c.l.bf16 %v323_v40 }
 0x4ef   : > { %v4587_v24 = vpack.c.bf16 %v4541_v9, %v4540_v5  ;;  %v4543_v32 = vmax.f32 %v4479_v16, 0.0  ;;  %v4425_v5 = vunpack.c.h.bf16 %v323_v40  ;;  %v324_v16 = vld [vmem:[%s5998_s16 + $0xc0] sm:$0xff] }
 0x4f0   : > { %v4254_v39 = vpop.f32.mrf.mxu3 }
 0x4f1   : > { %4619 = vst [vmem:[%s7546_s12 + $0x88] sm:$0xff] %v4587_v24  ;;  %v4255_v11 = vadd.f32 %v4254_v39, %v7533_v53 }
 0x4f2   : > { %v4345_v47 = vpop.f32.mrf.mxu0 }
 0x4f3   : > { %v4478_v8 = vadd.f32 %v4414_v48, %v4255_v11  ;;  %v4346_v62 = vadd.f32 %v4345_v47, %v7523_v13 }
 0x4f5   : > { %v4542_v35 = vmax.f32 %v4478_v8, 0.0  ;;  %v4481_v15 = vadd.f32 %v4417_v0, %v4346_v62  ;;  %v4426_v0 = vunpack.c.l.bf16 %v324_v16 }
 0x4f7   : > { %v4588_v41 = vpack.c.bf16 %v4543_v32, %v4542_v35  ;;  %v4545_v42 = vmax.f32 %v4481_v15, 0.0  ;;  %v4427_v35 = vunpack.c.h.bf16 %v324_v16  ;;  %v325_v15 = vld [vmem:[%s5998_s16 + $0xc8] sm:$0xff] }
 0x4f8   : > { %v4256_v61 = vpop.f32.mrf.mxu3 }
 0x4f9   : > { %4620 = vst [vmem:[%s7546_s12 + $0x90] sm:$0xff] %v4588_v41  ;;  %v4257_v27 = vadd.f32 %v4256_v61, %v7533_v53 }
 0x4fa   : > { %v4348_v1 = vpop.f32.mrf.mxu0 }
 0x4fb   : > { %v4480_v33 = vadd.f32 %v4416_v50, %v4257_v27  ;;  %v4349_v20 = vadd.f32 %v4348_v1, %v7523_v13 }
 0x4fd   : > { %v4544_v25 = vmax.f32 %v4480_v33, 0.0  ;;  %v4483_v43 = vadd.f32 %v4419_v21, %v4349_v20  ;;  %v4428_v21 = vunpack.c.l.bf16 %v325_v15 }
 0x4ff   : > { %v4589_v59 = vpack.c.bf16 %v4545_v42, %v4544_v25  ;;  %v4547_v37 = vmax.f32 %v4483_v43, 0.0  ;;  %v4429_v25 = vunpack.c.h.bf16 %v325_v15  ;;  %v326_v43 = vld [vmem:[%s5998_s16 + $0xd0] sm:$0xff] }
 0x500   : > { %v4259_v19 = vpop.f32.mrf.mxu3 }
 0x501   : > { %4621 = vst [vmem:[%s7546_s12 + $0x98] sm:$0xff] %v4589_v59  ;;  %v4260_v23 = vadd.f32 %v4259_v19, %v7533_v53 }
 0x502   : > { %v4350_v10 = vpop.f32.mrf.mxu0 }
 0x503   : > { %v4482_v58 = vadd.f32 %v4418_v30, %v4260_v23  ;;  %v4351_v45 = vadd.f32 %v4350_v10, %v7523_v13 }
 0x505   : > { %v4546_v51 = vmax.f32 %v4482_v58, 0.0  ;;  %v4485_v6 = vadd.f32 %v4421_v52, %v4351_v45  ;;  %v4430_v52 = vunpack.c.l.bf16 %v326_v43 }
 0x507   : > { %v4590_v17 = vpack.c.bf16 %v4547_v37, %v4546_v51  ;;  %v4549_v44 = vmax.f32 %v4485_v6, 0.0  ;;  %v4431_v51 = vunpack.c.h.bf16 %v326_v43  ;;  %v327_v6 = vld [vmem:[%s5998_s16 + $0xd8] sm:$0xff] }
 0x508   : > { %v4261_v54 = vpop.f32.mrf.mxu3 }
 0x509   : > { %4622 = vst [vmem:[%s7546_s12 + $0xa0] sm:$0xff] %v4590_v17  ;;  %v4262_v2 = vadd.f32 %v4261_v54, %v7533_v53 }
 0x50a   : > { %v4353_v63 = vpop.f32.mrf.mxu0 }
 0x50b   : > { %v4484_v3 = vadd.f32 %v4420_v57, %v4262_v2  ;;  %v4354_v26 = vadd.f32 %v4353_v63, %v7523_v13 }
 0x50d   : > { %v4548_v60 = vmax.f32 %v4484_v3, 0.0  ;;  %v4487_v4 = vadd.f32 %v4423_v28, %v4354_v26  ;;  %v4432_v28 = vunpack.c.l.bf16 %v327_v6 }
 0x50f   : > { %v4591_v22 = vpack.c.bf16 %v4549_v44, %v4548_v60  ;;  %v4551_v31 = vmax.f32 %v4487_v4, 0.0  ;;  %v4433_v60 = vunpack.c.h.bf16 %v327_v6  ;;  %v328_v4 = vld [vmem:[%s5998_s16 + $0xe0] sm:$0xff] }
 0x510   : > { %v4264_v49 = vpop.f32.mrf.mxu3 }
 0x511   : > { %4623 = vst [vmem:[%s7546_s12 + $0xa8] sm:$0xff] %v4591_v22  ;;  %v4265_v14 = vadd.f32 %v4264_v49, %v7533_v53 }
 0x512   : > { %v4355_v55 = vpop.f32.mrf.mxu0 }
 0x513   : > { %v4486_v38 = vadd.f32 %v4422_v46, %v4265_v14  ;;  %v4356_v9 = vadd.f32 %v4355_v55, %v7523_v13 }
 0x515   : > { %v4550_v34 = vmax.f32 %v4486_v38, 0.0  ;;  %v4489_v48 = vadd.f32 %v4425_v5, %v4356_v9  ;;  %v4434_v5 = vunpack.c.l.bf16 %v328_v4 }
 0x517   : > { %v4592_v56 = vpack.c.bf16 %v4551_v31, %v4550_v34  ;;  %v4553_v47 = vmax.f32 %v4489_v48, 0.0  ;;  %v4435_v34 = vunpack.c.h.bf16 %v328_v4  ;;  %v329_v48 = vld [vmem:[%s5998_s16 + $0xe8] sm:$0xff] }
 0x518   : > { %v4266_v24 = vpop.f32.mrf.mxu3 }
 0x519   : > { %4624 = vst [vmem:[%s7546_s12 + $0xb0] sm:$0xff] %v4592_v56  ;;  %v4267_v39 = vadd.f32 %v4266_v24, %v7533_v53 }
 0x51a   : > { %v4358_v11 = vpop.f32.mrf.mxu0 }
 0x51b   : > { %v4488_v12 = vadd.f32 %v4424_v29, %v4267_v39  ;;  %v4359_v32 = vadd.f32 %v4358_v11, %v7523_v13 }
 0x51d   : > { %v4552_v8 = vmax.f32 %v4488_v12, 0.0  ;;  %v4491_v50 = vadd.f32 %v4427_v35, %v4359_v32  ;;  %v4436_v35 = vunpack.c.l.bf16 %v329_v48 }
 0x51f   : > { %v4593_v62 = vpack.c.bf16 %v4553_v47, %v4552_v8  ;;  %v4555_v1 = vmax.f32 %v4491_v50, 0.0  ;;  %v4437_v8 = vunpack.c.h.bf16 %v329_v48  ;;  %v330_v50 = vld [vmem:[%s5998_s16 + $0xf0] sm:$0xff] }
 0x520   : > { %v4269_v41 = vpop.f32.mrf.mxu3 }
 0x521   : > { %4625 = vst [vmem:[%s7546_s12 + $0xb8] sm:$0xff] %v4593_v62  ;;  %v4270_v61 = vadd.f32 %v4269_v41, %v7533_v53 }
 0x522   : > { %v4360_v27 = vpop.f32.mrf.mxu0 }
 0x523   : > { %v4490_v18 = vadd.f32 %v4426_v0, %v4270_v61  ;;  %v4361_v42 = vadd.f32 %v4360_v27, %v7523_v13 }
 0x525   : > { %v4554_v33 = vmax.f32 %v4490_v18, 0.0  ;;  %v4493_v30 = vadd.f32 %v4429_v25, %v4361_v42  ;;  %v4438_v25 = vunpack.c.l.bf16 %v330_v50 }
 0x527   : > { %v4594_v20 = vpack.c.bf16 %v4555_v1, %v4554_v33  ;;  %v4557_v10 = vmax.f32 %v4493_v30, 0.0  ;;  %v4439_v33 = vunpack.c.h.bf16 %v330_v50  ;;  %v331_v30 = vld [vmem:[%s5998_s16 + $0xf8] sm:$0xff]  ;;  %s4647_s16 = sshll.u32 %s7546_s12, 4  ;;  %s4648_s16 = int_to_ptr.vmem [resolvable:$true] %s4647_s16 }
 0x528   : > { %v4271_v59 = vpop.f32.mrf.mxu3 }
 0x529   : > { %4626 = vst [vmem:[%s7546_s12 + $0xc0] sm:$0xff] %v4594_v20  ;;  %v4272_v19 = vadd.f32 %v4271_v59, %v7533_v53 }
 0x52a   : > { %v4363_v23 = vpop.f32.mrf.mxu0 }
 0x52b   : > { %v4492_v7 = vadd.f32 %v4428_v21, %v4272_v19  ;;  %v4364_v37 = vadd.f32 %v4363_v23, %v7523_v13 }
 0x52d   : > { %v4556_v58 = vmax.f32 %v4492_v7, 0.0  ;;  %v4495_v57 = vadd.f32 %v4431_v51, %v4364_v37  ;;  %v4440_v51 = vunpack.c.l.bf16 %v331_v30 }
 0x52f   : > { %v4595_v45 = vpack.c.bf16 %v4557_v10, %v4556_v58  ;;  %v4559_v63 = vmax.f32 %v4495_v57, 0.0  ;;  %v4441_v58 = vunpack.c.h.bf16 %v331_v30 }
 0x530   : > { %v4274_v17 = vpop.f32.mrf.mxu3 }
 0x531   : > { %4627 = vst [vmem:[%s7546_s12 + $0xc8] sm:$0xff] %v4595_v45  ;;  %v4275_v54 = vadd.f32 %v4274_v17, %v7533_v53 }
 0x532   : > { %v4365_v2 = vpop.f32.mrf.mxu0 }
 0x533   : > { %v4494_v36 = vadd.f32 %v4430_v52, %v4275_v54  ;;  %v4366_v44 = vadd.f32 %v4365_v2, %v7523_v13 }
 0x535   : > { %v4558_v3 = vmax.f32 %v4494_v36, 0.0  ;;  %v4497_v46 = vadd.f32 %v4433_v60, %v4366_v44 }
 0x537   : > { %v4596_v26 = vpack.c.bf16 %v4559_v63, %v4558_v3  ;;  %v4561_v55 = vmax.f32 %v4497_v46, 0.0 }
 0x538   : > { %v4276_v22 = vpop.f32.mrf.mxu3 }
 0x539   : > { %4628 = vst [vmem:[%s7546_s12 + $0xd0] sm:$0xff] %v4596_v26  ;;  %v4277_v49 = vadd.f32 %v4276_v22, %v7533_v53 }
 0x53a   : > { %v4368_v14 = vpop.f32.mrf.mxu0 }
 0x53b   : > { %v4496_v40 = vadd.f32 %v4432_v28, %v4277_v49  ;;  %v4369_v31 = vadd.f32 %v4368_v14, %v7523_v13 }
 0x53d   : > { %v4560_v38 = vmax.f32 %v4496_v40, 0.0  ;;  %v4499_v29 = vadd.f32 %v4435_v34, %v4369_v31 }
 0x53f   : > { %v4597_v9 = vpack.c.bf16 %v4561_v55, %v4560_v38  ;;  %v4563_v11 = vmax.f32 %v4499_v29, 0.0 }
 0x540   : > { %v4279_v56 = vpop.f32.mrf.mxu3 }
 0x541   : > { %4629 = vst [vmem:[%s7546_s12 + $0xd8] sm:$0xff] %v4597_v9  ;;  %v4280_v24 = vadd.f32 %v4279_v56, %v7533_v53 }
 0x542   : > { %v4370_v39 = vpop.f32.mrf.mxu0 }
 0x543   : > { %v4498_v16 = vadd.f32 %v4434_v5, %v4280_v24  ;;  %v4371_v47 = vadd.f32 %v4370_v39, %v7523_v13 }
 0x545   : > { %v4562_v12 = vmax.f32 %v4498_v16, 0.0  ;;  %v4501_v0 = vadd.f32 %v4437_v8, %v4371_v47 }
 0x547   : > { %v4598_v32 = vpack.c.bf16 %v4563_v11, %v4562_v12  ;;  %v4565_v27 = vmax.f32 %v4501_v0, 0.0 }
 0x548   : > { %v4281_v62 = vpop.f32.mrf.mxu3 }
 0x549   : > { %4630 = vst [vmem:[%s7546_s12 + $0xe0] sm:$0xff] %v4598_v32  ;;  %v4282_v41 = vadd.f32 %v4281_v62, %v7533_v53 }
 0x54a   : > { %v4373_v61 = vpop.f32.mrf.mxu0 }
 0x54b   : > { %v4500_v15 = vadd.f32 %v4436_v35, %v4282_v41  ;;  %v4374_v1 = vadd.f32 %v4373_v61, %v7523_v13 }
 0x54d   : > { %v4564_v18 = vmax.f32 %v4500_v15, 0.0  ;;  %v4503_v21 = vadd.f32 %v4439_v33, %v4374_v1 }
 0x54f   : > { %v4599_v42 = vpack.c.bf16 %v4565_v27, %v4564_v18  ;;  %v4567_v23 = vmax.f32 %v4503_v21, 0.0 }
 0x550   : > { %v4284_v20 = vpop.f32.mrf.mxu3 }
 0x551   : > { %4631 = vst [vmem:[%s7546_s12 + $0xe8] sm:$0xff] %v4599_v42  ;;  %v4285_v59 = vadd.f32 %v4284_v20, %v7533_v53 }
 0x552   : > { %v4375_v19 = vpop.f32.mrf.mxu0 }
 0x553   : > { %v4502_v43 = vadd.f32 %v4438_v25, %v4285_v59  ;;  %v4376_v10 = vadd.f32 %v4375_v19, %v7523_v13 }
 0x555   : > { %v4566_v7 = vmax.f32 %v4502_v43, 0.0  ;;  %v4505_v52 = vadd.f32 %v4441_v58, %v4376_v10 }
 0x557   : > { %v4600_v37 = vpack.c.bf16 %v4567_v23, %v4566_v7  ;;  %v4569_v13 = vmax.f32 %v4505_v52, 0.0 }
 0x558   : > { %v4286_v45 = vpop.f32.mrf.mxu3 }
 0x559   : > { %4632 = vst [vmem:[%s7546_s12 + $0xf0] sm:$0xff] %v4600_v37  ;;  %v4287_v17 = vadd.f32 %v4286_v45, %v7533_v53 }
 0x55b   : > { %v4504_v57 = vadd.f32 %v4440_v51, %v4287_v17 }
 0x55d   : > { %v4568_v54 = vmax.f32 %v4504_v57, 0.0 }
 0x55f   : > { %v4601_v6 = vpack.c.bf16 %v4569_v13, %v4568_v54 }
 0x561   : > { %4633 = vst [vmem:[%s7546_s12 + $0xf8] sm:$0xff] %v4601_v6 }
 0x562   : > { %5817 = shalt.err (!%p5814_p4)
}
 0x563   : > { %s5864_s22 = smov 128   ;;  %s5865_s12 = smov 8  }
 0x564   : > { %5703 = dma.vmem_to_hbm [thread:$0]  (%p5956_p11), %s4648_s16, 4096, %s4650_s23, %s4635_s28, %s5864_s22, %s5864_s22, %s5865_s12  }
 0x565 PF: > { %s4664_s15 = sand.u32 1, %s5844_s24   ;;  %p7925_p7 = scmp.ge.s32.totalorder %s5856_s27, 2 }
 0x566   : > { %s4665_s20 = scalar_lea.sflag [#allocation5], %s4664_s15 }
 0x567   : > { %p5710_p5 = pnand %p7925_p7, %p5960_p12 }
 0x569   : > { %p5711_p8 = pneg %p5710_p5 }
 0x56b   : > { %5839 = dma.done.wait (%p5711_p8), %s4665_s20, 4096  }
 0x56c   : > { %5841 = vsyncadd (%p5711_p8), %s4665_s20, 4294963200  ;;  %s7926_s9 = sld [smem:[#allocation9_spill]]  ;;  %p20_p10 = scmp.ge.s32.totalorder %s5931_s30, 4  }
 0x56d   : > { %s7927_s24 = smov %s5848_s25  ;;  %s7928_s25 = smov %s5852_s26 }
 0x56e   : > { %s7930_s27 = smov %s5931_s30  ;;  %22 = sbr.rel (!%p20_p10) target bundleno = 5 (0x5), region = 95 }
 0x572   : > { %s7929_s26 = smov %s7926_s9 }
 0x573   :  { %4671 = vsyncpa [#allocation4], 1 }
 0x574   :  { %4673 = vsyncpa [#allocation4 + $0x1], 1 }
 0x575   :  { %4674 = vsyncpa [#allocation5], 1 }
 0x576   :  { %4676 = vsyncpa [#allocation5 + $0x1], 1 }

// kernel: tpu_custom_call.1
= control target key start
LH: loop header
LB: loop body
LE: loop exit
PB: predicated region body
PF: predicated region fallthrough
CT: control target
= control target key end

     0   :  { %12 = vsyncpa [#allocation4], 0  ;;  %s7769_s0 = inlined_call_operand.hbm [shape: bf16[2,256,256], index: 0, kind: input, shape index: {}]   ;;  %s7770_s1 = inlined_call_operand.vmem [shape: bf16[256,64], index: 1, kind: input, shape index: {}]   ;;  %s7771_s2 = inlined_call_operand.vmem [shape: f32[1,64], index: 2, kind: input, shape index: {}]   ;;  %s7772_s3 = inlined_call_operand.vmem [shape: bf16[3,192,64], index: 3, kind: input, shape index: {}]   ;;  %s7773_s4 = inlined_call_operand.vmem [shape: f32[1,64], index: 4, kind: input, shape index: {}]   ;;  %s7774_s5 = inlined_call_operand.vmem [shape: bf16[64,256], index: 5, kind: input, shape index: {}]   ;;  %s7775_s6 = inlined_call_operand.vmem [shape: f32[1,256], index: 6, kind: input, shape index: {}]   ;;  %s7776_s7 = inlined_call_operand.hbm [shape: bf16[2,256,256], index: 7, kind: output, shape index: {}]  }
   0x1   :  { %14 = vsyncpa [#allocation4 + $0x1], 0 }
   0x2   :  { %15 = vsyncpa [#allocation5], 0 }
   0x3   :  { %17 = vsyncpa [#allocation5 + $0x1], 0  ;;  %s5906_s24 = smov 0   ;;  %s5908_s25 = smov 0  }
   0x4   :  { %s5910_s26 = smov 0   ;;  %s5912_s27 = smov 0  }
   0x5 LB: > { %s5927_s28 = sadd.s32 4294967295, %s5856_s27   ;;  %s4723_s29 = sadd.s32 4294967294, %s5856_s27   ;;  %s5856_s27 = sphi %s5912_s27, %s7930_s27   ;;  %s5852_s26 = sphi %s5910_s26, %s7929_s26   ;;  %s5848_s25 = sphi %s5908_s25, %s7928_s25   ;;  %s5844_s24 = sphi %s5906_s24, %s7927_s24  }
   0x6   : > { %s5931_s30 = sadd.s32 1, %s5856_s27   ;;  %s30_s8 = sadd.s32 1, %s5852_s26 }
   0x7   : > { %s27_s9 = ssub.s32 %s5856_s27, %s5931_s30  ;;  %p37_p0 = scmp.ne.s32.totalorder %s5852_s26, %s5848_s25 }
   0x8   : > { %p28_p1 = scmp.eq.s32.totalorder %s27_s9, 0  ;;  %p38_p2 = scmp.eq.s32.totalorder %s5856_s27, 0 }
   0x9   : > { %p43_p3 = scmp.ne.s32.totalorder %s5848_s25, %s5844_s24  ;;  %p44_p4 = scmp.eq.s32.totalorder %s5927_s28, 0 }
   0xa   : > { %s5943_s10 = scalar_select %p28_p1, %s5852_s26, %s30_s8  }
   0xb   : > { %p5945_p5 = por %p38_p2, %p37_p0  ;;  %p5949_p6 = por %p44_p4, %p43_p3 }
   0xc   : > { %7777 = sst [smem:[#allocation9_spill]] %s5943_s10  ;;  %p193_p7 = scmp.eq.s32.totalorder %s5927_s28, 1 }
   0xd   : > { %p199_p8 = scmp.eq.s32.totalorder %s4723_s29, 1  ;;  %p5713_p10 = scmp.lt.s32.totalorder %s5856_s27, 2 }
   0xe   : > { %p5956_p11 = por %p193_p7, %p37_p0  ;;  %s237_s15 = sand.u32 1, %s5852_s26  }
   0xf   : > { %p5960_p12 = por %p199_p8, %p43_p3  ;;  %s5529_s16 = sshll.u32 %s5856_s27, 8 }
  0x10   : > { %s4726_s17 = sshll.u32 %s237_s15, 8  ;;  %s246_s20 = scalar_lea.hbm %s7769_s0, %s5529_s16 }
  0x11   : > { %s247_s21 = sshll.u32 %s246_s20, 4  ;;  %s241_s22 = scalar_lea.vmem [#allocation3], %s4726_s17  ;;  %s248_s21 = int_to_ptr.hbm [resolvable:$true] %s247_s21 }
  0x12   : > { %s249_s23 = sshll.u32 %s241_s22, 4  ;;  %p5971_p13 = pnand %p5713_p10, %p5945_p5  ;;  %s250_s23 = int_to_ptr.vmem [resolvable:$true] %s249_s23 }
  0x13   : > { %p4729_p0 = scmp.ge.s32.totalorder %s5856_s27, 1  ;;  %p257_p1 = scmp.lt.s32.totalorder %s5856_s27, 3 }
  0x14   : > { %s238_s8 = scalar_lea.sflag [#allocation4], %s237_s15  ;;  %s5760_s9 = sshra.s32 %s248_s21, 4  ;;  %s5761_s9 = int_to_ptr.hbm [resolvable:$true] %s5760_s9 }
  0x15   : > { %s5762_s10 = scalar_lea.hbm %s5761_s9, 256  ;;  %p5764_p3 = pneg %p5971_p13 }
  0x16   : > { %p5763_p2 = scmp.ne.s32.totalorder %s5761_s9, %s5762_s10  ;;  %s5767_s11 = scalar_lea.hbm %s7769_s0, 512 }
  0x17   : > { %p5768_p5 = scmp.lt.s32.totalorder %s5761_s9, %s7769_s0  ;;  %p5769_p8 = scmp.lt.s32.totalorder %s5767_s11, %s5762_s10 }
  0x18   : > { %p5765_p4 = pnand %p5764_p3, %p5763_p2 }
  0x19   : > { %p5770_p10 = por %p5769_p8, %p5768_p5 }
  0x1a   : > { %p5766_p7 = pneg %p5765_p4 }
  0x1c   : > { %p5771_p9 = pnand %p5770_p10, %p5766_p7 }
  0x1e   : > { %5774 = shalt.err (!%p5771_p9)
}
  0x1f   : > { %s5858_s15 = smov 128   ;;  %s5859_s20 = smov 8  }
  0x20   : > { %5708 = dma.hbm_to_vmem [thread:$0]  (!%p5971_p13), %s248_s21, 4096, %s250_s23, %s238_s8, %s5858_s15, %s5858_s15, %s5859_s20  }
  0x21   : > { %p258_p2 = pnand %p4729_p0, %p257_p1 }
  0x23   : > { %261 = sbr.rel (%p258_p2) target bundleno = 1381 (0x565), region = 48 }
  0x28   : > { %s5992_s22 = sand.u32 1, %s5848_s25  }
  0x29   : > { %s4730_s10 = sshll.u32 %s5992_s22, 8  ;;  %s264_s9 = scalar_lea.sflag [#allocation4], %s5992_s22 }
  0x2a   : > { %s5998_s16 = scalar_lea.vmem [#allocation3], %s4730_s10 }
  0x2b   : > { %5835 = dma.done.wait (%p5949_p6), %s264_s9, 4096  }
  0x2c   : > { %5837 = vsyncadd (%p5949_p6), %s264_s9, 4294963200  ;;  %v5569_v0 = vld [vmem:[%s7770_s1 + $0x38] sm:$0xff]  ;;  %v5568_v1 = vld [vmem:[%s7770_s1 + $0x30] sm:$0xff]  ;;  %vm1539_vm0 = vcmask 1043456   ;;  %vm1540_vm1 = vcmask 523268   ;;  %s5863_s12 = smov 64  }
  0x2d   : > { %5689 = vmatpush.bf16.msra.mxu1 %v5569_v0  ;;  %624 = vmatpush.bf16.msra.mxu0 %v5569_v0  ;;  %v5567_v2 = vld [vmem:[%s7770_s1 + $0x28] sm:$0xff]  ;;  %v5566_v3 = vld [vmem:[%s7770_s1 + $0x20] sm:$0xff]  ;;  %v5565_v4 = vld [vmem:[%s7770_s1 + $0x18] sm:$0xff]  ;;  %vm2654_vm4 = vcmask 519171   ;;  %vm2655_vm5 = vsmask.f32 7950 }
  0x2e   : > { %v5564_v5 = vld [vmem:[%s7770_s1 + $0x10] sm:$0xff]  ;;  %v5563_v6 = vld [vmem:[%s7770_s1 + $0x8] sm:$0xff]  ;;  %v5562_v7 = vld [vmem:[%s7770_s1] sm:$0xff]  ;;  %vm1999_vm7 = vcmask 519168   ;;  %vm2000_vm8 = vsmask.f32 7938 }
  0x2f   : > { %v4798_v8 = vld [vmem:[%s5998_s16 + $0x80] sm:$0xf]  ;;  %v5547_v9 = vld [vmem:[%s5998_s16 + $0x84] sm:$0xf0]  ;;  %v5577_v10 = vld [vmem:[%s7770_s1 + $0x78] sm:$0xff]  ;;  %s5688_s15 = sshll.u32 %s5927_s28, 8 }
  0x30   : > { %v4799_v11 = vor.u32 %v5547_v9, %v4798_v8  ;;  %v5576_v12 = vld [vmem:[%s7770_s1 + $0x70] sm:$0xff]  ;;  %v5575_v13 = vld [vmem:[%s7770_s1 + $0x68] sm:$0xff]  ;;  %v5549_v15 = vld [vmem:[%s5998_s16 + $0x94] sm:$0xf0]  ;;  %vm2299_vm11 = vsmask.f32 3328  ;;  %s4646_s21 = scalar_lea.hbm %s7776_s7, %s5688_s15 }
  0x31   : > { %5690 = vmatpush.bf16.msra.mxu1 %v5568_v1  ;;  %625 = vmatpush.bf16.msra.mxu0 %v5568_v1  ;;  %v4806_v14 = vld [vmem:[%s5998_s16 + $0x90] sm:$0xf]  ;;  %v5574_v17 = vld [vmem:[%s7770_s1 + $0x60] sm:$0xff]  ;;  %v5551_v19 = vld [vmem:[%s5998_s16 + $0xa4] sm:$0xf0]  ;;  %s4649_s23 = sshll.u32 %s4646_s21, 4  ;;  %s4650_s23 = int_to_ptr.hbm [resolvable:$true] %s4649_s23 }
  0x32   : > { %v4807_v16 = vor.u32 %v5549_v15, %v4806_v14  ;;  %v4814_v18 = vld [vmem:[%s5998_s16 + $0xa0] sm:$0xf]  ;;  %v5573_v21 = vld [vmem:[%s7770_s1 + $0x58] sm:$0xff]  ;;  %v4822_v22 = vld [vmem:[%s5998_s16 + $0xb0] sm:$0xf]  ;;  %s4635_s28 = scalar_lea.sflag [#allocation5], %s5992_s22 }
  0x33   : > { %v4815_v20 = vor.u32 %v5551_v19, %v4814_v18  ;;  %v5553_v23 = vld [vmem:[%s5998_s16 + $0xb4] sm:$0xf0]  ;;  %v5572_v25 = vld [vmem:[%s7770_s1 + $0x50] sm:$0xff]  ;;  %v4830_v26 = vld [vmem:[%s5998_s16 + $0xc0] sm:$0xf]  ;;  %s5804_s29 = sshra.s32 %s4650_s23, 4  ;;  %s5805_s29 = int_to_ptr.hbm [resolvable:$true] %s5804_s29 }
  0x34   : > { %v4823_v24 = vor.u32 %v5553_v23, %v4822_v22  ;;  %v5555_v27 = vld [vmem:[%s5998_s16 + $0xc4] sm:$0xf0]  ;;  %v4838_v30 = vld [vmem:[%s5998_s16 + $0xd0] sm:$0xf]  ;;  %v5557_v31 = vld [vmem:[%s5998_s16 + $0xd4] sm:$0xf0]  ;;  %p5811_p0 = scmp.lt.s32.totalorder %s5805_s29, %s7776_s7 }
  0x35   : > { %5691 = vmatpush.bf16.msra.mxu1 %v5567_v2  ;;  %626 = vmatpush.bf16.msra.mxu0 %v5567_v2  ;;  %v4831_v28 = vor.u32 %v5555_v27, %v4830_v26  ;;  %v5571_v29 = vld [vmem:[%s7770_s1 + $0x48] sm:$0xff]  ;;  %v4839_v32 = vor.u32 %v5557_v31, %v4838_v30  ;;  %v5570_v33 = vld [vmem:[%s7770_s1 + $0x40] sm:$0xff]  ;;  %v4742_v40 = vld [vmem:[%s5998_s16 + $0x10] sm:$0xf]  ;;  %vm2300_vm12 = vsmask.f32 7440 }
  0x36   : > { %v4734_v34 = vld [vmem:[%s5998_s16] sm:$0xf]  ;;  %v5531_v35 = vld [vmem:[%s5998_s16 + $0x4] sm:$0xf0]  ;;  %v5533_v41 = vld [vmem:[%s5998_s16 + $0x14] sm:$0xf0] }
  0x37   : > { %v4735_v36 = vor.u32 %v5531_v35, %v4734_v34  ;;  %v4846_v37 = vld [vmem:[%s5998_s16 + $0xe0] sm:$0xf]  ;;  %v5559_v38 = vld [vmem:[%s5998_s16 + $0xe4] sm:$0xf0]  ;;  %v4743_v42 = vor.u32 %v5533_v41, %v4742_v40  ;;  %v4854_v43 = vld [vmem:[%s5998_s16 + $0xf0] sm:$0xf] }
  0x38   : > { %v4847_v39 = vor.u32 %v5559_v38, %v4846_v37  ;;  %v5561_v44 = vld [vmem:[%s5998_s16 + $0xf4] sm:$0xf0]  ;;  %v4750_v46 = vld [vmem:[%s5998_s16 + $0x20] sm:$0xf]  ;;  %v5535_v47 = vld [vmem:[%s5998_s16 + $0x24] sm:$0xf0] }
  0x39   : > { %5692 = vmatpush.bf16.msra.mxu1 %v5566_v3  ;;  %627 = vmatpush.bf16.msra.mxu0 %v5566_v3  ;;  %v4855_v45 = vor.u32 %v5561_v44, %v4854_v43  ;;  %v4751_v48 = vor.u32 %v5535_v47, %v4750_v46  ;;  %v5530_v49 = vld [vmem:[%s5998_s16 + $0x4] sm:$0xf]  ;;  %v4736_v50 = vld [vmem:[%s5998_s16 + $0x8] sm:$0xf0]  ;;  %v4758_v53 = vld [vmem:[%s5998_s16 + $0x30] sm:$0xf]  ;;  %v866_v46 = vlaneseq }
  0x3a   : > { %v4739_v51 = vor.u32 %v5530_v49, %v4736_v50  ;;  %v5537_v54 = vld [vmem:[%s5998_s16 + $0x34] sm:$0xf0]  ;;  %v5532_v57 = vld [vmem:[%s5998_s16 + $0x14] sm:$0xf]  ;;  %v4744_v58 = vld [vmem:[%s5998_s16 + $0x18] sm:$0xf0] }
  0x3b   : > { %v4759_v55 = vor.u32 %v5537_v54, %v4758_v53  ;;  %v4747_v59 = vor.u32 %v5532_v57, %v4744_v58  ;;  %v4766_v61 = vld [vmem:[%s5998_s16 + $0x40] sm:$0xf]  ;;  %v5539_v62 = vld [vmem:[%s5998_s16 + $0x44] sm:$0xf0]  ;;  %v5534_v1 = vld [vmem:[%s5998_s16 + $0x24] sm:$0xf] }
  0x3c   : > { %v4767_v63 = vor.u32 %v5539_v62, %v4766_v61  ;;  %v4752_v2 = vld [vmem:[%s5998_s16 + $0x28] sm:$0xf0]  ;;  %v5536_v9 = vld [vmem:[%s5998_s16 + $0x34] sm:$0xf]  ;;  %v5543_v14 = vld [vmem:[%s5998_s16 + $0x64] sm:$0xf0] }
  0x3d   : > { %5693 = vmatpush.bf16.msra.mxu1 %v5565_v4  ;;  %628 = vmatpush.bf16.msra.mxu0 %v5565_v4  ;;  %v4755_v3 = vor.u32 %v5534_v1, %v4752_v2  ;;  %v4768_v18 = vld [vmem:[%s5998_s16 + $0x48] sm:$0xf0]  ;;  %v5545_v22 = vld [vmem:[%s5998_s16 + $0x74] sm:$0xf0]  ;;  %v4776_v26 = vld [vmem:[%s5998_s16 + $0x58] sm:$0xf0] }
  0x3e   : > { %v5542_v30 = vld [vmem:[%s5998_s16 + $0x64] sm:$0xf]  ;;  %v4784_v31 = vld [vmem:[%s5998_s16 + $0x68] sm:$0xf0]  ;;  %vm1541_vm2 = vmor %vm1540_vm1, %vm1539_vm0  ;;  %vm1676_vm14 = vsmask.f32 256 }
  0x3f   : > { %v5544_v38 = vld [vmem:[%s5998_s16 + $0x74] sm:$0xf]  ;;  %v5621_v40 = vld [vmem:[%s7772_s3 + $0x58] sm:$0xff]  ;;  %v6149_v50 = vld [vmem:[%s7771_s2] ss:$0 sm:$0xff]  ;;  %s5806_s8 = scalar_lea.hbm %s5805_s29, 256 }
  0x40   : > { %v5620_v44 = vld [vmem:[%s7772_s3 + $0x50] sm:$0xff]  ;;  %v5546_v53 = vld [vmem:[%s5998_s16 + $0x84] sm:$0xf]  ;;  %v4800_v54 = vld [vmem:[%s5998_s16 + $0x88] sm:$0xf0]  ;;  %p5807_p6 = scmp.ne.s32.totalorder %s5805_s29, %s5806_s8  ;;  %s5810_s18 = scalar_lea.hbm %s7776_s7, 512 }
  0x41   : > { %5694 = vmatpush.bf16.msra.mxu1 %v5564_v5  ;;  %629 = vmatpush.bf16.msra.mxu0 %v5564_v5  ;;  %v4774_v5 = vld [vmem:[%s5998_s16 + $0x50] sm:$0xf]  ;;  %v4803_v57 = vor.u32 %v5546_v53, %v4800_v54  ;;  %vm6171_vm9 = vmand %vm2654_vm4, %vm2655_vm5  ;;  %vm1677_vm15 = vsmask.f32 4368  ;;  %p5812_p1 = scmp.lt.s32.totalorder %s5810_s18, %s5806_s8 }
  0x42   : > { %vm6183_vm10 = vmand %vm1999_vm7, %vm2000_vm8  ;;  %p5808_p9 = pnand %p5807_p6, %p5956_p11 }
  0x43   : > { %vm6196_vm0 = vmor %vm2299_vm11, %vm2300_vm12  ;;  %p5813_p3 = por %p5812_p1, %p5811_p0 }
  0x44   : > { %p5809_p13 = pneg %p5808_p9 }
  0x45   : > { %5695 = vmatpush.bf16.msra.mxu1 %v5563_v6  ;;  %630 = vmatpush.bf16.msra.mxu0 %v5563_v6  ;;  %v5541_v6 = vld [vmem:[%s5998_s16 + $0x54] sm:$0xf0] }
  0x46   : > { %p5814_p4 = pnand %p5813_p3, %p5809_p13 }
  0x49   : > { %5696 = vmatpush.bf16.msra.mxu1 %v5562_v7  ;;  %631 = vmatpush.bf16.msra.mxu0 %v5562_v7  ;;  %v4775_v7 = vor.u32 %v5541_v6, %v4774_v5  ;;  %v5862_v6 = vmov 0.0  }
  0x4c   : > { %672 = vmatmul.bf16.vlgmr.msra.gmra.mxu1 %v4799_v11  ;;  %632 = vmatmul.bf16.vlgmr.msra.gmra.mxu0 %v4735_v36  ;;  %v5860_v36 = vmov 0  }
  0x4d   : > { %713 = vmatpush.bf16.msrb.mxu1 %v5577_v10  ;;  %v4760_v10 = vld [vmem:[%s5998_s16 + $0x38] sm:$0xf0]  ;;  %1542 = vst.msk [vmem:[#allocation2] sm:$0xff] %vm1541_vm2, %v5860_v36  ;;  %3398 = vmatpush.bf16.msrb.mxu0 %v5621_v40 }
  0x4e   : > { %v4763_v11 = vor.u32 %v5536_v9, %v4760_v10  ;;  %1543 = vst.msk [vmem:[#allocation2 + $0x8] sm:$0xff] %vm1541_vm2, %v5860_v36 }
  0x4f   : > { %1544 = vst.msk [vmem:[#allocation2 + $0x10] sm:$0xff] %vm1541_vm2, %v5860_v36 }
  0x50   : > { %1545 = vst.msk [vmem:[#allocation2 + $0x108] sm:$0xff] %vm1541_vm2, %v5860_v36 }
  0x51   : > { %714 = vmatpush.bf16.msrb.mxu1 %v5576_v12  ;;  %1546 = vst.msk [vmem:[#allocation2 + $0x110] sm:$0xff] %vm1541_vm2, %v5860_v36  ;;  %3399 = vmatpush.bf16.msrb.mxu0 %v5620_v44 }
  0x52   : > { %1547 = vst.msk [vmem:[#allocation2 + $0x118] sm:$0xff] %vm1541_vm2, %v5860_v36  ;;  %vm2994_vm2 = vcmask 523264  }
  0x55   : > { %715 = vmatpush.bf16.msrb.mxu1 %v5575_v13  ;;  %v4782_v13 = vld [vmem:[%s5998_s16 + $0x60] sm:$0xf] }
  0x56   : > { %v4783_v15 = vor.u32 %v5543_v14, %v4782_v13  ;;  %v2002_v54 = vld [vmem:[#allocation2 + $0x10] sm:$0xf] }
  0x59   : > { %716 = vmatpush.bf16.msrb.mxu1 %v5574_v17  ;;  %v5538_v17 = vld [vmem:[%s5998_s16 + $0x44] sm:$0xf] }
  0x5a   : > { %v4771_v19 = vor.u32 %v5538_v17, %v4768_v18 }
  0x5c   : > { %677 = vmatmul.bf16.gmra.mxu1 %v4807_v16  ;;  %637 = vmatmul.bf16.gmra.mxu0 %v4743_v42 }
  0x5d   : > { %717 = vmatpush.bf16.msrb.mxu1 %v5573_v21  ;;  %v4790_v21 = vld [vmem:[%s5998_s16 + $0x70] sm:$0xf] }
  0x5e   : > { %v4791_v23 = vor.u32 %v5545_v22, %v4790_v21  ;;  %v5548_v22 = vld [vmem:[%s5998_s16 + $0x94] sm:$0xf] }
  0x61   : > { %718 = vmatpush.bf16.msrb.mxu1 %v5572_v25  ;;  %v5540_v25 = vld [vmem:[%s5998_s16 + $0x54] sm:$0xf] }
  0x62   : > { %v4779_v27 = vor.u32 %v5540_v25, %v4776_v26 }
  0x65   : > { %719 = vmatpush.bf16.msrb.mxu1 %v5571_v29 }
  0x69   : > { %720 = vmatpush.bf16.msrb.mxu1 %v5570_v33  ;;  %v4787_v33 = vor.u32 %v5542_v30, %v4784_v31 }
  0x6c   : > { %682 = vmatmul.bf16.gmra.mxu1 %v4815_v20  ;;  %642 = vmatmul.bf16.gmra.mxu0 %v4751_v48  ;;  %v5618_v48 = vld [vmem:[%s7772_s3 + $0x40] sm:$0xff] }
  0x7c   : > { %687 = vmatmul.bf16.gmra.mxu1 %v4823_v24  ;;  %647 = vmatmul.bf16.gmra.mxu0 %v4759_v55 }
  0x8c   : > { %692 = vmatmul.bf16.gmra.mxu1 %v4831_v28  ;;  %652 = vmatmul.bf16.gmra.mxu0 %v4767_v63 }
  0x9c   : > { %697 = vmatmul.bf16.gmra.mxu1 %v4839_v32  ;;  %657 = vmatmul.bf16.gmra.mxu0 %v4775_v7 }
  0xac   : > { %702 = vmatmul.bf16.gmra.mxu1 %v4847_v39  ;;  %662 = vmatmul.bf16.gmra.mxu0 %v4783_v15  ;;  %v4792_v39 = vld [vmem:[%s5998_s16 + $0x78] sm:$0xf0] }
  0xad   : > { %v4795_v41 = vor.u32 %v5544_v38, %v4792_v39 }
  0xbc   : > { %707 = vmatmul.bf16.gmra.mxu1 %v4855_v45  ;;  %667 = vmatmul.bf16.gmra.mxu0 %v4791_v23  ;;  %v5619_v45 = vld [vmem:[%s7772_s3 + $0x48] sm:$0xff]  ;;  %v4808_v23 = vld [vmem:[%s5998_s16 + $0x98] sm:$0xf0] }
  0xbd   : > { %3400 = vmatpush.bf16.msrb.mxu0 %v5619_v45  ;;  %v4811_v38 = vor.u32 %v5548_v22, %v4808_v23 }
  0xc1   : > { %3401 = vmatpush.bf16.msrb.mxu0 %v5618_v48 }
  0xc9   : > { %v6076_v52 = vpop.f32.mrf.mxu1  ;;  %v633_v32 = vpop.f32.mrf.mxu0 }
  0xca   : > { %v634_v55 = vadd.f32 %v6149_v50, %v633_v32 }
  0xcc   : > { %721 = vmatmul.bf16.vlgmr.msrb.gmra.mxu1 %v4739_v51  ;;  %v6151_v51 = vshrl.u32 %v866_v46, 7 }
  0xce   : > { %v903_v58 = vand.u32 15, %v6151_v51  ;;  %v868_v63 = vadd.s32 8, %v6151_v51  ;;  %v869_v25 = vadd.s32 16, %v6151_v51 }
  0xd0   : > { %vm1411_vm3 = vcmp.ne.s32.totalorder %v903_v58, 0  ;;  %v917_v48 = vand.u32 15, %v869_v25  ;;  %v870_v58 = vadd.s32 24, %v6151_v51 }
  0xd1   : > { %v6080_v56 = vpop.f32.mrf.mxu1  ;;  %v635_v35 = vpop.f32.mrf.mxu0  ;;  %v4940_v7 = vsel %vm1411_vm3, 1.0, %v5862_v6  ;;  %vm6214_vm3 = vmor %vm1676_vm14, %vm1677_vm15 }
  0xd2   : > { %v636_v9 = vadd.f32 %v6149_v50, %v635_v35  ;;  %vm1413_vm13 = vcmp.ne.s32.totalorder %v917_v48, 0 }
  0xd9   : > { %v6084_v60 = vpop.f32.mrf.mxu1  ;;  %v638_v43 = vpop.f32.mrf.mxu0 }
  0xda   : > { %v639_v31 = vadd.f32 %v6149_v50, %v638_v43 }
  0xdc   : > { %726 = vmatmul.bf16.gmra.mxu1 %v4747_v59 }
  0xe1   : > { %v6088_v0 = vpop.f32.mrf.mxu1  ;;  %v6144_v49 = vpop.f32.mrf.mxu0 }
  0xe9   : > { %v6092_v4 = vpop.f32.mrf.mxu1  ;;  %v6158_v1 = vpop.f32.mrf.mxu0 }
  0xec   : > { %731 = vmatmul.bf16.gmra.mxu1 %v4755_v3  ;;  %v5861_v3 = vmov 1.0|1.0  }
  0xed   : > { %v6160_v5 = vunpack.c.l.bf16 %v5861_v3 }
  0xf1   : > { %v6096_v8 = vpop.f32.mrf.mxu1  ;;  %v6176_v39 = vpop.f32.mrf.mxu0 }
  0xf9   : > { %v6100_v12 = vpop.f32.mrf.mxu1 }
  0xfc   : > { %736 = vmatmul.bf16.gmra.mxu1 %v4763_v11  ;;  %v910_v11 = vand.u32 15, %v868_v63 }
  0xfe   : > { %vm1284_vm6 = vcmp.ne.s32.totalorder %v910_v11, 15 }
  0xff   : > { %v4924_v36 = vsel %vm1284_vm6, 1.0, %v5862_v6 }
 0x101   : > { %v6104_v16 = vpop.f32.mrf.mxu1 }
 0x109   : > { %v6108_v20 = vpop.f32.mrf.mxu1 }
 0x10c   : > { %741 = vmatmul.bf16.gmra.mxu1 %v4771_v19 }
 0x111   : > { %v6112_v24 = vpop.f32.mrf.mxu1 }
 0x119   : > { %v6116_v28 = vpop.f32.mrf.mxu1 }
 0x11c   : > { %746 = vmatmul.bf16.gmra.mxu1 %v4779_v27 }
 0x121   : > { %v6118_v29 = vpop.f32.mrf.mxu1 }
 0x129   : > { %v6122_v34 = vpop.f32.mrf.mxu1 }
 0x12c   : > { %751 = vmatmul.bf16.gmra.mxu1 %v4787_v33  ;;  %v2657_v33 = vld [vmem:[#allocation2 + $0xc] sm:$0x8] }
 0x131   : > { %v6124_v37 = vpop.f32.mrf.mxu1 }
 0x139   : > { %v6131_v42 = vpop.f32.mrf.mxu1 }
 0x13c   : > { %756 = vmatmul.bf16.gmra.mxu1 %v4795_v41 }
 0x141   : > { %v6139_v47 = vpop.f32.mrf.mxu1 }
 0x149   : > { %v722_v59 = vpop.f32.mrf.mxu1 }
 0x14a   : > { %v723_v61 = vadd.f32 %v722_v59, %v634_v55 }
 0x14c   : > { %v802_v62 = vmax.f32 %v723_v61, 0.0  ;;  %761 = vmatmul.bf16.gmra.mxu1 %v4803_v57 }
 0x14e   : > { %v834_v2 = vpack.c.bf16 %v802_v62, %v802_v62 }
 0x150   : > { %2074 = vrot.lane.b32.xlu0 %v834_v2, %s5863_s12  ;;  %v1548_v10 = vunpack.c.l.bf16 %v834_v2 }
 0x151   : > { %v724_v13 = vpop.f32.mrf.mxu1 }
 0x152   : > { %v1612_v14 = vmul.f32 %v6160_v5, %v1548_v10  ;;  %v2235_v15 = vmul.f32 %v4940_v7, %v1548_v10  ;;  %v725_v17 = vadd.f32 %v724_v13, %v636_v9  ;;  %v924_v10 = vand.u32 15, %v870_v58 }
 0x154   : > { %v1644_v18 = vpack.c.bf16 %v1612_v14, %v1612_v14  ;;  %v2267_v19 = vpack.c.bf16 %v2235_v15, %v2235_v15  ;;  %v803_v21 = vmax.f32 %v725_v17, 0.0  ;;  %vm6208_vm1 = vcmp.ne.s32.totalorder %v924_v10, 15 }
 0x156   : > { %v1680_v26 = vshrl.u32 %v1644_v18, 16  ;;  %v2303_v27 = vshll.u32 %v2267_v19, 16  ;;  %v2306_v30 = vshrl.u32 %v2267_v19, 16  ;;  %v835_v35 = vpack.c.bf16 %v803_v21, %v803_v21 }
 0x157   : > { %v1683_v41 = vshll.u32 %v1644_v18, 16  ;;  %v641_v18 = vadd.f32 %v6149_v50, %v6144_v49  ;;  %v4941_v21 = vsel %vm1413_vm13, 1.0, %v5862_v6 }
 0x158   : > { %v6178_v40 = vrot.slane %v1680_v26, 7  ;;  %v2305_v44 = vrot.slane %v2303_v27, 5  ;;  %v2308_v45 = vrot.slane %v2306_v30, 4  ;;  %v1549_v46 = vunpack.c.l.bf16 %v835_v35  ;;  %2076 = vrot.lane.b32.xlu0 %v835_v35, %s5863_s12  ;;  %v5578_v30 = vld [vmem:[#allocation2 + $0x4] sm:$0xf] }
 0x159   : > { %v727_v43 = vpop.f32.mrf.mxu1  ;;  %v872_v35 = vadd.s32 40, %v6151_v51 }
 0x15a   : > { %v1685_v55 = vor.u32 %v1683_v41, %v6178_v40  ;;  %v2658_v57 = vsel %vm6171_vm9, %v2305_v44, %v2657_v33  ;;  %v1613_v59 = vmul.f32 %v4924_v36, %v1549_v46  ;;  %v2236_v61 = vmul.f32 %v6160_v5, %v1549_v46 }
 0x15b   : > { %2659 = vst [vmem:[#allocation2 + $0xc] sm:$0x8] %v2658_v57  ;;  %v728_v62 = vadd.f32 %v727_v43, %v639_v31  ;;  %v2309_v63 = vor.u32 %v2308_v45, %v2305_v44  ;;  %v6205_v31 = vpop.f32.mrf.mxu0  ;;  %v871_v45 = vadd.s32 32, %v6151_v51  ;;  %v5550_v57 = vld [vmem:[%s5998_s16 + $0xa4] sm:$0xf] }
 0x15c   : > { %766 = vmatmul.bf16.gmra.mxu1 %v4811_v38  ;;  %v2003_v2 = vsel %vm6183_vm10, %v1685_v55, %v2002_v54  ;;  %v1645_v3 = vpack.c.bf16 %v1613_v59, %v1613_v59  ;;  %v2268_v7 = vpack.c.bf16 %v2236_v61, %v2236_v61  ;;  %v1686_v38 = vrot.slane %v6178_v40, 4  ;;  %v4816_v40 = vld [vmem:[%s5998_s16 + $0xa8] sm:$0xf0] }
 0x15d   : > { %v804_v9 = vmax.f32 %v728_v62, 0.0  ;;  %2004 = vst [vmem:[#allocation2 + $0x10] sm:$0xf] %v2003_v2  ;;  %v2310_v15 = vrot.slane %v2309_v63, 4  ;;  %v644_v55 = vadd.f32 %v6149_v50, %v6158_v1  ;;  %v4925_v63 = vsel %vm6208_vm1, 1.0, %v5862_v6 }
 0x15e   : > { %v1688_v11 = vshrl.u32 %v1645_v3, 16  ;;  %v2312_v13 = vshll.u32 %v2268_v7, 16  ;;  %v2316_v14 = vshrl.u32 %v2268_v7, 16  ;;  %v1691_v23 = vshll.u32 %v1645_v3, 16 }
 0x15f   : > { %v836_v19 = vpack.c.bf16 %v804_v9, %v804_v9  ;;  %v931_v2 = vand.u32 15, %v871_v45  ;;  %v4819_v9 = vor.u32 %v5550_v57, %v4816_v40  ;;  %v646_v45 = vadd.f32 %v6149_v50, %v6176_v39 }
 0x160   : > { %v6203_v22 = vrot.slane %v1688_v11, 7  ;;  %v2314_v25 = vrot.slane %v2312_v13, 5  ;;  %v2318_v26 = vrot.slane %v2316_v14, 4  ;;  %v938_v57 = vand.u32 15, %v872_v35 }
 0x161   : > { %v729_v27 = vpop.f32.mrf.mxu1  ;;  %2078 = vrot.lane.b32.xlu1 %v836_v19, %s5863_s12  ;;  %v1550_v32 = vunpack.c.l.bf16 %v836_v19  ;;  %vm6238_vm4 = vcmp.ne.s32.totalorder %v931_v2, 0 }
 0x162   : > { %v730_v33 = vadd.f32 %v729_v27, %v641_v18  ;;  %v5176_v49 = vld [vmem:[#allocation2 + $0x8] sm:$0xf0]  ;;  %v1693_v41 = vor.u32 %v1691_v23, %v6203_v22  ;;  %v2315_v44 = vsel %vm6196_vm0, %v2310_v15, %v2314_v25  ;;  %v2319_v54 = vor.u32 %v2318_v26, %v2314_v25 }
 0x163   : > { %2660 = vst.msk [vmem:[#allocation2 + $0x14] sm:$0xf] %vm1999_vm7, %v2315_v44  ;;  %v1614_v46 = vmul.f32 %v6160_v5, %v1550_v32  ;;  %v2237_v43 = vmul.f32 %v4941_v21, %v1550_v32  ;;  %v5179_v53 = vor.u32 %v5578_v30, %v5176_v49  ;;  %v6242_v27 = vpop.f32.mrf.mxu0  ;;  %v1695_v44 = vrot.slane %v6203_v22, 4 }
 0x164   : > { %v805_v48 = vmax.f32 %v730_v33, 0.0  ;;  %v1694_v58 = vsel %vm6214_vm3, %v1686_v38, %v1693_v41  ;;  %v2320_v10 = vrot.slane %v2319_v54, 4  ;;  %vm1288_vm5 = vcmp.ne.s32.totalorder %v938_v57, 15 }
 0x165   : > { %v1646_v59 = vpack.c.bf16 %v1614_v46, %v1614_v46  ;;  %v2269_v61 = vpack.c.bf16 %v2237_v43, %v2237_v43  ;;  %5228 = vmatmul.msk.bf16.vlgmr.msrb.gmra.mxu0 %vm2994_vm2, %v5179_v53  ;;  %2006 = vst.msk [vmem:[#allocation2 + $0x18] sm:$0xf] %vm1999_vm7, %v1694_v58  ;;  %v4942_v53 = vsel %vm6238_vm4, 1.0, %v5862_v6  ;;  %v649_v26 = vadd.f32 %v6149_v50, %v6205_v31 }
 0x166   : > { %v837_v62 = vpack.c.bf16 %v805_v48, %v805_v48  ;;  %v4926_v35 = vsel %vm1288_vm5, 1.0, %v5862_v6  ;;  %vm2170_vm5 = vcmask 1043968  }
 0x167   : > { %v1697_v3 = vshrl.u32 %v1646_v59, 16  ;;  %v2322_v7 = vshll.u32 %v2269_v61, 16  ;;  %v2326_v1 = vshrl.u32 %v2269_v61, 16  ;;  %v1700_v11 = vshll.u32 %v1646_v59, 16 }
 0x168   : > { %v1551_v13 = vunpack.c.l.bf16 %v837_v62 }
 0x169   : > { %v732_v14 = vpop.f32.mrf.mxu1  ;;  %v1699_v15 = vrot.slane %v1697_v3, 7  ;;  %v2324_v18 = vrot.slane %v2322_v7, 5  ;;  %v2328_v19 = vrot.slane %v2326_v1, 4  ;;  %2080 = vrot.lane.b32.xlu1 %v837_v62, %s5863_s12 }
 0x16a   : > { %v733_v21 = vadd.f32 %v732_v14, %v644_v55  ;;  %v1615_v23 = vmul.f32 %v4925_v63, %v1551_v13  ;;  %v2238_v25 = vmul.f32 %v6160_v5, %v1551_v13  ;;  %v5580_v1 = vld [vmem:[#allocation2 + $0x14] sm:$0xf] }
 0x16b   : > { %v1702_v30 = vor.u32 %v1700_v11, %v1699_v15  ;;  %v2325_v32 = vsel %vm6196_vm0, %v2320_v10, %v2324_v18  ;;  %v2329_v33 = vor.u32 %v2328_v19, %v2324_v18  ;;  %v1704_v2 = vrot.slane %v1699_v15, 4  ;;  %v5552_v15 = vld [vmem:[%s5998_s16 + $0xb4] sm:$0xf] }
 0x16c   : > { %771 = vmatmul.bf16.gmra.mxu1 %v4819_v9  ;;  %2661 = vst.msk [vmem:[#allocation2 + $0x1c] sm:$0xf] %vm1999_vm7, %v2325_v32  ;;  %v1647_v49 = vpack.c.bf16 %v1615_v23, %v1615_v23  ;;  %v2270_v38 = vpack.c.bf16 %v2238_v25, %v2238_v25  ;;  %v806_v41 = vmax.f32 %v733_v21, 0.0  ;;  %v873_v9 = vadd.s32 48, %v6151_v51  ;;  %v4824_v21 = vld [vmem:[%s5998_s16 + $0xb8] sm:$0xf0]  ;;  %v6270_v23 = vpop.f32.mrf.mxu0 }
 0x16d   : > { %v2330_v54 = vrot.slane %v2329_v33, 4  ;;  %v1703_v40 = vsel %vm6214_vm3, %v1695_v44, %v1702_v30 }
 0x16e   : > { %v1706_v46 = vshrl.u32 %v1647_v49, 16  ;;  %v2332_v43 = vshll.u32 %v2270_v38, 16  ;;  %v2336_v48 = vshrl.u32 %v2270_v38, 16  ;;  %v838_v55 = vpack.c.bf16 %v806_v41, %v806_v41  ;;  %2007 = vst.msk [vmem:[#allocation2 + $0x20] sm:$0xf] %vm1999_vm7, %v1703_v40 }
 0x16f   : > { %v1709_v59 = vshll.u32 %v1647_v49, 16  ;;  %v945_v49 = vand.u32 15, %v873_v9 }
 0x170   : > { %v6256_v58 = vrot.slane %v1706_v46, 7  ;;  %v2334_v22 = vrot.slane %v2332_v43, 5  ;;  %v2338_v61 = vrot.slane %v2336_v48, 4  ;;  %2082 = vrot.lane.b32.xlu2 %v838_v55, %s5863_s12  ;;  %v1552_v39 = vunpack.c.l.bf16 %v838_v55 }
 0x171   : > { %v734_v62 = vpop.f32.mrf.mxu1  ;;  %vm1417_vm6 = vcmp.ne.s32.totalorder %v945_v49, 0 }
 0x172   : > { %v735_v63 = vadd.f32 %v734_v62, %v646_v45  ;;  %v1711_v3 = vor.u32 %v1709_v59, %v6256_v58  ;;  %v2335_v7 = vsel %vm6196_vm0, %v2330_v54, %v2334_v22  ;;  %v1616_v10 = vmul.f32 %v6160_v5, %v1552_v39 }
 0x173   : > { %2662 = vst.msk [vmem:[#allocation2 + $0x24] sm:$0xf] %vm1999_vm7, %v2335_v7  ;;  %v2239_v11 = vmul.f32 %v4942_v53, %v1552_v39  ;;  %v4984_v14 = vld [vmem:[#allocation2 + $0x18] sm:$0xf0]  ;;  %v2339_v18 = vor.u32 %v2338_v61, %v2334_v22  ;;  %v4827_v45 = vor.u32 %v5552_v15, %v4824_v21  ;;  %v874_v39 = vadd.s32 56, %v6151_v51 }
 0x174   : > { %v807_v13 = vmax.f32 %v735_v63, 0.0  ;;  %v6266_v19 = vor.u32 %v5580_v1, %v4984_v14  ;;  %v1712_v25 = vsel %vm6214_vm3, %v1704_v2, %v1711_v3  ;;  %v1648_v30 = vpack.c.bf16 %v1616_v10, %v1616_v10  ;;  %v6290_v14 = vpop.f32.mrf.mxu0 }
 0x175   : > { %v2271_v32 = vpack.c.bf16 %v2239_v11, %v2239_v11  ;;  %2008 = vst.msk [vmem:[#allocation2 + $0x28] sm:$0xf] %vm1999_vm7, %v1712_v25  ;;  %v2340_v46 = vrot.slane %v2339_v18, 4  ;;  %v1713_v7 = vrot.slane %v6256_v58, 4  ;;  %v651_v1 = vadd.f32 %v6149_v50, %v6242_v27 }
 0x176   : > { %v839_v33 = vpack.c.bf16 %v807_v13, %v807_v13  ;;  %5229 = vmatmul.msk.bf16.gmra.mxu0 %vm2994_vm2, %v6266_v19  ;;  %v1715_v38 = vshrl.u32 %v1648_v30, 16  ;;  %v1718_v43 = vshll.u32 %v1648_v30, 16  ;;  %v4943_v13 = vsel %vm1417_vm6, 1.0, %v5862_v6 }
 0x177   : > { %v2342_v41 = vshll.u32 %v2271_v32, 16  ;;  %v2346_v44 = vshrl.u32 %v2271_v32, 16  ;;  %v952_v21 = vand.u32 15, %v874_v39 }
 0x178   : > { %v1553_v48 = vunpack.c.l.bf16 %v839_v33  ;;  %v1717_v31 = vrot.slane %v1715_v38, 7  ;;  %2084 = vrot.lane.b32.xlu2 %v839_v33, %s5863_s12 }
 0x179   : > { %v737_v53 = vpop.f32.mrf.mxu1  ;;  %v2344_v54 = vrot.slane %v2342_v41, 5  ;;  %v2348_v55 = vrot.slane %v2346_v44, 4  ;;  %vm1290_vm8 = vcmp.ne.s32.totalorder %v952_v21, 15 }
 0x17a   : > { %v738_v57 = vadd.f32 %v737_v53, %v649_v26  ;;  %v1617_v40 = vmul.f32 %v4926_v35, %v1553_v48  ;;  %v2240_v59 = vmul.f32 %v6160_v5, %v1553_v48  ;;  %v1720_v22 = vor.u32 %v1718_v43, %v1717_v31  ;;  %v5582_v44 = vld [vmem:[#allocation2 + $0x24] sm:$0xf] }
 0x17b   : > { %v2345_v61 = vsel %vm6196_vm0, %v2340_v46, %v2344_v54  ;;  %v2349_v62 = vor.u32 %v2348_v55, %v2344_v54  ;;  %v1722_v49 = vrot.slane %v1717_v31, 4  ;;  %v5554_v31 = vld [vmem:[%s5998_s16 + $0xc4] sm:$0xf]  ;;  %v4927_v39 = vsel %vm1290_vm8, 1.0, %v5862_v6 }
 0x17c   : > { %776 = vmatmul.bf16.gmra.mxu1 %v4827_v45  ;;  %2663 = vst.msk [vmem:[#allocation2 + $0x2c] sm:$0xf] %vm1999_vm7, %v2345_v61  ;;  %v1649_v63 = vpack.c.bf16 %v1617_v40, %v1617_v40  ;;  %v2272_v2 = vpack.c.bf16 %v2240_v59, %v2240_v59  ;;  %v808_v3 = vmax.f32 %v738_v57, 0.0  ;;  %v1721_v25 = vsel %vm6214_vm3, %v1713_v7, %v1720_v22  ;;  %v4832_v57 = vld [vmem:[%s5998_s16 + $0xc8] sm:$0xf0] }
 0x17d   : > { %v2350_v18 = vrot.slane %v2349_v62, 4  ;;  %2009 = vst.msk [vmem:[#allocation2 + $0x30] sm:$0xf] %vm1999_vm7, %v1721_v25  ;;  %v875_v45 = vadd.s32 64, %v6151_v51  ;;  %v654_v61 = vadd.f32 %v6149_v50, %v6270_v23  ;;  %v658_v23 = vpop.f32.mrf.mxu0 }
 0x17e   : > { %v1724_v9 = vshrl.u32 %v1649_v63, 16  ;;  %v2352_v10 = vshll.u32 %v2272_v2, 16  ;;  %v2356_v11 = vshrl.u32 %v2272_v2, 16  ;;  %v840_v15 = vpack.c.bf16 %v808_v3, %v808_v3 }
 0x17f   : > { %v1727_v30 = vshll.u32 %v1649_v63, 16  ;;  %v959_v63 = vand.u32 15, %v875_v45  ;;  %v656_v45 = vadd.f32 %v6149_v50, %v6290_v14 }
 0x180   : > { %v6294_v26 = vrot.slane %v1724_v9, 7  ;;  %v2354_v58 = vrot.slane %v2352_v10, 5  ;;  %v2358_v32 = vrot.slane %v2356_v11, 4  ;;  %v1554_v27 = vunpack.c.l.bf16 %v840_v15  ;;  %2086 = vrot.lane.b32.xlu0 %v840_v15, %s5863_s12 }
 0x181   : > { %v739_v33 = vpop.f32.mrf.mxu1  ;;  %vm1419_vm9 = vcmp.ne.s32.totalorder %v959_v63, 0 }
 0x182   : > { %v740_v35 = vadd.f32 %v739_v33, %v651_v1  ;;  %v1729_v38 = vor.u32 %v1727_v30, %v6294_v26  ;;  %v2355_v41 = vsel %vm6196_vm0, %v2350_v18, %v2354_v58  ;;  %v1618_v46 = vmul.f32 %v6160_v5, %v1554_v27 }
 0x183   : > { %2664 = vst.msk [vmem:[#allocation2 + $0x34] sm:$0xf] %vm1999_vm7, %v2355_v41  ;;  %v2241_v43 = vmul.f32 %v4943_v13, %v1554_v27  ;;  %v4992_v53 = vld [vmem:[#allocation2 + $0x28] sm:$0xf0]  ;;  %v2359_v54 = vor.u32 %v2358_v32, %v2354_v58  ;;  %v4835_v1 = vor.u32 %v5554_v31, %v4832_v57 }
 0x184   : > { %v809_v48 = vmax.f32 %v740_v35, 0.0  ;;  %v6304_v55 = vor.u32 %v5582_v44, %v4992_v53  ;;  %v1730_v40 = vsel %vm6214_vm3, %v1722_v49, %v1729_v38  ;;  %v1650_v59 = vpack.c.bf16 %v1618_v46, %v1618_v46 }
 0x185   : > { %v2273_v22 = vpack.c.bf16 %v2241_v43, %v2241_v43  ;;  %2010 = vst.msk [vmem:[#allocation2 + $0x38] sm:$0xf] %vm1999_vm7, %v1730_v40  ;;  %v2360_v9 = vrot.slane %v2359_v54, 4  ;;  %v876_v35 = vadd.s32 72, %v6151_v51  ;;  %v1731_v44 = vrot.slane %v6294_v26, 4 }
 0x186   : > { %v841_v62 = vpack.c.bf16 %v809_v48, %v809_v48  ;;  %5230 = vmatmul.msk.bf16.gmra.mxu0 %vm2994_vm2, %v6304_v55  ;;  %v1733_v2 = vshrl.u32 %v1650_v59, 16  ;;  %v1736_v10 = vshll.u32 %v1650_v59, 16  ;;  %v4944_v53 = vsel %vm1419_vm9, 1.0, %v5862_v6 }
 0x187   : > { %v2362_v3 = vshll.u32 %v2273_v22, 16  ;;  %v2366_v7 = vshrl.u32 %v2273_v22, 16  ;;  %v966_v57 = vand.u32 15, %v876_v35 }
 0x188   : > { %2088 = vrot.lane.b32.xlu1 %v841_v62, %s5863_s12  ;;  %v1555_v11 = vunpack.c.l.bf16 %v841_v62  ;;  %v1735_v18 = vrot.slane %v1733_v2, 7 }
 0x189   : > { %v742_v13 = vpop.f32.mrf.mxu1  ;;  %v2364_v15 = vrot.slane %v2362_v3, 5  ;;  %v2368_v21 = vrot.slane %v2366_v7, 4  ;;  %vm1292_vm10 = vcmp.ne.s32.totalorder %v966_v57, 15 }
 0x18a   : > { %v743_v25 = vadd.f32 %v742_v13, %v654_v61  ;;  %v1619_v30 = vmul.f32 %v4927_v39, %v1555_v11  ;;  %v2242_v58 = vmul.f32 %v6160_v5, %v1555_v11  ;;  %v1738_v32 = vor.u32 %v1736_v10, %v1735_v18  ;;  %v5584_v7 = vld [vmem:[#allocation2 + $0x34] sm:$0xf] }
 0x18b   : > { %v2365_v33 = vsel %vm6196_vm0, %v2360_v9, %v2364_v15  ;;  %v2369_v27 = vor.u32 %v2368_v21, %v2364_v15  ;;  %v1740_v63 = vrot.slane %v1735_v18, 4  ;;  %v877_v9 = vadd.s32 80, %v6151_v51  ;;  %v5556_v18 = vld [vmem:[%s5998_s16 + $0xd4] sm:$0xf] }
 0x18c   : > { %781 = vmatmul.bf16.gmra.mxu1 %v4835_v1  ;;  %2665 = vst.msk [vmem:[#allocation2 + $0x3c] sm:$0xf] %vm1999_vm7, %v2365_v33  ;;  %v1651_v49 = vpack.c.bf16 %v1619_v30, %v1619_v30  ;;  %v2274_v38 = vpack.c.bf16 %v2242_v58, %v2242_v58  ;;  %v810_v41 = vmax.f32 %v743_v25, 0.0  ;;  %v1739_v40 = vsel %vm6214_vm3, %v1731_v44, %v1738_v32  ;;  %v660_v1 = vpop.f32.mrf.mxu0  ;;  %v4840_v30 = vld [vmem:[%s5998_s16 + $0xd8] sm:$0xf0] }
 0x18d   : > { %v2370_v54 = vrot.slane %v2369_v27, 4  ;;  %2011 = vst.msk [vmem:[#allocation2 + $0x40] sm:$0xf] %vm1999_vm7, %v1739_v40  ;;  %v659_v27 = vadd.f32 %v6149_v50, %v658_v23 }
 0x18e   : > { %v1742_v46 = vshrl.u32 %v1651_v49, 16  ;;  %v2372_v43 = vshll.u32 %v2274_v38, 16  ;;  %v2376_v48 = vshrl.u32 %v2274_v38, 16  ;;  %v842_v31 = vpack.c.bf16 %v810_v41, %v810_v41 }
 0x18f   : > { %v1745_v22 = vshll.u32 %v1651_v49, 16  ;;  %v5631_v49 = vld [vmem:[%s7772_s3 + $0x98] sm:$0xff]  ;;  %v4928_v38 = vsel %vm1292_vm10, 1.0, %v5862_v6  ;;  %v973_v41 = vand.u32 15, %v877_v9 }
 0x190   : > { %v6328_v59 = vrot.slane %v1742_v46, 7  ;;  %v2374_v61 = vrot.slane %v2372_v43, 5  ;;  %v2378_v62 = vrot.slane %v2376_v48, 4  ;;  %v1556_v14 = vunpack.c.l.bf16 %v842_v31  ;;  %2090 = vrot.lane.b32.xlu2 %v842_v31, %s5863_s12  ;;  %3043 = vmatpush.bf16.msra.mxu2 %v5631_v49 }
 0x191   : > { %v744_v26 = vpop.f32.mrf.mxu1  ;;  %v4843_v43 = vor.u32 %v5556_v18, %v4840_v30  ;;  %vm6357_vm12 = vcmp.ne.s32.totalorder %v973_v41, 0 }
 0x192   : > { %v745_v39 = vadd.f32 %v744_v26, %v656_v45  ;;  %v1747_v2 = vor.u32 %v1745_v22, %v6328_v59  ;;  %v2375_v3 = vsel %vm6196_vm0, %v2370_v54, %v2374_v61  ;;  %v1620_v10 = vmul.f32 %v6160_v5, %v1556_v14 }
 0x193   : > { %2666 = vst.msk [vmem:[#allocation2 + $0x44] sm:$0xf] %vm1999_vm7, %v2375_v3  ;;  %v2243_v11 = vmul.f32 %v4944_v53, %v1556_v14  ;;  %v5000_v15 = vld [vmem:[#allocation2 + $0x38] sm:$0xf0]  ;;  %v2379_v21 = vor.u32 %v2378_v62, %v2374_v61  ;;  %v5630_v61 = vld [vmem:[%s7772_s3 + $0x90] sm:$0xff]  ;;  %v878_v3 = vadd.s32 88, %v6151_v51 }
 0x194   : > { %v811_v13 = vmax.f32 %v745_v39, 0.0  ;;  %v6338_v25 = vor.u32 %v5584_v7, %v5000_v15  ;;  %v1748_v58 = vsel %vm6214_vm3, %v1740_v63, %v1747_v2  ;;  %v1652_v32 = vpack.c.bf16 %v1620_v10, %v1620_v10  ;;  %3044 = vmatpush.bf16.msra.mxu2 %v5630_v61 }
 0x195   : > { %v2275_v33 = vpack.c.bf16 %v2243_v11, %v2243_v11  ;;  %2012 = vst.msk [vmem:[#allocation2 + $0x48] sm:$0xf] %vm1999_vm7, %v1748_v58  ;;  %v2380_v23 = vrot.slane %v2379_v21, 4  ;;  %v663_v11 = vpop.f32.mrf.mxu0  ;;  %v661_v15 = vadd.f32 %v6149_v50, %v660_v1  ;;  %v5629_v21 = vld [vmem:[%s7772_s3 + $0x88] sm:$0xff]  ;;  %v879_v14 = vadd.s32 96, %v6151_v51 }
 0x196   : > { %v843_v35 = vpack.c.bf16 %v811_v13, %v811_v13  ;;  %5231 = vmatmul.msk.bf16.gmra.mxu0 %vm2994_vm2, %v6338_v25  ;;  %v1751_v44 = vshrl.u32 %v1652_v32, 16  ;;  %v1754_v48 = vshll.u32 %v1652_v32, 16  ;;  %v1749_v13 = vrot.slane %v6328_v59, 4 }
 0x197   : > { %v2382_v45 = vshll.u32 %v2275_v33, 16  ;;  %v2386_v46 = vshrl.u32 %v2275_v33, 16  ;;  %v4945_v32 = vsel %vm6357_vm12, 1.0, %v5862_v6 }
 0x198   : > { %2092 = vrot.lane.b32.xlu0 %v843_v35, %s5863_s12  ;;  %v1557_v53 = vunpack.c.l.bf16 %v843_v35  ;;  %v1753_v31 = vrot.slane %v1751_v44, 7  ;;  %v980_v35 = vand.u32 15, %v878_v3  ;;  %3045 = vmatpush.bf16.msra.mxu2 %v5629_v21 }
 0x199   : > { %v747_v54 = vpop.f32.mrf.mxu1  ;;  %v2384_v57 = vrot.slane %v2382_v45, 5  ;;  %v2388_v40 = vrot.slane %v2386_v46, 4 }
 0x19a   : > { %v748_v22 = vadd.f32 %v747_v54, %v659_v27  ;;  %v1621_v62 = vmul.f32 %v4928_v38, %v1557_v53  ;;  %v2244_v26 = vmul.f32 %v6160_v5, %v1557_v53  ;;  %v1756_v39 = vor.u32 %v1754_v48, %v1753_v31  ;;  %v5586_v54 = vld [vmem:[#allocation2 + $0x44] sm:$0xf] }
 0x19b   : > { %v2385_v63 = vsel %vm6196_vm0, %v2380_v23, %v2384_v57  ;;  %v2389_v2 = vor.u32 %v2388_v40, %v2384_v57  ;;  %v1758_v23 = vrot.slane %v1753_v31, 4  ;;  %vm6387_vm13 = vcmp.ne.s32.totalorder %v980_v35, 15 }
 0x19c   : > { %786 = vmatmul.bf16.gmra.mxu1 %v4843_v43  ;;  %2667 = vst.msk [vmem:[#allocation2 + $0x4c] sm:$0xf] %vm1999_vm7, %v2385_v63  ;;  %v1653_v7 = vpack.c.bf16 %v1621_v62, %v1621_v62  ;;  %v2276_v9 = vpack.c.bf16 %v2244_v26, %v2244_v26  ;;  %v812_v10 = vmax.f32 %v748_v22, 0.0  ;;  %v1757_v59 = vsel %vm6214_vm3, %v1749_v13, %v1756_v39  ;;  %v5628_v43 = vld [vmem:[%s7772_s3 + $0x80] sm:$0xff]  ;;  %v4848_v63 = vld [vmem:[%s5998_s16 + $0xe8] sm:$0xf0] }
 0x19d   : > { %v2390_v33 = vrot.slane %v2389_v2, 4  ;;  %2013 = vst.msk [vmem:[#allocation2 + $0x50] sm:$0xf] %vm1999_vm7, %v1757_v59  ;;  %3046 = vmatpush.bf16.msra.mxu2 %v5628_v43  ;;  %v5558_v39 = vld [vmem:[%s5998_s16 + $0xe4] sm:$0xf]  ;;  %v5627_v13 = vld [vmem:[%s7772_s3 + $0x78] sm:$0xff] }
 0x19e   : > { %v1760_v18 = vshrl.u32 %v1653_v7, 16  ;;  %v2392_v30 = vshll.u32 %v2276_v9, 16  ;;  %v2396_v58 = vshrl.u32 %v2276_v9, 16  ;;  %v844_v27 = vpack.c.bf16 %v812_v10, %v812_v10  ;;  %v5674_v43 = vld [vmem:[%s7772_s3 + $0xf0] sm:$0xff] }
 0x19f   : > { %v1763_v1 = vshll.u32 %v1653_v7, 16  ;;  %v664_v9 = vadd.f32 %v6149_v50, %v663_v11  ;;  %v4929_v21 = vsel %vm6387_vm13, 1.0, %v5862_v6 }
 0x1a0   : > { %v6375_v49 = vrot.slane %v1760_v18, 7  ;;  %v2394_v38 = vrot.slane %v2392_v30, 5  ;;  %v2398_v41 = vrot.slane %v2396_v58, 4  ;;  %v1558_v45 = vunpack.c.l.bf16 %v844_v27  ;;  %2094 = vrot.lane.b32.xlu1 %v844_v27, %s5863_s12  ;;  %v665_v18 = vpop.f32.mrf.mxu0 }
 0x1a1   : > { %v749_v44 = vpop.f32.mrf.mxu1  ;;  %3047 = vmatpush.bf16.msra.mxu2 %v5627_v13  ;;  %v5625_v13 = vld [vmem:[%s7772_s3 + $0x68] sm:$0xff] }
 0x1a2   : > { %v750_v46 = vadd.f32 %v749_v44, %v661_v15  ;;  %v1765_v48 = vor.u32 %v1763_v1, %v6375_v49  ;;  %v2395_v53 = vsel %vm6196_vm0, %v2390_v33, %v2394_v38  ;;  %v1622_v57 = vmul.f32 %v6160_v5, %v1558_v45  ;;  %v5675_v15 = vld [vmem:[%s7772_s3 + $0xf8] sm:$0xff] }
 0x1a3   : > { %2668 = vst.msk [vmem:[#allocation2 + $0x54] sm:$0xf] %vm1999_vm7, %v2395_v53  ;;  %v2245_v40 = vmul.f32 %v4945_v32, %v1558_v45  ;;  %v5008_v62 = vld [vmem:[#allocation2 + $0x48] sm:$0xf0]  ;;  %v2399_v26 = vor.u32 %v2398_v41, %v2394_v38  ;;  %v4851_v32 = vor.u32 %v5558_v39, %v4848_v63  ;;  %v987_v1 = vand.u32 15, %v879_v14  ;;  %3804 = vmatpush.bf16.msra.mxu1 %v5675_v15 }
 0x1a4   : > { %v813_v22 = vmax.f32 %v750_v46, 0.0  ;;  %v6391_v31 = vor.u32 %v5586_v54, %v5008_v62  ;;  %v1766_v2 = vsel %vm6214_vm3, %v1758_v23, %v1765_v48  ;;  %v1654_v3 = vpack.c.bf16 %v1622_v57, %v1622_v57  ;;  %v5626_v46 = vld [vmem:[%s7772_s3 + $0x70] sm:$0xff]  ;;  %v5673_v15 = vld [vmem:[%s7772_s3 + $0xe8] sm:$0xff] }
 0x1a5   : > { %v2277_v7 = vpack.c.bf16 %v2245_v40, %v2245_v40  ;;  %2014 = vst.msk [vmem:[#allocation2 + $0x58] sm:$0xf] %vm1999_vm7, %v1766_v2  ;;  %v2400_v33 = vrot.slane %v2399_v26, 4  ;;  %v880_v53 = vadd.s32 104, %v6151_v51  ;;  %v1767_v54 = vrot.slane %v6375_v49, 4  ;;  %3048 = vmatpush.bf16.msra.mxu2 %v5626_v46 }
 0x1a6   : > { %v845_v10 = vpack.c.bf16 %v813_v22, %v813_v22  ;;  %5232 = vmatmul.msk.bf16.gmra.mxu0 %vm2994_vm2, %v6391_v31  ;;  %v1769_v11 = vshrl.u32 %v1654_v3, 16  ;;  %v1772_v27 = vshll.u32 %v1654_v3, 16  ;;  %vm1423_vm15 = vcmp.ne.s32.totalorder %v987_v1, 0 }
 0x1a7   : > { %v2402_v30 = vshll.u32 %v2277_v7, 16  ;;  %v2406_v58 = vshrl.u32 %v2277_v7, 16  ;;  %3805 = vmatpush.bf16.msra.mxu1 %v5674_v43  ;;  %v666_v2 = vadd.f32 %v6149_v50, %v665_v18 }
 0x1a8   : > { %2096 = vrot.lane.b32.xlu2 %v845_v10, %s5863_s12  ;;  %v1559_v35 = vunpack.c.l.bf16 %v845_v10  ;;  %v6412_v38 = vrot.slane %v1769_v11, 7  ;;  %v994_v10 = vand.u32 15, %v880_v53 }
 0x1a9   : > { %v752_v59 = vpop.f32.mrf.mxu1  ;;  %v2404_v41 = vrot.slane %v2402_v30, 5  ;;  %v2408_v44 = vrot.slane %v2406_v58, 4  ;;  %v668_v58 = vpop.f32.mrf.mxu0  ;;  %3049 = vmatpush.bf16.msra.mxu2 %v5625_v13 }
 0x1aa   : > { %v753_v45 = vadd.f32 %v752_v59, %v664_v9  ;;  %v1623_v23 = vmul.f32 %v4929_v21, %v1559_v35  ;;  %v2246_v48 = vmul.f32 %v6160_v5, %v1559_v35  ;;  %v1774_v57 = vor.u32 %v1772_v27, %v6412_v38 }
 0x1ab   : > { %v2405_v40 = vsel %vm6196_vm0, %v2400_v33, %v2404_v41  ;;  %v2409_v22 = vor.u32 %v2408_v44, %v2404_v41  ;;  %v4946_v9 = vsel %vm1423_vm15, 1.0, %v5862_v6  ;;  %v1776_v35 = vrot.slane %v6412_v38, 4  ;;  %v5588_v41 = vld [vmem:[#allocation2 + $0x54] sm:$0xf]  ;;  %3806 = vmatpush.bf16.msra.mxu1 %v5673_v15 }
 0x1ac   : > { %791 = vmatmul.bf16.gmra.mxu1 %v4851_v32  ;;  %2669 = vst.msk [vmem:[#allocation2 + $0x5c] sm:$0xf] %vm1999_vm7, %v2405_v40  ;;  %v1655_v61 = vpack.c.bf16 %v1623_v23, %v1623_v23  ;;  %v2278_v62 = vpack.c.bf16 %v2246_v48, %v2246_v48  ;;  %v814_v26 = vmax.f32 %v753_v45, 0.0  ;;  %v1775_v14 = vsel %vm6214_vm3, %v1767_v54, %v1774_v57  ;;  %v5560_v45 = vld [vmem:[%s5998_s16 + $0xf4] sm:$0xf]  ;;  %v5624_v57 = vld [vmem:[%s7772_s3 + $0x60] sm:$0xff] }
 0x1ad   : > { %2015 = vst.msk [vmem:[#allocation2 + $0x60] sm:$0xf] %vm1999_vm7, %v1775_v14  ;;  %v2410_v3 = vrot.slane %v2409_v22, 4  ;;  %v881_v44 = vadd.s32 112, %v6151_v51  ;;  %vm1296_vm1 = vcmp.ne.s32.totalorder %v994_v10, 15  ;;  %v5672_v40 = vld [vmem:[%s7772_s3 + $0xe0] sm:$0xff]  ;;  %3050 = vmatpush.bf16.msra.mxu2 %v5624_v57 }
 0x1ae   : > { %v1778_v39 = vshrl.u32 %v1655_v61, 16  ;;  %v2412_v49 = vshll.u32 %v2278_v62, 16  ;;  %v2416_v63 = vshrl.u32 %v2278_v62, 16  ;;  %v846_v7 = vpack.c.bf16 %v814_v26, %v814_v26  ;;  %v4856_v54 = vld [vmem:[%s5998_s16 + $0xf8] sm:$0xf0] }
 0x1af   : > { %v1781_v11 = vshll.u32 %v1655_v61, 16  ;;  %v669_v26 = vadd.f32 %v6149_v50, %v668_v58  ;;  %3807 = vmatpush.bf16.msra.mxu1 %v5672_v40  ;;  %v5635_v50 = vld [vmem:[%s7772_s3 + $0xb8] sm:$0xff] }
 0x1b0   : > { %v6438_v21 = vrot.slane %v1778_v39, 7  ;;  %v2414_v18 = vrot.slane %v2412_v49, 5  ;;  %v2418_v30 = vrot.slane %v2416_v63, 4  ;;  %v1560_v33 = vunpack.c.l.bf16 %v846_v7  ;;  %2098 = vrot.lane.b32.xlu0 %v846_v7, %s5863_s12  ;;  %5697 = vmatpush.bf16.msra.mxu3 %v5635_v50 }
 0x1b1   : > { %v754_v32 = vpop.f32.mrf.mxu1  ;;  %v4930_v39 = vsel %vm1296_vm1, 1.0, %v5862_v6  ;;  %v1001_v49 = vand.u32 15, %v881_v44  ;;  %v4859_v7 = vor.u32 %v5560_v45, %v4856_v54  ;;  %3136 = vmatpush.bf16.msrb.mxu2 %v5635_v50  ;;  %v6494_v54 = vld [vmem:[%s7771_s2] ss:$0 sm:$0xff] }
 0x1b2   : > { %v755_v27 = vadd.f32 %v754_v32, %v666_v2  ;;  %v1783_v59 = vor.u32 %v1781_v11, %v6438_v21  ;;  %v2415_v1 = vsel %vm6196_vm0, %v2410_v3, %v2414_v18  ;;  %v1624_v46 = vmul.f32 %v6160_v5, %v1560_v33  ;;  %v5671_v11 = vld [vmem:[%s7772_s3 + $0xd8] sm:$0xff] }
 0x1b3   : > { %2670 = vst.msk [vmem:[#allocation2 + $0x64] sm:$0xf] %vm1999_vm7, %v2415_v1  ;;  %v2247_v43 = vmul.f32 %v4946_v9, %v1560_v33  ;;  %v5016_v48 = vld [vmem:[#allocation2 + $0x58] sm:$0xf0]  ;;  %v2419_v53 = vor.u32 %v2418_v30, %v2414_v18  ;;  %vm6475_vm4 = vcmp.ne.s32.totalorder %v1001_v49, 0  ;;  %v882_v1 = vadd.s32 120, %v6151_v51  ;;  %3808 = vmatpush.bf16.msra.mxu1 %v5671_v11 }
 0x1b4   : > { %v815_v23 = vmax.f32 %v755_v27, 0.0  ;;  %v6449_v38 = vor.u32 %v5588_v41, %v5016_v48  ;;  %v1784_v22 = vsel %vm6214_vm3, %v1776_v35, %v1783_v59  ;;  %v1656_v61 = vpack.c.bf16 %v1624_v46, %v1624_v46  ;;  %v670_v35 = vpop.f32.mrf.mxu0 }
 0x1b5   : > { %v2279_v62 = vpack.c.bf16 %v2247_v43, %v2247_v43  ;;  %2016 = vst.msk [vmem:[#allocation2 + $0x68] sm:$0xf] %vm1999_vm7, %v1784_v22  ;;  %v2420_v9 = vrot.slane %v2419_v53, 4  ;;  %v1785_v41 = vrot.slane %v6438_v21, 4  ;;  %v5634_v43 = vld [vmem:[%s7772_s3 + $0xb0] sm:$0xff]  ;;  %v671_v57 = vadd.f32 %v6494_v54, %v670_v35 }
 0x1b6   : > { %v847_v14 = vpack.c.bf16 %v815_v23, %v815_v23  ;;  %5233 = vmatmul.msk.bf16.gmra.mxu0 %vm2994_vm2, %v6449_v38  ;;  %v1787_v63 = vshrl.u32 %v1656_v61, 16  ;;  %v1790_v10 = vshll.u32 %v1656_v61, 16  ;;  %v5670_v21 = vld [vmem:[%s7772_s3 + $0xd0] sm:$0xff]  ;;  %5698 = vmatpush.bf16.msra.mxu3 %v5634_v43  ;;  %v1008_v49 = vand.u32 15, %v882_v1 }
 0x1b7   : > { %v2422_v2 = vshll.u32 %v2279_v62, 16  ;;  %v2426_v3 = vshrl.u32 %v2279_v62, 16  ;;  %3137 = vmatpush.bf16.msrb.mxu2 %v5634_v43  ;;  %3809 = vmatpush.bf16.msra.mxu1 %v5670_v21  ;;  %v5668_v43 = vld [vmem:[%s7772_s3 + $0xc0] sm:$0xff] }
 0x1b8   : > { %2100 = vrot.lane.b32.xlu1 %v847_v14, %s5863_s12  ;;  %v1561_v13 = vunpack.c.l.bf16 %v847_v14  ;;  %v6472_v18 = vrot.slane %v1787_v63, 7  ;;  %v5633_v63 = vld [vmem:[%s7772_s3 + $0xa8] sm:$0xff]  ;;  %vm6519_vm6 = vcmp.ne.s32.totalorder %v1008_v49, 15 }
 0x1b9   : > { %v757_v15 = vpop.f32.mrf.mxu1  ;;  %v2424_v30 = vrot.slane %v2422_v2, 5  ;;  %v2428_v58 = vrot.slane %v2426_v3, 4 }
 0x1ba   : > { %v758_v32 = vadd.f32 %v757_v15, %v669_v26  ;;  %v1625_v33 = vmul.f32 %v4930_v39, %v1561_v13  ;;  %v2248_v27 = vmul.f32 %v6160_v5, %v1561_v13  ;;  %v1792_v44 = vor.u32 %v1790_v10, %v6472_v18  ;;  %v5669_v10 = vld [vmem:[%s7772_s3 + $0xc8] sm:$0xff]  ;;  %5699 = vmatpush.bf16.msra.mxu3 %v5633_v63 }
 0x1bb   : > { %v2425_v45 = vsel %vm6196_vm0, %v2420_v9, %v2424_v30  ;;  %v2429_v46 = vor.u32 %v2428_v58, %v2424_v30  ;;  %v4947_v26 = vsel %vm6475_vm4, 1.0, %v5862_v6  ;;  %v1794_v30 = vrot.slane %v6472_v18, 4  ;;  %3138 = vmatpush.bf16.msrb.mxu2 %v5633_v63  ;;  %3810 = vmatpush.bf16.msra.mxu1 %v5669_v10 }
 0x1bc   : > { %796 = vmatmul.bf16.gmra.mxu1 %v4859_v7  ;;  %2671 = vst.msk [vmem:[#allocation2 + $0x6c] sm:$0xf] %vm1999_vm7, %v2425_v45  ;;  %v1657_v23 = vpack.c.bf16 %v1625_v33, %v1625_v33  ;;  %v2280_v48 = vpack.c.bf16 %v2248_v27, %v2248_v27  ;;  %v816_v53 = vmax.f32 %v758_v32, 0.0  ;;  %v1793_v40 = vsel %vm6214_vm3, %v1785_v41, %v1792_v44  ;;  %v5590_v33 = vld [vmem:[#allocation2 + $0x64] sm:$0xf] }
 0x1bd   : > { %2017 = vst.msk [vmem:[#allocation2 + $0x70] sm:$0xf] %vm1999_vm7, %v1793_v40  ;;  %v2430_v14 = vrot.slane %v2429_v46, 4  ;;  %v883_v45 = vadd.s32 128, %v6151_v51  ;;  %v5632_v46 = vld [vmem:[%s7772_s3 + $0xa0] sm:$0xff] }
 0x1be   : > { %v1796_v22 = vshrl.u32 %v1657_v23, 16  ;;  %v2432_v61 = vshll.u32 %v2280_v48, 16  ;;  %v2436_v62 = vshrl.u32 %v2280_v48, 16  ;;  %v848_v39 = vpack.c.bf16 %v816_v53, %v816_v53  ;;  %5700 = vmatpush.bf16.msra.mxu3 %v5632_v46 }
 0x1bf   : > { %v1799_v3 = vshll.u32 %v1657_v23, 16  ;;  %3139 = vmatpush.bf16.msrb.mxu2 %v5632_v46  ;;  %v1015_v63 = vand.u32 15, %v883_v45  ;;  %3811 = vmatpush.bf16.msra.mxu1 %v5668_v43  ;;  %v676_v46 = vadd.f32 %v6494_v54, %v6080_v56 }
 0x1c0   : > { %v6506_v2 = vrot.slane %v1796_v22, 7  ;;  %v2434_v7 = vrot.slane %v2432_v61, 5  ;;  %v2438_v50 = vrot.slane %v2436_v62, 4  ;;  %v1562_v13 = vunpack.c.l.bf16 %v848_v39  ;;  %2102 = vrot.lane.b32.xlu2 %v848_v39, %s5863_s12 }
 0x1c1   : > { %v759_v9 = vpop.f32.mrf.mxu1  ;;  %v4931_v62 = vsel %vm6519_vm6, 1.0, %v5862_v6  ;;  %vm1427_vm8 = vcmp.ne.s32.totalorder %v1015_v63, 0 }
 0x1c2   : > { %v760_v15 = vadd.f32 %v759_v9, %v671_v57  ;;  %v2075_v11 = vpop.permute.xlu0 %2074  ;;  %v1801_v58 = vor.u32 %v1799_v3, %v6506_v2  ;;  %v2435_v32 = vsel %vm6196_vm0, %v2430_v14, %v2434_v7  ;;  %v1626_v27 = vmul.f32 %v6160_v5, %v1562_v13 }
 0x1c3   : > { %2171 = vst.msk [vmem:[#allocation2 + $0x10] sm:$0xf] %vm2170_vm5, %v2075_v11  ;;  %v2249_v35 = vmul.f32 %v4947_v26, %v1562_v13  ;;  %v5024_v18 = vld [vmem:[#allocation2 + $0x68] sm:$0xf0]  ;;  %v2439_v41 = vor.u32 %v2438_v50, %v2434_v7  ;;  %v674_v57 = vadd.f32 %v6494_v54, %v6076_v52  ;;  %v1803_v11 = vrot.slane %v6506_v2, 4 }
 0x1c4   : > { %2672 = vst.msk [vmem:[#allocation2 + $0x74] sm:$0xf] %vm1999_vm7, %v2435_v32  ;;  %v817_v59 = vmax.f32 %v760_v15, 0.0  ;;  %v6523_v44 = vor.u32 %v5590_v33, %v5024_v18  ;;  %v1802_v23 = vsel %vm6214_vm3, %v1794_v30, %v1801_v58  ;;  %v1658_v48 = vpack.c.bf16 %v1626_v27, %v1626_v27 }
 0x1c5   : > { %v2281_v53 = vpack.c.bf16 %v2249_v35, %v2249_v35  ;;  %2018 = vst.msk [vmem:[#allocation2 + $0x78] sm:$0xf] %vm1999_vm7, %v1802_v23  ;;  %v2440_v26 = vrot.slane %v2439_v41, 4  ;;  %v884_v15 = vadd.s32 136, %v6151_v51 }
 0x1c6   : > { %v849_v21 = vpack.c.bf16 %v817_v59, %v817_v59  ;;  %5234 = vmatmul.msk.bf16.gmra.mxu0 %vm2994_vm2, %v6523_v44  ;;  %v1805_v40 = vshrl.u32 %v1658_v48, 16  ;;  %v1808_v14 = vshll.u32 %v1658_v48, 16  ;;  %v4948_v48 = vsel %vm1427_vm8, 1.0, %v5862_v6 }
 0x1c7   : > { %v2442_v22 = vshll.u32 %v2281_v53, 16  ;;  %v2446_v61 = vshrl.u32 %v2281_v53, 16  ;;  %v1022_v45 = vand.u32 15, %v884_v15 }
 0x1c8   : > { %2104 = vrot.lane.b32.xlu0 %v849_v21, %s5863_s12  ;;  %v1563_v39 = vunpack.c.l.bf16 %v849_v21  ;;  %v1807_v52 = vrot.slane %v1805_v40, 7 }
 0x1c9   : > { %v762_v49 = vpop.f32.mrf.mxu1  ;;  %v2444_v3 = vrot.slane %v2442_v22, 5  ;;  %v2448_v7 = vrot.slane %v2446_v61, 4  ;;  %vm6563_vm9 = vcmp.ne.s32.totalorder %v1022_v45, 15 }
 0x1ca   : > { %v763_v50 = vadd.f32 %v762_v49, %v674_v57  ;;  %v1627_v9 = vmul.f32 %v4931_v62, %v1563_v39  ;;  %v2250_v10 = vmul.f32 %v6160_v5, %v1563_v39  ;;  %v2077_v13 = vpop.permute.xlu0 %2076  ;;  %v1810_v30 = vor.u32 %v1808_v14, %v1807_v52  ;;  %v2083_v33 = vpop.permute.xlu2 %2082 }
 0x1cb   : > { %v2445_v58 = vsel %vm6196_vm0, %v2440_v26, %v2444_v3  ;;  %v2449_v32 = vor.u32 %v2448_v7, %v2444_v3  ;;  %2172 = vst.msk [vmem:[#allocation2 + $0x18] sm:$0xf] %vm2170_vm5, %v2077_v13  ;;  %v4982_v26 = vld [vmem:[#allocation2 + $0x10] sm:$0xf]  ;;  %v1812_v14 = vrot.slane %v1807_v52, 4 }
 0x1cc   : > { %2673 = vst.msk [vmem:[#allocation2 + $0x7c] sm:$0xf] %vm1999_vm7, %v2445_v58  ;;  %v1659_v27 = vpack.c.bf16 %v1627_v9, %v1627_v9  ;;  %v2282_v35 = vpack.c.bf16 %v2250_v10, %v2250_v10  ;;  %v818_v59 = vmax.f32 %v763_v50, 0.0  ;;  %v1811_v1 = vsel %vm6214_vm3, %v1803_v11, %v1810_v30  ;;  %v5592_v3 = vld [vmem:[#allocation2 + $0x74] sm:$0xf] }
 0x1cd   : > { %2175 = vst.msk [vmem:[#allocation2 + $0x30] sm:$0xf] %vm2170_vm5, %v2083_v33  ;;  %v2450_v43 = vrot.slane %v2449_v32, 4  ;;  %v885_v58 = vadd.s32 144, %v6151_v51 }
 0x1ce   : > { %v1814_v2 = vshrl.u32 %v1659_v27, 16  ;;  %v2452_v18 = vshll.u32 %v2282_v35, 16  ;;  %v2456_v41 = vshrl.u32 %v2282_v35, 16  ;;  %2019 = vst.msk [vmem:[#allocation2 + $0x80] sm:$0xf] %vm1999_vm7, %v1811_v1  ;;  %v850_v23 = vpack.c.bf16 %v818_v59, %v818_v59 }
 0x1cf   : > { %v1817_v21 = vshll.u32 %v1659_v27, 16  ;;  %v679_v59 = vadd.f32 %v6494_v54, %v6084_v60 }
 0x1d0   : > { %v6557_v53 = vrot.slane %v1814_v2, 7  ;;  %v2454_v57 = vrot.slane %v2452_v18, 5  ;;  %v2458_v40 = vrot.slane %v2456_v41, 4  ;;  %v1564_v61 = vunpack.c.l.bf16 %v850_v23  ;;  %2106 = vrot.lane.b32.xlu1 %v850_v23, %s5863_s12 }
 0x1d1   : > { %v764_v22 = vpop.f32.mrf.mxu1  ;;  %v4932_v41 = vsel %vm6563_vm9, 1.0, %v5862_v6 }
 0x1d2   : > { %v765_v62 = vadd.f32 %v764_v22, %v676_v46  ;;  %v1819_v39 = vor.u32 %v1817_v21, %v6557_v53  ;;  %v2455_v56 = vsel %vm6196_vm0, %v2450_v43, %v2454_v57  ;;  %v5581_v63 = vld [vmem:[#allocation2 + $0x14] sm:$0xf0]  ;;  %v1628_v7 = vmul.f32 %v6160_v5, %v1564_v61  ;;  %v2085_v10 = vpop.permute.xlu2 %2084 }
 0x1d3   : > { %2674 = vst.msk [vmem:[#allocation2 + $0x84] sm:$0xf] %vm1999_vm7, %v2455_v56  ;;  %v2251_v50 = vmul.f32 %v4948_v48, %v1564_v61  ;;  %v2079_v13 = vpop.permute.xlu1 %2078  ;;  %v6569_v52 = vor.u32 %v5581_v63, %v4982_v26  ;;  %v5032_v15 = vld [vmem:[#allocation2 + $0x78] sm:$0xf0]  ;;  %v2459_v11 = vor.u32 %v2458_v40, %v2454_v57  ;;  %v1029_v48 = vand.u32 15, %v885_v58 }
 0x1d4   : > { %v819_v9 = vmax.f32 %v765_v62, 0.0  ;;  %2176 = vst.msk [vmem:[#allocation2 + $0x38] sm:$0xf] %vm2170_vm5, %v2085_v10  ;;  %v6572_v30 = vor.u32 %v5592_v3, %v5032_v15  ;;  %v1820_v32 = vsel %vm6214_vm3, %v1812_v14, %v1819_v39  ;;  %v1660_v33 = vpack.c.bf16 %v1628_v7, %v1628_v7 }
 0x1d5   : > { %v2283_v27 = vpack.c.bf16 %v2251_v50, %v2251_v50  ;;  %2173 = vst.msk [vmem:[#allocation2 + $0x20] sm:$0xf] %vm2170_vm5, %v2079_v13  ;;  %3051 = vmatmul.bf16.vlgmr.msra.gmra.mxu2 %v6569_v52  ;;  %v2460_v45 = vrot.slane %v2459_v11, 4  ;;  %v886_v62 = vadd.s32 152, %v6151_v51  ;;  %vm1429_vm10 = vcmp.ne.s32.totalorder %v1029_v48, 0 }
 0x1d6   : > { %v851_v35 = vpack.c.bf16 %v819_v9, %v819_v9  ;;  %5235 = vmatmul.msk.bf16.gmra.mxu0 %vm2994_vm2, %v6572_v30  ;;  %2020 = vst.msk [vmem:[#allocation2 + $0x88] sm:$0xf] %vm1999_vm7, %v1820_v32  ;;  %v1823_v1 = vshrl.u32 %v1660_v33, 16  ;;  %v1826_v46 = vshll.u32 %v1660_v33, 16  ;;  %v681_v7 = vadd.f32 %v6494_v54, %v6088_v0 }
 0x1d7   : > { %v2462_v2 = vshll.u32 %v2283_v27, 16  ;;  %v2466_v18 = vshrl.u32 %v2283_v27, 16  ;;  %v1821_v50 = vrot.slane %v6557_v53, 4  ;;  %v1036_v15 = vand.u32 15, %v886_v62 }
 0x1d8   : > { %2108 = vrot.lane.b32.xlu2 %v851_v35, %s5863_s12  ;;  %v1565_v43 = vunpack.c.l.bf16 %v851_v35  ;;  %v1825_v60 = vrot.slane %v1823_v1, 7  ;;  %v4949_v32 = vsel %vm1429_vm10, 1.0, %v5862_v6 }
 0x1d9   : > { %v767_v23 = vpop.f32.mrf.mxu1  ;;  %v2464_v21 = vrot.slane %v2462_v2, 5  ;;  %v2468_v57 = vrot.slane %v2466_v18, 4  ;;  %vm6607_vm12 = vcmp.ne.s32.totalorder %v1036_v15, 15 }
 0x1da   : > { %v768_v40 = vadd.f32 %v767_v23, %v679_v59  ;;  %v1629_v22 = vmul.f32 %v4932_v41, %v1565_v43  ;;  %v2252_v61 = vmul.f32 %v6160_v5, %v1565_v43  ;;  %v1828_v26 = vor.u32 %v1826_v46, %v1825_v60  ;;  %v5594_v43 = vld [vmem:[#allocation2 + $0x84] sm:$0xf] }
 0x1db   : > { %v2465_v14 = vsel %vm6196_vm0, %v2460_v45, %v2464_v21  ;;  %v2469_v39 = vor.u32 %v2468_v57, %v2464_v21  ;;  %v2081_v56 = vpop.permute.xlu1 %2080  ;;  %v1830_v18 = vrot.slane %v1825_v60, 4  ;;  %v4933_v15 = vsel %vm6607_vm12, 1.0, %v5862_v6 }
 0x1dc   : > { %2675 = vst.msk [vmem:[#allocation2 + $0x8c] sm:$0xf] %vm1999_vm7, %v2465_v14  ;;  %v1661_v49 = vpack.c.bf16 %v1629_v22, %v1629_v22  ;;  %v2284_v63 = vpack.c.bf16 %v2252_v61, %v2252_v61  ;;  %v820_v3 = vmax.f32 %v768_v40, 0.0  ;;  %v1829_v33 = vsel %vm6214_vm3, %v1821_v50, %v1828_v26  ;;  %v4990_v22 = vld [vmem:[#allocation2 + $0x20] sm:$0xf] }
 0x1dd   : > { %2174 = vst.msk [vmem:[#allocation2 + $0x28] sm:$0xf] %vm2170_vm5, %v2081_v56  ;;  %v2470_v11 = vrot.slane %v2469_v39, 4  ;;  %v887_v40 = vadd.s32 160, %v6151_v51 }
 0x1de   : > { %v1832_v9 = vshrl.u32 %v1661_v49, 16  ;;  %v2472_v10 = vshll.u32 %v2284_v63, 16  ;;  %v2476_v13 = vshrl.u32 %v2284_v63, 16  ;;  %v852_v58 = vpack.c.bf16 %v820_v3, %v820_v3  ;;  %2021 = vst.msk [vmem:[#allocation2 + $0x90] sm:$0xf] %vm1999_vm7, %v1829_v33 }
 0x1df   : > { %v1835_v35 = vshll.u32 %v1661_v49, 16  ;;  %v5270_v3 = vld [vmem:[#allocation2 + $0x20] sm:$0xf]  ;;  %v1043_v33 = vand.u32 15, %v887_v40 }
 0x1e0   : > { %v6600_v27 = vrot.slane %v1832_v9, 7  ;;  %v2474_v59 = vrot.slane %v2472_v10, 5  ;;  %v2478_v0 = vrot.slane %v2476_v13, 4  ;;  %v1566_v53 = vunpack.c.l.bf16 %v852_v58  ;;  %2110 = vrot.lane.b32.xlu0 %v852_v58, %s5863_s12 }
 0x1e1   : > { %v769_v1 = vpop.f32.mrf.mxu1  ;;  %vm1431_vm13 = vcmp.ne.s32.totalorder %v1043_v33, 0 }
 0x1e2   : > { %v770_v2 = vadd.f32 %v769_v1, %v681_v7  ;;  %v1837_v41 = vor.u32 %v1835_v35, %v6600_v27  ;;  %v2475_v45 = vsel %vm6196_vm0, %v2470_v11, %v2474_v59  ;;  %v1630_v23 = vmul.f32 %v6160_v5, %v1566_v53 }
 0x1e3   : > { %2676 = vst.msk [vmem:[#allocation2 + $0x94] sm:$0xf] %vm1999_vm7, %v2475_v45  ;;  %v2253_v48 = vmul.f32 %v4949_v32, %v1566_v53  ;;  %v5040_v57 = vld [vmem:[#allocation2 + $0x88] sm:$0xf0]  ;;  %v2479_v60 = vor.u32 %v2478_v0, %v2474_v59  ;;  %v684_v7 = vadd.f32 %v6494_v54, %v6092_v4 }
 0x1e4   : > { %v821_v21 = vmax.f32 %v770_v2, 0.0  ;;  %v5583_v61 = vld [vmem:[#allocation2 + $0x24] sm:$0xf0]  ;;  %v5043_v62 = vor.u32 %v5594_v43, %v5040_v57  ;;  %v1838_v14 = vsel %vm6214_vm3, %v1830_v18, %v1837_v41  ;;  %v1662_v39 = vpack.c.bf16 %v1630_v23, %v1630_v23 }
 0x1e5   : > { %v5637_v26 = vld [vmem:[#allocation2 + $0x24] sm:$0xf0]  ;;  %v2285_v56 = vpack.c.bf16 %v2253_v48, %v2253_v48  ;;  %v6616_v63 = vor.u32 %v5583_v61, %v4990_v22  ;;  %2022 = vst.msk [vmem:[#allocation2 + $0x98] sm:$0xf] %vm1999_vm7, %v1838_v14  ;;  %v2480_v11 = vrot.slane %v2479_v60, 4  ;;  %v888_v18 = vadd.s32 168, %v6151_v51 }
 0x1e6   : > { %v853_v49 = vpack.c.bf16 %v821_v21, %v821_v21  ;;  %5163 = vmatmul.msk.bf16.vlgmr.msra.gmra.mxu3 %vm2994_vm2, %v5043_v62  ;;  %5236 = vmatmul.msk.bf16.gmra.mxu0 %vm2994_vm2, %v5043_v62  ;;  %v5271_v50 = vor.u32 %v5637_v26, %v5270_v3  ;;  %v1841_v9 = vshrl.u32 %v1662_v39, 16  ;;  %v1844_v58 = vshll.u32 %v1662_v39, 16 }
 0x1e7   : > { %v2482_v10 = vshll.u32 %v2285_v56, 16  ;;  %v2486_v13 = vshrl.u32 %v2285_v56, 16  ;;  %3056 = vmatmul.bf16.gmra.mxu2 %v6616_v63  ;;  %v1839_v41 = vrot.slane %v6600_v27, 4  ;;  %v686_v27 = vadd.f32 %v6494_v54, %v6096_v8 }
 0x1e8   : > { %2112 = vrot.lane.b32.xlu1 %v853_v49, %s5863_s12  ;;  %v1567_v32 = vunpack.c.l.bf16 %v853_v49  ;;  %3812 = vmatmul.bf16.vlgmr.msra.gmra.mxu1 %v5271_v50  ;;  %v1843_v35 = vrot.slane %v1841_v9, 7  ;;  %v4950_v14 = vsel %vm1431_vm13, 1.0, %v5862_v6  ;;  %v1050_v39 = vand.u32 15, %v888_v18  ;;  %v4998_v18 = vld [vmem:[#allocation2 + $0x30] sm:$0xf] }
 0x1e9   : > { %v772_v4 = vpop.f32.mrf.mxu1  ;;  %v2484_v59 = vrot.slane %v2482_v10, 5  ;;  %v2488_v0 = vrot.slane %v2486_v13, 4  ;;  %v5585_v10 = vld [vmem:[#allocation2 + $0x34] sm:$0xf0] }
 0x1ea   : > { %v773_v1 = vadd.f32 %v772_v4, %v684_v7  ;;  %v1631_v53 = vmul.f32 %v4933_v15, %v1567_v32  ;;  %v2254_v2 = vmul.f32 %v6160_v5, %v1567_v32  ;;  %v1846_v45 = vor.u32 %v1844_v58, %v1843_v35  ;;  %v2091_v23 = vpop.permute.xlu2 %2090  ;;  %v5596_v58 = vld [vmem:[#allocation2 + $0x94] sm:$0xf]  ;;  %v5639_v32 = vld [vmem:[#allocation2 + $0x34] sm:$0xf0] }
 0x1eb   : > { %v2485_v46 = vsel %vm6196_vm0, %v2480_v11, %v2484_v59  ;;  %v2489_v43 = vor.u32 %v2488_v0, %v2484_v59  ;;  %2179 = vst.msk [vmem:[#allocation2 + $0x50] sm:$0xf] %vm2170_vm5, %v2091_v23  ;;  %v1848_v13 = vrot.slane %v1843_v35, 4  ;;  %v889_v4 = vadd.s32 176, %v6151_v51 }
 0x1ec   : > { %2677 = vst.msk [vmem:[#allocation2 + $0x9c] sm:$0xf] %vm1999_vm7, %v2485_v46  ;;  %v1663_v48 = vpack.c.bf16 %v1631_v53, %v1631_v53  ;;  %v2286_v21 = vpack.c.bf16 %v2254_v2, %v2254_v2  ;;  %v822_v57 = vmax.f32 %v773_v1, 0.0  ;;  %v1847_v40 = vsel %vm6214_vm3, %v1839_v41, %v1846_v45 }
 0x1ed   : > { %2023 = vst.msk [vmem:[#allocation2 + $0xa0] sm:$0xf] %vm1999_vm7, %v1847_v40  ;;  %v2490_v62 = vrot.slane %v2489_v43, 4  ;;  %vm6650_vm15 = vcmp.ne.s32.totalorder %v1050_v39, 15 }
 0x1ee   : > { %v1850_v60 = vshrl.u32 %v1663_v48, 16  ;;  %v2492_v22 = vshll.u32 %v2286_v21, 16  ;;  %v2496_v61 = vshrl.u32 %v2286_v21, 16  ;;  %v854_v26 = vpack.c.bf16 %v822_v57, %v822_v57  ;;  %v5278_v21 = vld [vmem:[#allocation2 + $0x30] sm:$0xf] }
 0x1ef   : > { %v1853_v49 = vshll.u32 %v1663_v48, 16  ;;  %v6657_v48 = vor.u32 %v5585_v10, %v4998_v18  ;;  %v689_v57 = vadd.f32 %v6494_v54, %v6100_v12  ;;  %v5279_v40 = vor.u32 %v5639_v32, %v5278_v21 }
 0x1f0   : > { %v6641_v56 = vrot.slane %v1850_v60, 7  ;;  %v2494_v3 = vrot.slane %v2492_v22, 5  ;;  %v2498_v7 = vrot.slane %v2496_v61, 4  ;;  %v1568_v9 = vunpack.c.l.bf16 %v854_v26  ;;  %2114 = vrot.lane.b32.xlu2 %v854_v26, %s5863_s12 }
 0x1f1   : > { %v774_v50 = vpop.f32.mrf.mxu1  ;;  %v890_v60 = vadd.s32 184, %v6151_v51  ;;  %v4934_v26 = vsel %vm6650_vm15, 1.0, %v5862_v6 }
 0x1f2   : > { %v775_v8 = vadd.f32 %v774_v50, %v686_v27  ;;  %v1855_v15 = vor.u32 %v1853_v49, %v6641_v56  ;;  %v2495_v11 = vsel %vm6196_vm0, %v2490_v62, %v2494_v3  ;;  %v1632_v33 = vmul.f32 %v6160_v5, %v1568_v9  ;;  %v2087_v1 = vpop.permute.xlu0 %2086 }
 0x1f3   : > { %2678 = vst.msk [vmem:[#allocation2 + $0xa4] sm:$0xf] %vm1999_vm7, %v2495_v11  ;;  %v2255_v59 = vmul.f32 %v4950_v14, %v1568_v9  ;;  %v5048_v53 = vld [vmem:[#allocation2 + $0x98] sm:$0xf0]  ;;  %v2499_v2 = vor.u32 %v2498_v7, %v2494_v3  ;;  %v1057_v27 = vand.u32 15, %v889_v4  ;;  %v1064_v11 = vand.u32 15, %v890_v60 }
 0x1f4   : > { %v823_v0 = vmax.f32 %v775_v8, 0.0  ;;  %2177 = vst.msk [vmem:[#allocation2 + $0x40] sm:$0xf] %vm2170_vm5, %v2087_v1  ;;  %v5051_v41 = vor.u32 %v5596_v58, %v5048_v53  ;;  %v1856_v45 = vsel %vm6214_vm3, %v1848_v13, %v1855_v15  ;;  %v1664_v46 = vpack.c.bf16 %v1632_v33, %v1632_v33 }
 0x1f5   : > { %v2287_v43 = vpack.c.bf16 %v2255_v59, %v2255_v59  ;;  %2024 = vst.msk [vmem:[#allocation2 + $0xa8] sm:$0xf] %vm1999_vm7, %v1856_v45  ;;  %v2500_v12 = vrot.slane %v2499_v2, 4  ;;  %vm6673_vm1 = vcmp.ne.s32.totalorder %v1057_v27, 0  ;;  %v1857_v58 = vrot.slane %v6641_v56, 4 }
 0x1f6   : > { %v855_v23 = vpack.c.bf16 %v823_v0, %v823_v0  ;;  %5164 = vmatmul.msk.bf16.gmra.mxu3 %vm2994_vm2, %v5051_v41  ;;  %5237 = vmatmul.msk.bf16.gmra.mxu0 %vm2994_vm2, %v5051_v41  ;;  %v1859_v22 = vshrl.u32 %v1664_v46, 16  ;;  %v1862_v14 = vshll.u32 %v1664_v46, 16  ;;  %v691_v53 = vadd.f32 %v6494_v54, %v6104_v16 }
 0x1f7   : > { %v2502_v61 = vshll.u32 %v2287_v43, 16  ;;  %v2506_v62 = vshrl.u32 %v2287_v43, 16  ;;  %3061 = vmatmul.bf16.gmra.mxu2 %v6657_v48  ;;  %v4951_v41 = vsel %vm6673_vm1, 1.0, %v5862_v6  ;;  %vm6691_vm4 = vcmp.ne.s32.totalorder %v1064_v11, 15 }
 0x1f8   : > { %2116 = vrot.lane.b32.xlu0 %v855_v23, %s5863_s12  ;;  %v1569_v39 = vunpack.c.l.bf16 %v855_v23  ;;  %3817 = vmatmul.bf16.gmra.mxu1 %v5279_v40  ;;  %v6670_v3 = vrot.slane %v1859_v22, 7  ;;  %v6696_v16 = vadd.s32 192, %v6151_v51 }
 0x1f9   : > { %v777_v49 = vpop.f32.mrf.mxu1  ;;  %v2504_v7 = vrot.slane %v2502_v61, 5  ;;  %v2508_v50 = vrot.slane %v2506_v62, 4 }
 0x1fa   : > { %v778_v9 = vadd.f32 %v777_v49, %v689_v57  ;;  %v2089_v8 = vpop.permute.xlu1 %2088  ;;  %v1633_v10 = vmul.f32 %v4934_v26, %v1569_v39  ;;  %v2256_v13 = vmul.f32 %v6160_v5, %v1569_v39  ;;  %v1864_v32 = vor.u32 %v1862_v14, %v6670_v3  ;;  %v5598_v26 = vld [vmem:[#allocation2 + $0xa4] sm:$0xf] }
 0x1fb   : > { %2178 = vst.msk [vmem:[#allocation2 + $0x48] sm:$0xf] %vm2170_vm5, %v2089_v8  ;;  %v2505_v4 = vsel %vm6196_vm0, %v2500_v12, %v2504_v7  ;;  %v2509_v33 = vor.u32 %v2508_v50, %v2504_v7  ;;  %v5006_v49 = vld [vmem:[#allocation2 + $0x40] sm:$0xf]  ;;  %v1866_v15 = vrot.slane %v6670_v3, 4  ;;  %v4935_v3 = vsel %vm6691_vm4, 1.0, %v5862_v6 }
 0x1fc   : > { %2679 = vst.msk [vmem:[#allocation2 + $0xac] sm:$0xf] %vm1999_vm7, %v2505_v4  ;;  %v1665_v59 = vpack.c.bf16 %v1633_v10, %v1633_v10  ;;  %v2288_v0 = vpack.c.bf16 %v2256_v13, %v2256_v13  ;;  %v824_v1 = vmax.f32 %v778_v9, 0.0  ;;  %v1865_v2 = vsel %vm6214_vm3, %v1857_v58, %v1864_v32  ;;  %v5286_v7 = vld [vmem:[#allocation2 + $0x40] sm:$0xf] }
 0x1fd   : > { %2025 = vst.msk [vmem:[#allocation2 + $0xb0] sm:$0xf] %vm1999_vm7, %v1865_v2  ;;  %v2510_v45 = vrot.slane %v2509_v33, 4  ;;  %vm2037_vm4 = vcmask 516096  }
 0x1fe   : > { %v1868_v35 = vshrl.u32 %v1665_v59, 16  ;;  %v2512_v18 = vshll.u32 %v2288_v0, 16  ;;  %v2516_v56 = vshrl.u32 %v2288_v0, 16  ;;  %v856_v46 = vpack.c.bf16 %v824_v1, %v824_v1 }
 0x1ff   : > { %v1871_v21 = vshll.u32 %v1665_v59, 16  ;;  %v694_v0 = vadd.f32 %v6494_v54, %v6108_v20 }
 0x200   : > { %v6698_v23 = vrot.slane %v1868_v35, 7  ;;  %v2514_v57 = vrot.slane %v2512_v18, 5  ;;  %v2518_v40 = vrot.slane %v2516_v56, 4  ;;  %v1570_v60 = vunpack.c.l.bf16 %v856_v46  ;;  %2118 = vrot.lane.b32.xlu1 %v856_v46, %s5863_s12 }
 0x201   : > { %v779_v27 = vpop.f32.mrf.mxu1 }
 0x202   : > { %v780_v22 = vadd.f32 %v779_v27, %v691_v53  ;;  %v2097_v61 = vpop.permute.xlu2 %2096  ;;  %v5587_v62 = vld [vmem:[#allocation2 + $0x44] sm:$0xf0]  ;;  %v1873_v14 = vor.u32 %v1871_v21, %v6698_v23  ;;  %v2515_v39 = vsel %vm6196_vm0, %v2510_v45, %v2514_v57  ;;  %v1634_v50 = vmul.f32 %v6160_v5, %v1570_v60 }
 0x203   : > { %v5641_v12 = vld [vmem:[#allocation2 + $0x44] sm:$0xf0]  ;;  %2182 = vst.msk [vmem:[#allocation2 + $0x68] sm:$0xf] %vm2170_vm5, %v2097_v61  ;;  %v2257_v9 = vmul.f32 %v4951_v41, %v1570_v60  ;;  %v6707_v10 = vor.u32 %v5587_v62, %v5006_v49  ;;  %v5056_v13 = vld [vmem:[#allocation2 + $0xa8] sm:$0xf0]  ;;  %v2519_v11 = vor.u32 %v2518_v40, %v2514_v57 }
 0x204   : > { %2680 = vst.msk [vmem:[#allocation2 + $0xb4] sm:$0xf] %vm1999_vm7, %v2515_v39  ;;  %v825_v8 = vmax.f32 %v780_v22, 0.0  ;;  %v5059_v58 = vor.u32 %v5598_v26, %v5056_v13  ;;  %v5287_v32 = vor.u32 %v5641_v12, %v5286_v7  ;;  %v1666_v4 = vpack.c.bf16 %v1634_v50, %v1634_v50 }
 0x205   : > { %v2289_v33 = vpack.c.bf16 %v2257_v9, %v2257_v9  ;;  %v1874_v1 = vsel %vm6214_vm3, %v1866_v15, %v1873_v14  ;;  %v2520_v20 = vrot.slane %v2519_v11, 4  ;;  %v1071_v45 = vand.u32 15, %v6696_v16 }
 0x206   : > { %v857_v59 = vpack.c.bf16 %v825_v8, %v825_v8  ;;  %5165 = vmatmul.msk.bf16.gmra.mxu3 %vm2994_vm2, %v5059_v58  ;;  %5238 = vmatmul.msk.bf16.gmra.mxu0 %vm2994_vm2, %v5059_v58  ;;  %v1877_v53 = vshrl.u32 %v1666_v4, 16  ;;  %2026 = vst.msk [vmem:[#allocation2 + $0xb8] sm:$0xf] %vm1999_vm7, %v1874_v1  ;;  %v1880_v18 = vshll.u32 %v1666_v4, 16  ;;  %v892_v22 = vadd.s32 200, %v6151_v51  ;;  %v6739_v58 = vpop.f32.mrf.mxu0 }
 0x207   : > { %v2522_v2 = vshll.u32 %v2289_v33, 16  ;;  %v2526_v35 = vshrl.u32 %v2289_v33, 16  ;;  %3066 = vmatmul.bf16.gmra.mxu2 %v6707_v10  ;;  %v1875_v61 = vrot.slane %v6698_v23, 4  ;;  %vm1435_vm6 = vcmp.ne.s32.totalorder %v1071_v45, 0 }
 0x208   : > { %2120 = vrot.lane.b32.xlu2 %v857_v59, %s5863_s12  ;;  %v1571_v56 = vunpack.c.l.bf16 %v857_v59  ;;  %3822 = vmatmul.bf16.gmra.mxu1 %v5287_v32  ;;  %v6723_v46 = vrot.slane %v1877_v53, 7  ;;  %v1078_v8 = vand.u32 15, %v892_v22  ;;  %v696_v23 = vadd.f32 %v6494_v54, %v6112_v24 }
 0x209   : > { %v782_v41 = vpop.f32.mrf.mxu1  ;;  %v2524_v21 = vrot.slane %v2522_v2, 5  ;;  %v2528_v57 = vrot.slane %v2526_v35, 4  ;;  %v4952_v11 = vsel %vm1435_vm6, 1.0, %v5862_v6  ;;  %v5014_v2 = vld [vmem:[#allocation2 + $0x50] sm:$0xf]  ;;  %v893_v45 = vadd.s32 208, %v6151_v51  ;;  %vm6946_vm6 = vmand %vm2037_vm4, %vm1676_vm14 }
 0x20a   : > { %v783_v40 = vadd.f32 %v782_v41, %v694_v0  ;;  %v2093_v43 = vpop.permute.xlu0 %2092  ;;  %v1635_v27 = vmul.f32 %v4935_v3, %v1571_v56  ;;  %v2258_v60 = vmul.f32 %v6160_v5, %v1571_v56  ;;  %v1882_v62 = vor.u32 %v1880_v18, %v6723_v46  ;;  %v5294_v41 = vld [vmem:[#allocation2 + $0x50] sm:$0xf]  ;;  %vm6958_vm14 = vmand %vm1999_vm7, %vm2299_vm11 }
 0x20b   : > { %2180 = vst.msk [vmem:[#allocation2 + $0x58] sm:$0xf] %vm2170_vm5, %v2093_v43  ;;  %v2525_v16 = vsel %vm6196_vm0, %v2520_v20, %v2524_v21  ;;  %v2529_v26 = vor.u32 %v2528_v57, %v2524_v21  ;;  %vm6747_vm8 = vcmp.ne.s32.totalorder %v1078_v8, 15  ;;  %v5600_v56 = vld [vmem:[#allocation2 + $0xb4] sm:$0xf]  ;;  %v1884_v22 = vrot.slane %v6723_v46, 4 }
 0x20c   : > { %2681 = vst.msk [vmem:[#allocation2 + $0xbc] sm:$0xf] %vm1999_vm7, %v2525_v16  ;;  %v1667_v12 = vpack.c.bf16 %v1635_v27, %v1635_v27  ;;  %v2290_v14 = vpack.c.bf16 %v2258_v60, %v2258_v60  ;;  %v826_v39 = vmax.f32 %v783_v40, 0.0  ;;  %v1883_v49 = vsel %vm6214_vm3, %v1875_v61, %v1882_v62 }
 0x20d   : > { %2027 = vst.msk [vmem:[#allocation2 + $0xc0] sm:$0xf] %vm1999_vm7, %v1883_v49  ;;  %v2530_v13 = vrot.slane %v2529_v26, 4 }
 0x20e   : > { %v1886_v7 = vshrl.u32 %v1667_v12, 16  ;;  %v2532_v50 = vshll.u32 %v2290_v14, 16  ;;  %v2536_v9 = vshrl.u32 %v2290_v14, 16  ;;  %v858_v15 = vpack.c.bf16 %v826_v39, %v826_v39 }
 0x20f   : > { %v1889_v4 = vshll.u32 %v1667_v12, 16  ;;  %v699_v39 = vadd.f32 %v6494_v54, %v6116_v28 }
 0x210   : > { %v6741_v32 = vrot.slane %v1886_v7, 7  ;;  %v2534_v33 = vrot.slane %v2532_v50, 5  ;;  %v2538_v59 = vrot.slane %v2536_v9, 4  ;;  %v1572_v1 = vunpack.c.l.bf16 %v858_v15  ;;  %2122 = vrot.lane.b32.xlu0 %v858_v15, %s5863_s12 }
 0x211   : > { %v784_v0 = vpop.f32.mrf.mxu1  ;;  %v4936_v9 = vsel %vm6747_vm8, 1.0, %v5862_v6  ;;  %v1085_v15 = vand.u32 15, %v893_v45 }
 0x212   : > { %v785_v53 = vadd.f32 %v784_v0, %v696_v23  ;;  %v5589_v35 = vld [vmem:[#allocation2 + $0x54] sm:$0xf0]  ;;  %v1891_v24 = vor.u32 %v1889_v4, %v6741_v32  ;;  %v2535_v20 = vsel %vm6196_vm0, %v2530_v13, %v2534_v33  ;;  %v1636_v21 = vmul.f32 %v6160_v5, %v1572_v1  ;;  %v2095_v43 = vpop.permute.xlu1 %2094  ;;  %v6770_v0 = vpop.f32.mrf.mxu0 }
 0x213   : > { %v5643_v3 = vld [vmem:[#allocation2 + $0x54] sm:$0xf0]  ;;  %2682 = vst.msk [vmem:[#allocation2 + $0xc4] sm:$0xf] %vm1999_vm7, %v2535_v20  ;;  %v2259_v57 = vmul.f32 %v4952_v11, %v1572_v1  ;;  %v6754_v27 = vor.u32 %v5589_v35, %v5014_v2  ;;  %v5064_v60 = vld [vmem:[#allocation2 + $0xb8] sm:$0xf0]  ;;  %v2539_v61 = vor.u32 %v2538_v59, %v2534_v33 }
 0x214   : > { %v827_v40 = vmax.f32 %v785_v53, 0.0  ;;  %2181 = vst.msk [vmem:[#allocation2 + $0x60] sm:$0xf] %vm2170_vm5, %v2095_v43  ;;  %v5067_v62 = vor.u32 %v5600_v56, %v5064_v60  ;;  %v5295_v16 = vor.u32 %v5643_v3, %v5294_v41  ;;  %v1668_v26 = vpack.c.bf16 %v1636_v21, %v1636_v21 }
 0x215   : > { %v2291_v12 = vpack.c.bf16 %v2259_v57, %v2259_v57  ;;  %v1892_v49 = vsel %vm6214_vm3, %v1884_v22, %v1891_v24  ;;  %v2540_v28 = vrot.slane %v2539_v61, 4  ;;  %v894_v2 = vadd.s32 216, %v6151_v51 }
 0x216   : > { %v859_v14 = vpack.c.bf16 %v827_v40, %v827_v40  ;;  %5166 = vmatmul.msk.bf16.gmra.mxu3 %vm2994_vm2, %v5067_v62  ;;  %5239 = vmatmul.msk.bf16.gmra.mxu0 %vm2994_vm2, %v5067_v62  ;;  %v1895_v7 = vshrl.u32 %v1668_v26, 16  ;;  %2028 = vst.msk [vmem:[#allocation2 + $0xc8] sm:$0xf] %vm1999_vm7, %v1892_v49  ;;  %v1898_v8 = vshll.u32 %v1668_v26, 16  ;;  %v1893_v35 = vrot.slane %v6741_v32, 4 }
 0x217   : > { %v2542_v46 = vshll.u32 %v2291_v12, 16  ;;  %v2546_v50 = vshrl.u32 %v2291_v12, 16  ;;  %3071 = vmatmul.bf16.gmra.mxu2 %v6754_v27  ;;  %vm1437_vm9 = vcmp.ne.s32.totalorder %v1085_v15, 0  ;;  %v1092_v43 = vand.u32 15, %v894_v2  ;;  %v5591_v2 = vld [vmem:[#allocation2 + $0x64] sm:$0xf0] }
 0x218   : > { %2124 = vrot.lane.b32.xlu1 %v859_v14, %s5863_s12  ;;  %v1573_v23 = vunpack.c.l.bf16 %v859_v14  ;;  %3827 = vmatmul.bf16.gmra.mxu1 %v5295_v16  ;;  %v1897_v11 = vrot.slane %v1895_v7, 7  ;;  %v701_v60 = vadd.f32 %v6494_v54, %v6118_v29  ;;  %v4953_v62 = vsel %vm1437_vm9, 1.0, %v5862_v6 }
 0x219   : > { %v787_v13 = vpop.f32.mrf.mxu1  ;;  %v2544_v4 = vrot.slane %v2542_v46, 5  ;;  %v2548_v33 = vrot.slane %v2546_v50, 4  ;;  %vm6791_vm10 = vcmp.ne.s32.totalorder %v1092_v43, 15 }
 0x21a   : > { %v788_v59 = vadd.f32 %v787_v13, %v699_v39  ;;  %v1637_v1 = vmul.f32 %v4936_v9, %v1573_v23  ;;  %v2260_v53 = vmul.f32 %v6160_v5, %v1573_v23  ;;  %v1900_v3 = vor.u32 %v1898_v8, %v1897_v11  ;;  %v2103_v18 = vpop.permute.xlu2 %2102  ;;  %v5602_v46 = vld [vmem:[#allocation2 + $0xc4] sm:$0xf] }
 0x21b   : > { %v2545_v24 = vsel %vm6196_vm0, %v2540_v28, %v2544_v4  ;;  %v2549_v20 = vor.u32 %v2548_v33, %v2544_v4  ;;  %2185 = vst.msk [vmem:[#allocation2 + $0x80] sm:$0xf] %vm2170_vm5, %v2103_v18  ;;  %v1902_v50 = vrot.slane %v1897_v11, 4  ;;  %v5022_v8 = vld [vmem:[#allocation2 + $0x60] sm:$0xf]  ;;  %v895_v11 = vadd.s32 224, %v6151_v51 }
 0x21c   : > { %2683 = vst.msk [vmem:[#allocation2 + $0xcc] sm:$0xf] %vm1999_vm7, %v2545_v24  ;;  %v1669_v56 = vpack.c.bf16 %v1637_v1, %v1637_v1  ;;  %v2292_v41 = vpack.c.bf16 %v2260_v53, %v2260_v53  ;;  %v828_v45 = vmax.f32 %v788_v59, 0.0  ;;  %v1901_v21 = vsel %vm6214_vm3, %v1893_v35, %v1900_v3  ;;  %v5302_v23 = vld [vmem:[#allocation2 + $0x60] sm:$0xf]  ;;  %v6798_v1 = vpop.f32.mrf.mxu0 }
 0x21d   : > { %2029 = vst.msk [vmem:[#allocation2 + $0xd0] sm:$0xf] %vm1999_vm7, %v1901_v21  ;;  %v2550_v22 = vrot.slane %v2549_v20, 4  ;;  %v4937_v21 = vsel %vm6791_vm10, 1.0, %v5862_v6 }
 0x21e   : > { %v1904_v57 = vshrl.u32 %v1669_v56, 16  ;;  %v2552_v40 = vshll.u32 %v2292_v41, 16  ;;  %v2556_v32 = vshrl.u32 %v2292_v41, 16  ;;  %v860_v61 = vpack.c.bf16 %v828_v45, %v828_v45  ;;  %v5645_v41 = vld [vmem:[#allocation2 + $0x64] sm:$0xf0] }
 0x21f   : > { %v1907_v26 = vshll.u32 %v1669_v56, 16  ;;  %v6803_v56 = vor.u32 %v5591_v2, %v5022_v8  ;;  %v704_v45 = vadd.f32 %v6494_v54, %v6122_v34 }
 0x220   : > { %v6785_v16 = vrot.slane %v1904_v57, 7  ;;  %v2554_v12 = vrot.slane %v2552_v40, 5  ;;  %v2558_v14 = vrot.slane %v2556_v32, 4  ;;  %v1574_v49 = vunpack.c.l.bf16 %v860_v61  ;;  %2126 = vrot.lane.b32.xlu2 %v860_v61, %s5863_s12 }
 0x221   : > { %v789_v39 = vpop.f32.mrf.mxu1  ;;  %v5303_v57 = vor.u32 %v5645_v41, %v5302_v23 }
 0x222   : > { %v790_v7 = vadd.f32 %v789_v39, %v701_v60  ;;  %v1909_v9 = vor.u32 %v1907_v26, %v6785_v16  ;;  %v2555_v29 = vsel %vm6196_vm0, %v2550_v22, %v2554_v12  ;;  %v1638_v13 = vmul.f32 %v6160_v5, %v1574_v49  ;;  %v2099_v33 = vpop.permute.xlu0 %2098 }
 0x223   : > { %2684 = vst.msk [vmem:[#allocation2 + $0xd4] sm:$0xf] %vm1999_vm7, %v2555_v29  ;;  %v2261_v15 = vmul.f32 %v4953_v62, %v1574_v49  ;;  %v5072_v59 = vld [vmem:[#allocation2 + $0xc8] sm:$0xf0]  ;;  %v2559_v53 = vor.u32 %v2558_v14, %v2554_v12  ;;  %v1099_v60 = vand.u32 15, %v895_v11  ;;  %v896_v62 = vadd.s32 232, %v6151_v51 }
 0x224   : > { %v829_v4 = vmax.f32 %v790_v7, 0.0  ;;  %2183 = vst.msk [vmem:[#allocation2 + $0x70] sm:$0xf] %vm2170_vm5, %v2099_v33  ;;  %v5075_v35 = vor.u32 %v5602_v46, %v5072_v59  ;;  %v1910_v3 = vsel %vm6214_vm3, %v1902_v50, %v1909_v9  ;;  %v1670_v24 = vpack.c.bf16 %v1638_v13, %v1638_v13  ;;  %v6827_v33 = vpop.f32.mrf.mxu0 }
 0x225   : > { %v2293_v20 = vpack.c.bf16 %v2261_v15, %v2261_v15  ;;  %2030 = vst.msk [vmem:[#allocation2 + $0xd8] sm:$0xf] %vm1999_vm7, %v1910_v3  ;;  %v2560_v22 = vrot.slane %v2559_v53, 4  ;;  %v1911_v50 = vrot.slane %v6785_v16, 4  ;;  %vm1439_vm12 = vcmp.ne.s32.totalorder %v1099_v60, 0 }
 0x226   : > { %v861_v18 = vpack.c.bf16 %v829_v4, %v829_v4  ;;  %5167 = vmatmul.msk.bf16.gmra.mxu3 %vm2994_vm2, %v5075_v35  ;;  %5240 = vmatmul.msk.bf16.gmra.mxu0 %vm2994_vm2, %v5075_v35  ;;  %v1913_v40 = vshrl.u32 %v1670_v24, 16  ;;  %v1916_v61 = vshll.u32 %v1670_v24, 16  ;;  %v1106_v15 = vand.u32 15, %v896_v62  ;;  %v6833_v53 = vld [vmem:[%s7771_s2] ss:$0 sm:$0xff] }
 0x227   : > { %v2562_v32 = vshll.u32 %v2293_v20, 16  ;;  %v2566_v43 = vshrl.u32 %v2293_v20, 16  ;;  %3076 = vmatmul.bf16.gmra.mxu2 %v6803_v56  ;;  %v706_v2 = vadd.f32 %v6833_v53, %v6124_v37  ;;  %v4954_v24 = vsel %vm1439_vm12, 1.0, %v5862_v6 }
 0x228   : > { %2128 = vrot.lane.b32.xlu0 %v861_v18, %s5863_s12  ;;  %v1575_v34 = vunpack.c.l.bf16 %v861_v18  ;;  %3832 = vmatmul.bf16.gmra.mxu1 %v5303_v57  ;;  %v6816_v26 = vrot.slane %v1913_v40, 7  ;;  %vm6842_vm13 = vcmp.ne.s32.totalorder %v1106_v15, 15  ;;  %v709_v15 = vadd.f32 %v6833_v53, %v6131_v42  ;;  %v5617_v42 = vld [vmem:[%s7772_s3 + $0x38] sm:$0xff] }
 0x229   : > { %v792_v54 = vpop.f32.mrf.mxu1  ;;  %v2564_v12 = vrot.slane %v2562_v32, 5  ;;  %v2568_v14 = vrot.slane %v2566_v43, 4  ;;  %3305 = vmatpush.bf16.msrb.mxu3 %v5617_v42  ;;  %v5616_v43 = vld [vmem:[%s7772_s3 + $0x30] sm:$0xff] }
 0x22a   : > { %v793_v39 = vadd.f32 %v792_v54, %v704_v45  ;;  %v2101_v49 = vpop.permute.xlu1 %2100  ;;  %v1639_v7 = vmul.f32 %v4937_v21, %v1575_v34  ;;  %v2262_v46 = vmul.f32 %v6160_v5, %v1575_v34  ;;  %v1918_v9 = vor.u32 %v1916_v61, %v6816_v26 }
 0x22b   : > { %2184 = vst.msk [vmem:[#allocation2 + $0x78] sm:$0xf] %vm2170_vm5, %v2101_v49  ;;  %v2565_v29 = vsel %vm6196_vm0, %v2560_v22, %v2564_v12  ;;  %v2569_v28 = vor.u32 %v2568_v14, %v2564_v12  ;;  %v1920_v57 = vrot.slane %v6816_v26, 4  ;;  %v5604_v22 = vld [vmem:[#allocation2 + $0xd4] sm:$0xf] }
 0x22c   : > { %2685 = vst.msk [vmem:[#allocation2 + $0xdc] sm:$0xf] %vm1999_vm7, %v2565_v29  ;;  %v1671_v8 = vpack.c.bf16 %v1639_v7, %v1639_v7  ;;  %v2294_v23 = vpack.c.bf16 %v2262_v46, %v2262_v46  ;;  %v830_v13 = vmax.f32 %v793_v39, 0.0  ;;  %v1919_v4 = vsel %vm6214_vm3, %v1911_v50, %v1918_v9  ;;  %v5030_v62 = vld [vmem:[#allocation2 + $0x70] sm:$0xf] }
 0x22d   : > { %2031 = vst.msk [vmem:[#allocation2 + $0xe0] sm:$0xf] %vm1999_vm7, %v1919_v4  ;;  %v2570_v35 = vrot.slane %v2569_v28, 4  ;;  %v5310_v26 = vld [vmem:[#allocation2 + $0x70] sm:$0xf]  ;;  %v897_v29 = vadd.s32 240, %v6151_v51  ;;  %3306 = vmatpush.bf16.msrb.mxu3 %v5616_v43 }
 0x22e   : > { %v1922_v59 = vshrl.u32 %v1671_v8, 16  ;;  %v2572_v16 = vshll.u32 %v2294_v23, 16  ;;  %v2576_v11 = vshrl.u32 %v2294_v23, 16  ;;  %v862_v3 = vpack.c.bf16 %v830_v13, %v830_v13 }
 0x22f   : > { %v1925_v18 = vshll.u32 %v1671_v8, 16 }
 0x230   : > { %v6838_v20 = vrot.slane %v1922_v59, 7  ;;  %v2574_v41 = vrot.slane %v2572_v16, 5  ;;  %v2578_v45 = vrot.slane %v2576_v11, 4  ;;  %v1576_v40 = vunpack.c.l.bf16 %v862_v3  ;;  %2130 = vrot.lane.b32.xlu1 %v862_v3, %s5863_s12 }
 0x231   : > { %v794_v21 = vpop.f32.mrf.mxu1  ;;  %v4938_v11 = vsel %vm6842_vm13, 1.0, %v5862_v6 }
 0x232   : > { %v795_v32 = vadd.f32 %v794_v21, %v706_v2  ;;  %v2109_v37 = vpop.permute.xlu2 %2108  ;;  %v5593_v60 = vld [vmem:[#allocation2 + $0x74] sm:$0xf0]  ;;  %v1927_v34 = vor.u32 %v1925_v18, %v6838_v20  ;;  %v2575_v54 = vsel %vm6196_vm0, %v2570_v35, %v2574_v41  ;;  %v1640_v12 = vmul.f32 %v6160_v5, %v1576_v40  ;;  %v6870_v2 = vpop.f32.mrf.mxu0 }
 0x233   : > { %v5647_v61 = vld [vmem:[#allocation2 + $0x74] sm:$0xf0]  ;;  %2188 = vst.msk [vmem:[#allocation2 + $0x98] sm:$0xf] %vm2170_vm5, %v2109_v37  ;;  %v2263_v14 = vmul.f32 %v4954_v24, %v1576_v40  ;;  %v6852_v49 = vor.u32 %v5593_v60, %v5030_v62  ;;  %v5080_v7 = vld [vmem:[#allocation2 + $0xd8] sm:$0xf0]  ;;  %v2579_v46 = vor.u32 %v2578_v45, %v2574_v41 }
 0x234   : > { %2686 = vst.msk [vmem:[#allocation2 + $0xe4] sm:$0xf] %vm1999_vm7, %v2575_v54  ;;  %v831_v39 = vmax.f32 %v795_v32, 0.0  ;;  %v5083_v50 = vor.u32 %v5604_v22, %v5080_v7  ;;  %v5311_v9 = vor.u32 %v5647_v61, %v5310_v26  ;;  %v1672_v28 = vpack.c.bf16 %v1640_v12, %v1640_v12 }
 0x235   : > { %v2295_v8 = vpack.c.bf16 %v2263_v14, %v2263_v14  ;;  %v1928_v13 = vsel %vm6214_vm3, %v1920_v57, %v1927_v34  ;;  %v2580_v35 = vrot.slane %v2579_v46, 4  ;;  %v1113_v41 = vand.u32 15, %v897_v29 }
 0x236   : > { %v863_v23 = vpack.c.bf16 %v831_v39, %v831_v39  ;;  %5168 = vmatmul.msk.bf16.gmra.mxu3 %vm2994_vm2, %v5083_v50  ;;  %5241 = vmatmul.msk.bf16.gmra.mxu0 %vm2994_vm2, %v5083_v50  ;;  %2032 = vst.msk [vmem:[#allocation2 + $0xe8] sm:$0xf] %vm1999_vm7, %v1928_v13  ;;  %v1931_v4 = vshrl.u32 %v1672_v28, 16  ;;  %v1934_v3 = vshll.u32 %v1672_v28, 16  ;;  %v898_v22 = vadd.s32 248, %v6151_v51  ;;  %v5615_v39 = vld [vmem:[%s7772_s3 + $0x28] sm:$0xff] }
 0x237   : > { %v2582_v59 = vshll.u32 %v2295_v8, 16  ;;  %v2586_v16 = vshrl.u32 %v2295_v8, 16  ;;  %3081 = vmatmul.bf16.gmra.mxu2 %v6852_v49  ;;  %v1929_v61 = vrot.slane %v6838_v20, 4  ;;  %vm1441_vm15 = vcmp.ne.s32.totalorder %v1113_v41, 0  ;;  %3307 = vmatpush.bf16.msrb.mxu3 %v5615_v39 }
 0x238   : > { %2132 = vrot.lane.b32.xlu2 %v863_v23, %s5863_s12  ;;  %v1577_v24 = vunpack.c.l.bf16 %v863_v23  ;;  %3837 = vmatmul.bf16.gmra.mxu1 %v5311_v9  ;;  %v6872_v45 = vrot.slane %v1931_v4, 7  ;;  %v1120_v50 = vand.u32 15, %v898_v22  ;;  %v711_v9 = vadd.f32 %v6833_v53, %v6139_v47  ;;  %v5614_v47 = vld [vmem:[%s7772_s3 + $0x20] sm:$0xff] }
 0x239   : > { %v797_v18 = vpop.f32.mrf.mxu1  ;;  %v2584_v21 = vrot.slane %v2582_v59, 5  ;;  %v2588_v57 = vrot.slane %v2586_v16, 4  ;;  %v4955_v8 = vsel %vm1441_vm15, 1.0, %v5862_v6  ;;  %v5038_v16 = vld [vmem:[#allocation2 + $0x80] sm:$0xf] }
 0x23a   : > { %v798_v40 = vadd.f32 %v797_v18, %v709_v15  ;;  %v2105_v32 = vpop.permute.xlu0 %2104  ;;  %v1641_v37 = vmul.f32 %v4938_v11, %v1577_v24  ;;  %v2264_v60 = vmul.f32 %v6160_v5, %v1577_v24  ;;  %v1936_v34 = vor.u32 %v1934_v3, %v6872_v45  ;;  %v6900_v53 = vpop.f32.mrf.mxu0 }
 0x23b   : > { %2186 = vst.msk [vmem:[#allocation2 + $0x88] sm:$0xf] %vm2170_vm5, %v2105_v32  ;;  %v2585_v54 = vsel %vm6196_vm0, %v2580_v35, %v2584_v21  ;;  %v2589_v62 = vor.u32 %v2588_v57, %v2584_v21  ;;  %v1938_v24 = vrot.slane %v6872_v45, 4  ;;  %vm6906_vm1 = vcmp.ne.s32.totalorder %v1120_v50, 15  ;;  %v5606_v57 = vld [vmem:[#allocation2 + $0xe4] sm:$0xf]  ;;  %3308 = vmatpush.bf16.msrb.mxu3 %v5614_v47 }
 0x23c   : > { %2687 = vst.msk [vmem:[#allocation2 + $0xec] sm:$0xf] %vm1999_vm7, %v2585_v54  ;;  %v1673_v26 = vpack.c.bf16 %v1641_v37, %v1641_v37  ;;  %v2296_v12 = vpack.c.bf16 %v2264_v60, %v2264_v60  ;;  %v832_v14 = vmax.f32 %v798_v40, 0.0  ;;  %v1937_v51 = vsel %vm6214_vm3, %v1929_v61, %v1936_v34  ;;  %v5318_v40 = vld [vmem:[#allocation2 + $0x80] sm:$0xf] }
 0x23d   : > { %2033 = vst.msk [vmem:[#allocation2 + $0xf0] sm:$0xf] %vm1999_vm7, %v1937_v51  ;;  %v2590_v29 = vrot.slane %v2589_v62, 4 }
 0x23e   : > { %v1940_v20 = vshrl.u32 %v1673_v26, 16  ;;  %v2592_v7 = vshll.u32 %v2296_v12, 16  ;;  %v2596_v46 = vshrl.u32 %v2296_v12, 16  ;;  %v864_v28 = vpack.c.bf16 %v832_v14, %v832_v14 }
 0x23f   : > { %v1943_v13 = vshll.u32 %v1673_v26, 16 }
 0x240   : > { %v6894_v23 = vrot.slane %v1940_v20, 7  ;;  %v2594_v15 = vrot.slane %v2592_v7, 5  ;;  %v2598_v4 = vrot.slane %v2596_v46, 4  ;;  %v1578_v11 = vunpack.c.l.bf16 %v864_v28  ;;  %2134 = vrot.lane.b32.xlu0 %v864_v28, %s5863_s12  ;;  %v5613_v46 = vld [vmem:[%s7772_s3 + $0x18] sm:$0xff] }
 0x241   : > { %v799_v59 = vpop.f32.mrf.mxu1  ;;  %v4939_v7 = vsel %vm6906_vm1, 1.0, %v5862_v6  ;;  %3309 = vmatpush.bf16.msrb.mxu3 %v5613_v46  ;;  %v5612_v6 = vld [vmem:[%s7772_s3 + $0x10] sm:$0xff] }
 0x242   : > { %v800_v42 = vadd.f32 %v799_v59, %v711_v9  ;;  %v5595_v35 = vld [vmem:[#allocation2 + $0x84] sm:$0xf0]  ;;  %v1945_v18 = vor.u32 %v1943_v13, %v6894_v23  ;;  %v2595_v41 = vsel %vm6196_vm0, %v2590_v29, %v2594_v15  ;;  %v1642_v32 = vmul.f32 %v6160_v5, %v1578_v11  ;;  %v2107_v60 = vpop.permute.xlu1 %2106 }
 0x243   : > { %v5649_v3 = vld [vmem:[#allocation2 + $0x84] sm:$0xf0]  ;;  %2688 = vst.msk [vmem:[#allocation2 + $0xf4] sm:$0xf] %vm1999_vm7, %v2595_v41  ;;  %v2265_v43 = vmul.f32 %v4955_v8, %v1578_v11  ;;  %v6912_v22 = vor.u32 %v5595_v35, %v5038_v16  ;;  %v5088_v45 = vld [vmem:[#allocation2 + $0xe8] sm:$0xf0]  ;;  %v2599_v61 = vor.u32 %v2598_v4, %v2594_v15 }
 0x244   : > { %v833_v37 = vmax.f32 %v800_v42, 0.0  ;;  %2187 = vst.msk [vmem:[#allocation2 + $0x90] sm:$0xf] %vm2170_vm5, %v2107_v60  ;;  %v5091_v34 = vor.u32 %v5606_v57, %v5088_v45  ;;  %v5319_v54 = vor.u32 %v5649_v3, %v5318_v40  ;;  %v1946_v62 = vsel %vm6214_vm3, %v1938_v24, %v1945_v18  ;;  %v6935_v3 = vpop.f32.mrf.mxu0 }
 0x245   : > { %v1674_v26 = vpack.c.bf16 %v1642_v32, %v1642_v32  ;;  %v2297_v12 = vpack.c.bf16 %v2265_v43, %v2265_v43  ;;  %2034 = vst.msk [vmem:[#allocation2 + $0xf8] sm:$0xf] %vm1999_vm7, %v1946_v62  ;;  %v2600_v50 = vrot.slane %v2599_v61, 4  ;;  %v1947_v59 = vrot.slane %v6894_v23, 4  ;;  %3310 = vmatpush.bf16.msrb.mxu3 %v5612_v6  ;;  %v2039_v61 = vld [vmem:[#allocation2 + $0x110] sm:$0x1] }
 0x246   : > { %v865_v14 = vpack.c.bf16 %v833_v37, %v833_v37  ;;  %5169 = vmatmul.msk.bf16.gmra.mxu3 %vm2994_vm2, %v5091_v34  ;;  %5242 = vmatmul.msk.bf16.gmra.mxu0 %vm2994_vm2, %v5091_v34  ;;  %v2692_v34 = vld [vmem:[#allocation2 + $0x10c] sm:$0xf] }
 0x247   : > { %v1949_v39 = vshrl.u32 %v1674_v26, 16  ;;  %v2602_v51 = vshll.u32 %v2297_v12, 16  ;;  %v2606_v20 = vshrl.u32 %v2297_v12, 16  ;;  %3086 = vmatmul.bf16.gmra.mxu2 %v6912_v22  ;;  %v1952_v28 = vshll.u32 %v1674_v26, 16 }
 0x248   : > { %2136 = vrot.lane.b32.xlu1 %v865_v14, %s5863_s12  ;;  %v1579_v9 = vunpack.c.l.bf16 %v865_v14  ;;  %3842 = vmatmul.bf16.gmra.mxu1 %v5319_v54  ;;  %s7546_s12 = scalar_lea.vmem [#allocation6], %s4730_s10 }
 0x249   : > { %v1951_v29 = vrot.slane %v1949_v39, 7  ;;  %v2604_v8 = vrot.slane %v2602_v51, 5  ;;  %v2608_v13 = vrot.slane %v2606_v20, 4  ;;  %v5610_v51 = vld [vmem:[%s7772_s3] sm:$0xff] }
 0x24a   : > { %v1643_v15 = vmul.f32 %v4939_v7, %v1579_v9  ;;  %v2266_v4 = vmul.f32 %v6160_v5, %v1579_v9  ;;  %v2115_v35 = vpop.permute.xlu2 %2114  ;;  %v5611_v5 = vld [vmem:[%s7772_s3 + $0x8] sm:$0xff]  ;;  %v5608_v39 = vld [vmem:[#allocation2 + $0xf4] sm:$0xf] }
 0x24b   : > { %v1954_v16 = vor.u32 %v1952_v28, %v1951_v29  ;;  %v2605_v11 = vsel %vm6196_vm0, %v2600_v50, %v2604_v8  ;;  %v2609_v42 = vor.u32 %v2608_v13, %v2604_v8  ;;  %2191 = vst.msk [vmem:[#allocation2 + $0xb0] sm:$0xf] %vm2170_vm5, %v2115_v35  ;;  %v1956_v60 = vrot.slane %v1951_v29, 4  ;;  %3311 = vmatpush.bf16.msrb.mxu3 %v5611_v5  ;;  %v5046_v14 = vld [vmem:[#allocation2 + $0x90] sm:$0xf] }
 0x24c   : > { %2689 = vst.msk [vmem:[#allocation2 + $0xfc] sm:$0xf] %vm1999_vm7, %v2605_v11  ;;  %v1675_v47 = vpack.c.bf16 %v1643_v15, %v1643_v15  ;;  %v2298_v24 = vpack.c.bf16 %v2266_v4, %v2266_v4  ;;  %v5326_v50 = vld [vmem:[#allocation2 + $0x90] sm:$0xf]  ;;  %v5597_v29 = vld [vmem:[#allocation2 + $0x94] sm:$0xf0]  ;;  %v6969_v4 = vpop.f32.mrf.mxu0 }
 0x24d   : > { %v1955_v23 = vsel %vm6214_vm3, %v1947_v59, %v1954_v16  ;;  %v2610_v57 = vrot.slane %v2609_v42, 4  ;;  %v6967_v13 = vor.u32 %v5597_v29, %v5046_v14  ;;  %v5651_v15 = vld [vmem:[#allocation2 + $0x94] sm:$0xf0] }
 0x24e   : > { %v1958_v18 = vshrl.u32 %v1675_v47, 16  ;;  %v2612_v41 = vshll.u32 %v2298_v24, 16  ;;  %v2616_v21 = vshrl.u32 %v2298_v24, 16  ;;  %2035 = vst.msk [vmem:[#allocation2 + $0x100] sm:$0xf] %vm1999_vm7, %v1955_v23  ;;  %v1961_v32 = vshll.u32 %v1675_v47, 16 }
 0x24f   : > { %3312 = vmatpush.bf16.msrb.mxu3 %v5610_v51  ;;  %v5327_v59 = vor.u32 %v5651_v15, %v5326_v50 }
 0x250   : > { %v1960_v40 = vrot.slane %v1958_v18, 7  ;;  %v2614_v43 = vrot.slane %v2612_v41, 5  ;;  %v2618_v37 = vrot.slane %v2616_v21, 4 }
 0x252   : > { %v1963_v54 = vor.u32 %v1961_v32, %v1960_v40  ;;  %v1965_v62 = vrot.slane %v1960_v40, 4  ;;  %v2615_v26 = vsel %vm6196_vm0, %v2610_v57, %v2614_v43  ;;  %v2619_v12 = vor.u32 %v2618_v37, %v2614_v43  ;;  %v2111_v7 = vpop.permute.xlu0 %2110  ;;  %v5174_v37 = vld [vmem:[#allocation2] sm:$0xf] }
 0x253   : > { %2690 = vst.msk [vmem:[#allocation2 + $0x104] sm:$0xf] %vm1999_vm7, %v2615_v26  ;;  %v5096_v46 = vld [vmem:[#allocation2 + $0xf8] sm:$0xf0] }
 0x254   : > { %v2040_v17 = vsel %vm6946_vm6, %v1965_v62, %v2039_v61  ;;  %v2620_v9 = vrot.slane %v2619_v12, 4  ;;  %2189 = vst.msk [vmem:[#allocation2 + $0xa0] sm:$0xf] %vm2170_vm5, %v2111_v7  ;;  %v5099_v28 = vor.u32 %v5608_v39, %v5096_v46  ;;  %v1964_v8 = vsel %vm6214_vm3, %v1956_v60, %v1963_v54  ;;  %v5579_v60 = vld [vmem:[#allocation2 + $0x4] sm:$0xf0] }
 0x255   : > { %2041 = vst [vmem:[#allocation2 + $0x110] sm:$0x1] %v2040_v17  ;;  %v5062_v62 = vld [vmem:[#allocation2 + $0xb0] sm:$0xf]  ;;  %v5175_v26 = vor.u32 %v5579_v60, %v5174_v37 }
 0x256   : > { %v2693_v6 = vsel %vm6958_vm14, %v2620_v9, %v2692_v34  ;;  %5170 = vmatmul.msk.bf16.gmra.mxu3 %vm2994_vm2, %v5099_v28  ;;  %5243 = vmatmul.msk.bf16.gmra.mxu0 %vm2994_vm2, %v5099_v28  ;;  %2036 = vst.msk [vmem:[#allocation2 + $0x108] sm:$0xf] %vm1999_vm7, %v1964_v8  ;;  %v5342_v39 = vld [vmem:[#allocation2 + $0xb0] sm:$0xf] }
 0x257   : > { %2694 = vst [vmem:[#allocation2 + $0x10c] sm:$0xf] %v2693_v6  ;;  %3091 = vmatmul.bf16.gmra.mxu2 %v6967_v13 }
 0x258   : > { %3847 = vmatmul.bf16.gmra.mxu1 %v5327_v59  ;;  %v6977_v36 = vpop.f32.mrf.mxu2 }
 0x25a   : > { %v2113_v16 = vpop.permute.xlu1 %2112  ;;  %v5622_v18 = vld [vmem:[#allocation2 + $0x104] sm:$0xf] }
 0x25b   : > { %2190 = vst.msk [vmem:[#allocation2 + $0xa8] sm:$0xf] %vm2170_vm5, %v2113_v16  ;;  %v5054_v5 = vld [vmem:[#allocation2 + $0xa0] sm:$0xf] }
 0x25c   : > { %v5334_v41 = vld [vmem:[#allocation2 + $0xa0] sm:$0xf] }
 0x25e   : > { %v5104_v47 = vld [vmem:[#allocation2 + $0x108] sm:$0xf0] }
 0x25f   : > { %v5107_v21 = vor.u32 %v5622_v18, %v5104_v47 }
 0x260   : > { %v6980_v11 = vpop.f32.mrf.mxu2 }
 0x262   : > { %v2121_v42 = vpop.permute.xlu2 %2120  ;;  %v5599_v35 = vld [vmem:[#allocation2 + $0xa4] sm:$0xf0] }
 0x263   : > { %v5653_v24 = vld [vmem:[#allocation2 + $0xa4] sm:$0xf0]  ;;  %2194 = vst.msk [vmem:[#allocation2 + $0xc8] sm:$0xf] %vm2170_vm5, %v2121_v42  ;;  %v6983_v23 = vor.u32 %v5599_v35, %v5054_v5 }
 0x264   : > { %v5335_v57 = vor.u32 %v5653_v24, %v5334_v41 }
 0x265   : > { %v7021_v41 = vpop.f32.mrf.mxu1 }
 0x266   : > { %5171 = vmatmul.msk.bf16.gmra.mxu3 %vm2994_vm2, %v5107_v21 }
 0x267   : > { %3096 = vmatmul.bf16.gmra.mxu2 %v6983_v23 }
 0x268   : > { %3852 = vmatmul.bf16.gmra.mxu1 %v5335_v57 }
 0x269   : > { %v6987_v40 = vpop.f32.mrf.mxu3 }
 0x26a   : > { %v2117_v32 = vpop.permute.xlu0 %2116  ;;  %v6989_v43 = vpop.f32.mrf.mxu2  ;;  %v5603_v8 = vld [vmem:[#allocation2 + $0xc4] sm:$0xf0] }
 0x26b   : > { %2192 = vst.msk [vmem:[#allocation2 + $0xb8] sm:$0xf] %vm2170_vm5, %v2117_v32  ;;  %v5657_v6 = vld [vmem:[#allocation2 + $0xc4] sm:$0xf0] }
 0x271   : > { %v6992_v45 = vpop.f32.mrf.mxu3 }
 0x272   : > { %7825 = vst [vmem:[#allocation10_spill] sm:$0xff] %v6992_v45  ;;  %v5601_v61 = vld [vmem:[#allocation2 + $0xb4] sm:$0xf0]  ;;  %v6994_v54 = vpop.f32.mrf.mxu2  ;;  %v2119_v12 = vpop.permute.xlu1 %2118 }
 0x273   : > { %v5655_v34 = vld [vmem:[#allocation2 + $0xb4] sm:$0xf0]  ;;  %v6996_v14 = vor.u32 %v5601_v61, %v5062_v62  ;;  %2193 = vst.msk [vmem:[#allocation2 + $0xc0] sm:$0xf] %vm2170_vm5, %v2119_v12  ;;  %v7035_v62 = vpop.f32.mrf.mxu1 }
 0x274   : > { %v5343_v51 = vor.u32 %v5655_v34, %v5342_v39 }
 0x276   : > { %3313 = vmatmul.bf16.vlgmr.msrb.gmra.mxu3 %v5175_v26 }
 0x277   : > { %3101 = vmatmul.bf16.gmra.mxu2 %v6996_v14 }
 0x278   : > { %3857 = vmatmul.bf16.gmra.mxu1 %v5343_v51 }
 0x279   : > { %v7000_v20 = vpop.f32.mrf.mxu3 }
 0x27a   : > { %v7002_v7 = vpop.f32.mrf.mxu2  ;;  %v2127_v46 = vpop.permute.xlu2 %2126  ;;  %v5070_v9 = vld [vmem:[#allocation2 + $0xc0] sm:$0xf] }
 0x27b   : > { %2197 = vst.msk [vmem:[#allocation2 + $0xe0] sm:$0xf] %vm2170_vm5, %v2127_v46  ;;  %v5350_v28 = vld [vmem:[#allocation2 + $0xc0] sm:$0xf]  ;;  %v7010_v15 = vor.u32 %v5603_v8, %v5070_v9  ;;  %v7044_v8 = vpop.f32.mrf.mxu1 }
 0x27c   : > { %v5351_v59 = vor.u32 %v5657_v6, %v5350_v28 }
 0x281   : > { %v7005_v50 = vpop.f32.mrf.mxu3 }
 0x282   : > { %7826 = vst [vmem:[#allocation11_spill] sm:$0xff] %v7005_v50  ;;  %v7007_v17 = vpop.f32.mrf.mxu2  ;;  %v2123_v29 = vpop.permute.xlu0 %2122  ;;  %v5086_v46 = vld [vmem:[#allocation2 + $0xe0] sm:$0xf] }
 0x283   : > { %2195 = vst.msk [vmem:[#allocation2 + $0xd0] sm:$0xf] %vm2170_vm5, %v2123_v29  ;;  %v5366_v29 = vld [vmem:[#allocation2 + $0xe0] sm:$0xf] }
 0x286   : > { %3318 = vmatmul.bf16.gmra.mxu3 %v6569_v52 }
 0x287   : > { %3106 = vmatmul.bf16.gmra.mxu2 %v7010_v15 }
 0x288   : > { %3862 = vmatmul.bf16.gmra.mxu1 %v5351_v59 }
 0x289   : > { %v7014_v16 = vpop.f32.mrf.mxu3 }
 0x28a   : > { %v2125_v42 = vpop.permute.xlu1 %2124  ;;  %v7016_v35 = vpop.f32.mrf.mxu2  ;;  %v5078_v52 = vld [vmem:[#allocation2 + $0xd0] sm:$0xf] }
 0x28b   : > { %2196 = vst.msk [vmem:[#allocation2 + $0xd8] sm:$0xf] %vm2170_vm5, %v2125_v42  ;;  %v5358_v32 = vld [vmem:[#allocation2 + $0xd0] sm:$0xf]  ;;  %v7052_v42 = vpop.f32.mrf.mxu1 }
 0x291   : > { %v7019_v47 = vpop.f32.mrf.mxu3 }
 0x292   : > { %7827 = vst [vmem:[#allocation12_spill] sm:$0xff] %v7019_v47  ;;  %v2133_v24 = vpop.permute.xlu2 %2132  ;;  %v5605_v5 = vld [vmem:[#allocation2 + $0xd4] sm:$0xf0]  ;;  %v7023_v21 = vpop.f32.mrf.mxu2  ;;  %v5488_v47 = vld [vmem:[%s7774_s5 + $0x38] sm:$0xf0] }
 0x293   : > { %v5659_v18 = vld [vmem:[#allocation2 + $0xd4] sm:$0xf0]  ;;  %2200 = vst.msk [vmem:[#allocation2 + $0xf8] sm:$0xf] %vm2170_vm5, %v2133_v24  ;;  %v7026_v57 = vor.u32 %v5605_v5, %v5078_v52 }
 0x294   : > { %v5359_v37 = vor.u32 %v5659_v18, %v5358_v32 }
 0x296   : > { %3323 = vmatmul.bf16.gmra.mxu3 %v6616_v63 }
 0x297   : > { %3111 = vmatmul.bf16.gmra.mxu2 %v7026_v57 }
 0x298   : > { %3867 = vmatmul.bf16.gmra.mxu1 %v5359_v37 }
 0x299   : > { %v7030_v60 = vpop.f32.mrf.mxu3 }
 0x29a   : > { %v2129_v61 = vpop.permute.xlu0 %2128  ;;  %v7032_v34 = vpop.f32.mrf.mxu2  ;;  %v5609_v37 = vld [vmem:[#allocation2 + $0xf4] sm:$0xf0] }
 0x29b   : > { %7828 = vst [vmem:[#allocation13_spill] sm:$0xff] %v7032_v34  ;;  %v5296_v34 = vld [vmem:[#allocation2 + $0x58] sm:$0xf0] }
 0x29c   : > { %2198 = vst.msk [vmem:[#allocation2 + $0xe8] sm:$0xf] %vm2170_vm5, %v2129_v61  ;;  %v5663_v61 = vld [vmem:[#allocation2 + $0xf4] sm:$0xf0] }
 0x2a1   : > { %v7037_v26 = vpop.f32.mrf.mxu3 }
 0x2a2   : > { %7829 = vst [vmem:[#allocation14_spill] sm:$0xff] %v7037_v26  ;;  %v7039_v51 = vpop.f32.mrf.mxu2  ;;  %v2131_v63 = vpop.permute.xlu1 %2130 }
 0x2a3   : > { %v5607_v12 = vld [vmem:[#allocation2 + $0xe4] sm:$0xf0]  ;;  %7830 = vst [vmem:[#allocation15_spill] sm:$0xff] %v7039_v51  ;;  %v5472_v51 = vld [vmem:[%s7774_s5 + $0x18] sm:$0xf0] }
 0x2a4   : > { %v5661_v39 = vld [vmem:[#allocation2 + $0xe4] sm:$0xf0]  ;;  %v7041_v9 = vor.u32 %v5607_v12, %v5086_v46  ;;  %2199 = vst.msk [vmem:[#allocation2 + $0xf0] sm:$0xf] %vm2170_vm5, %v2131_v63 }
 0x2a5   : > { %v5367_v28 = vor.u32 %v5661_v39, %v5366_v29  ;;  %v5679_v39 = vld [vmem:[%s7772_s3 + $0x118] sm:$0xff]  ;;  %v7068_v29 = vpop.f32.mrf.mxu1 }
 0x2a6   : > { %3328 = vmatmul.bf16.gmra.mxu3 %v6657_v48  ;;  %3897 = vmatpush.bf16.msra.mxu2 %v5679_v39  ;;  %v5686_v39 = vld [vmem:[%s7774_s5 + $0x34] sm:$0xf] }
 0x2a7   : > { %3116 = vmatmul.bf16.gmra.mxu2 %v7041_v9 }
 0x2a8   : > { %3872 = vmatmul.bf16.gmra.mxu1 %v5367_v28 }
 0x2a9   : > { %v7048_v6 = vpop.f32.mrf.mxu3 }
 0x2aa   : > { %v7050_v59 = vpop.f32.mrf.mxu2 }
 0x2ab   : > { %7831 = vst [vmem:[#allocation16_spill] sm:$0xff] %v7050_v59  ;;  %v5094_v18 = vld [vmem:[#allocation2 + $0xf0] sm:$0xf]  ;;  %v5682_v59 = vld [vmem:[%s7774_s5 + $0x14] sm:$0xf] }
 0x2ac   : > { %v5374_v32 = vld [vmem:[#allocation2 + $0xf0] sm:$0xf]  ;;  %v7059_v48 = vor.u32 %v5609_v37, %v5094_v18  ;;  %v5687_v18 = vld [vmem:[%s7774_s5 + $0x34] sm:$0xf0] }
 0x2ad   : > { %v5375_v12 = vor.u32 %v5663_v61, %v5374_v32  ;;  %v7089_v50 = vpop.f32.mrf.mxu1 }
 0x2b1   : > { %v7054_v24 = vpop.f32.mrf.mxu3 }
 0x2b2   : > { %7832 = vst [vmem:[#allocation17_spill] sm:$0xff] %v7054_v24  ;;  %v7056_v5 = vpop.f32.mrf.mxu2  ;;  %v2135_v52 = vpop.permute.xlu0 %2134 }
 0x2b3   : > { %7833 = vst [vmem:[#allocation18_spill] sm:$0xff] %v7056_v5 }
 0x2b4   : > { %2201 = vst.msk [vmem:[#allocation2 + $0x100] sm:$0xf] %vm2170_vm5, %v2135_v52 }
 0x2b6   : > { %3333 = vmatmul.bf16.gmra.mxu3 %v6707_v10  ;;  %v5486_v10 = vld [vmem:[%s7774_s5 + $0x30] sm:$0xf] }
 0x2b7   : > { %3121 = vmatmul.bf16.gmra.mxu2 %v7059_v48  ;;  %v5487_v52 = vor.u32 %v5687_v18, %v5486_v10  ;;  %v5491_v18 = vor.u32 %v5686_v39, %v5488_v47  ;;  %v5678_v47 = vld [vmem:[%s7772_s3 + $0x110] sm:$0xff] }
 0x2b8   : > { %3877 = vmatmul.bf16.gmra.mxu1 %v5375_v12  ;;  %3898 = vmatpush.bf16.msra.mxu2 %v5678_v47  ;;  %v5478_v47 = vld [vmem:[%s7774_s5 + $0x20] sm:$0xf] }
 0x2b9   : > { %v7066_v46 = vpop.f32.mrf.mxu3  ;;  %4204 = vmatpush.bf16.msra.mxu3 %v5487_v52  ;;  %4293 = vmatpush.bf16.msra.mxu0 %v5491_v18 }
 0x2ba   : > { %v2137_v63 = vpop.permute.xlu1 %2136  ;;  %v7070_v28 = vpop.f32.mrf.mxu2 }
 0x2bb   : > { %7834 = vst [vmem:[#allocation19_spill] sm:$0xff] %v7070_v28  ;;  %v5102_v24 = vld [vmem:[#allocation2 + $0x100] sm:$0xf]  ;;  %v5667_v28 = vld [vmem:[#allocation2 + $0x114] sm:$0xf0] }
 0x2bc   : > { %2202 = vst.msk [vmem:[#allocation2 + $0x108] sm:$0xf] %vm2170_vm5, %v2137_v63  ;;  %v5382_v63 = vld [vmem:[#allocation2 + $0x100] sm:$0xf] }
 0x2c1   : > { %v7079_v32 = vpop.f32.mrf.mxu3 }
 0x2c2   : > { %7835 = vst [vmem:[#allocation20_spill] sm:$0xff] %v7079_v32  ;;  %v7081_v12 = vpop.f32.mrf.mxu2 }
 0x2c3   : > { %v5623_v37 = vld [vmem:[#allocation2 + $0x104] sm:$0xf0]  ;;  %7836 = vst [vmem:[#allocation21_spill] sm:$0xff] %v7081_v12  ;;  %v5390_v12 = vld [vmem:[#allocation2 + $0x110] sm:$0xf] }
 0x2c4   : > { %v5665_v61 = vld [vmem:[#allocation2 + $0x104] sm:$0xf0]  ;;  %v5103_v26 = vor.u32 %v5623_v37, %v5102_v24  ;;  %v7096_v37 = vpop.f32.mrf.mxu1 }
 0x2c5   : > { %v5383_v10 = vor.u32 %v5665_v61, %v5382_v63 }
 0x2c6   : > { %3338 = vmatmul.bf16.gmra.mxu3 %v6754_v27  ;;  %v5391_v27 = vor.u32 %v5667_v28, %v5390_v12 }
 0x2c7   : > { %3126 = vmatmul.bf16.gmra.mxu2 %v5103_v26 }
 0x2c8   : > { %3882 = vmatmul.bf16.gmra.mxu1 %v5383_v10 }
 0x2c9   : > { %v7092_v52 = vpop.f32.mrf.mxu3 }
 0x2ca   : > { %v7094_v24 = vpop.f32.mrf.mxu2 }
 0x2cc   : > { %v7108_v26 = vpop.f32.mrf.mxu1 }
 0x2cd   : > { %7839 = vst [vmem:[#allocation24_spill] sm:$0xff] %v7108_v26 }
 0x2d1   : > { %v7098_v32 = vpop.f32.mrf.mxu3 }
 0x2d2   : > { %7837 = vst [vmem:[#allocation22_spill] sm:$0xff] %v7098_v32  ;;  %v7100_v45 = vpop.f32.mrf.mxu2 }
 0x2d3   : > { %7838 = vst [vmem:[#allocation23_spill] sm:$0xff] %v7100_v45  ;;  %v5272_v45 = vld [vmem:[#allocation2 + $0x28] sm:$0xf0] }
 0x2d6   : > { %3343 = vmatmul.bf16.gmra.mxu3 %v6803_v56 }
 0x2d7   : > { %5156 = vmatmul.msk.bf16.vlgmr.msrb.gmra.mxu2 %vm2994_vm2, %v6266_v19  ;;  %v5677_v19 = vld [vmem:[%s7772_s3 + $0x108] sm:$0xff] }
 0x2d8   : > { %3887 = vmatmul.bf16.gmra.mxu1 %v5391_v27  ;;  %3899 = vmatpush.bf16.msra.mxu2 %v5677_v19  ;;  %v5685_v27 = vld [vmem:[%s7774_s5 + $0x24] sm:$0xf0] }
 0x2d9   : > { %v7110_v61 = vpop.f32.mrf.mxu3  ;;  %v5479_v19 = vor.u32 %v5685_v27, %v5478_v47 }
 0x2da   : > { %v7112_v63 = vpop.f32.mrf.mxu2 }
 0x2db   : > { %4205 = vmatpush.bf16.msra.mxu3 %v5479_v19  ;;  %v5676_v19 = vld [vmem:[%s7772_s3 + $0x100] sm:$0xff] }
 0x2dc   : > { %3900 = vmatpush.bf16.msra.mxu2 %v5676_v19 }
 0x2e1   : > { %v7114_v39 = vpop.f32.mrf.mxu3 }
 0x2e2   : > { %7840 = vst [vmem:[#allocation25_spill] sm:$0xff] %v7114_v39  ;;  %v7116_v10 = vpop.f32.mrf.mxu2  ;;  %v5480_v39 = vld [vmem:[%s7774_s5 + $0x28] sm:$0xf0] }
 0x2e3   : > { %7841 = vst [vmem:[#allocation26_spill] sm:$0xff] %v7116_v10 }
 0x2e6   : > { %3348 = vmatmul.bf16.gmra.mxu3 %v6852_v49 }
 0x2e7   : > { %5157 = vmatmul.msk.bf16.gmra.mxu2 %vm2994_vm2, %v6304_v55 }
 0x2e9   : > { %v7121_v56 = vpop.f32.mrf.mxu3 }
 0x2ea   : > { %v7123_v28 = vpop.f32.mrf.mxu2 }
 0x2f1   : > { %v7128_v12 = vpop.f32.mrf.mxu3 }
 0x2f2   : > { %7842 = vst [vmem:[#allocation27_spill] sm:$0xff] %v7128_v12  ;;  %v7130_v18 = vpop.f32.mrf.mxu2 }
 0x2f3   : > { %7843 = vst [vmem:[#allocation28_spill] sm:$0xff] %v7130_v18 }
 0x2f6   : > { %3353 = vmatmul.bf16.gmra.mxu3 %v6912_v22 }
 0x2f7   : > { %5158 = vmatmul.msk.bf16.gmra.mxu2 %vm2994_vm2, %v6338_v25  ;;  %v5684_v25 = vld [vmem:[%s7774_s5 + $0x24] sm:$0xf] }
 0x2f8   : > { %v5483_v32 = vor.u32 %v5684_v25, %v5480_v39 }
 0x2f9   : > { %v7135_v49 = vpop.f32.mrf.mxu3 }
 0x2fa   : > { %v7137_v55 = vpop.f32.mrf.mxu2  ;;  %4294 = vmatpush.bf16.msra.mxu0 %v5483_v32 }
 0x301   : > { %v7145_v12 = vpop.f32.mrf.mxu3 }
 0x302   : > { %v7147_v22 = vpop.f32.mrf.mxu2 }
 0x303   : > { %7844 = vst [vmem:[#allocation29_spill] sm:$0xff] %v7147_v22 }
 0x306   : > { %3358 = vmatmul.bf16.gmra.mxu3 %v6967_v13 }
 0x307   : > { %5159 = vmatmul.msk.bf16.gmra.mxu2 %vm2994_vm2, %v6391_v31 }
 0x309   : > { %v7158_v47 = vpop.f32.mrf.mxu3 }
 0x30a   : > { %v7160_v27 = vpop.f32.mrf.mxu2 }
 0x311   : > { %v7165_v22 = vpop.f32.mrf.mxu3 }
 0x312   : > { %v7167_v18 = vpop.f32.mrf.mxu2 }
 0x313   : > { %7845 = vst [vmem:[#allocation30_spill] sm:$0xff] %v7167_v18 }
 0x316   : > { %3363 = vmatmul.bf16.gmra.mxu3 %v6983_v23 }
 0x317   : > { %5160 = vmatmul.msk.bf16.gmra.mxu2 %vm2994_vm2, %v6449_v38 }
 0x319   : > { %v7172_v13 = vpop.f32.mrf.mxu3 }
 0x31a   : > { %v7174_v31 = vpop.f32.mrf.mxu2 }
 0x321   : > { %v7176_v32 = vpop.f32.mrf.mxu3 }
 0x322   : > { %v7178_v39 = vpop.f32.mrf.mxu2 }
 0x323   : > { %7846 = vst [vmem:[#allocation31_spill] sm:$0xff] %v7178_v39 }
 0x326   : > { %3368 = vmatmul.bf16.gmra.mxu3 %v6996_v14  ;;  %v5683_v14 = vld [vmem:[%s7774_s5 + $0x14] sm:$0xf0] }
 0x327   : > { %5161 = vmatmul.msk.bf16.gmra.mxu2 %vm2994_vm2, %v6523_v44  ;;  %v5470_v44 = vld [vmem:[%s7774_s5 + $0x10] sm:$0xf] }
 0x328   : > { %v5471_v10 = vor.u32 %v5683_v14, %v5470_v44 }
 0x329   : > { %v7183_v25 = vpop.f32.mrf.mxu3 }
 0x32a   : > { %v7185_v19 = vpop.f32.mrf.mxu2  ;;  %4206 = vmatpush.bf16.msra.mxu3 %v5471_v10 }
 0x331   : > { %v7187_v23 = vpop.f32.mrf.mxu3 }
 0x332   : > { %v7189_v38 = vpop.f32.mrf.mxu2 }
 0x333   : > { %7847 = vst [vmem:[#allocation32_spill] sm:$0xff] %v7189_v38 }
 0x336   : > { %3373 = vmatmul.bf16.gmra.mxu3 %v7010_v15 }
 0x337   : > { %5162 = vmatmul.msk.bf16.gmra.mxu2 %vm2994_vm2, %v6572_v30  ;;  %v5636_v30 = vld [vmem:[#allocation2 + $0x24] sm:$0xf] }
 0x338   : > { %v5275_v5 = vor.u32 %v5636_v30, %v5272_v45  ;;  %v5280_v30 = vld [vmem:[#allocation2 + $0x38] sm:$0xf0] }
 0x339   : > { %v7194_v18 = vpop.f32.mrf.mxu3 }
 0x33a   : > { %7848 = vst [vmem:[#allocation33_spill] sm:$0xff] %v7194_v18  ;;  %v7196_v39 = vpop.f32.mrf.mxu2  ;;  %v5475_v18 = vor.u32 %v5682_v59, %v5472_v51 }
 0x33c   : > { %4295 = vmatpush.bf16.msra.mxu0 %v5475_v18  ;;  %v5288_v18 = vld [vmem:[#allocation2 + $0x48] sm:$0xf0] }
 0x341   : > { %v7204_v38 = vpop.f32.mrf.mxu3 }
 0x342   : > { %7849 = vst [vmem:[#allocation34_spill] sm:$0xff] %v7204_v38  ;;  %v7206_v15 = vpop.f32.mrf.mxu2 }
 0x343   : > { %7850 = vst [vmem:[#allocation35_spill] sm:$0xff] %v7206_v15  ;;  %v5638_v15 = vld [vmem:[#allocation2 + $0x34] sm:$0xf] }
 0x344   : > { %v5283_v38 = vor.u32 %v5638_v15, %v5280_v30 }
 0x346   : > { %3378 = vmatmul.bf16.gmra.mxu3 %v7026_v57 }
 0x347   : > { %5444 = vmatmul.msk.bf16.vlgmr.msra.gmra.mxu2 %vm2994_vm2, %v5275_v5 }
 0x349   : > { %v7216_v10 = vpop.f32.mrf.mxu3 }
 0x34a   : > { %7851 = vst [vmem:[#allocation36_spill] sm:$0xff] %v7216_v10  ;;  %v7218_v44 = vpop.f32.mrf.mxu2  ;;  %v5640_v10 = vld [vmem:[#allocation2 + $0x44] sm:$0xf] }
 0x351   : > { %v7220_v14 = vpop.f32.mrf.mxu3 }
 0x352   : > { %7852 = vst [vmem:[#allocation37_spill] sm:$0xff] %v7220_v14  ;;  %v7222_v45 = vpop.f32.mrf.mxu2  ;;  %v5291_v14 = vor.u32 %v5640_v10, %v5288_v18  ;;  %v5642_v10 = vld [vmem:[#allocation2 + $0x54] sm:$0xf] }
 0x353   : > { %7853 = vst [vmem:[#allocation38_spill] sm:$0xff] %v7222_v45  ;;  %v7242_v45 = vpop.f32.mrf.mxu0  ;;  %v5299_v18 = vor.u32 %v5642_v10, %v5296_v34  ;;  %v5681_v34 = vld [vmem:[%s7774_s5 + $0x4] sm:$0xf0] }
 0x354   : > { %7857 = vst [vmem:[#allocation42_spill] sm:$0xff] %v7242_v45  ;;  %v5312_v45 = vld [vmem:[#allocation2 + $0x78] sm:$0xf0] }
 0x356   : > { %3383 = vmatmul.bf16.gmra.mxu3 %v7041_v9  ;;  %v3177_v9 = vadd.f32 %v6987_v40, %v7094_v24  ;;  %v3182_v40 = vadd.f32 %v7000_v20, %v7112_v63  ;;  %v5304_v63 = vld [vmem:[#allocation2 + $0x68] sm:$0xf0] }
 0x357   : > { %5445 = vmatmul.msk.bf16.gmra.mxu2 %vm2994_vm2, %v5283_v38 }
 0x359   : > { %v7226_v57 = vpop.f32.mrf.mxu3 }
 0x35a   : > { %7854 = vst [vmem:[#allocation39_spill] sm:$0xff] %v7226_v57  ;;  %v7228_v51 = vpop.f32.mrf.mxu2 }
 0x361   : > { %v7230_v59 = vpop.f32.mrf.mxu3 }
 0x362   : > { %7855 = vst [vmem:[#allocation40_spill] sm:$0xff] %v7230_v59  ;;  %v7232_v5 = vpop.f32.mrf.mxu2 }
 0x366   : > { %3388 = vmatmul.bf16.gmra.mxu3 %v7059_v48  ;;  %v7248_v48 = vpop.f32.mrf.mxu0 }
 0x367   : > { %5446 = vmatmul.msk.bf16.gmra.mxu2 %vm2994_vm2, %v5291_v14  ;;  %7859 = vst [vmem:[#allocation44_spill] sm:$0xff] %v7248_v48 }
 0x369   : > { %v3349_v15 = vpop.f32.mrf.mxu3 }
 0x36a   : > { %v7238_v38 = vpop.f32.mrf.mxu2  ;;  %v7240_v30 = vadd.f32 %v3349_v15, %v3177_v9  ;;  %v5462_v15 = vld [vmem:[%s7774_s5] sm:$0xf] }
 0x36b   : > { %v5463_v10 = vor.u32 %v5681_v34, %v5462_v15  ;;  %v3187_v15 = vadd.f32 %v7014_v16, %v7123_v28  ;;  %v3192_v16 = vadd.f32 %v7030_v60, %v7137_v55  ;;  %v3197_v60 = vadd.f32 %v7048_v6, %v7160_v27 }
 0x36c   : > { %7856 = vst [vmem:[#allocation41_spill] sm:$0xff] %v7240_v30  ;;  %v5644_v30 = vld [vmem:[#allocation2 + $0x64] sm:$0xf] }
 0x36d   : > { %4207 = vmatpush.bf16.msra.mxu3 %v5463_v10 }
 0x371   : > { %v7244_v59 = vpop.f32.mrf.mxu3 }
 0x372   : > { %7858 = vst [vmem:[#allocation43_spill] sm:$0xff] %v7244_v59  ;;  %v7246_v57 = vpop.f32.mrf.mxu2  ;;  %v7263_v59 = vpop.f32.mrf.mxu0 }
 0x373   : > { %7861 = vst [vmem:[#allocation46_spill] sm:$0xff] %v7263_v59 }
 0x377   : > { %5447 = vmatmul.msk.bf16.gmra.mxu2 %vm2994_vm2, %v5299_v18 }
 0x379   : > { %v3354_v24 = vpop.f32.mrf.mxu3 }
 0x37a   : > { %v7253_v14 = vpop.f32.mrf.mxu2  ;;  %v7255_v9 = vadd.f32 %v3354_v24, %v3182_v40  ;;  %v5307_v40 = vor.u32 %v5644_v30, %v5304_v63  ;;  %v5680_v24 = vld [vmem:[%s7774_s5 + $0x4] sm:$0xf]  ;;  %v7278_v10 = vpop.f32.mrf.mxu0 }
 0x37b   : > { %7863 = vst [vmem:[#allocation48_spill] sm:$0xff] %v7278_v10 }
 0x37c   : > { %7860 = vst [vmem:[#allocation45_spill] sm:$0xff] %v7255_v9  ;;  %v5464_v9 = vld [vmem:[%s7774_s5 + $0x8] sm:$0xf0] }
 0x37d   : > { %v5467_v48 = vor.u32 %v5680_v24, %v5464_v9  ;;  %v5646_v9 = vld [vmem:[#allocation2 + $0x74] sm:$0xf] }
 0x37f   : > { %4296 = vmatpush.bf16.msra.mxu0 %v5467_v48 }
 0x381   : > { %v7265_v18 = vpop.f32.mrf.mxu3 }
 0x382   : > { %7862 = vst [vmem:[#allocation47_spill] sm:$0xff] %v7265_v18  ;;  %v7267_v20 = vpop.f32.mrf.mxu2  ;;  %v7288_v26 = vpop.f32.mrf.mxu0 }
 0x383   : > { %7866 = vst [vmem:[#allocation51_spill] sm:$0xff] %v7288_v26  ;;  %v5648_v26 = vld [vmem:[#allocation2 + $0x84] sm:$0xf] }
 0x387   : > { %5448 = vmatmul.msk.bf16.gmra.mxu2 %vm2994_vm2, %v5307_v40  ;;  %v5315_v40 = vor.u32 %v5646_v9, %v5312_v45 }
 0x389   : > { %v3359_v34 = vpop.f32.mrf.mxu3 }
 0x38a   : > { %v7280_v18 = vpop.f32.mrf.mxu2  ;;  %v7282_v30 = vadd.f32 %v3359_v34, %v3187_v15  ;;  %v7297_v15 = vpop.f32.mrf.mxu0 }
 0x38b   : > { %7868 = vst [vmem:[#allocation53_spill] sm:$0xff] %v7297_v15 }
 0x38c   : > { %7864 = vst [vmem:[#allocation49_spill] sm:$0xff] %v7282_v30  ;;  %v5320_v30 = vld [vmem:[#allocation2 + $0x88] sm:$0xf0] }
 0x38d   : > { %v5323_v10 = vor.u32 %v5648_v26, %v5320_v30  ;;  %v5650_v26 = vld [vmem:[#allocation2 + $0x94] sm:$0xf] }
 0x391   : > { %v7284_v63 = vpop.f32.mrf.mxu3 }
 0x392   : > { %7865 = vst [vmem:[#allocation50_spill] sm:$0xff] %v7284_v63  ;;  %v7286_v59 = vpop.f32.mrf.mxu2  ;;  %v7304_v45 = vpop.f32.mrf.mxu0 }
 0x393   : > { %7870 = vst [vmem:[#allocation55_spill] sm:$0xff] %v7304_v45 }
 0x397   : > { %5449 = vmatmul.msk.bf16.gmra.mxu2 %vm2994_vm2, %v5315_v40 }
 0x399   : > { %v3364_v28 = vpop.f32.mrf.mxu3 }
 0x39a   : > { %v7293_v48 = vpop.f32.mrf.mxu2  ;;  %v7295_v24 = vadd.f32 %v3364_v28, %v3192_v16  ;;  %v7314_v28 = vpop.f32.mrf.mxu0 }
 0x39b   : > { %7873 = vst [vmem:[#allocation58_spill] sm:$0xff] %v7314_v28  ;;  %v5652_v28 = vld [vmem:[#allocation2 + $0xa4] sm:$0xf] }
 0x39c   : > { %7867 = vst [vmem:[#allocation52_spill] sm:$0xff] %v7295_v24  ;;  %v5328_v24 = vld [vmem:[#allocation2 + $0x98] sm:$0xf0] }
 0x39d   : > { %v5331_v30 = vor.u32 %v5650_v26, %v5328_v24  ;;  %v3142_v26 = vadd.f32 %v7228_v51, %v6977_v36 }
 0x3a1   : > { %v7299_v34 = vpop.f32.mrf.mxu3 }
 0x3a2   : > { %7869 = vst [vmem:[#allocation54_spill] sm:$0xff] %v7299_v34  ;;  %v7301_v63 = vpop.f32.mrf.mxu2 }
 0x3a7   : > { %5450 = vmatmul.msk.bf16.gmra.mxu2 %vm2994_vm2, %v5323_v10  ;;  %v3202_v10 = vadd.f32 %v7066_v46, %v7174_v31  ;;  %v3207_v46 = vadd.f32 %v7092_v52, %v7185_v19  ;;  %v7351_v52 = vld [vmem:[%s7773_s4] ss:$0 sm:$0xff] }
 0x3a9   : > { %v3369_v55 = vpop.f32.mrf.mxu3 }
 0x3aa   : > { %v7308_v9 = vpop.f32.mrf.mxu2  ;;  %v7310_v40 = vadd.f32 %v3369_v55, %v3197_v60  ;;  %v7325_v60 = vpop.f32.mrf.mxu0 }
 0x3ac   : > { %7871 = vst [vmem:[#allocation56_spill] sm:$0xff] %v7310_v40  ;;  %v5336_v40 = vld [vmem:[#allocation2 + $0xa8] sm:$0xf0] }
 0x3ad   : > { %v5339_v15 = vor.u32 %v5652_v28, %v5336_v40 }
 0x3b1   : > { %v7312_v16 = vpop.f32.mrf.mxu3 }
 0x3b2   : > { %7872 = vst [vmem:[#allocation57_spill] sm:$0xff] %v7312_v16  ;;  %v7316_v34 = vpop.f32.mrf.mxu2  ;;  %v7331_v24 = vpop.f32.mrf.mxu0 }
 0x3b7   : > { %5451 = vmatmul.msk.bf16.gmra.mxu2 %vm2994_vm2, %v5331_v30 }
 0x3b9   : > { %v3374_v6 = vpop.f32.mrf.mxu3 }
 0x3ba   : > { %v7321_v27 = vpop.f32.mrf.mxu2  ;;  %v7323_v45 = vadd.f32 %v3374_v6, %v3202_v10  ;;  %v3315_v6 = vadd.f32 %v7135_v49, %v3142_v26  ;;  %v7346_v51 = vpop.f32.mrf.mxu0  ;;  %v5344_v26 = vld [vmem:[#allocation2 + $0xb8] sm:$0xf0] }
 0x3bc   : > { %v3404_v36 = vadd.f32 %v6739_v58, %v3315_v6 }
 0x3c1   : > { %v7327_v55 = vpop.f32.mrf.mxu3 }
 0x3c2   : > { %7874 = vst [vmem:[#allocation59_spill] sm:$0xff] %v7327_v55  ;;  %v7329_v16 = vpop.f32.mrf.mxu2  ;;  %v3144_v55 = vadd.f32 %v7232_v5, %v6980_v11  ;;  %v5654_v5 = vld [vmem:[#allocation2 + $0xb4] sm:$0xf] }
 0x3c4   : > { %v3317_v28 = vadd.f32 %v7145_v12, %v3144_v55  ;;  %v5347_v55 = vor.u32 %v5654_v5, %v5344_v26 }
 0x3c6   : > { %v3406_v11 = vadd.f32 %v6770_v0, %v3317_v28  ;;  %v7364_v28 = vpop.f32.mrf.mxu0 }
 0x3c7   : > { %5452 = vmatmul.msk.bf16.gmra.mxu2 %vm2994_vm2, %v5339_v15 }
 0x3c9   : > { %v3379_v31 = vpop.f32.mrf.mxu3 }
 0x3ca   : > { %v7338_v30 = vadd.f32 %v3379_v31, %v3207_v46  ;;  %v3902_v10 = vpop.f32.mrf.mxu2  ;;  %v3147_v46 = vadd.f32 %v7238_v38, %v6989_v43  ;;  %v3149_v43 = vadd.f32 %v7246_v57, %v6994_v54 }
 0x3cb   : > { %v3903_v40 = vadd.f32 %v3902_v10, %v7021_v41  ;;  %v3212_v10 = vadd.f32 %v7110_v61, %v7196_v39 }
 0x3cc   : > { %v3322_v61 = vadd.f32 %v7165_v22, %v3149_v43 }
 0x3cd   : > { %v3982_v15 = vadd.f32 %v3903_v40, %v3404_v36 }
 0x3ce   : > { %v7382_v57 = vpop.f32.mrf.mxu0 }
 0x3cf   : > { %v4018_v12 = vadd.f32 %v7351_v52, %v3982_v15  ;;  %v7368_v15 = vpop.f32.mrf.mxu1 }
 0x3d1   : > { %v7353_v19 = vpop.f32.mrf.mxu3  ;;  %v4050_v6 = vmax.f32 %v4018_v12, 0.0  ;;  %v5352_v12 = vld [vmem:[#allocation2 + $0xc8] sm:$0xf0] }
 0x3d2   : > { %v3904_v49 = vpop.f32.mrf.mxu2 }
 0x3d3   : > { %v3905_v41 = vadd.f32 %v3904_v49, %v7035_v62  ;;  %v3320_v49 = vadd.f32 %v7158_v47, %v3147_v46  ;;  %v3411_v47 = vadd.f32 %v6827_v33, %v3322_v61  ;;  %v3217_v33 = vadd.f32 %v7121_v56, %v7218_v44  ;;  %v5360_v61 = vld [vmem:[#allocation2 + $0xd8] sm:$0xf0] }
 0x3d5   : > { %v3983_v58 = vadd.f32 %v3905_v41, %v3406_v11  ;;  %v3409_v39 = vadd.f32 %v6798_v1, %v3320_v49  ;;  %v3152_v1 = vadd.f32 %v7253_v14, %v7002_v7  ;;  %v3154_v49 = vadd.f32 %v7267_v20, %v7007_v17 }
 0x3d6   : > { %v7401_v14 = vpop.f32.mrf.mxu0 }
 0x3d7   : > { %v4019_v31 = vadd.f32 %v7351_v52, %v3983_v58  ;;  %5453 = vmatmul.msk.bf16.gmra.mxu2 %vm2994_vm2, %v5347_v55  ;;  %v7384_v58 = vpop.f32.mrf.mxu1  ;;  %v3327_v44 = vadd.f32 %v7176_v32, %v3154_v49  ;;  %v7876_v49 = vld [vmem:[#allocation13_spill] sm:$0xff] }
 0x3d9   : > { %v4051_v40 = vmax.f32 %v4019_v31, 0.0  ;;  %v3384_v0 = vpop.f32.mrf.mxu3  ;;  %v3416_v17 = vadd.f32 %v6900_v53, %v3327_v44 }
 0x3da   : > { %v7366_v62 = vadd.f32 %v3384_v0, %v3212_v10  ;;  %v3907_v36 = vpop.f32.mrf.mxu2 }
 0x3db   : > { %v4082_v38 = vpack.c.bf16 %v4051_v40, %v4050_v6  ;;  %v3908_v26 = vadd.f32 %v3907_v36, %v7044_v8  ;;  %v5656_v8 = vld [vmem:[#allocation2 + $0xc4] sm:$0xf]  ;;  %v3325_v36 = vadd.f32 %v7172_v13, %v3152_v1 }
 0x3dc   : > { %v5355_v22 = vor.u32 %v5656_v8, %v5352_v12  ;;  %v3157_v12 = vadd.f32 %v7280_v18, %v7016_v35 }
 0x3dd   : > { %5492 = vmatmul.msk.bf16.vlgmr.msra.gmra.mxu3 %vm2994_vm2, %v4082_v38  ;;  %5508 = vmatmul.msk.bf16.vlgmr.msra.gmra.mxu0 %vm2994_vm2, %v4082_v38  ;;  %v3984_v11 = vadd.f32 %v3908_v26, %v3409_v39  ;;  %v3414_v38 = vadd.f32 %v6870_v2, %v3325_v36 }
 0x3de   : > { %v7414_v2 = vpop.f32.mrf.mxu0 }
 0x3df   : > { %v4020_v55 = vadd.f32 %v7351_v52, %v3984_v11  ;;  %v7403_v56 = vpop.f32.mrf.mxu1 }
 0x3e1   : > { %v7378_v41 = vpop.f32.mrf.mxu3 }
 0x3e2   : > { %v3909_v5 = vpop.f32.mrf.mxu2 }
 0x3e3   : > { %v3910_v54 = vadd.f32 %v3909_v5, %v7052_v42  ;;  %v4052_v42 = vmax.f32 %v4020_v55, 0.0  ;;  %v3159_v55 = vadd.f32 %v7286_v59, %v7023_v21  ;;  %v7875_v59 = vld [vmem:[#allocation24_spill] sm:$0xff] }
 0x3e5   : > { %v3985_v46 = vadd.f32 %v3910_v54, %v3411_v47  ;;  %v3332_v35 = vadd.f32 %v7187_v23, %v3159_v55  ;;  %v3162_v23 = vadd.f32 %v7293_v48, %v7876_v49  ;;  %v7879_v48 = vld [vmem:[#allocation34_spill] sm:$0xff] }
 0x3e7   : > { %v4021_v31 = vadd.f32 %v7351_v52, %v3985_v46  ;;  %5454 = vmatmul.msk.bf16.gmra.mxu2 %vm2994_vm2, %v5355_v22  ;;  %v7416_v32 = vpop.f32.mrf.mxu1  ;;  %v3421_v21 = vadd.f32 %v6969_v4, %v3332_v35  ;;  %v7878_v4 = vld [vmem:[#allocation15_spill] sm:$0xff] }
 0x3e9   : > { %v4053_v10 = vmax.f32 %v4021_v31, 0.0  ;;  %v3389_v6 = vpop.f32.mrf.mxu3  ;;  %v7426_v31 = vpop.f32.mrf.mxu0 }
 0x3ea   : > { %v7393_v40 = vadd.f32 %v3389_v6, %v3217_v33  ;;  %v3912_v0 = vpop.f32.mrf.mxu2 }
 0x3eb   : > { %v4083_v43 = vpack.c.bf16 %v4053_v10, %v4052_v42  ;;  %v3913_v7 = vadd.f32 %v3912_v0, %v7068_v29  ;;  %v5658_v29 = vld [vmem:[#allocation2 + $0xd4] sm:$0xf]  ;;  %v5368_v42 = vld [vmem:[#allocation2 + $0xe8] sm:$0xf0] }
 0x3ec   : > { %v5363_v5 = vor.u32 %v5658_v29, %v5360_v61 }
 0x3ed   : > { %5493 = vmatmul.msk.bf16.gmra.mxu3 %vm2994_vm2, %v4083_v43  ;;  %5509 = vmatmul.msk.bf16.gmra.mxu0 %vm2994_vm2, %v4083_v43  ;;  %v3986_v26 = vadd.f32 %v3913_v7, %v3414_v38  ;;  %v7877_v38 = vld [vmem:[#allocation33_spill] sm:$0xff] }
 0x3ef   : > { %v4022_v39 = vadd.f32 %v7351_v52, %v3986_v26  ;;  %v3335_v26 = vadd.f32 %v7877_v38, %v3162_v23  ;;  %v7886_v23 = vld [vmem:[#allocation46_spill] sm:$0xff] }
 0x3f1   : > { %v4054_v54 = vmax.f32 %v4022_v39, 0.0 }
 0x3f2   : > { %v3914_v13 = vpop.f32.mrf.mxu2 }
 0x3f3   : > { %v3915_v20 = vadd.f32 %v3914_v13, %v7089_v50  ;;  %v3330_v50 = vadd.f32 %v7183_v25, %v3157_v12  ;;  %v7428_v25 = vpop.f32.mrf.mxu1  ;;  %v3164_v13 = vadd.f32 %v7301_v63, %v7878_v4  ;;  %v7887_v4 = vld [vmem:[#allocation48_spill] sm:$0xff] }
 0x3f5   : > { %v3987_v11 = vadd.f32 %v3915_v20, %v3416_v17  ;;  %v3419_v18 = vadd.f32 %v6935_v3, %v3330_v50  ;;  %v7440_v17 = vpop.f32.mrf.mxu0  ;;  %v3337_v39 = vadd.f32 %v7879_v48, %v3164_v13  ;;  %v5662_v50 = vld [vmem:[#allocation2 + $0xf4] sm:$0xf] }
 0x3f7   : > { %v4023_v47 = vadd.f32 %v7351_v52, %v3987_v11  ;;  %5455 = vmatmul.msk.bf16.gmra.mxu2 %vm2994_vm2, %v5363_v5  ;;  %v7880_v11 = vld [vmem:[#allocation42_spill] sm:$0xff] }
 0x3f8   : > { %v3424_v5 = vadd.f32 %v7880_v11, %v3335_v26  ;;  %v5384_v26 = vld [vmem:[#allocation2 + $0x108] sm:$0xf0] }
 0x3f9   : > { %v4055_v53 = vmax.f32 %v4023_v47, 0.0 }
 0x3fa   : > { %v3917_v8 = vpop.f32.mrf.mxu2 }
 0x3fb   : > { %v4084_v46 = vpack.c.bf16 %v4055_v53, %v4054_v54  ;;  %v3918_v22 = vadd.f32 %v3917_v8, %v7096_v37  ;;  %v5660_v37 = vld [vmem:[#allocation2 + $0xe4] sm:$0xf]  ;;  %v7442_v20 = vpop.f32.mrf.mxu1  ;;  %v5376_v54 = vld [vmem:[#allocation2 + $0xf8] sm:$0xf0]  ;;  %v7881_v53 = vld [vmem:[#allocation44_spill] sm:$0xff] }
 0x3fc   : > { %v5371_v36 = vor.u32 %v5660_v37, %v5368_v42  ;;  %v3426_v63 = vadd.f32 %v7881_v53, %v3337_v39  ;;  %v7884_v37 = vld [vmem:[#allocation18_spill] sm:$0xff]  ;;  %v7888_v39 = vld [vmem:[#allocation19_spill] sm:$0xff] }
 0x3fd   : > { %5494 = vmatmul.msk.bf16.gmra.mxu3 %vm2994_vm2, %v4084_v46  ;;  %5510 = vmatmul.msk.bf16.gmra.mxu0 %vm2994_vm2, %v4084_v46  ;;  %v3988_v1 = vadd.f32 %v3918_v22, %v3419_v18  ;;  %v7452_v22 = vpop.f32.mrf.mxu0  ;;  %v7882_v18 = vld [vmem:[#allocation16_spill] sm:$0xff]  ;;  %v3172_v11 = vadd.f32 %v7321_v27, %v7888_v39  ;;  %v7898_v39 = vld [vmem:[#allocation43_spill] sm:$0xff] }
 0x3fe   : > { %v7891_v27 = vld [vmem:[#allocation40_spill] sm:$0xff] }
 0x3ff   : > { %v4024_v6 = vadd.f32 %v7351_v52, %v3988_v1  ;;  %v3167_v1 = vadd.f32 %v7308_v9, %v7882_v18  ;;  %v7885_v9 = vld [vmem:[#allocation37_spill] sm:$0xff] }
 0x401   : > { %v4056_v43 = vmax.f32 %v4024_v6, 0.0  ;;  %v3169_v6 = vadd.f32 %v7316_v34, %v7884_v37 }
 0x402   : > { %v3919_v33 = vpop.f32.mrf.mxu2 }
 0x403   : > { %v3920_v10 = vadd.f32 %v3919_v33, %v7875_v59  ;;  %v3848_v35 = vpop.f32.mrf.mxu1  ;;  %v3342_v49 = vadd.f32 %v7885_v9, %v3169_v6 }
 0x405   : > { %v3989_v0 = vadd.f32 %v3920_v10, %v3421_v21  ;;  %v7883_v10 = vld [vmem:[#allocation36_spill] sm:$0xff]  ;;  %v3431_v13 = vadd.f32 %v7887_v4, %v3342_v49  ;;  %v7895_v4 = vld [vmem:[#allocation10_spill] sm:$0xff] }
 0x407   : > { %v4025_v3 = vadd.f32 %v7351_v52, %v3989_v0  ;;  %5456 = vmatmul.msk.bf16.gmra.mxu2 %vm2994_vm2, %v5371_v36 }
 0x409   : > { %v4057_v7 = vmax.f32 %v4025_v3, 0.0 }
 0x40a   : > { %v3922_v44 = vpop.f32.mrf.mxu2 }
 0x40b   : > { %v4085_v61 = vpack.c.bf16 %v4057_v7, %v4056_v43  ;;  %v3923_v29 = vadd.f32 %v3922_v44, %v7368_v15  ;;  %v5379_v15 = vor.u32 %v5662_v50, %v5376_v54  ;;  %v7466_v43 = vpop.f32.mrf.mxu0  ;;  %v3850_v7 = vpop.f32.mrf.mxu1  ;;  %v7890_v50 = vld [vmem:[#allocation21_spill] sm:$0xff] }
 0x40d   : > { %5495 = vmatmul.msk.bf16.gmra.mxu3 %vm2994_vm2, %v4085_v61  ;;  %5511 = vmatmul.msk.bf16.gmra.mxu0 %vm2994_vm2, %v4085_v61  ;;  %v3990_v12 = vadd.f32 %v3923_v29, %v3424_v5  ;;  %v5664_v61 = vld [vmem:[#allocation2 + $0x104] sm:$0xf] }
 0x40e   : > { %v5387_v48 = vor.u32 %v5664_v61, %v5384_v26  ;;  %v7894_v26 = vld [vmem:[#allocation23_spill] sm:$0xff] }
 0x40f   : > { %v4026_v55 = vadd.f32 %v7351_v52, %v3990_v12 }
 0x411   : > { %v4058_v42 = vmax.f32 %v4026_v55, 0.0  ;;  %v3174_v55 = vadd.f32 %v7329_v16, %v7890_v50 }
 0x412   : > { %v3924_v47 = vpop.f32.mrf.mxu2 }
 0x413   : > { %v3925_v8 = vadd.f32 %v3924_v47, %v7384_v58  ;;  %v3340_v58 = vadd.f32 %v7883_v10, %v3167_v1  ;;  %v7475_v54 = vpop.f32.mrf.mxu0  ;;  %v3347_v18 = vadd.f32 %v7891_v27, %v3174_v55  ;;  %v7892_v1 = vld [vmem:[#allocation51_spill] sm:$0xff] }
 0x415   : > { %v3991_v46 = vadd.f32 %v3925_v8, %v3426_v63  ;;  %v3429_v3 = vadd.f32 %v7886_v23, %v3340_v58  ;;  %v3853_v63 = vpop.f32.mrf.mxu1  ;;  %v7889_v8 = vld [vmem:[#allocation39_spill] sm:$0xff]  ;;  %v7893_v58 = vld [vmem:[#allocation53_spill] sm:$0xff] }
 0x416   : > { %v3436_v37 = vadd.f32 %v7893_v58, %v3347_v18  ;;  %v7903_v58 = vld [vmem:[#allocation47_spill] sm:$0xff] }
 0x417   : > { %v4027_v33 = vadd.f32 %v7351_v52, %v3991_v46  ;;  %5457 = vmatmul.msk.bf16.gmra.mxu2 %vm2994_vm2, %v5379_v15 }
 0x419   : > { %v4059_v21 = vmax.f32 %v4027_v33, 0.0 }
 0x41a   : > { %v3927_v59 = vpop.f32.mrf.mxu2 }
 0x41b   : > { %v4086_v0 = vpack.c.bf16 %v4059_v21, %v4058_v42  ;;  %v3928_v36 = vadd.f32 %v3927_v59, %v7403_v56  ;;  %v5666_v42 = vld [vmem:[#allocation2 + $0x114] sm:$0xf]  ;;  %v5392_v21 = vld [vmem:[#allocation2 + $0x118] sm:$0xf0] }
 0x41c   : > { %v5395_v16 = vor.u32 %v5666_v42, %v5392_v21  ;;  %v7901_v42 = vld [vmem:[#allocation11_spill] sm:$0xff] }
 0x41d   : > { %5496 = vmatmul.msk.bf16.gmra.mxu3 %vm2994_vm2, %v4086_v0  ;;  %5512 = vmatmul.msk.bf16.gmra.mxu0 %vm2994_vm2, %v4086_v0  ;;  %v3992_v44 = vadd.f32 %v3928_v36, %v3429_v3  ;;  %v7487_v0 = vpop.f32.mrf.mxu0 }
 0x41f   : > { %v4028_v56 = vadd.f32 %v7351_v52, %v3992_v44 }
 0x421   : > { %v4060_v12 = vmax.f32 %v4028_v56, 0.0  ;;  %v7896_v56 = vld [vmem:[#allocation41_spill] sm:$0xff] }
 0x422   : > { %v3929_v38 = vpop.f32.mrf.mxu2 }
 0x423   : > { %v3930_v34 = vadd.f32 %v3929_v38, %v7416_v32  ;;  %v3345_v32 = vadd.f32 %v7889_v8, %v3172_v11 }
 0x425   : > { %v3993_v29 = vadd.f32 %v3930_v34, %v3431_v13  ;;  %v3434_v33 = vadd.f32 %v7892_v1, %v3345_v32  ;;  %v3179_v13 = vadd.f32 %v7895_v4, %v7894_v26 }
 0x427   : > { %v4029_v5 = vadd.f32 %v7351_v52, %v3993_v29  ;;  %5458 = vmatmul.msk.bf16.gmra.mxu2 %vm2994_vm2, %v5387_v48  ;;  %v7897_v29 = vld [vmem:[#allocation55_spill] sm:$0xff]  ;;  %v3352_v11 = vadd.f32 %v7898_v39, %v3179_v13  ;;  %v7905_v39 = vld [vmem:[#allocation12_spill] sm:$0xff] }
 0x428   : > { %v3439_v48 = vadd.f32 %v7897_v29, %v7896_v56  ;;  %v300_v56 = vld [vmem:[%s5998_s16] sm:$0xff] }
 0x429   : > { %v4061_v47 = vmax.f32 %v4029_v5, 0.0 }
 0x42a   : > { %v3932_v53 = vpop.f32.mrf.mxu2 }
 0x42b   : > { %v4087_v46 = vpack.c.bf16 %v4061_v47, %v4060_v12  ;;  %v3933_v15 = vadd.f32 %v3932_v53, %v7428_v25  ;;  %v3855_v25 = vpop.f32.mrf.mxu1  ;;  %v7899_v47 = vld [vmem:[#allocation58_spill] sm:$0xff] }
 0x42c   : > { %v3441_v53 = vadd.f32 %v7899_v47, %v3352_v11  ;;  %v4379_v47 = vunpack.c.h.bf16 %v300_v56 }
 0x42d   : > { %5497 = vmatmul.msk.bf16.gmra.mxu3 %vm2994_vm2, %v4087_v46  ;;  %5513 = vmatmul.msk.bf16.gmra.mxu0 %vm2994_vm2, %v4087_v46  ;;  %v3994_v59 = vadd.f32 %v3933_v15, %v3434_v33  ;;  %v7900_v33 = vld [vmem:[#allocation26_spill] sm:$0xff] }
 0x42e   : > { %v3184_v21 = vadd.f32 %v7901_v42, %v7900_v33  ;;  %v301_v33 = vld [vmem:[%s5998_s16 + $0x8] sm:$0xff] }
 0x42f   : > { %v4030_v36 = vadd.f32 %v7351_v52, %v3994_v59 }
 0x431   : > { %v4062_v23 = vmax.f32 %v4030_v36, 0.0 }
 0x432   : > { %v3934_v10 = vpop.f32.mrf.mxu2 }
 0x433   : > { %v3935_v6 = vadd.f32 %v3934_v10, %v7442_v20  ;;  %v7496_v20 = vpop.f32.mrf.mxu0  ;;  %v3858_v61 = vpop.f32.mrf.mxu1 }
 0x435   : > { %v3995_v9 = vadd.f32 %v3935_v6, %v3436_v37  ;;  %v3357_v37 = vadd.f32 %v7903_v58, %v3184_v21 }
 0x437   : > { %v4031_v49 = vadd.f32 %v7351_v52, %v3995_v9  ;;  %5459 = vmatmul.msk.bf16.gmra.mxu2 %vm2994_vm2, %v5395_v16 }
 0x439   : > { %v4063_v3 = vmax.f32 %v4031_v49, 0.0  ;;  %v3446_v49 = vadd.f32 %v7331_v24, %v3357_v37  ;;  %v4381_v37 = vunpack.c.h.bf16 %v301_v33 }
 0x43a   : > { %v3937_v44 = vpop.f32.mrf.mxu2 }
 0x43b   : > { %v4088_v38 = vpack.c.bf16 %v4063_v3, %v4062_v23  ;;  %v3938_v34 = vadd.f32 %v3937_v44, %v3848_v35  ;;  %v7504_v55 = vpop.f32.mrf.mxu0  ;;  %v3860_v46 = vpop.f32.mrf.mxu1  ;;  %v4106_v44 = vld [vmem:[%s7775_s6] sm:$0x3] }
 0x43c   : > { %v7523_v13 = vperm.slane %v4106_v44, 1 }
 0x43d   : > { %5498 = vmatmul.msk.bf16.gmra.mxu3 %vm2994_vm2, %v4088_v38  ;;  %5514 = vmatmul.msk.bf16.gmra.mxu0 %vm2994_vm2, %v4088_v38  ;;  %v3996_v5 = vadd.f32 %v3938_v34, %v3439_v48  ;;  %v7521_v38 = vpop.f32.mrf.mxu3  ;;  %v7904_v48 = vld [vmem:[#allocation28_spill] sm:$0xff] }
 0x43e   : > { %v3189_v11 = vadd.f32 %v7905_v39, %v7904_v48  ;;  %v7908_v48 = vld [vmem:[#allocation29_spill] sm:$0xff]  ;;  %v7909_v39 = vld [vmem:[#allocation14_spill] sm:$0xff] }
 0x43f   : > { %v4032_v32 = vadd.f32 %v7351_v52, %v3996_v5 }
 0x441   : > { %v4064_v15 = vmax.f32 %v4032_v32, 0.0 }
 0x442   : > { %v3939_v12 = vpop.f32.mrf.mxu2 }
 0x443   : > { %v3940_v8 = vadd.f32 %v3939_v12, %v3850_v7  ;;  %v7902_v7 = vld [vmem:[#allocation45_spill] sm:$0xff]  ;;  %v7513_v16 = vpop.f32.mrf.mxu0  ;;  %v3863_v9 = vpop.f32.mrf.mxu1 }
 0x444   : > { %v3444_v10 = vadd.f32 %v7325_v60, %v7902_v7 }
 0x445   : > { %v3997_v35 = vadd.f32 %v3940_v8, %v3441_v53  ;;  %v7533_v53 = vperm.slane %v4106_v44, 0  ;;  %v7906_v8 = vld [vmem:[#allocation49_spill] sm:$0xff]  ;;  %v4380_v44 = vunpack.c.l.bf16 %v301_v33 }
 0x446   : > { %v3449_v32 = vadd.f32 %v7346_v51, %v7906_v8 }
 0x447   : > { %v4033_v50 = vadd.f32 %v7351_v52, %v3997_v35  ;;  %v7907_v35 = vld [vmem:[#allocation50_spill] sm:$0xff] }
 0x449   : > { %v4065_v27 = vmax.f32 %v4033_v50, 0.0  ;;  %v3362_v50 = vadd.f32 %v7907_v35, %v3189_v11  ;;  %v3194_v11 = vadd.f32 %v7909_v39, %v7908_v48 }
 0x44a   : > { %v3942_v18 = vpop.f32.mrf.mxu2 }
 0x44b   : > { %v4089_v1 = vpack.c.bf16 %v4065_v27, %v4064_v15  ;;  %v3943_v59 = vadd.f32 %v3942_v18, %v3853_v63  ;;  %v7528_v5 = vpop.f32.mrf.mxu1 }
 0x44d   : > { %5499 = vmatmul.msk.bf16.gmra.mxu3 %vm2994_vm2, %v4089_v1  ;;  %5515 = vmatmul.msk.bf16.gmra.mxu0 %vm2994_vm2, %v4089_v1  ;;  %v3998_v6 = vadd.f32 %v3943_v59, %v3444_v10  ;;  %v3451_v59 = vadd.f32 %v7364_v28, %v3362_v50  ;;  %v7910_v50 = vld [vmem:[#allocation52_spill] sm:$0xff] }
 0x44f   : > { %v4034_v63 = vadd.f32 %v7351_v52, %v3998_v6 }
 0x451   : > { %v4066_v26 = vmax.f32 %v4034_v63, 0.0 }
 0x452   : > { %v3944_v36 = vpop.f32.mrf.mxu2 }
 0x453   : > { %v3945_v23 = vadd.f32 %v3944_v36, %v3855_v25 }
 0x455   : > { %v3999_v3 = vadd.f32 %v3945_v23, %v3446_v49  ;;  %v3868_v23 = vpop.f32.mrf.mxu1 }
 0x457   : > { %v4035_v60 = vadd.f32 %v7351_v52, %v3999_v3 }
 0x459   : > { %v4067_v4 = vmax.f32 %v4035_v60, 0.0 }
 0x45a   : > { %v3947_v34 = vpop.f32.mrf.mxu2  ;;  %v4298_v29 = vpop.f32.mrf.mxu0 }
 0x45b   : > { %v4090_v24 = vpack.c.bf16 %v4067_v4, %v4066_v26  ;;  %v3948_v25 = vadd.f32 %v3947_v34, %v3858_v61  ;;  %v4299_v12 = vadd.f32 %v4298_v29, %v7523_v13  ;;  %v4378_v61 = vunpack.c.l.bf16 %v300_v56  ;;  %v302_v56 = vld [vmem:[%s5998_s16 + $0x10] sm:$0xff] }
 0x45c   : > { %v4383_v35 = vunpack.c.h.bf16 %v302_v56 }
 0x45d   : > { %5500 = vmatmul.msk.bf16.gmra.mxu3 %vm2994_vm2, %v4090_v24  ;;  %5516 = vmatmul.msk.bf16.gmra.mxu0 %vm2994_vm2, %v4090_v24  ;;  %v4000_v15 = vadd.f32 %v3948_v25, %v3449_v32  ;;  %v4443_v18 = vadd.f32 %v4379_v47, %v4299_v12 }
 0x45f   : > { %v4036_v58 = vadd.f32 %v7351_v52, %v4000_v15  ;;  %v4507_v51 = vmax.f32 %v4443_v18, 0.0  ;;  %v7911_v15 = vld [vmem:[#allocation54_spill] sm:$0xff] }
 0x460   : > { %v4209_v27 = vpop.f32.mrf.mxu3 }
 0x461   : > { %v4210_v1 = vadd.f32 %v4209_v27, %v7533_v53  ;;  %v4068_v26 = vmax.f32 %v4036_v58, 0.0  ;;  %v3367_v27 = vadd.f32 %v7911_v15, %v3194_v11  ;;  %v7912_v11 = vld [vmem:[#allocation30_spill] sm:$0xff]  ;;  %v7914_v15 = vld [vmem:[#allocation56_spill] sm:$0xff] }
 0x462   : > { %v3949_v42 = vpop.f32.mrf.mxu2  ;;  %v4300_v21 = vpop.f32.mrf.mxu0 }
 0x463   : > { %v4442_v7 = vadd.f32 %v4378_v61, %v4210_v1  ;;  %v3950_v10 = vadd.f32 %v3949_v42, %v3860_v46  ;;  %v4301_v49 = vadd.f32 %v4300_v21, %v7523_v13  ;;  %v3454_v61 = vadd.f32 %v7382_v57, %v7910_v50 }
 0x464   : > { %v4382_v1 = vunpack.c.l.bf16 %v302_v56 }
 0x465   : > { %v4506_v6 = vmax.f32 %v4442_v7, 0.0  ;;  %v4001_v36 = vadd.f32 %v3950_v10, %v3451_v59  ;;  %v4445_v46 = vadd.f32 %v4381_v37, %v4301_v49  ;;  %v303_v7 = vld [vmem:[%s5998_s16 + $0x18] sm:$0xff]  ;;  %v3456_v37 = vadd.f32 %v7401_v14, %v3367_v27 }
 0x466   : > { %v3459_v27 = vadd.f32 %v7414_v2, %v7914_v15 }
 0x467   : > { %v4570_v63 = vpack.c.bf16 %v4507_v51, %v4506_v6  ;;  %v4037_v3 = vadd.f32 %v7351_v52, %v4001_v36  ;;  %v4509_v47 = vmax.f32 %v4445_v46, 0.0  ;;  %v4385_v36 = vunpack.c.h.bf16 %v303_v7 }
 0x468   : > { %v4211_v60 = vpop.f32.mrf.mxu3 }
 0x469   : > { %4602 = vst [vmem:[%s7546_s12] sm:$0xff] %v4570_v63  ;;  %v4069_v28 = vmax.f32 %v4037_v3, 0.0  ;;  %v4212_v4 = vadd.f32 %v4211_v60, %v7533_v53 }
 0x46a   : > { %v3952_v34 = vpop.f32.mrf.mxu2  ;;  %v4303_v29 = vpop.f32.mrf.mxu0 }
 0x46b   : > { %v4091_v24 = vpack.c.bf16 %v4069_v28, %v4068_v26  ;;  %v4444_v25 = vadd.f32 %v4380_v44, %v4212_v4  ;;  %v3953_v12 = vadd.f32 %v3952_v34, %v3863_v9  ;;  %v4304_v32 = vadd.f32 %v4303_v29, %v7523_v13  ;;  %v3870_v9 = vpop.f32.mrf.mxu1  ;;  %v304_v29 = vld [vmem:[%s5998_s16 + $0x20] sm:$0xff] }
 0x46c   : > { %v4384_v28 = vunpack.c.l.bf16 %v303_v7 }
 0x46d   : > { %v4508_v8 = vmax.f32 %v4444_v25, 0.0  ;;  %5501 = vmatmul.msk.bf16.gmra.mxu3 %vm2994_vm2, %v4091_v24  ;;  %5517 = vmatmul.msk.bf16.gmra.mxu0 %vm2994_vm2, %v4091_v24  ;;  %v4002_v33 = vadd.f32 %v3953_v12, %v3454_v61  ;;  %v4447_v21 = vadd.f32 %v4383_v35, %v4304_v32  ;;  %v7913_v12 = vld [vmem:[#allocation17_spill] sm:$0xff]  ;;  %v4387_v61 = vunpack.c.h.bf16 %v304_v29 }
 0x46f   : > { %v4571_v18 = vpack.c.bf16 %v4509_v47, %v4508_v8  ;;  %v4038_v6 = vadd.f32 %v7351_v52, %v4002_v33  ;;  %v4511_v49 = vmax.f32 %v4447_v21, 0.0  ;;  %v3199_v47 = vadd.f32 %v7913_v12, %v7912_v11  ;;  %v7917_v11 = vld [vmem:[#allocation20_spill] sm:$0xff] }
 0x470   : > { %v4214_v42 = vpop.f32.mrf.mxu3 }
 0x471   : > { %4603 = vst [vmem:[%s7546_s12 + $0x8] sm:$0xff] %v4571_v18  ;;  %v4215_v59 = vadd.f32 %v4214_v42, %v7533_v53  ;;  %v4070_v4 = vmax.f32 %v4038_v6, 0.0  ;;  %v7915_v18 = vld [vmem:[#allocation57_spill] sm:$0xff]  ;;  %v4386_v42 = vunpack.c.l.bf16 %v304_v29 }
 0x472   : > { %v3954_v10 = vpop.f32.mrf.mxu2  ;;  %v4305_v58 = vpop.f32.mrf.mxu0 }
 0x473   : > { %v4446_v51 = vadd.f32 %v4382_v1, %v4215_v59  ;;  %v3955_v57 = vadd.f32 %v3954_v10, %v7528_v5  ;;  %v4306_v44 = vadd.f32 %v4305_v58, %v7523_v13  ;;  %v3873_v25 = vpop.f32.mrf.mxu1  ;;  %v3372_v1 = vadd.f32 %v7915_v18, %v3199_v47  ;;  %v305_v10 = vld [vmem:[%s5998_s16 + $0x28] sm:$0xff] }
 0x475   : > { %v4510_v63 = vmax.f32 %v4446_v51, 0.0  ;;  %v4003_v3 = vadd.f32 %v3955_v57, %v3456_v37  ;;  %v4449_v34 = vadd.f32 %v4385_v36, %v4306_v44  ;;  %v3461_v51 = vadd.f32 %v7426_v31, %v3372_v1 }
 0x476   : > { %v4389_v36 = vunpack.c.h.bf16 %v305_v10 }
 0x477   : > { %v4572_v60 = vpack.c.bf16 %v4511_v49, %v4510_v63  ;;  %v4039_v26 = vadd.f32 %v7351_v52, %v4003_v3  ;;  %v4513_v32 = vmax.f32 %v4449_v34, 0.0 }
 0x478   : > { %v4216_v46 = vpop.f32.mrf.mxu3 }
 0x479   : > { %4604 = vst [vmem:[%s7546_s12 + $0x10] sm:$0xff] %v4572_v60  ;;  %v4071_v14 = vmax.f32 %v4039_v26, 0.0  ;;  %v4217_v5 = vadd.f32 %v4216_v46, %v7533_v53  ;;  %v4388_v46 = vunpack.c.l.bf16 %v305_v10 }
 0x47a   : > { %v3957_v56 = vpop.f32.mrf.mxu2  ;;  %v4308_v24 = vpop.f32.mrf.mxu0 }
 0x47b   : > { %v4092_v48 = vpack.c.bf16 %v4071_v14, %v4070_v4  ;;  %v4448_v39 = vadd.f32 %v4384_v28, %v4217_v5  ;;  %v3958_v8 = vadd.f32 %v3957_v56, %v3868_v23  ;;  %v4309_v50 = vadd.f32 %v4308_v24, %v7523_v13  ;;  %v3875_v49 = vpop.f32.mrf.mxu1  ;;  %v306_v56 = vld [vmem:[%s5998_s16 + $0x30] sm:$0xff] }
 0x47d   : > { %v4512_v35 = vmax.f32 %v4448_v39, 0.0  ;;  %5502 = vmatmul.msk.bf16.gmra.mxu3 %vm2994_vm2, %v4092_v48  ;;  %5518 = vmatmul.msk.bf16.gmra.mxu0 %vm2994_vm2, %v4092_v48  ;;  %v4004_v21 = vadd.f32 %v3958_v8, %v3459_v27  ;;  %v4451_v23 = vadd.f32 %v4387_v61, %v4309_v50  ;;  %v7916_v39 = vld [vmem:[#allocation31_spill] sm:$0xff]  ;;  %v4391_v50 = vunpack.c.h.bf16 %v306_v56 }
 0x47e   : > { %v3204_v12 = vadd.f32 %v7917_v11, %v7916_v39  ;;  %v3464_v61 = vadd.f32 %v7440_v17, %v7323_v45  ;;  %v7918_v27 = vld [vmem:[#allocation59_spill] sm:$0xff] }
 0x47f   : > { %v4573_v33 = vpack.c.bf16 %v4513_v32, %v4512_v35  ;;  %v4040_v2 = vadd.f32 %v7351_v52, %v4004_v21  ;;  %v4515_v63 = vmax.f32 %v4451_v23, 0.0  ;;  %v307_v23 = vld [vmem:[%s5998_s16 + $0x38] sm:$0xff] }
 0x480   : > { %v4219_v59 = vpop.f32.mrf.mxu3  ;;  %v3377_v18 = vadd.f32 %v7918_v27, %v3204_v12  ;;  %v4393_v17 = vunpack.c.h.bf16 %v307_v23 }
 0x481   : > { %4605 = vst [vmem:[%s7546_s12 + $0x18] sm:$0xff] %v4573_v33  ;;  %v4220_v7 = vadd.f32 %v4219_v59, %v7533_v53  ;;  %v4072_v14 = vmax.f32 %v4040_v2, 0.0  ;;  %v4390_v33 = vunpack.c.l.bf16 %v306_v56  ;;  %v7920_v56 = vld [vmem:[#allocation22_spill] sm:$0xff] }
 0x482   : > { %v3959_v58 = vpop.f32.mrf.mxu2  ;;  %v4310_v37 = vpop.f32.mrf.mxu0 }
 0x483   : > { %v4450_v57 = vadd.f32 %v4386_v42, %v4220_v7  ;;  %v3960_v6 = vadd.f32 %v3959_v58, %v3870_v9  ;;  %v4311_v60 = vadd.f32 %v4310_v37, %v7523_v13  ;;  %v3878_v15 = vpop.f32.mrf.mxu1  ;;  %v3466_v58 = vadd.f32 %v7452_v22, %v3377_v18  ;;  %v309_v18 = vld [vmem:[%s5998_s16 + $0x48] sm:$0xff] }
 0x485   : > { %v4514_v3 = vmax.f32 %v4450_v57, 0.0  ;;  %v4005_v44 = vadd.f32 %v3960_v6, %v3461_v51  ;;  %v4453_v34 = vadd.f32 %v4389_v36, %v4311_v60 }
 0x487   : > { %v4574_v26 = vpack.c.bf16 %v4515_v63, %v4514_v3  ;;  %v4041_v28 = vadd.f32 %v7351_v52, %v4005_v44  ;;  %v4517_v8 = vmax.f32 %v4453_v34, 0.0  ;;  %v4392_v44 = vunpack.c.l.bf16 %v307_v23 }
 0x488   : > { %v4221_v4 = vpop.f32.mrf.mxu3 }
 0x489   : > { %4606 = vst [vmem:[%s7546_s12 + $0x20] sm:$0xff] %v4574_v26  ;;  %v4073_v31 = vmax.f32 %v4041_v28, 0.0  ;;  %v4222_v9 = vadd.f32 %v4221_v4, %v7533_v53 }
 0x48a   : > { %v3962_v5 = vpop.f32.mrf.mxu2  ;;  %v4313_v29 = vpop.f32.mrf.mxu0 }
 0x48b   : > { %v4093_v24 = vpack.c.bf16 %v4073_v31, %v4072_v14  ;;  %v4452_v48 = vadd.f32 %v4388_v46, %v4222_v9  ;;  %v3963_v47 = vadd.f32 %v3962_v5, %v3873_v25  ;;  %v4314_v35 = vadd.f32 %v4313_v29, %v7523_v13  ;;  %v3880_v26 = vpop.f32.mrf.mxu1  ;;  %v308_v14 = vld [vmem:[%s5998_s16 + $0x40] sm:$0xff]  ;;  %v7919_v5 = vld [vmem:[#allocation32_spill] sm:$0xff] }
 0x48c   : > { %v3209_v29 = vadd.f32 %v7920_v56, %v7919_v5  ;;  %v4395_v12 = vunpack.c.h.bf16 %v308_v14 }
 0x48d   : > { %v4516_v32 = vmax.f32 %v4452_v48, 0.0  ;;  %5503 = vmatmul.msk.bf16.gmra.mxu3 %vm2994_vm2, %v4093_v24  ;;  %5519 = vmatmul.msk.bf16.gmra.mxu0 %vm2994_vm2, %v4093_v24  ;;  %v4006_v42 = vadd.f32 %v3963_v47, %v3464_v61  ;;  %v4455_v21 = vadd.f32 %v4391_v50, %v4314_v35  ;;  %v3469_v47 = vadd.f32 %v7466_v43, %v7338_v30 }
 0x48e   : > { %v4394_v35 = vunpack.c.l.bf16 %v308_v14 }
 0x48f   : > { %v4575_v1 = vpack.c.bf16 %v4517_v8, %v4516_v32  ;;  %v4042_v45 = vadd.f32 %v7351_v52, %v4006_v42  ;;  %v4519_v57 = vmax.f32 %v4455_v21, 0.0  ;;  %v3382_v8 = vadd.f32 %v7353_v19, %v3209_v29 }
 0x490   : > { %v4224_v25 = vpop.f32.mrf.mxu3  ;;  %v4397_v19 = vunpack.c.h.bf16 %v309_v18 }
 0x491   : > { %4607 = vst [vmem:[%s7546_s12 + $0x28] sm:$0xff] %v4575_v1  ;;  %v4225_v59 = vadd.f32 %v4224_v25, %v7533_v53  ;;  %v4074_v28 = vmax.f32 %v4042_v45, 0.0  ;;  %v3471_v25 = vadd.f32 %v7475_v54, %v3382_v8 }
 0x492   : > { %v3964_v7 = vpop.f32.mrf.mxu2  ;;  %v4315_v10 = vpop.f32.mrf.mxu0 }
 0x493   : > { %v4454_v37 = vadd.f32 %v4390_v33, %v4225_v59  ;;  %v3965_v51 = vadd.f32 %v3964_v7, %v3875_v49  ;;  %v4316_v36 = vadd.f32 %v4315_v10, %v7523_v13  ;;  %v3883_v42 = vpop.f32.mrf.mxu1 }
 0x495   : > { %v4518_v6 = vmax.f32 %v4454_v37, 0.0  ;;  %v4007_v2 = vadd.f32 %v3965_v51, %v3466_v58  ;;  %v4457_v46 = vadd.f32 %v4393_v17, %v4316_v36  ;;  %v4396_v51 = vunpack.c.l.bf16 %v309_v18  ;;  %v310_v36 = vld [vmem:[%s5998_s16 + $0x50] sm:$0xff] }
 0x496   : > { %v4398_v56 = vunpack.c.l.bf16 %v310_v36 }
 0x497   : > { %v4576_v63 = vpack.c.bf16 %v4519_v57, %v4518_v6  ;;  %v4043_v3 = vadd.f32 %v7351_v52, %v4007_v2  ;;  %v4521_v48 = vmax.f32 %v4457_v46, 0.0 }
 0x498   : > { %v4226_v60 = vpop.f32.mrf.mxu3 }
 0x499   : > { %4608 = vst [vmem:[%s7546_s12 + $0x30] sm:$0xff] %v4576_v63  ;;  %v4075_v22 = vmax.f32 %v4043_v3, 0.0  ;;  %v4227_v49 = vadd.f32 %v4226_v60, %v7533_v53  ;;  %v7921_v60 = vld [vmem:[#allocation35_spill] sm:$0xff] }
 0x49a   : > { %v3967_v4 = vpop.f32.mrf.mxu2  ;;  %v4318_v31 = vpop.f32.mrf.mxu0 }
 0x49b   : > { %v4094_v34 = vpack.c.bf16 %v4075_v22, %v4074_v28  ;;  %v4456_v9 = vadd.f32 %v4392_v44, %v4227_v49  ;;  %v3968_v24 = vadd.f32 %v3967_v4, %v3878_v15  ;;  %v4319_v11 = vadd.f32 %v4318_v31, %v7523_v13  ;;  %v3885_v46 = vpop.f32.mrf.mxu1 }
 0x49c   : > { %v4399_v31 = vunpack.c.h.bf16 %v310_v36 }
 0x49d   : > { %v4520_v39 = vmax.f32 %v4456_v9, 0.0  ;;  %5504 = vmatmul.msk.bf16.gmra.mxu3 %vm2994_vm2, %v4094_v34  ;;  %5520 = vmatmul.msk.bf16.gmra.mxu0 %vm2994_vm2, %v4094_v34  ;;  %v4008_v50 = vadd.f32 %v3968_v24, %v3469_v47  ;;  %v4459_v15 = vadd.f32 %v4395_v12, %v4319_v11  ;;  %v3474_v34 = vadd.f32 %v7487_v0, %v7366_v62  ;;  %v311_v11 = vld [vmem:[%s5998_s16 + $0x58] sm:$0xff] }
 0x49e   : > { %v4401_v0 = vunpack.c.h.bf16 %v311_v11 }
 0x49f   : > { %v4577_v32 = vpack.c.bf16 %v4521_v48, %v4520_v39  ;;  %v4044_v30 = vadd.f32 %v7351_v52, %v4008_v50  ;;  %v4523_v43 = vmax.f32 %v4459_v15, 0.0 }
 0x4a0   : > { %v4229_v61 = vpop.f32.mrf.mxu3 }
 0x4a1   : > { %4609 = vst [vmem:[%s7546_s12 + $0x38] sm:$0xff] %v4577_v32  ;;  %v4230_v27 = vadd.f32 %v4229_v61, %v7533_v53  ;;  %v4076_v17 = vmax.f32 %v4044_v30, 0.0 }
 0x4a2   : > { %v3969_v1 = vpop.f32.mrf.mxu2  ;;  %v4320_v33 = vpop.f32.mrf.mxu0 }
 0x4a3   : > { %v4458_v21 = vadd.f32 %v4394_v35, %v4230_v27  ;;  %v3970_v59 = vadd.f32 %v3969_v1, %v3880_v26  ;;  %v4321_v10 = vadd.f32 %v4320_v33, %v7523_v13  ;;  %v7922_v26 = vld [vmem:[#allocation25_spill] sm:$0xff]  ;;  %v3888_v27 = vpop.f32.mrf.mxu1  ;;  %v4400_v33 = vunpack.c.l.bf16 %v311_v11 }
 0x4a4   : > { %v3214_v28 = vadd.f32 %v7922_v26, %v7921_v60 }
 0x4a5   : > { %v4522_v23 = vmax.f32 %v4458_v21, 0.0  ;;  %v4009_v7 = vadd.f32 %v3970_v59, %v3471_v25  ;;  %v4461_v54 = vadd.f32 %v4397_v19, %v4321_v10  ;;  %v312_v19 = vld [vmem:[%s5998_s16 + $0x60] sm:$0xff] }
 0x4a6   : > { %v3387_v9 = vadd.f32 %v7378_v41, %v3214_v28  ;;  %v7923_v10 = vld [vmem:[#allocation38_spill] sm:$0xff]  ;;  %v4402_v36 = vunpack.c.l.bf16 %v312_v19  ;;  %v313_v28 = vld [vmem:[%s5998_s16 + $0x68] sm:$0xff] }
 0x4a7   : > { %v4578_v58 = vpack.c.bf16 %v4523_v43, %v4522_v23  ;;  %v4045_v37 = vadd.f32 %v7351_v52, %v4009_v7  ;;  %v4525_v49 = vmax.f32 %v4461_v54, 0.0  ;;  %v3479_v54 = vadd.f32 %v7504_v55, %v7393_v40  ;;  %v5759_v40 = vld [vmem:[%s7773_s4] ss:$0 sm:$0xff] }
 0x4a8   : > { %v4231_v45 = vpop.f32.mrf.mxu3  ;;  %v3476_v8 = vadd.f32 %v7496_v20, %v3387_v9 }
 0x4a9   : > { %4610 = vst [vmem:[%s7546_s12 + $0x40] sm:$0xff] %v4578_v58  ;;  %v4077_v57 = vmax.f32 %v4045_v37, 0.0  ;;  %v4232_v6 = vadd.f32 %v4231_v45, %v7533_v53  ;;  %v7924_v58 = vld [vmem:[#allocation27_spill] sm:$0xff] }
 0x4aa   : > { %v3972_v2 = vpop.f32.mrf.mxu2  ;;  %v4323_v63 = vpop.f32.mrf.mxu0  ;;  %v3219_v37 = vadd.f32 %v7924_v58, %v7923_v10  ;;  %v316_v58 = vld [vmem:[%s5998_s16 + $0x80] sm:$0xff] }
 0x4ab   : > { %v4095_v3 = vpack.c.bf16 %v4077_v57, %v4076_v17  ;;  %v4460_v44 = vadd.f32 %v4396_v51, %v4232_v6  ;;  %v3973_v22 = vadd.f32 %v3972_v2, %v3883_v42  ;;  %v4324_v14 = vadd.f32 %v4323_v63, %v7523_v13 }
 0x4ac   : > { %v4403_v57 = vunpack.c.h.bf16 %v312_v19  ;;  %v3392_v6 = vadd.f32 %v7521_v38, %v3219_v37  ;;  %v4405_v38 = vunpack.c.h.bf16 %v313_v28 }
 0x4ad   : > { %v4524_v4 = vmax.f32 %v4460_v44, 0.0  ;;  %5505 = vmatmul.msk.bf16.gmra.mxu3 %vm2994_vm2, %v4095_v3  ;;  %5521 = vmatmul.msk.bf16.gmra.mxu0 %vm2994_vm2, %v4095_v3  ;;  %v4010_v29 = vadd.f32 %v3973_v22, %v3474_v34  ;;  %v4463_v48 = vadd.f32 %v4399_v31, %v4324_v14  ;;  %v3890_v44 = vpop.f32.mrf.mxu1 }
 0x4af   : > { %v4579_v5 = vpack.c.bf16 %v4525_v49, %v4524_v4  ;;  %v4046_v62 = vadd.f32 %v7351_v52, %v4010_v29  ;;  %v4527_v41 = vmax.f32 %v4463_v48, 0.0  ;;  %v3481_v49 = vadd.f32 %v7513_v16, %v3392_v6 }
 0x4b0   : > { %v4234_v24 = vpop.f32.mrf.mxu3  ;;  %v4410_v6 = vunpack.c.l.bf16 %v316_v58 }
 0x4b1   : > { %4611 = vst [vmem:[%s7546_s12 + $0x48] sm:$0xff] %v4579_v5  ;;  %v4235_v39 = vadd.f32 %v4234_v24, %v7533_v53  ;;  %v4078_v25 = vmax.f32 %v4046_v62, 0.0  ;;  %v4404_v24 = vunpack.c.l.bf16 %v313_v28 }
 0x4b2   : > { %v3974_v12 = vpop.f32.mrf.mxu2  ;;  %v4325_v47 = vpop.f32.mrf.mxu0 }
 0x4b3   : > { %v4462_v32 = vadd.f32 %v4398_v56, %v4235_v39  ;;  %v3975_v35 = vadd.f32 %v3974_v12, %v3885_v46  ;;  %v4326_v15 = vadd.f32 %v4325_v47, %v7523_v13  ;;  %v314_v47 = vld [vmem:[%s5998_s16 + $0x70] sm:$0xff] }
 0x4b5   : > { %v4526_v50 = vmax.f32 %v4462_v32, 0.0  ;;  %v4011_v61 = vadd.f32 %v3975_v35, %v3476_v8  ;;  %v4465_v21 = vadd.f32 %v4401_v0, %v4326_v15  ;;  %v4406_v15 = vunpack.c.l.bf16 %v314_v47 }
 0x4b7   : > { %v4580_v18 = vpack.c.bf16 %v4527_v41, %v4526_v50  ;;  %v4047_v1 = vadd.f32 %v7351_v52, %v4011_v61  ;;  %v4529_v45 = vmax.f32 %v4465_v21, 0.0  ;;  %v4407_v50 = vunpack.c.h.bf16 %v314_v47 }
 0x4b8   : > { %v4236_v42 = vpop.f32.mrf.mxu3 }
 0x4b9   : > { %4612 = vst [vmem:[%s7546_s12 + $0x50] sm:$0xff] %v4580_v18  ;;  %v4079_v20 = vmax.f32 %v4047_v1, 0.0  ;;  %v4237_v59 = vadd.f32 %v4236_v42, %v7533_v53 }
 0x4ba   : > { %v3977_v30 = vpop.f32.mrf.mxu2  ;;  %v4328_v43 = vpop.f32.mrf.mxu0 }
 0x4bb   : > { %v4096_v23 = vpack.c.bf16 %v4079_v20, %v4078_v25  ;;  %v4464_v7 = vadd.f32 %v4400_v33, %v4237_v59  ;;  %v3978_v51 = vadd.f32 %v3977_v30, %v3888_v27  ;;  %v4329_v17 = vadd.f32 %v4328_v43, %v7523_v13  ;;  %v315_v33 = vld [vmem:[%s5998_s16 + $0x78] sm:$0xff] }
 0x4bc   : > { %v4409_v30 = vunpack.c.h.bf16 %v315_v33  ;;  %v4408_v43 = vunpack.c.l.bf16 %v315_v33 }
 0x4bd   : > { %v4528_v52 = vmax.f32 %v4464_v7, 0.0  ;;  %5506 = vmatmul.msk.bf16.gmra.mxu3 %vm2994_vm2, %v4096_v23  ;;  %5522 = vmatmul.msk.bf16.gmra.mxu0 %vm2994_vm2, %v4096_v23  ;;  %v4012_v63 = vadd.f32 %v3978_v51, %v3479_v54  ;;  %v4467_v60 = vadd.f32 %v4403_v57, %v4329_v17  ;;  %v4411_v57 = vunpack.c.h.bf16 %v316_v58 }
 0x4bf   : > { %v4581_v2 = vpack.c.bf16 %v4529_v45, %v4528_v52  ;;  %v4048_v55 = vadd.f32 %v5759_v40, %v4012_v63  ;;  %v4531_v31 = vmax.f32 %v4467_v60, 0.0 }
 0x4c0   : > { %v4239_v3 = vpop.f32.mrf.mxu3 }
 0x4c1   : > { %4613 = vst [vmem:[%s7546_s12 + $0x58] sm:$0xff] %v4581_v2  ;;  %v4240_v26 = vadd.f32 %v4239_v3, %v7533_v53  ;;  %v4080_v39 = vmax.f32 %v4048_v55, 0.0  ;;  %v317_v3 = vld [vmem:[%s5998_s16 + $0x88] sm:$0xff] }
 0x4c2   : > { %v3979_v22 = vpop.f32.mrf.mxu2  ;;  %v4330_v46 = vpop.f32.mrf.mxu0 }
 0x4c3   : > { %v4466_v4 = vadd.f32 %v4402_v36, %v4240_v26  ;;  %v3980_v14 = vadd.f32 %v3979_v22, %v3890_v44  ;;  %v4331_v5 = vadd.f32 %v4330_v46, %v7523_v13  ;;  %v4413_v46 = vunpack.c.h.bf16 %v317_v3 }
 0x4c5   : > { %v4530_v34 = vmax.f32 %v4466_v4, 0.0  ;;  %v4013_v9 = vadd.f32 %v3980_v14, %v3481_v49  ;;  %v4469_v11 = vadd.f32 %v4405_v38, %v4331_v5  ;;  %v4412_v4 = vunpack.c.l.bf16 %v317_v3  ;;  %v318_v38 = vld [vmem:[%s5998_s16 + $0x90] sm:$0xff] }
 0x4c7   : > { %v4582_v56 = vpack.c.bf16 %v4531_v31, %v4530_v34  ;;  %v4049_v29 = vadd.f32 %v5759_v40, %v4013_v9  ;;  %v4533_v62 = vmax.f32 %v4469_v11, 0.0 }
 0x4c8   : > { %v4241_v48 = vpop.f32.mrf.mxu3 }
 0x4c9   : > { %4614 = vst [vmem:[%s7546_s12 + $0x60] sm:$0xff] %v4582_v56  ;;  %v4081_v16 = vmax.f32 %v4049_v29, 0.0  ;;  %v4242_v12 = vadd.f32 %v4241_v48, %v7533_v53  ;;  %v4415_v29 = vunpack.c.h.bf16 %v318_v38  ;;  %v4414_v48 = vunpack.c.l.bf16 %v318_v38 }
 0x4ca   : > { %v4333_v8 = vpop.f32.mrf.mxu0 }
 0x4cb   : > { %v4097_v32 = vpack.c.bf16 %v4081_v16, %v4080_v39  ;;  %v4468_v35 = vadd.f32 %v4404_v24, %v4242_v12  ;;  %v4334_v41 = vadd.f32 %v4333_v8, %v7523_v13  ;;  %v319_v12 = vld [vmem:[%s5998_s16 + $0x98] sm:$0xff] }
 0x4cd   : > { %v4532_v0 = vmax.f32 %v4468_v35, 0.0  ;;  %5507 = vmatmul.msk.bf16.gmra.mxu3 %vm2994_vm2, %v4097_v32  ;;  %5523 = vmatmul.msk.bf16.gmra.mxu0 %vm2994_vm2, %v4097_v32  ;;  %v4471_v18 = vadd.f32 %v4407_v50, %v4334_v41  ;;  %v4416_v50 = vunpack.c.l.bf16 %v319_v12 }
 0x4cf   : > { %v4583_v61 = vpack.c.bf16 %v4533_v62, %v4532_v0  ;;  %v4535_v20 = vmax.f32 %v4471_v18, 0.0  ;;  %v4417_v0 = vunpack.c.h.bf16 %v319_v12  ;;  %v320_v18 = vld [vmem:[%s5998_s16 + $0xa0] sm:$0xff] }
 0x4d0   : > { %v4244_v27 = vpop.f32.mrf.mxu3 }
 0x4d1   : > { %4615 = vst [vmem:[%s7546_s12 + $0x68] sm:$0xff] %v4583_v61  ;;  %v4245_v1 = vadd.f32 %v4244_v27, %v7533_v53 }
 0x4d2   : > { %v4335_v42 = vpop.f32.mrf.mxu0 }
 0x4d3   : > { %v4470_v25 = vadd.f32 %v4406_v15, %v4245_v1  ;;  %v4336_v59 = vadd.f32 %v4335_v42, %v7523_v13 }
 0x4d5   : > { %v4534_v21 = vmax.f32 %v4470_v25, 0.0  ;;  %v4473_v7 = vadd.f32 %v4409_v30, %v4336_v59  ;;  %v4418_v30 = vunpack.c.l.bf16 %v320_v18 }
 0x4d7   : > { %v4584_v19 = vpack.c.bf16 %v4535_v20, %v4534_v21  ;;  %v4537_v45 = vmax.f32 %v4473_v7, 0.0  ;;  %v4419_v21 = vunpack.c.h.bf16 %v320_v18  ;;  %v321_v7 = vld [vmem:[%s5998_s16 + $0xa8] sm:$0xff] }
 0x4d8   : > { %v4246_v23 = vpop.f32.mrf.mxu3 }
 0x4d9   : > { %4616 = vst [vmem:[%s7546_s12 + $0x70] sm:$0xff] %v4584_v19  ;;  %v4247_v10 = vadd.f32 %v4246_v23, %v7533_v53 }
 0x4da   : > { %v4338_v37 = vpop.f32.mrf.mxu0 }
 0x4db   : > { %v4472_v51 = vadd.f32 %v4408_v43, %v4247_v10  ;;  %v4339_v17 = vadd.f32 %v4338_v37, %v7523_v13 }
 0x4dd   : > { %v4536_v52 = vmax.f32 %v4472_v51, 0.0  ;;  %v4475_v36 = vadd.f32 %v4411_v57, %v4339_v17  ;;  %v4420_v57 = vunpack.c.l.bf16 %v321_v7 }
 0x4df   : > { %v4585_v54 = vpack.c.bf16 %v4537_v45, %v4536_v52  ;;  %v4539_v26 = vmax.f32 %v4475_v36, 0.0  ;;  %v4421_v52 = vunpack.c.h.bf16 %v321_v7  ;;  %v322_v36 = vld [vmem:[%s5998_s16 + $0xb0] sm:$0xff] }
 0x4e0   : > { %v4249_v2 = vpop.f32.mrf.mxu3 }
 0x4e1   : > { %4617 = vst [vmem:[%s7546_s12 + $0x78] sm:$0xff] %v4585_v54  ;;  %v4250_v63 = vadd.f32 %v4249_v2, %v7533_v53 }
 0x4e2   : > { %v4340_v44 = vpop.f32.mrf.mxu0 }
 0x4e3   : > { %v4474_v60 = vadd.f32 %v4410_v6, %v4250_v63  ;;  %v4341_v22 = vadd.f32 %v4340_v44, %v7523_v13 }
 0x4e5   : > { %v4538_v28 = vmax.f32 %v4474_v60, 0.0  ;;  %v4477_v40 = vadd.f32 %v4413_v46, %v4341_v22  ;;  %v4422_v46 = vunpack.c.l.bf16 %v322_v36 }
 0x4e7   : > { %v4586_v49 = vpack.c.bf16 %v4539_v26, %v4538_v28  ;;  %v4541_v9 = vmax.f32 %v4477_v40, 0.0  ;;  %v4423_v28 = vunpack.c.h.bf16 %v322_v36  ;;  %v323_v40 = vld [vmem:[%s5998_s16 + $0xb8] sm:$0xff] }
 0x4e8   : > { %v4251_v14 = vpop.f32.mrf.mxu3 }
 0x4e9   : > { %4618 = vst [vmem:[%s7546_s12 + $0x80] sm:$0xff] %v4586_v49  ;;  %v4252_v55 = vadd.f32 %v4251_v14, %v7533_v53 }
 0x4ea   : > { %v4343_v31 = vpop.f32.mrf.mxu0 }
 0x4eb   : > { %v4476_v34 = vadd.f32 %v4412_v4, %v4252_v55  ;;  %v4344_v56 = vadd.f32 %v4343_v31, %v7523_v13 }
 0x4ed   : > { %v4540_v5 = vmax.f32 %v4476_v34, 0.0  ;;  %v4479_v16 = vadd.f32 %v4415_v29, %v4344_v56  ;;  %v4424_v29 = vunpack.c.l.bf16 %v323_v40 }
 0x4ef   : > { %v4587_v24 = vpack.c.bf16 %v4541_v9, %v4540_v5  ;;  %v4543_v32 = vmax.f32 %v4479_v16, 0.0  ;;  %v4425_v5 = vunpack.c.h.bf16 %v323_v40  ;;  %v324_v16 = vld [vmem:[%s5998_s16 + $0xc0] sm:$0xff] }
 0x4f0   : > { %v4254_v39 = vpop.f32.mrf.mxu3 }
 0x4f1   : > { %4619 = vst [vmem:[%s7546_s12 + $0x88] sm:$0xff] %v4587_v24  ;;  %v4255_v11 = vadd.f32 %v4254_v39, %v7533_v53 }
 0x4f2   : > { %v4345_v47 = vpop.f32.mrf.mxu0 }
 0x4f3   : > { %v4478_v8 = vadd.f32 %v4414_v48, %v4255_v11  ;;  %v4346_v62 = vadd.f32 %v4345_v47, %v7523_v13 }
 0x4f5   : > { %v4542_v35 = vmax.f32 %v4478_v8, 0.0  ;;  %v4481_v15 = vadd.f32 %v4417_v0, %v4346_v62  ;;  %v4426_v0 = vunpack.c.l.bf16 %v324_v16 }
 0x4f7   : > { %v4588_v41 = vpack.c.bf16 %v4543_v32, %v4542_v35  ;;  %v4545_v42 = vmax.f32 %v4481_v15, 0.0  ;;  %v4427_v35 = vunpack.c.h.bf16 %v324_v16  ;;  %v325_v15 = vld [vmem:[%s5998_s16 + $0xc8] sm:$0xff] }
 0x4f8   : > { %v4256_v61 = vpop.f32.mrf.mxu3 }
 0x4f9   : > { %4620 = vst [vmem:[%s7546_s12 + $0x90] sm:$0xff] %v4588_v41  ;;  %v4257_v27 = vadd.f32 %v4256_v61, %v7533_v53 }
 0x4fa   : > { %v4348_v1 = vpop.f32.mrf.mxu0 }
 0x4fb   : > { %v4480_v33 = vadd.f32 %v4416_v50, %v4257_v27  ;;  %v4349_v20 = vadd.f32 %v4348_v1, %v7523_v13 }
 0x4fd   : > { %v4544_v25 = vmax.f32 %v4480_v33, 0.0  ;;  %v4483_v43 = vadd.f32 %v4419_v21, %v4349_v20  ;;  %v4428_v21 = vunpack.c.l.bf16 %v325_v15 }
 0x4ff   : > { %v4589_v59 = vpack.c.bf16 %v4545_v42, %v4544_v25  ;;  %v4547_v37 = vmax.f32 %v4483_v43, 0.0  ;;  %v4429_v25 = vunpack.c.h.bf16 %v325_v15  ;;  %v326_v43 = vld [vmem:[%s5998_s16 + $0xd0] sm:$0xff] }
 0x500   : > { %v4259_v19 = vpop.f32.mrf.mxu3 }
 0x501   : > { %4621 = vst [vmem:[%s7546_s12 + $0x98] sm:$0xff] %v4589_v59  ;;  %v4260_v23 = vadd.f32 %v4259_v19, %v7533_v53 }
 0x502   : > { %v4350_v10 = vpop.f32.mrf.mxu0 }
 0x503   : > { %v4482_v58 = vadd.f32 %v4418_v30, %v4260_v23  ;;  %v4351_v45 = vadd.f32 %v4350_v10, %v7523_v13 }
 0x505   : > { %v4546_v51 = vmax.f32 %v4482_v58, 0.0  ;;  %v4485_v6 = vadd.f32 %v4421_v52, %v4351_v45  ;;  %v4430_v52 = vunpack.c.l.bf16 %v326_v43 }
 0x507   : > { %v4590_v17 = vpack.c.bf16 %v4547_v37, %v4546_v51  ;;  %v4549_v44 = vmax.f32 %v4485_v6, 0.0  ;;  %v4431_v51 = vunpack.c.h.bf16 %v326_v43  ;;  %v327_v6 = vld [vmem:[%s5998_s16 + $0xd8] sm:$0xff] }
 0x508   : > { %v4261_v54 = vpop.f32.mrf.mxu3 }
 0x509   : > { %4622 = vst [vmem:[%s7546_s12 + $0xa0] sm:$0xff] %v4590_v17  ;;  %v4262_v2 = vadd.f32 %v4261_v54, %v7533_v53 }
 0x50a   : > { %v4353_v63 = vpop.f32.mrf.mxu0 }
 0x50b   : > { %v4484_v3 = vadd.f32 %v4420_v57, %v4262_v2  ;;  %v4354_v26 = vadd.f32 %v4353_v63, %v7523_v13 }
 0x50d   : > { %v4548_v60 = vmax.f32 %v4484_v3, 0.0  ;;  %v4487_v4 = vadd.f32 %v4423_v28, %v4354_v26  ;;  %v4432_v28 = vunpack.c.l.bf16 %v327_v6 }
 0x50f   : > { %v4591_v22 = vpack.c.bf16 %v4549_v44, %v4548_v60  ;;  %v4551_v31 = vmax.f32 %v4487_v4, 0.0  ;;  %v4433_v60 = vunpack.c.h.bf16 %v327_v6  ;;  %v328_v4 = vld [vmem:[%s5998_s16 + $0xe0] sm:$0xff] }
 0x510   : > { %v4264_v49 = vpop.f32.mrf.mxu3 }
 0x511   : > { %4623 = vst [vmem:[%s7546_s12 + $0xa8] sm:$0xff] %v4591_v22  ;;  %v4265_v14 = vadd.f32 %v4264_v49, %v7533_v53 }
 0x512   : > { %v4355_v55 = vpop.f32.mrf.mxu0 }
 0x513   : > { %v4486_v38 = vadd.f32 %v4422_v46, %v4265_v14  ;;  %v4356_v9 = vadd.f32 %v4355_v55, %v7523_v13 }
 0x515   : > { %v4550_v34 = vmax.f32 %v4486_v38, 0.0  ;;  %v4489_v48 = vadd.f32 %v4425_v5, %v4356_v9  ;;  %v4434_v5 = vunpack.c.l.bf16 %v328_v4 }
 0x517   : > { %v4592_v56 = vpack.c.bf16 %v4551_v31, %v4550_v34  ;;  %v4553_v47 = vmax.f32 %v4489_v48, 0.0  ;;  %v4435_v34 = vunpack.c.h.bf16 %v328_v4  ;;  %v329_v48 = vld [vmem:[%s5998_s16 + $0xe8] sm:$0xff] }
 0x518   : > { %v4266_v24 = vpop.f32.mrf.mxu3 }
 0x519   : > { %4624 = vst [vmem:[%s7546_s12 + $0xb0] sm:$0xff] %v4592_v56  ;;  %v4267_v39 = vadd.f32 %v4266_v24, %v7533_v53 }
 0x51a   : > { %v4358_v11 = vpop.f32.mrf.mxu0 }
 0x51b   : > { %v4488_v12 = vadd.f32 %v4424_v29, %v4267_v39  ;;  %v4359_v32 = vadd.f32 %v4358_v11, %v7523_v13 }
 0x51d   : > { %v4552_v8 = vmax.f32 %v4488_v12, 0.0  ;;  %v4491_v50 = vadd.f32 %v4427_v35, %v4359_v32  ;;  %v4436_v35 = vunpack.c.l.bf16 %v329_v48 }
 0x51f   : > { %v4593_v62 = vpack.c.bf16 %v4553_v47, %v4552_v8  ;;  %v4555_v1 = vmax.f32 %v4491_v50, 0.0  ;;  %v4437_v8 = vunpack.c.h.bf16 %v329_v48  ;;  %v330_v50 = vld [vmem:[%s5998_s16 + $0xf0] sm:$0xff] }
 0x520   : > { %v4269_v41 = vpop.f32.mrf.mxu3 }
 0x521   : > { %4625 = vst [vmem:[%s7546_s12 + $0xb8] sm:$0xff] %v4593_v62  ;;  %v4270_v61 = vadd.f32 %v4269_v41, %v7533_v53 }
 0x522   : > { %v4360_v27 = vpop.f32.mrf.mxu0 }
 0x523   : > { %v4490_v18 = vadd.f32 %v4426_v0, %v4270_v61  ;;  %v4361_v42 = vadd.f32 %v4360_v27, %v7523_v13 }
 0x525   : > { %v4554_v33 = vmax.f32 %v4490_v18, 0.0  ;;  %v4493_v30 = vadd.f32 %v4429_v25, %v4361_v42  ;;  %v4438_v25 = vunpack.c.l.bf16 %v330_v50 }
 0x527   : > { %v4594_v20 = vpack.c.bf16 %v4555_v1, %v4554_v33  ;;  %v4557_v10 = vmax.f32 %v4493_v30, 0.0  ;;  %v4439_v33 = vunpack.c.h.bf16 %v330_v50  ;;  %v331_v30 = vld [vmem:[%s5998_s16 + $0xf8] sm:$0xff]  ;;  %s4647_s16 = sshll.u32 %s7546_s12, 4  ;;  %s4648_s16 = int_to_ptr.vmem [resolvable:$true] %s4647_s16 }
 0x528   : > { %v4271_v59 = vpop.f32.mrf.mxu3 }
 0x529   : > { %4626 = vst [vmem:[%s7546_s12 + $0xc0] sm:$0xff] %v4594_v20  ;;  %v4272_v19 = vadd.f32 %v4271_v59, %v7533_v53 }
 0x52a   : > { %v4363_v23 = vpop.f32.mrf.mxu0 }
 0x52b   : > { %v4492_v7 = vadd.f32 %v4428_v21, %v4272_v19  ;;  %v4364_v37 = vadd.f32 %v4363_v23, %v7523_v13 }
 0x52d   : > { %v4556_v58 = vmax.f32 %v4492_v7, 0.0  ;;  %v4495_v57 = vadd.f32 %v4431_v51, %v4364_v37  ;;  %v4440_v51 = vunpack.c.l.bf16 %v331_v30 }
 0x52f   : > { %v4595_v45 = vpack.c.bf16 %v4557_v10, %v4556_v58  ;;  %v4559_v63 = vmax.f32 %v4495_v57, 0.0  ;;  %v4441_v58 = vunpack.c.h.bf16 %v331_v30 }
 0x530   : > { %v4274_v17 = vpop.f32.mrf.mxu3 }
 0x531   : > { %4627 = vst [vmem:[%s7546_s12 + $0xc8] sm:$0xff] %v4595_v45  ;;  %v4275_v54 = vadd.f32 %v4274_v17, %v7533_v53 }
 0x532   : > { %v4365_v2 = vpop.f32.mrf.mxu0 }
 0x533   : > { %v4494_v36 = vadd.f32 %v4430_v52, %v4275_v54  ;;  %v4366_v44 = vadd.f32 %v4365_v2, %v7523_v13 }
 0x535   : > { %v4558_v3 = vmax.f32 %v4494_v36, 0.0  ;;  %v4497_v46 = vadd.f32 %v4433_v60, %v4366_v44 }
 0x537   : > { %v4596_v26 = vpack.c.bf16 %v4559_v63, %v4558_v3  ;;  %v4561_v55 = vmax.f32 %v4497_v46, 0.0 }
 0x538   : > { %v4276_v22 = vpop.f32.mrf.mxu3 }
 0x539   : > { %4628 = vst [vmem:[%s7546_s12 + $0xd0] sm:$0xff] %v4596_v26  ;;  %v4277_v49 = vadd.f32 %v4276_v22, %v7533_v53 }
 0x53a   : > { %v4368_v14 = vpop.f32.mrf.mxu0 }
 0x53b   : > { %v4496_v40 = vadd.f32 %v4432_v28, %v4277_v49  ;;  %v4369_v31 = vadd.f32 %v4368_v14, %v7523_v13 }
 0x53d   : > { %v4560_v38 = vmax.f32 %v4496_v40, 0.0  ;;  %v4499_v29 = vadd.f32 %v4435_v34, %v4369_v31 }
 0x53f   : > { %v4597_v9 = vpack.c.bf16 %v4561_v55, %v4560_v38  ;;  %v4563_v11 = vmax.f32 %v4499_v29, 0.0 }
 0x540   : > { %v4279_v56 = vpop.f32.mrf.mxu3 }
 0x541   : > { %4629 = vst [vmem:[%s7546_s12 + $0xd8] sm:$0xff] %v4597_v9  ;;  %v4280_v24 = vadd.f32 %v4279_v56, %v7533_v53 }
 0x542   : > { %v4370_v39 = vpop.f32.mrf.mxu0 }
 0x543   : > { %v4498_v16 = vadd.f32 %v4434_v5, %v4280_v24  ;;  %v4371_v47 = vadd.f32 %v4370_v39, %v7523_v13 }
 0x545   : > { %v4562_v12 = vmax.f32 %v4498_v16, 0.0  ;;  %v4501_v0 = vadd.f32 %v4437_v8, %v4371_v47 }
 0x547   : > { %v4598_v32 = vpack.c.bf16 %v4563_v11, %v4562_v12  ;;  %v4565_v27 = vmax.f32 %v4501_v0, 0.0 }
 0x548   : > { %v4281_v62 = vpop.f32.mrf.mxu3 }
 0x549   : > { %4630 = vst [vmem:[%s7546_s12 + $0xe0] sm:$0xff] %v4598_v32  ;;  %v4282_v41 = vadd.f32 %v4281_v62, %v7533_v53 }
 0x54a   : > { %v4373_v61 = vpop.f32.mrf.mxu0 }
 0x54b   : > { %v4500_v15 = vadd.f32 %v4436_v35, %v4282_v41  ;;  %v4374_v1 = vadd.f32 %v4373_v61, %v7523_v13 }
 0x54d   : > { %v4564_v18 = vmax.f32 %v4500_v15, 0.0  ;;  %v4503_v21 = vadd.f32 %v4439_v33, %v4374_v1 }
 0x54f   : > { %v4599_v42 = vpack.c.bf16 %v4565_v27, %v4564_v18  ;;  %v4567_v23 = vmax.f32 %v4503_v21, 0.0 }
 0x550   : > { %v4284_v20 = vpop.f32.mrf.mxu3 }
 0x551   : > { %4631 = vst [vmem:[%s7546_s12 + $0xe8] sm:$0xff] %v4599_v42  ;;  %v4285_v59 = vadd.f32 %v4284_v20, %v7533_v53 }
 0x552   : > { %v4375_v19 = vpop.f32.mrf.mxu0 }
 0x553   : > { %v4502_v43 = vadd.f32 %v4438_v25, %v4285_v59  ;;  %v4376_v10 = vadd.f32 %v4375_v19, %v7523_v13 }
 0x555   : > { %v4566_v7 = vmax.f32 %v4502_v43, 0.0  ;;  %v4505_v52 = vadd.f32 %v4441_v58, %v4376_v10 }
 0x557   : > { %v4600_v37 = vpack.c.bf16 %v4567_v23, %v4566_v7  ;;  %v4569_v13 = vmax.f32 %v4505_v52, 0.0 }
 0x558   : > { %v4286_v45 = vpop.f32.mrf.mxu3 }
 0x559   : > { %4632 = vst [vmem:[%s7546_s12 + $0xf0] sm:$0xff] %v4600_v37  ;;  %v4287_v17 = vadd.f32 %v4286_v45, %v7533_v53 }
 0x55b   : > { %v4504_v57 = vadd.f32 %v4440_v51, %v4287_v17 }
 0x55d   : > { %v4568_v54 = vmax.f32 %v4504_v57, 0.0 }
 0x55f   : > { %v4601_v6 = vpack.c.bf16 %v4569_v13, %v4568_v54 }
 0x561   : > { %4633 = vst [vmem:[%s7546_s12 + $0xf8] sm:$0xff] %v4601_v6 }
 0x562   : > { %5817 = shalt.err (!%p5814_p4)
}
 0x563   : > { %s5864_s22 = smov 128   ;;  %s5865_s12 = smov 8  }
 0x564   : > { %5703 = dma.vmem_to_hbm [thread:$0]  (%p5956_p11), %s4648_s16, 4096, %s4650_s23, %s4635_s28, %s5864_s22, %s5864_s22, %s5865_s12  }
 0x565 PF: > { %s4664_s15 = sand.u32 1, %s5844_s24   ;;  %p7925_p7 = scmp.ge.s32.totalorder %s5856_s27, 2 }
 0x566   : > { %s4665_s20 = scalar_lea.sflag [#allocation5], %s4664_s15 }
 0x567   : > { %p5710_p5 = pnand %p7925_p7, %p5960_p12 }
 0x569   : > { %p5711_p8 = pneg %p5710_p5 }
 0x56b   : > { %5839 = dma.done.wait (%p5711_p8), %s4665_s20, 4096  }
 0x56c   : > { %5841 = vsyncadd (%p5711_p8), %s4665_s20, 4294963200  ;;  %s7926_s9 = sld [smem:[#allocation9_spill]]  ;;  %p20_p10 = scmp.ge.s32.totalorder %s5931_s30, 4  }
 0x56d   : > { %s7927_s24 = smov %s5848_s25  ;;  %s7928_s25 = smov %s5852_s26 }
 0x56e   : > { %s7930_s27 = smov %s5931_s30  ;;  %22 = sbr.rel (!%p20_p10) target bundleno = 5 (0x5), region = 95 }
 0x572   : > { %s7929_s26 = smov %s7926_s9 }
 0x573   :  { %4671 = vsyncpa [#allocation4], 1 }
 0x574   :  { %4673 = vsyncpa [#allocation4 + $0x1], 1 }
 0x575   :  { %4674 = vsyncpa [#allocation5], 1 }
 0x576   :  { %4676 = vsyncpa [#allocation5 + $0x1], 1 }

</bundles_post_ra>
